<compile_context>
chip_gen: v7x
topology: tpu7x:2x2x1
jax: 0.10.0
libtpu: 0.0.40
codegen_flags: <defaults>
</compile_context>

<pallas_src>
import functools

import jax
import jax.numpy as jnp
from jax import lax
from jax.experimental import pallas as pl
from jax.experimental.pallas import tpu as pltpu


# Model constants (CIFAR LeNet from the PyTorch spec).
_H = _W = 32          # input spatial size
_K = 5                # conv kernel size
_CANVAS = _H * _W     # per-image flat canvas length (1024)


def _rup128(v):
    return ((int(v) + 127) // 128) * 128


def _widths(batch):
    """Per-stage canvas widths so every static shifted slice stays in bounds.

    Max lane shift each stage applies when reading its input:
      conv1 : i*W + j               <= 4*W + 4
      pool1 : {0, 1, W, W+1}        <= W + 1
      conv2 : 2*(i*W + j)           <= 2*(4*W + 4)
      pool2 : {0, 2, 2W, 2W+2}      <= 2*W + 2
      fc1   : gathers lane b*CANVAS + 4*(qy*W + qx) <= (B-1)*CANVAS + 4*(4*W+4)
    """
    p2w = _rup128((batch - 1) * _CANVAS + 4 * (4 * _W + 4) + 1)
    c2w = _rup128(p2w + 2 * _W + 2)
    p1w = _rup128(c2w + 2 * (4 * _W + 4))
    c1w = _rup128(p1w + _W + 1)
    xw = _rup128(c1w + 4 * _W + 4)
    return c1w, p1w, c2w, p2w, xw


# ----------------------------------------------------------------------------
# The single fused kernel
# ----------------------------------------------------------------------------
def _lenet_kernel(x_ref, w1_ref, b1_ref, w2_ref, b2_ref,
                  w1fc_ref, b1fc_ref, w2fc_ref, b2fc_ref,
                  w3fc_ref, b3fc_ref, out_ref, *, batch, c1w, p1w, c2w, p2w):
    f32 = jnp.float32

    # ---- conv1 (3->6, k=5, VALID) as 25 shift-and-matmul steps + bias + relu.
    xv = x_ref[...]                               # [8, XW]    (3 valid channels)
    w1 = w1_ref[...]                              # [25*8, 8]  ([co, ci] per tap)
    acc1 = None
    for k in range(_K * _K):
        i, j = divmod(k, _K)
        d = i * _W + j
        t = jnp.dot(w1[k * 8:(k + 1) * 8, :], xv[:, d:d + c1w],
                    preferred_element_type=f32)
        acc1 = t if acc1 is None else acc1 + t
    a1 = jnp.maximum(acc1 + b1_ref[...], 0.0)     # [8, C1W]

    # ---- maxpool 2x2 / stride 2: results stay at even canvas lanes.
    p1 = jnp.maximum(jnp.maximum(a1[:, 0:p1w], a1[:, 1:1 + p1w]),
                     jnp.maximum(a1[:, _W:_W + p1w],
                                 a1[:, _W + 1:_W + 1 + p1w]))          # [8, P1W]

    # ---- conv2 (6->16, k=5) on the stride-2 ("dilated") canvas.
    w2 = w2_ref[...]                              # [25*16, 8]
    acc2 = None
    for k in range(_K * _K):
        i, j = divmod(k, _K)
        d = 2 * (i * _W + j)
        t = jnp.dot(w2[k * 16:(k + 1) * 16, :], p1[:, d:d + c2w],
                    preferred_element_type=f32)
        acc2 = t if acc2 is None else acc2 + t
    a2 = jnp.maximum(acc2 + b2_ref[...], 0.0)     # [16, C2W]

    # ---- maxpool 2x2 on the stride-2 grid: offsets {0, 2, 2W, 2W+2}.
    p2 = jnp.maximum(jnp.maximum(a2[:, 0:p2w], a2[:, 2:2 + p2w]),
                     jnp.maximum(a2[:, 2 * _W:2 * _W + p2w],
                                 a2[:, 2 * _W + 2:2 * _W + 2 + p2w]))  # [16, P2W]

    # ---- flatten: gather the 5x5 valid positions per image into [400, B].
    # Row order is q*16 + c; the fc1 weight columns were pre-permuted to match.
    blocks = []
    for q in range(_K * _K):
        qy, qx = divmod(q, _K)
        pos = 4 * (qy * _W + qx)
        cols = [p2[:, b * _CANVAS + pos:b * _CANVAS + pos + 1]
                for b in range(batch)]
        blocks.append(cols[0] if batch == 1 else jnp.concatenate(cols, axis=1))
    feat = jnp.concatenate(blocks, axis=0)        # [25*16, B]

    # ---- fully connected head (kept column-major: [features, B]).
    h1 = jnp.maximum(jnp.dot(w1fc_ref[...], feat, preferred_element_type=f32)
                     + b1fc_ref[...], 0.0)        # [128, B] (120 valid rows)
    h2 = jnp.maximum(jnp.dot(w2fc_ref[...], h1, preferred_element_type=f32)
                     + b2fc_ref[...], 0.0)        # [128, B] (84 valid rows)
    h3 = jnp.dot(w3fc_ref[...], h2, preferred_element_type=f32) + b3fc_ref[...]
    out_ref[...] = h3.astype(out_ref.dtype)       # [16, B] (10 valid rows)


# ----------------------------------------------------------------------------
# One-time weight repack (off the hot path, done outside jit)
# ----------------------------------------------------------------------------
def pack_params(p):
    f32 = jnp.float32

    def conv_pack(w, cout_pad, cin_pad):
        cout, cin = w.shape[0], w.shape[1]
        t = jnp.transpose(w, (2, 3, 0, 1)).reshape(_K * _K, cout, cin)
        t = jnp.pad(t, ((0, 0), (0, cout_pad - cout), (0, cin_pad - cin)))
        return t.reshape(_K * _K * cout_pad, cin_pad).astype(f32)

    def vec_pad(v, n):
        return jnp.pad(v, (0, n - v.shape[0])).reshape(n, 1).astype(f32)

    # fc1 weight: [120, 400] with input index c*25 + q  ->  [128, 400] with
    # column index q*16 + c (the order the kernel builds its feature matrix in).
    w1fc = p["fc1_w"].reshape(120, 16, _K * _K)               # [n, c, q]
    w1fc = jnp.transpose(w1fc, (0, 2, 1)).reshape(120, 400)   # [n, q*16 + c]
    w1fc = jnp.pad(w1fc, ((0, 8), (0, 0))).astype(f32)        # [128, 400]

    return {
        "w1": conv_pack(p["conv1_w"], 8, 8),      # [200, 8]
        "b1": vec_pad(p["conv1_b"], 8),           # [8, 1]
        "w2": conv_pack(p["conv2_w"], 16, 8),     # [400, 8]
        "b2": vec_pad(p["conv2_b"], 16),          # [16, 1]
        "w1fc": w1fc,                             # [128, 400]
        "b1fc": vec_pad(p["fc1_b"], 128),         # [128, 1]
        "w2fc": jnp.pad(p["fc2_w"], ((0, 128 - 84), (0, 128 - 120))).astype(f32),
        "b2fc": vec_pad(p["fc2_b"], 128),
        "w3fc": jnp.pad(p["fc3_w"], ((0, 16 - 10), (0, 128 - 84))).astype(f32),
        "b3fc": vec_pad(p["fc3_b"], 16),
    }


# ----------------------------------------------------------------------------
# Forward pass: layout prep (tiny) + one pallas_call + final 128-byte fixup
# ----------------------------------------------------------------------------
def net_forward(x_nchw, packed):
    batch = x_nchw.shape[0]
    c1w, p1w, c2w, p2w, xw = _widths(batch)

    # NCHW -> channel-major flat canvas [Cin_pad=8, XW], zero padded.
    xc = jnp.transpose(x_nchw.reshape(batch, 3, _CANVAS), (1, 0, 2))
    xc = xc.reshape(3, batch * _CANVAS)
    xc = jnp.pad(xc, ((0, 5), (0, xw - batch * _CANVAS))).astype(jnp.float32)

    kernel = functools.partial(_lenet_kernel, batch=batch,
                               c1w=c1w, p1w=p1w, c2w=c2w, p2w=p2w)
    operands = (xc, packed["w1"], packed["b1"], packed["w2"], packed["b2"],
                packed["w1fc"], packed["b1fc"], packed["w2fc"], packed["b2fc"],
                packed["w3fc"], packed["b3fc"])

    out = pl.pallas_call(
        kernel,
        out_shape=jax.ShapeDtypeStruct((16, batch), jnp.float32),
        grid=(1,),
        in_specs=[pl.BlockSpec(op.shape, lambda i: (0, 0)) for op in operands],
        out_specs=pl.BlockSpec((16, batch), lambda i: (0, 0)),
        compiler_params=pltpu.CompilerParams(
            dimension_semantics=("arbitrary",)),
    )(*operands)
    # TODO(synk): for large batch, tile the canvas over a leading 'parallel'
    # grid axis (sharding across v7x's two TensorCores) instead of one block.
    return out[:10, :].T    # [B, 10] in torch (flatten -> fc) order


# ----------------------------------------------------------------------------
# Pure-JAX reference (for a correctness cross-check in main)
# ----------------------------------------------------------------------------
def reference_forward(x, p):
    dn = ("NCHW", "OIHW", "NCHW")
    y = lax.conv_general_dilated(x, p["conv1_w"], (1, 1), "VALID",
                                 dimension_numbers=dn)
    y = jnp.maximum(y + p["conv1_b"][None, :, None, None], 0.0)
    y = lax.reduce_window(y, -jnp.inf, lax.max, (1, 1, 2, 2), (1, 1, 2, 2), "VALID")
    y = lax.conv_general_dilated(y, p["conv2_w"], (1, 1), "VALID",
                                 dimension_numbers=dn)
    y = jnp.maximum(y + p["conv2_b"][None, :, None, None], 0.0)
    y = lax.reduce_window(y, -jnp.inf, lax.max, (1, 1, 2, 2), (1, 1, 2, 2), "VALID")
    flat = y.reshape(y.shape[0], -1)
    h = jnp.maximum(flat @ p["fc1_w"].T + p["fc1_b"], 0.0)
    h = jnp.maximum(h @ p["fc2_w"].T + p["fc2_b"], 0.0)
    return h @ p["fc3_w"].T + p["fc3_b"]


# ----------------------------------------------------------------------------
# Deterministic parameter init (PyTorch-style uniform(-1/sqrt(fan_in), ...))
# ----------------------------------------------------------------------------
def init_params(key):
    def uinit(k, shape, fan_in):
        bound = 1.0 / jnp.sqrt(float(fan_in))
        return jax.random.uniform(k, shape, jnp.float32, -bound, bound)

    ks = jax.random.split(key, 10)
    return {
        "conv1_w": uinit(ks[0], (6, 3, 5, 5), 3 * 5 * 5),
        "conv1_b": uinit(ks[1], (6,), 3 * 5 * 5),
        "conv2_w": uinit(ks[2], (16, 6, 5, 5), 6 * 5 * 5),
        "conv2_b": uinit(ks[3], (16,), 6 * 5 * 5),
        "fc1_w":   uinit(ks[4], (120, 400), 400),
        "fc1_b":   uinit(ks[5], (120,), 400),
        "fc2_w":   uinit(ks[6], (84, 120), 120),
        "fc2_b":   uinit(ks[7], (84,), 120),
        "fc3_w":   uinit(ks[8], (10, 84), 84),
        "fc3_b":   uinit(ks[9], (10,), 84),
    }


if __name__ == "__main__":
    key = jax.random.PRNGKey(0)
    pkey, xkey = jax.random.split(key)
    params = init_params(pkey)
    packed = pack_params(params)   # one-time GEMM-ready repack (off hot path)

    # Input consistent with the module: 16*5*5 flatten => 3x32x32 images.
    x = jax.random.normal(xkey, (2, 3, 32, 32), dtype=jnp.float32)

    fwd = jax.jit(net_forward)
    out = fwd(x, packed)
    jax.block_until_ready(out)

    assert out.shape == (2, 10) and out.dtype == jnp.float32

    ref = reference_forward(x, params)
    assert jnp.allclose(out, ref, atol=5e-2, rtol=5e-2), \
        float(jnp.max(jnp.abs(out - ref)))

    print("KERNEL_OK")
</pallas_src>

<mosaic_0001>
module attributes {stable_mosaic.version = 11 : i64} {
  func.func @_lenet_kernel(%arg0: i32, %arg1: memref<8x2560xf32, #tpu.memory_space<vmem>>, %arg2: memref<200x8xf32, #tpu.memory_space<vmem>>, %arg3: memref<8x1xf32, #tpu.memory_space<vmem>>, %arg4: memref<400x8xf32, #tpu.memory_space<vmem>>, %arg5: memref<16x1xf32, #tpu.memory_space<vmem>>, %arg6: memref<128x400xf32, #tpu.memory_space<vmem>>, %arg7: memref<128x1xf32, #tpu.memory_space<vmem>>, %arg8: memref<128x128xf32, #tpu.memory_space<vmem>>, %arg9: memref<128x1xf32, #tpu.memory_space<vmem>>, %arg10: memref<16x128xf32, #tpu.memory_space<vmem>>, %arg11: memref<16x1xf32, #tpu.memory_space<vmem>>, %arg12: memref<16x2xf32, #tpu.memory_space<vmem>>) attributes {dimension_semantics = [#tpu.dimension_semantics<arbitrary>], iteration_bounds = array<i64: 1>, scalar_prefetch = 0 : i64, scratch_operands = 0 : i64, tpu.core_type = #tpu.core_type<tc>, window_params = [{pipeline_mode = #tpu.pipeline_mode<synchronous>, transform_indices = @transform_0, window_bounds = array<i64: 8, 2560>}, {pipeline_mode = #tpu.pipeline_mode<synchronous>, transform_indices = @transform_1, window_bounds = array<i64: 200, 8>}, {pipeline_mode = #tpu.pipeline_mode<synchronous>, transform_indices = @transform_2, window_bounds = array<i64: 8, 1>}, {pipeline_mode = #tpu.pipeline_mode<synchronous>, transform_indices = @transform_3, window_bounds = array<i64: 400, 8>}, {pipeline_mode = #tpu.pipeline_mode<synchronous>, transform_indices = @transform_4, window_bounds = array<i64: 16, 1>}, {pipeline_mode = #tpu.pipeline_mode<synchronous>, transform_indices = @transform_5, window_bounds = array<i64: 128, 400>}, {pipeline_mode = #tpu.pipeline_mode<synchronous>, transform_indices = @transform_6, window_bounds = array<i64: 128, 1>}, {pipeline_mode = #tpu.pipeline_mode<synchronous>, transform_indices = @transform_7, window_bounds = array<i64: 128, 128>}, {pipeline_mode = #tpu.pipeline_mode<synchronous>, transform_indices = @transform_8, window_bounds = array<i64: 128, 1>}, {pipeline_mode = #tpu.pipeline_mode<synchronous>, transform_indices = @transform_9, window_bounds = array<i64: 16, 128>}, {pipeline_mode = #tpu.pipeline_mode<synchronous>, transform_indices = @transform_10, window_bounds = array<i64: 16, 1>}, {pipeline_mode = #tpu.pipeline_mode<synchronous>, transform_indices = @transform_11, window_bounds = array<i64: 16, 2>}]} {
    %c0 = arith.constant 0 : index
    %c0_0 = arith.constant 0 : index
    %0 = vector.load %arg1[%c0, %c0_0] : memref<8x2560xf32, #tpu.memory_space<vmem>>, vector<8x2560xf32>
    %c0_1 = arith.constant 0 : index
    %c0_2 = arith.constant 0 : index
    %1 = vector.load %arg2[%c0_1, %c0_2] : memref<200x8xf32, #tpu.memory_space<vmem>>, vector<200x8xf32>
    %2 = vector.extract_strided_slice %1 {offsets = [0, 0], sizes = [8, 8], strides = [1, 1]} : vector<200x8xf32> to vector<8x8xf32>
    %3 = vector.extract_strided_slice %0 {offsets = [0, 0], sizes = [8, 2304], strides = [1, 1]} : vector<8x2560xf32> to vector<8x2304xf32>
    %cst = arith.constant dense<0.000000e+00> : vector<8x2304xf32>
    %4 = tpu.matmul %2, %3, %cst {dimension_numbers = #tpu.dot_dimension_numbers<[1], [0], [0], [1], [0, 0, 1, 1], [], []>} : vector<8x8xf32>, vector<8x2304xf32>, vector<8x2304xf32> -> vector<8x2304xf32>
    %5 = vector.extract_strided_slice %1 {offsets = [8, 0], sizes = [8, 8], strides = [1, 1]} : vector<200x8xf32> to vector<8x8xf32>
    %6 = vector.extract_strided_slice %0 {offsets = [0, 1], sizes = [8, 2304], strides = [1, 1]} : vector<8x2560xf32> to vector<8x2304xf32>
    %cst_3 = arith.constant dense<0.000000e+00> : vector<8x2304xf32>
    %7 = tpu.matmul %5, %6, %cst_3 {dimension_numbers = #tpu.dot_dimension_numbers<[1], [0], [0], [1], [0, 0, 1, 1], [], []>} : vector<8x8xf32>, vector<8x2304xf32>, vector<8x2304xf32> -> vector<8x2304xf32>
    %8 = arith.addf %4, %7 : vector<8x2304xf32>
    %9 = vector.extract_strided_slice %1 {offsets = [16, 0], sizes = [8, 8], strides = [1, 1]} : vector<200x8xf32> to vector<8x8xf32>
    %10 = vector.extract_strided_slice %0 {offsets = [0, 2], sizes = [8, 2304], strides = [1, 1]} : vector<8x2560xf32> to vector<8x2304xf32>
    %cst_4 = arith.constant dense<0.000000e+00> : vector<8x2304xf32>
    %11 = tpu.matmul %9, %10, %cst_4 {dimension_numbers = #tpu.dot_dimension_numbers<[1], [0], [0], [1], [0, 0, 1, 1], [], []>} : vector<8x8xf32>, vector<8x2304xf32>, vector<8x2304xf32> -> vector<8x2304xf32>
    %12 = arith.addf %8, %11 : vector<8x2304xf32>
    %13 = vector.extract_strided_slice %1 {offsets = [24, 0], sizes = [8, 8], strides = [1, 1]} : vector<200x8xf32> to vector<8x8xf32>
    %14 = vector.extract_strided_slice %0 {offsets = [0, 3], sizes = [8, 2304], strides = [1, 1]} : vector<8x2560xf32> to vector<8x2304xf32>
    %cst_5 = arith.constant dense<0.000000e+00> : vector<8x2304xf32>
    %15 = tpu.matmul %13, %14, %cst_5 {dimension_numbers = #tpu.dot_dimension_numbers<[1], [0], [0], [1], [0, 0, 1, 1], [], []>} : vector<8x8xf32>, vector<8x2304xf32>, vector<8x2304xf32> -> vector<8x2304xf32>
    %16 = arith.addf %12, %15 : vector<8x2304xf32>
    %17 = vector.extract_strided_slice %1 {offsets = [32, 0], sizes = [8, 8], strides = [1, 1]} : vector<200x8xf32> to vector<8x8xf32>
    %18 = vector.extract_strided_slice %0 {offsets = [0, 4], sizes = [8, 2304], strides = [1, 1]} : vector<8x2560xf32> to vector<8x2304xf32>
    %cst_6 = arith.constant dense<0.000000e+00> : vector<8x2304xf32>
    %19 = tpu.matmul %17, %18, %cst_6 {dimension_numbers = #tpu.dot_dimension_numbers<[1], [0], [0], [1], [0, 0, 1, 1], [], []>} : vector<8x8xf32>, vector<8x2304xf32>, vector<8x2304xf32> -> vector<8x2304xf32>
    %20 = arith.addf %16, %19 : vector<8x2304xf32>
    %21 = vector.extract_strided_slice %1 {offsets = [40, 0], sizes = [8, 8], strides = [1, 1]} : vector<200x8xf32> to vector<8x8xf32>
    %22 = vector.extract_strided_slice %0 {offsets = [0, 32], sizes = [8, 2304], strides = [1, 1]} : vector<8x2560xf32> to vector<8x2304xf32>
    %cst_7 = arith.constant dense<0.000000e+00> : vector<8x2304xf32>
    %23 = tpu.matmul %21, %22, %cst_7 {dimension_numbers = #tpu.dot_dimension_numbers<[1], [0], [0], [1], [0, 0, 1, 1], [], []>} : vector<8x8xf32>, vector<8x2304xf32>, vector<8x2304xf32> -> vector<8x2304xf32>
    %24 = arith.addf %20, %23 : vector<8x2304xf32>
    %25 = vector.extract_strided_slice %1 {offsets = [48, 0], sizes = [8, 8], strides = [1, 1]} : vector<200x8xf32> to vector<8x8xf32>
    %26 = vector.extract_strided_slice %0 {offsets = [0, 33], sizes = [8, 2304], strides = [1, 1]} : vector<8x2560xf32> to vector<8x2304xf32>
    %cst_8 = arith.constant dense<0.000000e+00> : vector<8x2304xf32>
    %27 = tpu.matmul %25, %26, %cst_8 {dimension_numbers = #tpu.dot_dimension_numbers<[1], [0], [0], [1], [0, 0, 1, 1], [], []>} : vector<8x8xf32>, vector<8x2304xf32>, vector<8x2304xf32> -> vector<8x2304xf32>
    %28 = arith.addf %24, %27 : vector<8x2304xf32>
    %29 = vector.extract_strided_slice %1 {offsets = [56, 0], sizes = [8, 8], strides = [1, 1]} : vector<200x8xf32> to vector<8x8xf32>
    %30 = vector.extract_strided_slice %0 {offsets = [0, 34], sizes = [8, 2304], strides = [1, 1]} : vector<8x2560xf32> to vector<8x2304xf32>
    %cst_9 = arith.constant dense<0.000000e+00> : vector<8x2304xf32>
    %31 = tpu.matmul %29, %30, %cst_9 {dimension_numbers = #tpu.dot_dimension_numbers<[1], [0], [0], [1], [0, 0, 1, 1], [], []>} : vector<8x8xf32>, vector<8x2304xf32>, vector<8x2304xf32> -> vector<8x2304xf32>
    %32 = arith.addf %28, %31 : vector<8x2304xf32>
    %33 = vector.extract_strided_slice %1 {offsets = [64, 0], sizes = [8, 8], strides = [1, 1]} : vector<200x8xf32> to vector<8x8xf32>
    %34 = vector.extract_strided_slice %0 {offsets = [0, 35], sizes = [8, 2304], strides = [1, 1]} : vector<8x2560xf32> to vector<8x2304xf32>
    %cst_10 = arith.constant dense<0.000000e+00> : vector<8x2304xf32>
    %35 = tpu.matmul %33, %34, %cst_10 {dimension_numbers = #tpu.dot_dimension_numbers<[1], [0], [0], [1], [0, 0, 1, 1], [], []>} : vector<8x8xf32>, vector<8x2304xf32>, vector<8x2304xf32> -> vector<8x2304xf32>
    %36 = arith.addf %32, %35 : vector<8x2304xf32>
    %37 = vector.extract_strided_slice %1 {offsets = [72, 0], sizes = [8, 8], strides = [1, 1]} : vector<200x8xf32> to vector<8x8xf32>
    %38 = vector.extract_strided_slice %0 {offsets = [0, 36], sizes = [8, 2304], strides = [1, 1]} : vector<8x2560xf32> to vector<8x2304xf32>
    %cst_11 = arith.constant dense<0.000000e+00> : vector<8x2304xf32>
    %39 = tpu.matmul %37, %38, %cst_11 {dimension_numbers = #tpu.dot_dimension_numbers<[1], [0], [0], [1], [0, 0, 1, 1], [], []>} : vector<8x8xf32>, vector<8x2304xf32>, vector<8x2304xf32> -> vector<8x2304xf32>
    %40 = arith.addf %36, %39 : vector<8x2304xf32>
    %41 = vector.extract_strided_slice %1 {offsets = [80, 0], sizes = [8, 8], strides = [1, 1]} : vector<200x8xf32> to vector<8x8xf32>
    %42 = vector.extract_strided_slice %0 {offsets = [0, 64], sizes = [8, 2304], strides = [1, 1]} : vector<8x2560xf32> to vector<8x2304xf32>
    %cst_12 = arith.constant dense<0.000000e+00> : vector<8x2304xf32>
    %43 = tpu.matmul %41, %42, %cst_12 {dimension_numbers = #tpu.dot_dimension_numbers<[1], [0], [0], [1], [0, 0, 1, 1], [], []>} : vector<8x8xf32>, vector<8x2304xf32>, vector<8x2304xf32> -> vector<8x2304xf32>
    %44 = arith.addf %40, %43 : vector<8x2304xf32>
    %45 = vector.extract_strided_slice %1 {offsets = [88, 0], sizes = [8, 8], strides = [1, 1]} : vector<200x8xf32> to vector<8x8xf32>
    %46 = vector.extract_strided_slice %0 {offsets = [0, 65], sizes = [8, 2304], strides = [1, 1]} : vector<8x2560xf32> to vector<8x2304xf32>
    %cst_13 = arith.constant dense<0.000000e+00> : vector<8x2304xf32>
    %47 = tpu.matmul %45, %46, %cst_13 {dimension_numbers = #tpu.dot_dimension_numbers<[1], [0], [0], [1], [0, 0, 1, 1], [], []>} : vector<8x8xf32>, vector<8x2304xf32>, vector<8x2304xf32> -> vector<8x2304xf32>
    %48 = arith.addf %44, %47 : vector<8x2304xf32>
    %49 = vector.extract_strided_slice %1 {offsets = [96, 0], sizes = [8, 8], strides = [1, 1]} : vector<200x8xf32> to vector<8x8xf32>
    %50 = vector.extract_strided_slice %0 {offsets = [0, 66], sizes = [8, 2304], strides = [1, 1]} : vector<8x2560xf32> to vector<8x2304xf32>
    %cst_14 = arith.constant dense<0.000000e+00> : vector<8x2304xf32>
    %51 = tpu.matmul %49, %50, %cst_14 {dimension_numbers = #tpu.dot_dimension_numbers<[1], [0], [0], [1], [0, 0, 1, 1], [], []>} : vector<8x8xf32>, vector<8x2304xf32>, vector<8x2304xf32> -> vector<8x2304xf32>
    %52 = arith.addf %48, %51 : vector<8x2304xf32>
    %53 = vector.extract_strided_slice %1 {offsets = [104, 0], sizes = [8, 8], strides = [1, 1]} : vector<200x8xf32> to vector<8x8xf32>
    %54 = vector.extract_strided_slice %0 {offsets = [0, 67], sizes = [8, 2304], strides = [1, 1]} : vector<8x2560xf32> to vector<8x2304xf32>
    %cst_15 = arith.constant dense<0.000000e+00> : vector<8x2304xf32>
    %55 = tpu.matmul %53, %54, %cst_15 {dimension_numbers = #tpu.dot_dimension_numbers<[1], [0], [0], [1], [0, 0, 1, 1], [], []>} : vector<8x8xf32>, vector<8x2304xf32>, vector<8x2304xf32> -> vector<8x2304xf32>
    %56 = arith.addf %52, %55 : vector<8x2304xf32>
    %57 = vector.extract_strided_slice %1 {offsets = [112, 0], sizes = [8, 8], strides = [1, 1]} : vector<200x8xf32> to vector<8x8xf32>
    %58 = vector.extract_strided_slice %0 {offsets = [0, 68], sizes = [8, 2304], strides = [1, 1]} : vector<8x2560xf32> to vector<8x2304xf32>
    %cst_16 = arith.constant dense<0.000000e+00> : vector<8x2304xf32>
    %59 = tpu.matmul %57, %58, %cst_16 {dimension_numbers = #tpu.dot_dimension_numbers<[1], [0], [0], [1], [0, 0, 1, 1], [], []>} : vector<8x8xf32>, vector<8x2304xf32>, vector<8x2304xf32> -> vector<8x2304xf32>
    %60 = arith.addf %56, %59 : vector<8x2304xf32>
    %61 = vector.extract_strided_slice %1 {offsets = [120, 0], sizes = [8, 8], strides = [1, 1]} : vector<200x8xf32> to vector<8x8xf32>
    %62 = vector.extract_strided_slice %0 {offsets = [0, 96], sizes = [8, 2304], strides = [1, 1]} : vector<8x2560xf32> to vector<8x2304xf32>
    %cst_17 = arith.constant dense<0.000000e+00> : vector<8x2304xf32>
    %63 = tpu.matmul %61, %62, %cst_17 {dimension_numbers = #tpu.dot_dimension_numbers<[1], [0], [0], [1], [0, 0, 1, 1], [], []>} : vector<8x8xf32>, vector<8x2304xf32>, vector<8x2304xf32> -> vector<8x2304xf32>
    %64 = arith.addf %60, %63 : vector<8x2304xf32>
    %65 = vector.extract_strided_slice %1 {offsets = [128, 0], sizes = [8, 8], strides = [1, 1]} : vector<200x8xf32> to vector<8x8xf32>
    %66 = vector.extract_strided_slice %0 {offsets = [0, 97], sizes = [8, 2304], strides = [1, 1]} : vector<8x2560xf32> to vector<8x2304xf32>
    %cst_18 = arith.constant dense<0.000000e+00> : vector<8x2304xf32>
    %67 = tpu.matmul %65, %66, %cst_18 {dimension_numbers = #tpu.dot_dimension_numbers<[1], [0], [0], [1], [0, 0, 1, 1], [], []>} : vector<8x8xf32>, vector<8x2304xf32>, vector<8x2304xf32> -> vector<8x2304xf32>
    %68 = arith.addf %64, %67 : vector<8x2304xf32>
    %69 = vector.extract_strided_slice %1 {offsets = [136, 0], sizes = [8, 8], strides = [1, 1]} : vector<200x8xf32> to vector<8x8xf32>
    %70 = vector.extract_strided_slice %0 {offsets = [0, 98], sizes = [8, 2304], strides = [1, 1]} : vector<8x2560xf32> to vector<8x2304xf32>
    %cst_19 = arith.constant dense<0.000000e+00> : vector<8x2304xf32>
    %71 = tpu.matmul %69, %70, %cst_19 {dimension_numbers = #tpu.dot_dimension_numbers<[1], [0], [0], [1], [0, 0, 1, 1], [], []>} : vector<8x8xf32>, vector<8x2304xf32>, vector<8x2304xf32> -> vector<8x2304xf32>
    %72 = arith.addf %68, %71 : vector<8x2304xf32>
    %73 = vector.extract_strided_slice %1 {offsets = [144, 0], sizes = [8, 8], strides = [1, 1]} : vector<200x8xf32> to vector<8x8xf32>
    %74 = vector.extract_strided_slice %0 {offsets = [0, 99], sizes = [8, 2304], strides = [1, 1]} : vector<8x2560xf32> to vector<8x2304xf32>
    %cst_20 = arith.constant dense<0.000000e+00> : vector<8x2304xf32>
    %75 = tpu.matmul %73, %74, %cst_20 {dimension_numbers = #tpu.dot_dimension_numbers<[1], [0], [0], [1], [0, 0, 1, 1], [], []>} : vector<8x8xf32>, vector<8x2304xf32>, vector<8x2304xf32> -> vector<8x2304xf32>
    %76 = arith.addf %72, %75 : vector<8x2304xf32>
    %77 = vector.extract_strided_slice %1 {offsets = [152, 0], sizes = [8, 8], strides = [1, 1]} : vector<200x8xf32> to vector<8x8xf32>
    %78 = vector.extract_strided_slice %0 {offsets = [0, 100], sizes = [8, 2304], strides = [1, 1]} : vector<8x2560xf32> to vector<8x2304xf32>
    %cst_21 = arith.constant dense<0.000000e+00> : vector<8x2304xf32>
    %79 = tpu.matmul %77, %78, %cst_21 {dimension_numbers = #tpu.dot_dimension_numbers<[1], [0], [0], [1], [0, 0, 1, 1], [], []>} : vector<8x8xf32>, vector<8x2304xf32>, vector<8x2304xf32> -> vector<8x2304xf32>
    %80 = arith.addf %76, %79 : vector<8x2304xf32>
    %81 = vector.extract_strided_slice %1 {offsets = [160, 0], sizes = [8, 8], strides = [1, 1]} : vector<200x8xf32> to vector<8x8xf32>
    %82 = vector.extract_strided_slice %0 {offsets = [0, 128], sizes = [8, 2304], strides = [1, 1]} : vector<8x2560xf32> to vector<8x2304xf32>
    %cst_22 = arith.constant dense<0.000000e+00> : vector<8x2304xf32>
    %83 = tpu.matmul %81, %82, %cst_22 {dimension_numbers = #tpu.dot_dimension_numbers<[1], [0], [0], [1], [0, 0, 1, 1], [], []>} : vector<8x8xf32>, vector<8x2304xf32>, vector<8x2304xf32> -> vector<8x2304xf32>
    %84 = arith.addf %80, %83 : vector<8x2304xf32>
    %85 = vector.extract_strided_slice %1 {offsets = [168, 0], sizes = [8, 8], strides = [1, 1]} : vector<200x8xf32> to vector<8x8xf32>
    %86 = vector.extract_strided_slice %0 {offsets = [0, 129], sizes = [8, 2304], strides = [1, 1]} : vector<8x2560xf32> to vector<8x2304xf32>
    %cst_23 = arith.constant dense<0.000000e+00> : vector<8x2304xf32>
    %87 = tpu.matmul %85, %86, %cst_23 {dimension_numbers = #tpu.dot_dimension_numbers<[1], [0], [0], [1], [0, 0, 1, 1], [], []>} : vector<8x8xf32>, vector<8x2304xf32>, vector<8x2304xf32> -> vector<8x2304xf32>
    %88 = arith.addf %84, %87 : vector<8x2304xf32>
    %89 = vector.extract_strided_slice %1 {offsets = [176, 0], sizes = [8, 8], strides = [1, 1]} : vector<200x8xf32> to vector<8x8xf32>
    %90 = vector.extract_strided_slice %0 {offsets = [0, 130], sizes = [8, 2304], strides = [1, 1]} : vector<8x2560xf32> to vector<8x2304xf32>
    %cst_24 = arith.constant dense<0.000000e+00> : vector<8x2304xf32>
    %91 = tpu.matmul %89, %90, %cst_24 {dimension_numbers = #tpu.dot_dimension_numbers<[1], [0], [0], [1], [0, 0, 1, 1], [], []>} : vector<8x8xf32>, vector<8x2304xf32>, vector<8x2304xf32> -> vector<8x2304xf32>
    %92 = arith.addf %88, %91 : vector<8x2304xf32>
    %93 = vector.extract_strided_slice %1 {offsets = [184, 0], sizes = [8, 8], strides = [1, 1]} : vector<200x8xf32> to vector<8x8xf32>
    %94 = vector.extract_strided_slice %0 {offsets = [0, 131], sizes = [8, 2304], strides = [1, 1]} : vector<8x2560xf32> to vector<8x2304xf32>
    %cst_25 = arith.constant dense<0.000000e+00> : vector<8x2304xf32>
    %95 = tpu.matmul %93, %94, %cst_25 {dimension_numbers = #tpu.dot_dimension_numbers<[1], [0], [0], [1], [0, 0, 1, 1], [], []>} : vector<8x8xf32>, vector<8x2304xf32>, vector<8x2304xf32> -> vector<8x2304xf32>
    %96 = arith.addf %92, %95 : vector<8x2304xf32>
    %97 = vector.extract_strided_slice %1 {offsets = [192, 0], sizes = [8, 8], strides = [1, 1]} : vector<200x8xf32> to vector<8x8xf32>
    %98 = vector.extract_strided_slice %0 {offsets = [0, 132], sizes = [8, 2304], strides = [1, 1]} : vector<8x2560xf32> to vector<8x2304xf32>
    %cst_26 = arith.constant dense<0.000000e+00> : vector<8x2304xf32>
    %99 = tpu.matmul %97, %98, %cst_26 {dimension_numbers = #tpu.dot_dimension_numbers<[1], [0], [0], [1], [0, 0, 1, 1], [], []>} : vector<8x8xf32>, vector<8x2304xf32>, vector<8x2304xf32> -> vector<8x2304xf32>
    %100 = arith.addf %96, %99 : vector<8x2304xf32>
    %c0_27 = arith.constant 0 : index
    %c0_28 = arith.constant 0 : index
    %101 = vector.load %arg3[%c0_27, %c0_28] : memref<8x1xf32, #tpu.memory_space<vmem>>, vector<8x1xf32>
    %102 = vector.broadcast %101 : vector<8x1xf32> to vector<8x2304xf32>
    %103 = arith.addf %100, %102 : vector<8x2304xf32>
    %cst_29 = arith.constant 0.000000e+00 : f32
    %104 = vector.broadcast %cst_29 : f32 to vector<8x2304xf32>
    %105 = arith.maximumf %103, %104 : vector<8x2304xf32>
    %106 = vector.extract_strided_slice %105 {offsets = [0, 0], sizes = [8, 2176], strides = [1, 1]} : vector<8x2304xf32> to vector<8x2176xf32>
    %107 = vector.extract_strided_slice %105 {offsets = [0, 1], sizes = [8, 2176], strides = [1, 1]} : vector<8x2304xf32> to vector<8x2176xf32>
    %108 = arith.maximumf %106, %107 : vector<8x2176xf32>
    %109 = vector.extract_strided_slice %105 {offsets = [0, 32], sizes = [8, 2176], strides = [1, 1]} : vector<8x2304xf32> to vector<8x2176xf32>
    %110 = vector.extract_strided_slice %105 {offsets = [0, 33], sizes = [8, 2176], strides = [1, 1]} : vector<8x2304xf32> to vector<8x2176xf32>
    %111 = arith.maximumf %109, %110 : vector<8x2176xf32>
    %112 = arith.maximumf %108, %111 : vector<8x2176xf32>
    %c0_30 = arith.constant 0 : index
    %c0_31 = arith.constant 0 : index
    %113 = vector.load %arg4[%c0_30, %c0_31] : memref<400x8xf32, #tpu.memory_space<vmem>>, vector<400x8xf32>
    %114 = vector.extract_strided_slice %113 {offsets = [0, 0], sizes = [16, 8], strides = [1, 1]} : vector<400x8xf32> to vector<16x8xf32>
    %115 = vector.extract_strided_slice %112 {offsets = [0, 0], sizes = [8, 1792], strides = [1, 1]} : vector<8x2176xf32> to vector<8x1792xf32>
    %cst_32 = arith.constant dense<0.000000e+00> : vector<16x1792xf32>
    %116 = tpu.matmul %114, %115, %cst_32 {dimension_numbers = #tpu.dot_dimension_numbers<[1], [0], [0], [1], [0, 0, 1, 1], [], []>} : vector<16x8xf32>, vector<8x1792xf32>, vector<16x1792xf32> -> vector<16x1792xf32>
    %117 = vector.extract_strided_slice %113 {offsets = [16, 0], sizes = [16, 8], strides = [1, 1]} : vector<400x8xf32> to vector<16x8xf32>
    %118 = vector.extract_strided_slice %112 {offsets = [0, 2], sizes = [8, 1792], strides = [1, 1]} : vector<8x2176xf32> to vector<8x1792xf32>
    %cst_33 = arith.constant dense<0.000000e+00> : vector<16x1792xf32>
    %119 = tpu.matmul %117, %118, %cst_33 {dimension_numbers = #tpu.dot_dimension_numbers<[1], [0], [0], [1], [0, 0, 1, 1], [], []>} : vector<16x8xf32>, vector<8x1792xf32>, vector<16x1792xf32> -> vector<16x1792xf32>
    %120 = arith.addf %116, %119 : vector<16x1792xf32>
    %121 = vector.extract_strided_slice %113 {offsets = [32, 0], sizes = [16, 8], strides = [1, 1]} : vector<400x8xf32> to vector<16x8xf32>
    %122 = vector.extract_strided_slice %112 {offsets = [0, 4], sizes = [8, 1792], strides = [1, 1]} : vector<8x2176xf32> to vector<8x1792xf32>
    %cst_34 = arith.constant dense<0.000000e+00> : vector<16x1792xf32>
    %123 = tpu.matmul %121, %122, %cst_34 {dimension_numbers = #tpu.dot_dimension_numbers<[1], [0], [0], [1], [0, 0, 1, 1], [], []>} : vector<16x8xf32>, vector<8x1792xf32>, vector<16x1792xf32> -> vector<16x1792xf32>
    %124 = arith.addf %120, %123 : vector<16x1792xf32>
    %125 = vector.extract_strided_slice %113 {offsets = [48, 0], sizes = [16, 8], strides = [1, 1]} : vector<400x8xf32> to vector<16x8xf32>
    %126 = vector.extract_strided_slice %112 {offsets = [0, 6], sizes = [8, 1792], strides = [1, 1]} : vector<8x2176xf32> to vector<8x1792xf32>
    %cst_35 = arith.constant dense<0.000000e+00> : vector<16x1792xf32>
    %127 = tpu.matmul %125, %126, %cst_35 {dimension_numbers = #tpu.dot_dimension_numbers<[1], [0], [0], [1], [0, 0, 1, 1], [], []>} : vector<16x8xf32>, vector<8x1792xf32>, vector<16x1792xf32> -> vector<16x1792xf32>
    %128 = arith.addf %124, %127 : vector<16x1792xf32>
    %129 = vector.extract_strided_slice %113 {offsets = [64, 0], sizes = [16, 8], strides = [1, 1]} : vector<400x8xf32> to vector<16x8xf32>
    %130 = vector.extract_strided_slice %112 {offsets = [0, 8], sizes = [8, 1792], strides = [1, 1]} : vector<8x2176xf32> to vector<8x1792xf32>
    %cst_36 = arith.constant dense<0.000000e+00> : vector<16x1792xf32>
    %131 = tpu.matmul %129, %130, %cst_36 {dimension_numbers = #tpu.dot_dimension_numbers<[1], [0], [0], [1], [0, 0, 1, 1], [], []>} : vector<16x8xf32>, vector<8x1792xf32>, vector<16x1792xf32> -> vector<16x1792xf32>
    %132 = arith.addf %128, %131 : vector<16x1792xf32>
    %133 = vector.extract_strided_slice %113 {offsets = [80, 0], sizes = [16, 8], strides = [1, 1]} : vector<400x8xf32> to vector<16x8xf32>
    %134 = vector.extract_strided_slice %112 {offsets = [0, 64], sizes = [8, 1792], strides = [1, 1]} : vector<8x2176xf32> to vector<8x1792xf32>
    %cst_37 = arith.constant dense<0.000000e+00> : vector<16x1792xf32>
    %135 = tpu.matmul %133, %134, %cst_37 {dimension_numbers = #tpu.dot_dimension_numbers<[1], [0], [0], [1], [0, 0, 1, 1], [], []>} : vector<16x8xf32>, vector<8x1792xf32>, vector<16x1792xf32> -> vector<16x1792xf32>
    %136 = arith.addf %132, %135 : vector<16x1792xf32>
    %137 = vector.extract_strided_slice %113 {offsets = [96, 0], sizes = [16, 8], strides = [1, 1]} : vector<400x8xf32> to vector<16x8xf32>
    %138 = vector.extract_strided_slice %112 {offsets = [0, 66], sizes = [8, 1792], strides = [1, 1]} : vector<8x2176xf32> to vector<8x1792xf32>
    %cst_38 = arith.constant dense<0.000000e+00> : vector<16x1792xf32>
    %139 = tpu.matmul %137, %138, %cst_38 {dimension_numbers = #tpu.dot_dimension_numbers<[1], [0], [0], [1], [0, 0, 1, 1], [], []>} : vector<16x8xf32>, vector<8x1792xf32>, vector<16x1792xf32> -> vector<16x1792xf32>
    %140 = arith.addf %136, %139 : vector<16x1792xf32>
    %141 = vector.extract_strided_slice %113 {offsets = [112, 0], sizes = [16, 8], strides = [1, 1]} : vector<400x8xf32> to vector<16x8xf32>
    %142 = vector.extract_strided_slice %112 {offsets = [0, 68], sizes = [8, 1792], strides = [1, 1]} : vector<8x2176xf32> to vector<8x1792xf32>
    %cst_39 = arith.constant dense<0.000000e+00> : vector<16x1792xf32>
    %143 = tpu.matmul %141, %142, %cst_39 {dimension_numbers = #tpu.dot_dimension_numbers<[1], [0], [0], [1], [0, 0, 1, 1], [], []>} : vector<16x8xf32>, vector<8x1792xf32>, vector<16x1792xf32> -> vector<16x1792xf32>
    %144 = arith.addf %140, %143 : vector<16x1792xf32>
    %145 = vector.extract_strided_slice %113 {offsets = [128, 0], sizes = [16, 8], strides = [1, 1]} : vector<400x8xf32> to vector<16x8xf32>
    %146 = vector.extract_strided_slice %112 {offsets = [0, 70], sizes = [8, 1792], strides = [1, 1]} : vector<8x2176xf32> to vector<8x1792xf32>
    %cst_40 = arith.constant dense<0.000000e+00> : vector<16x1792xf32>
    %147 = tpu.matmul %145, %146, %cst_40 {dimension_numbers = #tpu.dot_dimension_numbers<[1], [0], [0], [1], [0, 0, 1, 1], [], []>} : vector<16x8xf32>, vector<8x1792xf32>, vector<16x1792xf32> -> vector<16x1792xf32>
    %148 = arith.addf %144, %147 : vector<16x1792xf32>
    %149 = vector.extract_strided_slice %113 {offsets = [144, 0], sizes = [16, 8], strides = [1, 1]} : vector<400x8xf32> to vector<16x8xf32>
    %150 = vector.extract_strided_slice %112 {offsets = [0, 72], sizes = [8, 1792], strides = [1, 1]} : vector<8x2176xf32> to vector<8x1792xf32>
    %cst_41 = arith.constant dense<0.000000e+00> : vector<16x1792xf32>
    %151 = tpu.matmul %149, %150, %cst_41 {dimension_numbers = #tpu.dot_dimension_numbers<[1], [0], [0], [1], [0, 0, 1, 1], [], []>} : vector<16x8xf32>, vector<8x1792xf32>, vector<16x1792xf32> -> vector<16x1792xf32>
    %152 = arith.addf %148, %151 : vector<16x1792xf32>
    %153 = vector.extract_strided_slice %113 {offsets = [160, 0], sizes = [16, 8], strides = [1, 1]} : vector<400x8xf32> to vector<16x8xf32>
    %154 = vector.extract_strided_slice %112 {offsets = [0, 128], sizes = [8, 1792], strides = [1, 1]} : vector<8x2176xf32> to vector<8x1792xf32>
    %cst_42 = arith.constant dense<0.000000e+00> : vector<16x1792xf32>
    %155 = tpu.matmul %153, %154, %cst_42 {dimension_numbers = #tpu.dot_dimension_numbers<[1], [0], [0], [1], [0, 0, 1, 1], [], []>} : vector<16x8xf32>, vector<8x1792xf32>, vector<16x1792xf32> -> vector<16x1792xf32>
    %156 = arith.addf %152, %155 : vector<16x1792xf32>
    %157 = vector.extract_strided_slice %113 {offsets = [176, 0], sizes = [16, 8], strides = [1, 1]} : vector<400x8xf32> to vector<16x8xf32>
    %158 = vector.extract_strided_slice %112 {offsets = [0, 130], sizes = [8, 1792], strides = [1, 1]} : vector<8x2176xf32> to vector<8x1792xf32>
    %cst_43 = arith.constant dense<0.000000e+00> : vector<16x1792xf32>
    %159 = tpu.matmul %157, %158, %cst_43 {dimension_numbers = #tpu.dot_dimension_numbers<[1], [0], [0], [1], [0, 0, 1, 1], [], []>} : vector<16x8xf32>, vector<8x1792xf32>, vector<16x1792xf32> -> vector<16x1792xf32>
    %160 = arith.addf %156, %159 : vector<16x1792xf32>
    %161 = vector.extract_strided_slice %113 {offsets = [192, 0], sizes = [16, 8], strides = [1, 1]} : vector<400x8xf32> to vector<16x8xf32>
    %162 = vector.extract_strided_slice %112 {offsets = [0, 132], sizes = [8, 1792], strides = [1, 1]} : vector<8x2176xf32> to vector<8x1792xf32>
    %cst_44 = arith.constant dense<0.000000e+00> : vector<16x1792xf32>
    %163 = tpu.matmul %161, %162, %cst_44 {dimension_numbers = #tpu.dot_dimension_numbers<[1], [0], [0], [1], [0, 0, 1, 1], [], []>} : vector<16x8xf32>, vector<8x1792xf32>, vector<16x1792xf32> -> vector<16x1792xf32>
    %164 = arith.addf %160, %163 : vector<16x1792xf32>
    %165 = vector.extract_strided_slice %113 {offsets = [208, 0], sizes = [16, 8], strides = [1, 1]} : vector<400x8xf32> to vector<16x8xf32>
    %166 = vector.extract_strided_slice %112 {offsets = [0, 134], sizes = [8, 1792], strides = [1, 1]} : vector<8x2176xf32> to vector<8x1792xf32>
    %cst_45 = arith.constant dense<0.000000e+00> : vector<16x1792xf32>
    %167 = tpu.matmul %165, %166, %cst_45 {dimension_numbers = #tpu.dot_dimension_numbers<[1], [0], [0], [1], [0, 0, 1, 1], [], []>} : vector<16x8xf32>, vector<8x1792xf32>, vector<16x1792xf32> -> vector<16x1792xf32>
    %168 = arith.addf %164, %167 : vector<16x1792xf32>
    %169 = vector.extract_strided_slice %113 {offsets = [224, 0], sizes = [16, 8], strides = [1, 1]} : vector<400x8xf32> to vector<16x8xf32>
    %170 = vector.extract_strided_slice %112 {offsets = [0, 136], sizes = [8, 1792], strides = [1, 1]} : vector<8x2176xf32> to vector<8x1792xf32>
    %cst_46 = arith.constant dense<0.000000e+00> : vector<16x1792xf32>
    %171 = tpu.matmul %169, %170, %cst_46 {dimension_numbers = #tpu.dot_dimension_numbers<[1], [0], [0], [1], [0, 0, 1, 1], [], []>} : vector<16x8xf32>, vector<8x1792xf32>, vector<16x1792xf32> -> vector<16x1792xf32>
    %172 = arith.addf %168, %171 : vector<16x1792xf32>
    %173 = vector.extract_strided_slice %113 {offsets = [240, 0], sizes = [16, 8], strides = [1, 1]} : vector<400x8xf32> to vector<16x8xf32>
    %174 = vector.extract_strided_slice %112 {offsets = [0, 192], sizes = [8, 1792], strides = [1, 1]} : vector<8x2176xf32> to vector<8x1792xf32>
    %cst_47 = arith.constant dense<0.000000e+00> : vector<16x1792xf32>
    %175 = tpu.matmul %173, %174, %cst_47 {dimension_numbers = #tpu.dot_dimension_numbers<[1], [0], [0], [1], [0, 0, 1, 1], [], []>} : vector<16x8xf32>, vector<8x1792xf32>, vector<16x1792xf32> -> vector<16x1792xf32>
    %176 = arith.addf %172, %175 : vector<16x1792xf32>
    %177 = vector.extract_strided_slice %113 {offsets = [256, 0], sizes = [16, 8], strides = [1, 1]} : vector<400x8xf32> to vector<16x8xf32>
    %178 = vector.extract_strided_slice %112 {offsets = [0, 194], sizes = [8, 1792], strides = [1, 1]} : vector<8x2176xf32> to vector<8x1792xf32>
    %cst_48 = arith.constant dense<0.000000e+00> : vector<16x1792xf32>
    %179 = tpu.matmul %177, %178, %cst_48 {dimension_numbers = #tpu.dot_dimension_numbers<[1], [0], [0], [1], [0, 0, 1, 1], [], []>} : vector<16x8xf32>, vector<8x1792xf32>, vector<16x1792xf32> -> vector<16x1792xf32>
    %180 = arith.addf %176, %179 : vector<16x1792xf32>
    %181 = vector.extract_strided_slice %113 {offsets = [272, 0], sizes = [16, 8], strides = [1, 1]} : vector<400x8xf32> to vector<16x8xf32>
    %182 = vector.extract_strided_slice %112 {offsets = [0, 196], sizes = [8, 1792], strides = [1, 1]} : vector<8x2176xf32> to vector<8x1792xf32>
    %cst_49 = arith.constant dense<0.000000e+00> : vector<16x1792xf32>
    %183 = tpu.matmul %181, %182, %cst_49 {dimension_numbers = #tpu.dot_dimension_numbers<[1], [0], [0], [1], [0, 0, 1, 1], [], []>} : vector<16x8xf32>, vector<8x1792xf32>, vector<16x1792xf32> -> vector<16x1792xf32>
    %184 = arith.addf %180, %183 : vector<16x1792xf32>
    %185 = vector.extract_strided_slice %113 {offsets = [288, 0], sizes = [16, 8], strides = [1, 1]} : vector<400x8xf32> to vector<16x8xf32>
    %186 = vector.extract_strided_slice %112 {offsets = [0, 198], sizes = [8, 1792], strides = [1, 1]} : vector<8x2176xf32> to vector<8x1792xf32>
    %cst_50 = arith.constant dense<0.000000e+00> : vector<16x1792xf32>
    %187 = tpu.matmul %185, %186, %cst_50 {dimension_numbers = #tpu.dot_dimension_numbers<[1], [0], [0], [1], [0, 0, 1, 1], [], []>} : vector<16x8xf32>, vector<8x1792xf32>, vector<16x1792xf32> -> vector<16x1792xf32>
    %188 = arith.addf %184, %187 : vector<16x1792xf32>
    %189 = vector.extract_strided_slice %113 {offsets = [304, 0], sizes = [16, 8], strides = [1, 1]} : vector<400x8xf32> to vector<16x8xf32>
    %190 = vector.extract_strided_slice %112 {offsets = [0, 200], sizes = [8, 1792], strides = [1, 1]} : vector<8x2176xf32> to vector<8x1792xf32>
    %cst_51 = arith.constant dense<0.000000e+00> : vector<16x1792xf32>
    %191 = tpu.matmul %189, %190, %cst_51 {dimension_numbers = #tpu.dot_dimension_numbers<[1], [0], [0], [1], [0, 0, 1, 1], [], []>} : vector<16x8xf32>, vector<8x1792xf32>, vector<16x1792xf32> -> vector<16x1792xf32>
    %192 = arith.addf %188, %191 : vector<16x1792xf32>
    %193 = vector.extract_strided_slice %113 {offsets = [320, 0], sizes = [16, 8], strides = [1, 1]} : vector<400x8xf32> to vector<16x8xf32>
    %194 = vector.extract_strided_slice %112 {offsets = [0, 256], sizes = [8, 1792], strides = [1, 1]} : vector<8x2176xf32> to vector<8x1792xf32>
    %cst_52 = arith.constant dense<0.000000e+00> : vector<16x1792xf32>
    %195 = tpu.matmul %193, %194, %cst_52 {dimension_numbers = #tpu.dot_dimension_numbers<[1], [0], [0], [1], [0, 0, 1, 1], [], []>} : vector<16x8xf32>, vector<8x1792xf32>, vector<16x1792xf32> -> vector<16x1792xf32>
    %196 = arith.addf %192, %195 : vector<16x1792xf32>
    %197 = vector.extract_strided_slice %113 {offsets = [336, 0], sizes = [16, 8], strides = [1, 1]} : vector<400x8xf32> to vector<16x8xf32>
    %198 = vector.extract_strided_slice %112 {offsets = [0, 258], sizes = [8, 1792], strides = [1, 1]} : vector<8x2176xf32> to vector<8x1792xf32>
    %cst_53 = arith.constant dense<0.000000e+00> : vector<16x1792xf32>
    %199 = tpu.matmul %197, %198, %cst_53 {dimension_numbers = #tpu.dot_dimension_numbers<[1], [0], [0], [1], [0, 0, 1, 1], [], []>} : vector<16x8xf32>, vector<8x1792xf32>, vector<16x1792xf32> -> vector<16x1792xf32>
    %200 = arith.addf %196, %199 : vector<16x1792xf32>
    %201 = vector.extract_strided_slice %113 {offsets = [352, 0], sizes = [16, 8], strides = [1, 1]} : vector<400x8xf32> to vector<16x8xf32>
    %202 = vector.extract_strided_slice %112 {offsets = [0, 260], sizes = [8, 1792], strides = [1, 1]} : vector<8x2176xf32> to vector<8x1792xf32>
    %cst_54 = arith.constant dense<0.000000e+00> : vector<16x1792xf32>
    %203 = tpu.matmul %201, %202, %cst_54 {dimension_numbers = #tpu.dot_dimension_numbers<[1], [0], [0], [1], [0, 0, 1, 1], [], []>} : vector<16x8xf32>, vector<8x1792xf32>, vector<16x1792xf32> -> vector<16x1792xf32>
    %204 = arith.addf %200, %203 : vector<16x1792xf32>
    %205 = vector.extract_strided_slice %113 {offsets = [368, 0], sizes = [16, 8], strides = [1, 1]} : vector<400x8xf32> to vector<16x8xf32>
    %206 = vector.extract_strided_slice %112 {offsets = [0, 262], sizes = [8, 1792], strides = [1, 1]} : vector<8x2176xf32> to vector<8x1792xf32>
    %cst_55 = arith.constant dense<0.000000e+00> : vector<16x1792xf32>
    %207 = tpu.matmul %205, %206, %cst_55 {dimension_numbers = #tpu.dot_dimension_numbers<[1], [0], [0], [1], [0, 0, 1, 1], [], []>} : vector<16x8xf32>, vector<8x1792xf32>, vector<16x1792xf32> -> vector<16x1792xf32>
    %208 = arith.addf %204, %207 : vector<16x1792xf32>
    %209 = vector.extract_strided_slice %113 {offsets = [384, 0], sizes = [16, 8], strides = [1, 1]} : vector<400x8xf32> to vector<16x8xf32>
    %210 = vector.extract_strided_slice %112 {offsets = [0, 264], sizes = [8, 1792], strides = [1, 1]} : vector<8x2176xf32> to vector<8x1792xf32>
    %cst_56 = arith.constant dense<0.000000e+00> : vector<16x1792xf32>
    %211 = tpu.matmul %209, %210, %cst_56 {dimension_numbers = #tpu.dot_dimension_numbers<[1], [0], [0], [1], [0, 0, 1, 1], [], []>} : vector<16x8xf32>, vector<8x1792xf32>, vector<16x1792xf32> -> vector<16x1792xf32>
    %212 = arith.addf %208, %211 : vector<16x1792xf32>
    %c0_57 = arith.constant 0 : index
    %c0_58 = arith.constant 0 : index
    %213 = vector.load %arg5[%c0_57, %c0_58] : memref<16x1xf32, #tpu.memory_space<vmem>>, vector<16x1xf32>
    %214 = vector.broadcast %213 : vector<16x1xf32> to vector<16x1792xf32>
    %215 = arith.addf %212, %214 : vector<16x1792xf32>
    %cst_59 = arith.constant 0.000000e+00 : f32
    %216 = vector.broadcast %cst_59 : f32 to vector<16x1792xf32>
    %217 = arith.maximumf %215, %216 : vector<16x1792xf32>
    %218 = vector.extract_strided_slice %217 {offsets = [0, 0], sizes = [16, 1664], strides = [1, 1]} : vector<16x1792xf32> to vector<16x1664xf32>
    %219 = vector.extract_strided_slice %217 {offsets = [0, 2], sizes = [16, 1664], strides = [1, 1]} : vector<16x1792xf32> to vector<16x1664xf32>
    %220 = arith.maximumf %218, %219 : vector<16x1664xf32>
    %221 = vector.extract_strided_slice %217 {offsets = [0, 64], sizes = [16, 1664], strides = [1, 1]} : vector<16x1792xf32> to vector<16x1664xf32>
    %222 = vector.extract_strided_slice %217 {offsets = [0, 66], sizes = [16, 1664], strides = [1, 1]} : vector<16x1792xf32> to vector<16x1664xf32>
    %223 = arith.maximumf %221, %222 : vector<16x1664xf32>
    %224 = arith.maximumf %220, %223 : vector<16x1664xf32>
    %225 = vector.extract_strided_slice %224 {offsets = [0, 0], sizes = [16, 1], strides = [1, 1]} : vector<16x1664xf32> to vector<16x1xf32>
    %226 = vector.extract_strided_slice %224 {offsets = [0, 1024], sizes = [16, 1], strides = [1, 1]} : vector<16x1664xf32> to vector<16x1xf32>
    %227 = tpu.concatenate %225, %226 in 1 : vector<16x1xf32>, vector<16x1xf32> -> vector<16x2xf32>
    %228 = vector.extract_strided_slice %224 {offsets = [0, 4], sizes = [16, 1], strides = [1, 1]} : vector<16x1664xf32> to vector<16x1xf32>
    %229 = vector.extract_strided_slice %224 {offsets = [0, 1028], sizes = [16, 1], strides = [1, 1]} : vector<16x1664xf32> to vector<16x1xf32>
    %230 = tpu.concatenate %228, %229 in 1 : vector<16x1xf32>, vector<16x1xf32> -> vector<16x2xf32>
    %231 = vector.extract_strided_slice %224 {offsets = [0, 8], sizes = [16, 1], strides = [1, 1]} : vector<16x1664xf32> to vector<16x1xf32>
    %232 = vector.extract_strided_slice %224 {offsets = [0, 1032], sizes = [16, 1], strides = [1, 1]} : vector<16x1664xf32> to vector<16x1xf32>
    %233 = tpu.concatenate %231, %232 in 1 : vector<16x1xf32>, vector<16x1xf32> -> vector<16x2xf32>
    %234 = vector.extract_strided_slice %224 {offsets = [0, 12], sizes = [16, 1], strides = [1, 1]} : vector<16x1664xf32> to vector<16x1xf32>
    %235 = vector.extract_strided_slice %224 {offsets = [0, 1036], sizes = [16, 1], strides = [1, 1]} : vector<16x1664xf32> to vector<16x1xf32>
    %236 = tpu.concatenate %234, %235 in 1 : vector<16x1xf32>, vector<16x1xf32> -> vector<16x2xf32>
    %237 = vector.extract_strided_slice %224 {offsets = [0, 16], sizes = [16, 1], strides = [1, 1]} : vector<16x1664xf32> to vector<16x1xf32>
    %238 = vector.extract_strided_slice %224 {offsets = [0, 1040], sizes = [16, 1], strides = [1, 1]} : vector<16x1664xf32> to vector<16x1xf32>
    %239 = tpu.concatenate %237, %238 in 1 : vector<16x1xf32>, vector<16x1xf32> -> vector<16x2xf32>
    %240 = vector.extract_strided_slice %224 {offsets = [0, 128], sizes = [16, 1], strides = [1, 1]} : vector<16x1664xf32> to vector<16x1xf32>
    %241 = vector.extract_strided_slice %224 {offsets = [0, 1152], sizes = [16, 1], strides = [1, 1]} : vector<16x1664xf32> to vector<16x1xf32>
    %242 = tpu.concatenate %240, %241 in 1 : vector<16x1xf32>, vector<16x1xf32> -> vector<16x2xf32>
    %243 = vector.extract_strided_slice %224 {offsets = [0, 132], sizes = [16, 1], strides = [1, 1]} : vector<16x1664xf32> to vector<16x1xf32>
    %244 = vector.extract_strided_slice %224 {offsets = [0, 1156], sizes = [16, 1], strides = [1, 1]} : vector<16x1664xf32> to vector<16x1xf32>
    %245 = tpu.concatenate %243, %244 in 1 : vector<16x1xf32>, vector<16x1xf32> -> vector<16x2xf32>
    %246 = vector.extract_strided_slice %224 {offsets = [0, 136], sizes = [16, 1], strides = [1, 1]} : vector<16x1664xf32> to vector<16x1xf32>
    %247 = vector.extract_strided_slice %224 {offsets = [0, 1160], sizes = [16, 1], strides = [1, 1]} : vector<16x1664xf32> to vector<16x1xf32>
    %248 = tpu.concatenate %246, %247 in 1 : vector<16x1xf32>, vector<16x1xf32> -> vector<16x2xf32>
    %249 = vector.extract_strided_slice %224 {offsets = [0, 140], sizes = [16, 1], strides = [1, 1]} : vector<16x1664xf32> to vector<16x1xf32>
    %250 = vector.extract_strided_slice %224 {offsets = [0, 1164], sizes = [16, 1], strides = [1, 1]} : vector<16x1664xf32> to vector<16x1xf32>
    %251 = tpu.concatenate %249, %250 in 1 : vector<16x1xf32>, vector<16x1xf32> -> vector<16x2xf32>
    %252 = vector.extract_strided_slice %224 {offsets = [0, 144], sizes = [16, 1], strides = [1, 1]} : vector<16x1664xf32> to vector<16x1xf32>
    %253 = vector.extract_strided_slice %224 {offsets = [0, 1168], sizes = [16, 1], strides = [1, 1]} : vector<16x1664xf32> to vector<16x1xf32>
    %254 = tpu.concatenate %252, %253 in 1 : vector<16x1xf32>, vector<16x1xf32> -> vector<16x2xf32>
    %255 = vector.extract_strided_slice %224 {offsets = [0, 256], sizes = [16, 1], strides = [1, 1]} : vector<16x1664xf32> to vector<16x1xf32>
    %256 = vector.extract_strided_slice %224 {offsets = [0, 1280], sizes = [16, 1], strides = [1, 1]} : vector<16x1664xf32> to vector<16x1xf32>
    %257 = tpu.concatenate %255, %256 in 1 : vector<16x1xf32>, vector<16x1xf32> -> vector<16x2xf32>
    %258 = vector.extract_strided_slice %224 {offsets = [0, 260], sizes = [16, 1], strides = [1, 1]} : vector<16x1664xf32> to vector<16x1xf32>
    %259 = vector.extract_strided_slice %224 {offsets = [0, 1284], sizes = [16, 1], strides = [1, 1]} : vector<16x1664xf32> to vector<16x1xf32>
    %260 = tpu.concatenate %258, %259 in 1 : vector<16x1xf32>, vector<16x1xf32> -> vector<16x2xf32>
    %261 = vector.extract_strided_slice %224 {offsets = [0, 264], sizes = [16, 1], strides = [1, 1]} : vector<16x1664xf32> to vector<16x1xf32>
    %262 = vector.extract_strided_slice %224 {offsets = [0, 1288], sizes = [16, 1], strides = [1, 1]} : vector<16x1664xf32> to vector<16x1xf32>
    %263 = tpu.concatenate %261, %262 in 1 : vector<16x1xf32>, vector<16x1xf32> -> vector<16x2xf32>
    %264 = vector.extract_strided_slice %224 {offsets = [0, 268], sizes = [16, 1], strides = [1, 1]} : vector<16x1664xf32> to vector<16x1xf32>
    %265 = vector.extract_strided_slice %224 {offsets = [0, 1292], sizes = [16, 1], strides = [1, 1]} : vector<16x1664xf32> to vector<16x1xf32>
    %266 = tpu.concatenate %264, %265 in 1 : vector<16x1xf32>, vector<16x1xf32> -> vector<16x2xf32>
    %267 = vector.extract_strided_slice %224 {offsets = [0, 272], sizes = [16, 1], strides = [1, 1]} : vector<16x1664xf32> to vector<16x1xf32>
    %268 = vector.extract_strided_slice %224 {offsets = [0, 1296], sizes = [16, 1], strides = [1, 1]} : vector<16x1664xf32> to vector<16x1xf32>
    %269 = tpu.concatenate %267, %268 in 1 : vector<16x1xf32>, vector<16x1xf32> -> vector<16x2xf32>
    %270 = vector.extract_strided_slice %224 {offsets = [0, 384], sizes = [16, 1], strides = [1, 1]} : vector<16x1664xf32> to vector<16x1xf32>
    %271 = vector.extract_strided_slice %224 {offsets = [0, 1408], sizes = [16, 1], strides = [1, 1]} : vector<16x1664xf32> to vector<16x1xf32>
    %272 = tpu.concatenate %270, %271 in 1 : vector<16x1xf32>, vector<16x1xf32> -> vector<16x2xf32>
    %273 = vector.extract_strided_slice %224 {offsets = [0, 388], sizes = [16, 1], strides = [1, 1]} : vector<16x1664xf32> to vector<16x1xf32>
    %274 = vector.extract_strided_slice %224 {offsets = [0, 1412], sizes = [16, 1], strides = [1, 1]} : vector<16x1664xf32> to vector<16x1xf32>
    %275 = tpu.concatenate %273, %274 in 1 : vector<16x1xf32>, vector<16x1xf32> -> vector<16x2xf32>
    %276 = vector.extract_strided_slice %224 {offsets = [0, 392], sizes = [16, 1], strides = [1, 1]} : vector<16x1664xf32> to vector<16x1xf32>
    %277 = vector.extract_strided_slice %224 {offsets = [0, 1416], sizes = [16, 1], strides = [1, 1]} : vector<16x1664xf32> to vector<16x1xf32>
    %278 = tpu.concatenate %276, %277 in 1 : vector<16x1xf32>, vector<16x1xf32> -> vector<16x2xf32>
    %279 = vector.extract_strided_slice %224 {offsets = [0, 396], sizes = [16, 1], strides = [1, 1]} : vector<16x1664xf32> to vector<16x1xf32>
    %280 = vector.extract_strided_slice %224 {offsets = [0, 1420], sizes = [16, 1], strides = [1, 1]} : vector<16x1664xf32> to vector<16x1xf32>
    %281 = tpu.concatenate %279, %280 in 1 : vector<16x1xf32>, vector<16x1xf32> -> vector<16x2xf32>
    %282 = vector.extract_strided_slice %224 {offsets = [0, 400], sizes = [16, 1], strides = [1, 1]} : vector<16x1664xf32> to vector<16x1xf32>
    %283 = vector.extract_strided_slice %224 {offsets = [0, 1424], sizes = [16, 1], strides = [1, 1]} : vector<16x1664xf32> to vector<16x1xf32>
    %284 = tpu.concatenate %282, %283 in 1 : vector<16x1xf32>, vector<16x1xf32> -> vector<16x2xf32>
    %285 = vector.extract_strided_slice %224 {offsets = [0, 512], sizes = [16, 1], strides = [1, 1]} : vector<16x1664xf32> to vector<16x1xf32>
    %286 = vector.extract_strided_slice %224 {offsets = [0, 1536], sizes = [16, 1], strides = [1, 1]} : vector<16x1664xf32> to vector<16x1xf32>
    %287 = tpu.concatenate %285, %286 in 1 : vector<16x1xf32>, vector<16x1xf32> -> vector<16x2xf32>
    %288 = vector.extract_strided_slice %224 {offsets = [0, 516], sizes = [16, 1], strides = [1, 1]} : vector<16x1664xf32> to vector<16x1xf32>
    %289 = vector.extract_strided_slice %224 {offsets = [0, 1540], sizes = [16, 1], strides = [1, 1]} : vector<16x1664xf32> to vector<16x1xf32>
    %290 = tpu.concatenate %288, %289 in 1 : vector<16x1xf32>, vector<16x1xf32> -> vector<16x2xf32>
    %291 = vector.extract_strided_slice %224 {offsets = [0, 520], sizes = [16, 1], strides = [1, 1]} : vector<16x1664xf32> to vector<16x1xf32>
    %292 = vector.extract_strided_slice %224 {offsets = [0, 1544], sizes = [16, 1], strides = [1, 1]} : vector<16x1664xf32> to vector<16x1xf32>
    %293 = tpu.concatenate %291, %292 in 1 : vector<16x1xf32>, vector<16x1xf32> -> vector<16x2xf32>
    %294 = vector.extract_strided_slice %224 {offsets = [0, 524], sizes = [16, 1], strides = [1, 1]} : vector<16x1664xf32> to vector<16x1xf32>
    %295 = vector.extract_strided_slice %224 {offsets = [0, 1548], sizes = [16, 1], strides = [1, 1]} : vector<16x1664xf32> to vector<16x1xf32>
    %296 = tpu.concatenate %294, %295 in 1 : vector<16x1xf32>, vector<16x1xf32> -> vector<16x2xf32>
    %297 = vector.extract_strided_slice %224 {offsets = [0, 528], sizes = [16, 1], strides = [1, 1]} : vector<16x1664xf32> to vector<16x1xf32>
    %298 = vector.extract_strided_slice %224 {offsets = [0, 1552], sizes = [16, 1], strides = [1, 1]} : vector<16x1664xf32> to vector<16x1xf32>
    %299 = tpu.concatenate %297, %298 in 1 : vector<16x1xf32>, vector<16x1xf32> -> vector<16x2xf32>
    %300 = tpu.concatenate %227, %230, %233, %236, %239, %242, %245, %248, %251, %254, %257, %260, %263, %266, %269, %272 in 0 : vector<16x2xf32>, vector<16x2xf32>, vector<16x2xf32>, vector<16x2xf32>, vector<16x2xf32>, vector<16x2xf32>, vector<16x2xf32>, vector<16x2xf32>, vector<16x2xf32>, vector<16x2xf32>, vector<16x2xf32>, vector<16x2xf32>, vector<16x2xf32>, vector<16x2xf32>, vector<16x2xf32>, vector<16x2xf32> -> vector<256x2xf32>
    %301 = tpu.concatenate %275, %278, %281, %284, %287, %290, %293, %296, %299 in 0 : vector<16x2xf32>, vector<16x2xf32>, vector<16x2xf32>, vector<16x2xf32>, vector<16x2xf32>, vector<16x2xf32>, vector<16x2xf32>, vector<16x2xf32>, vector<16x2xf32> -> vector<144x2xf32>
    %302 = tpu.concatenate %300, %301 in 0 : vector<256x2xf32>, vector<144x2xf32> -> vector<400x2xf32>
    %c0_60 = arith.constant 0 : index
    %c0_61 = arith.constant 0 : index
    %303 = vector.load %arg6[%c0_60, %c0_61] : memref<128x400xf32, #tpu.memory_space<vmem>>, vector<128x400xf32>
    %cst_62 = arith.constant dense<0.000000e+00> : vector<128x2xf32>
    %304 = tpu.matmul %303, %302, %cst_62 {dimension_numbers = #tpu.dot_dimension_numbers<[1], [0], [0], [1], [0, 0, 1, 1], [], []>} : vector<128x400xf32>, vector<400x2xf32>, vector<128x2xf32> -> vector<128x2xf32>
    %c0_63 = arith.constant 0 : index
    %c0_64 = arith.constant 0 : index
    %305 = vector.load %arg7[%c0_63, %c0_64] : memref<128x1xf32, #tpu.memory_space<vmem>>, vector<128x1xf32>
    %306 = vector.broadcast %305 : vector<128x1xf32> to vector<128x2xf32>
    %307 = arith.addf %304, %306 : vector<128x2xf32>
    %cst_65 = arith.constant 0.000000e+00 : f32
    %308 = vector.broadcast %cst_65 : f32 to vector<128x2xf32>
    %309 = arith.maximumf %307, %308 : vector<128x2xf32>
    %c0_66 = arith.constant 0 : index
    %c0_67 = arith.constant 0 : index
    %310 = vector.load %arg8[%c0_66, %c0_67] : memref<128x128xf32, #tpu.memory_space<vmem>>, vector<128x128xf32>
    %cst_68 = arith.constant dense<0.000000e+00> : vector<128x2xf32>
    %311 = tpu.matmul %310, %309, %cst_68 {dimension_numbers = #tpu.dot_dimension_numbers<[1], [0], [0], [1], [0, 0, 1, 1], [], []>} : vector<128x128xf32>, vector<128x2xf32>, vector<128x2xf32> -> vector<128x2xf32>
    %c0_69 = arith.constant 0 : index
    %c0_70 = arith.constant 0 : index
    %312 = vector.load %arg9[%c0_69, %c0_70] : memref<128x1xf32, #tpu.memory_space<vmem>>, vector<128x1xf32>
    %313 = vector.broadcast %312 : vector<128x1xf32> to vector<128x2xf32>
    %314 = arith.addf %311, %313 : vector<128x2xf32>
    %cst_71 = arith.constant 0.000000e+00 : f32
    %315 = vector.broadcast %cst_71 : f32 to vector<128x2xf32>
    %316 = arith.maximumf %314, %315 : vector<128x2xf32>
    %c0_72 = arith.constant 0 : index
    %c0_73 = arith.constant 0 : index
    %317 = vector.load %arg10[%c0_72, %c0_73] : memref<16x128xf32, #tpu.memory_space<vmem>>, vector<16x128xf32>
    %cst_74 = arith.constant dense<0.000000e+00> : vector<16x2xf32>
    %318 = tpu.matmul %317, %316, %cst_74 {dimension_numbers = #tpu.dot_dimension_numbers<[1], [0], [0], [1], [0, 0, 1, 1], [], []>} : vector<16x128xf32>, vector<128x2xf32>, vector<16x2xf32> -> vector<16x2xf32>
    %c0_75 = arith.constant 0 : index
    %c0_76 = arith.constant 0 : index
    %319 = vector.load %arg11[%c0_75, %c0_76] : memref<16x1xf32, #tpu.memory_space<vmem>>, vector<16x1xf32>
    %320 = vector.broadcast %319 : vector<16x1xf32> to vector<16x2xf32>
    %321 = arith.addf %318, %320 : vector<16x2xf32>
    %c0_77 = arith.constant 0 : index
    %c0_78 = arith.constant 0 : index
    %322 = vector.load %arg12[%c0_77, %c0_78] : memref<16x2xf32, #tpu.memory_space<vmem>>, vector<16x2xf32>
    tpu.vector_store %arg12[%c0_77, %c0_78], %321 {strides = array<i32>} : memref<16x2xf32, #tpu.memory_space<vmem>>, vector<16x2xf32>,
    return
  }
  func.func @transform_0(%arg0: i32) -> (i32, i32) {
    %c0_i32 = arith.constant 0 : i32
    %c0_i32_0 = arith.constant 0 : i32
    %c0_i32_1 = arith.constant 0 : i32
    return %c0_i32, %c0_i32_0 : i32, i32
  }
  func.func @transform_1(%arg0: i32) -> (i32, i32) {
    %c0_i32 = arith.constant 0 : i32
    %c0_i32_0 = arith.constant 0 : i32
    %c0_i32_1 = arith.constant 0 : i32
    return %c0_i32, %c0_i32_0 : i32, i32
  }
  func.func @transform_2(%arg0: i32) -> (i32, i32) {
    %c0_i32 = arith.constant 0 : i32
    %c0_i32_0 = arith.constant 0 : i32
    %c0_i32_1 = arith.constant 0 : i32
    return %c0_i32, %c0_i32_0 : i32, i32
  }
  func.func @transform_3(%arg0: i32) -> (i32, i32) {
    %c0_i32 = arith.constant 0 : i32
    %c0_i32_0 = arith.constant 0 : i32
    %c0_i32_1 = arith.constant 0 : i32
    return %c0_i32, %c0_i32_0 : i32, i32
  }
  func.func @transform_4(%arg0: i32) -> (i32, i32) {
    %c0_i32 = arith.constant 0 : i32
    %c0_i32_0 = arith.constant 0 : i32
    %c0_i32_1 = arith.constant 0 : i32
    return %c0_i32, %c0_i32_0 : i32, i32
  }
  func.func @transform_5(%arg0: i32) -> (i32, i32) {
    %c0_i32 = arith.constant 0 : i32
    %c0_i32_0 = arith.constant 0 : i32
    %c0_i32_1 = arith.constant 0 : i32
    return %c0_i32, %c0_i32_0 : i32, i32
  }
  func.func @transform_6(%arg0: i32) -> (i32, i32) {
    %c0_i32 = arith.constant 0 : i32
    %c0_i32_0 = arith.constant 0 : i32
    %c0_i32_1 = arith.constant 0 : i32
    return %c0_i32, %c0_i32_0 : i32, i32
  }
  func.func @transform_7(%arg0: i32) -> (i32, i32) {
    %c0_i32 = arith.constant 0 : i32
    %c0_i32_0 = arith.constant 0 : i32
    %c0_i32_1 = arith.constant 0 : i32
    return %c0_i32, %c0_i32_0 : i32, i32
  }
  func.func @transform_8(%arg0: i32) -> (i32, i32) {
    %c0_i32 = arith.constant 0 : i32
    %c0_i32_0 = arith.constant 0 : i32
    %c0_i32_1 = arith.constant 0 : i32
    return %c0_i32, %c0_i32_0 : i32, i32
  }
  func.func @transform_9(%arg0: i32) -> (i32, i32) {
    %c0_i32 = arith.constant 0 : i32
    %c0_i32_0 = arith.constant 0 : i32
    %c0_i32_1 = arith.constant 0 : i32
    return %c0_i32, %c0_i32_0 : i32, i32
  }
  func.func @transform_10(%arg0: i32) -> (i32, i32) {
    %c0_i32 = arith.constant 0 : i32
    %c0_i32_0 = arith.constant 0 : i32
    %c0_i32_1 = arith.constant 0 : i32
    return %c0_i32, %c0_i32_0 : i32, i32
  }
  func.func @transform_11(%arg0: i32) -> (i32, i32) {
    %c0_i32 = arith.constant 0 : i32
    %c0_i32_0 = arith.constant 0 : i32
    %c0_i32_1 = arith.constant 0 : i32
    return %c0_i32, %c0_i32_0 : i32, i32
  }
}

</mosaic_0001>

<bundles_post_ra>
// kernel: net_forward.1
= control target key start
LH: loop header
LB: loop body
LE: loop exit
PB: predicated region body
PF: predicated region fallthrough
CT: control target
= control target key end

     0   :  { %v44298_v2 = vmov 0.0   ;;  %s37058_s21 = smov 127   ;;  %s37059_s13 = smov 126   ;;  %vm140_vm0 = vcmask 1039360   ;;  %vm177_vm1 = vcmask 64512   ;;  %vm1500_vm2 = vcmask 1031168   ;;  %s44285_s0 = inlined_call_operand.vmem [shape: f32[8,2560], index: 0, kind: input, shape index: {}]   ;;  %s44286_s1 = inlined_call_operand.vmem [shape: f32[200,8], index: 1, kind: input, shape index: {}]   ;;  %s44287_s2 = inlined_call_operand.vmem [shape: f32[8,1], index: 2, kind: input, shape index: {}]   ;;  %s44288_s3 = inlined_call_operand.vmem [shape: f32[400,8], index: 3, kind: input, shape index: {}]   ;;  %s44289_s4 = inlined_call_operand.vmem [shape: f32[16,1], index: 4, kind: input, shape index: {}]   ;;  %s44290_s5 = inlined_call_operand.vmem [shape: f32[128,400], index: 5, kind: input, shape index: {}]   ;;  %s44291_s6 = inlined_call_operand.vmem [shape: f32[128,1], index: 6, kind: input, shape index: {}]   ;;  %s44292_s8 = inlined_call_operand.vmem [shape: f32[128,1], index: 8, kind: input, shape index: {}]   ;;  %s44293_s10 = inlined_call_operand.vmem [shape: f32[16,1], index: 10, kind: input, shape index: {}]   ;;  %s44294_s7 = inlined_call_operand.vmem [shape: f32[128,128], index: 7, kind: input, shape index: {}]   ;;  %s44295_s9 = inlined_call_operand.vmem [shape: f32[16,128], index: 9, kind: input, shape index: {}]   ;;  %s44296_s11 = inlined_call_operand.vmem [shape: f32[16,2], index: 11, kind: output, shape index: {}]  }
   0x1   :  { %v37152_v0 = vld [vmem:[%s44285_s0 + $0x8] sm:$0xff]  ;;  %v37157_v1 = vld [vmem:[%s44285_s0] sm:$0xff]  ;;  %245 = vmatprep.mubr.f32.mxu0 %v44298_v2  ;;  %458 = vmatprep.mubr.f32.mxu1 %v44298_v2  ;;  %v37168_v3 = vld [vmem:[%s44285_s0 + $0x10] sm:$0xff]  ;;  %s37060_s14 = smov 125   ;;  %s37061_s15 = smov 124   ;;  %vm2235_vm3 = vcmask 1022976  }
   0x2   :  { %104 = vrot.lane.b32.xlu0 %v37152_v0, %s37058_s21  ;;  %102 = vrot.lane.b32.xlu1 %v37157_v1, %s37058_s21  ;;  %v37173_v4 = vld [vmem:[%s44285_s0 + $0x18] sm:$0xff]  ;;  %v37182_v5 = vld [vmem:[%s44285_s0 + $0x20] sm:$0xff]  ;;  %s37062_s18 = smov 96   ;;  %s37063_s28 = smov 95   ;;  %vm2970_vm4 = vcmask 1014784   ;;  %vm3705_vm5 = vcmask 785408  }
   0x3   :  { %v37187_v6 = vld [vmem:[%s44285_s0 + $0x28] sm:$0xff]  ;;  %v37196_v7 = vld [vmem:[%s44285_s0 + $0x30] sm:$0xff]  ;;  %v37215_v10 = vld [vmem:[%s44285_s0 + $0x40] sm:$0xff]  ;;  %s37064_s17 = smov 94   ;;  %s37065_s22 = smov 93   ;;  %vm4440_vm6 = vcmask 777216  }
   0x4   :  { %v37201_v8 = vld [vmem:[%s44285_s0 + $0x48] sm:$0xff]  ;;  %v37210_v9 = vld [vmem:[%s44285_s0 + $0x50] sm:$0xff]  ;;  %v37238_v13 = vld [vmem:[%s44285_s0 + $0x60] sm:$0xff]  ;;  %s37066_s25 = smov 92   ;;  %vm5175_vm7 = vcmask 769024   ;;  %s37067_s12 = smov 64  }
   0x5   :  { %v37224_v11 = vld [vmem:[%s44285_s0 + $0x68] sm:$0xff]  ;;  %v37229_v12 = vld [vmem:[%s44285_s0 + $0x70] sm:$0xff]  ;;  %v37257_v16 = vld [vmem:[%s44285_s0 + $0x80] sm:$0xff]  ;;  %vm5910_vm8 = vcmask 760832   ;;  %s37068_s30 = smov 63   ;;  %vm6645_vm9 = vcmask 752640  }
   0x6   :  { %106 = vrot.lane.b32.xlu0 %v37168_v3, %s37058_s21  ;;  %108 = vrot.lane.b32.xlu1 %v37173_v4, %s37058_s21  ;;  %v37243_v14 = vld [vmem:[%s44285_s0 + $0x88] sm:$0xff]  ;;  %v37252_v15 = vld [vmem:[%s44285_s0 + $0x90] sm:$0xff]  ;;  %vm7380_vm10 = vcmask 523264   ;;  %s37070_s23 = smov 61   ;;  %vm8115_vm11 = vcmask 515072   ;;  %s37071_s27 = smov 60  }
   0x7   :  { %v37357_v22 = vld [vmem:[%s44286_s1 + $0x8] sm:$0xff]  ;;  %v37383_v28 = vld [vmem:[%s44285_s0 + $0x38] sm:$0xff]  ;;  %v37490_v51 = vld [vmem:[%s44286_s1] sm:$0xff]  ;;  %vm8850_vm12 = vcmask 506880   ;;  %s37072_s29 = smov 32   ;;  %vm9585_vm13 = vcmask 498688  }
   0x8   :  { %v37427_v37 = vld [vmem:[%s44285_s0 + $0x58] sm:$0xff]  ;;  %s37073_s26 = smov 31   ;;  %vm10320_vm14 = vcmask 490496   ;;  %s37074_s24 = smov 30   ;;  %vm11055_vm15 = vcmask 261120  }
   0x9   :  { %v37459_v44 = vld [vmem:[%s44285_s0 + $0x78] sm:$0xff]  ;;  %s37076_s19 = smov 28  }
   0xa   :  { %110 = vrot.lane.b32.xlu0 %v37182_v5, %s37058_s21  ;;  %112 = vrot.lane.b32.xlu1 %v37187_v6, %s37058_s21 }
   0xe   :  { %114 = vrot.lane.b32.xlu0 %v37196_v7, %s37058_s21  ;;  %120 = vrot.lane.b32.xlu1 %v37201_v8, %s37058_s21 }
  0x12   :  { %122 = vrot.lane.b32.xlu0 %v37210_v9, %s37058_s21  ;;  %118 = vrot.lane.b32.xlu1 %v37215_v10, %s37058_s21 }
  0x16   :  { %128 = vrot.lane.b32.xlu0 %v37224_v11, %s37058_s21  ;;  %130 = vrot.lane.b32.xlu1 %v37229_v12, %s37058_s21 }
  0x1a   :  { %126 = vrot.lane.b32.xlu0 %v37238_v13, %s37058_s21  ;;  %136 = vrot.lane.b32.xlu1 %v37243_v14, %s37058_s21 }
  0x1e   :  { %138 = vrot.lane.b32.xlu0 %v37252_v15, %s37058_s21  ;;  %134 = vrot.lane.b32.xlu1 %v37257_v16, %s37058_s21 }
  0x22   :  { %1464 = vrot.lane.b32.xlu0 %v37152_v0, %s37059_s13  ;;  %1466 = vrot.lane.b32.xlu1 %v37168_v3, %s37059_s13 }
  0x26   :  { %1462 = vrot.lane.b32.xlu0 %v37157_v1, %s37059_s13  ;;  %1472 = vrot.lane.b32.xlu1 %v37187_v6, %s37059_s13 }
  0x2a   :  { %1474 = vrot.lane.b32.xlu0 %v37196_v7, %s37059_s13  ;;  %1470 = vrot.lane.b32.xlu1 %v37182_v5, %s37059_s13 }
  0x2e   :  { %1480 = vrot.lane.b32.xlu0 %v37201_v8, %s37059_s13  ;;  %1482 = vrot.lane.b32.xlu1 %v37210_v9, %s37059_s13 }
  0x32   :  { %1478 = vrot.lane.b32.xlu0 %v37215_v10, %s37059_s13  ;;  %1488 = vrot.lane.b32.xlu1 %v37224_v11, %s37059_s13 }
  0x36   :  { %1490 = vrot.lane.b32.xlu0 %v37229_v12, %s37059_s13  ;;  %1486 = vrot.lane.b32.xlu1 %v37238_v13, %s37059_s13 }
  0x3a   :  { %1496 = vrot.lane.b32.xlu0 %v37243_v14, %s37059_s13  ;;  %1498 = vrot.lane.b32.xlu1 %v37252_v15, %s37059_s13 }
  0x3e   :  { %1494 = vrot.lane.b32.xlu0 %v37257_v16, %s37059_s13  ;;  %2199 = vrot.lane.b32.xlu1 %v37152_v0, %s37060_s14 }
  0x42   :  { %2201 = vrot.lane.b32.xlu0 %v37168_v3, %s37060_s14  ;;  %2197 = vrot.lane.b32.xlu1 %v37157_v1, %s37060_s14 }
  0x46   :  { %2207 = vrot.lane.b32.xlu0 %v37187_v6, %s37060_s14  ;;  %2209 = vrot.lane.b32.xlu1 %v37196_v7, %s37060_s14 }
  0x4a   :  { %2205 = vrot.lane.b32.xlu0 %v37182_v5, %s37060_s14  ;;  %2215 = vrot.lane.b32.xlu1 %v37201_v8, %s37060_s14 }
  0x4e   :  { %2217 = vrot.lane.b32.xlu0 %v37210_v9, %s37060_s14  ;;  %2213 = vrot.lane.b32.xlu1 %v37215_v10, %s37060_s14 }
  0x52   :  { %2223 = vrot.lane.b32.xlu0 %v37224_v11, %s37060_s14  ;;  %2225 = vrot.lane.b32.xlu1 %v37229_v12, %s37060_s14 }
  0x56   :  { %2221 = vrot.lane.b32.xlu0 %v37238_v13, %s37060_s14  ;;  %2231 = vrot.lane.b32.xlu1 %v37243_v14, %s37060_s14 }
  0x5a   :  { %2233 = vrot.lane.b32.xlu0 %v37252_v15, %s37060_s14  ;;  %2229 = vrot.lane.b32.xlu1 %v37257_v16, %s37060_s14 }
  0x5e   :  { %2934 = vrot.lane.b32.xlu0 %v37152_v0, %s37061_s15  ;;  %2936 = vrot.lane.b32.xlu1 %v37168_v3, %s37061_s15 }
  0x62   :  { %2932 = vrot.lane.b32.xlu0 %v37157_v1, %s37061_s15  ;;  %2942 = vrot.lane.b32.xlu1 %v37187_v6, %s37061_s15 }
  0x66   :  { %2944 = vrot.lane.b32.xlu0 %v37196_v7, %s37061_s15  ;;  %2940 = vrot.lane.b32.xlu1 %v37182_v5, %s37061_s15 }
  0x6a   :  { %2950 = vrot.lane.b32.xlu0 %v37201_v8, %s37061_s15  ;;  %2952 = vrot.lane.b32.xlu1 %v37210_v9, %s37061_s15 }
  0x6e   :  { %2948 = vrot.lane.b32.xlu0 %v37215_v10, %s37061_s15  ;;  %2958 = vrot.lane.b32.xlu1 %v37224_v11, %s37061_s15 }
  0x72   :  { %2960 = vrot.lane.b32.xlu0 %v37229_v12, %s37061_s15  ;;  %2956 = vrot.lane.b32.xlu1 %v37238_v13, %s37061_s15 }
  0x74   :  { %v105_v17 = vpop.permute.xlu0 %104  ;;  %v103_v18 = vpop.permute.xlu1 %102 }
  0x75   :  { %v141_v23 = vsel %vm140_vm0, %v103_v18, %v105_v17  ;;  %v37560_v18 = vld [vmem:[%s44286_s1 + $0x10] sm:$0xff] }
  0x76   :  { %2966 = vrot.lane.b32.xlu0 %v37243_v14, %s37061_s15  ;;  %2968 = vrot.lane.b32.xlu1 %v37252_v15, %s37061_s15 }
  0x78   :  { %v107_v19 = vpop.permute.xlu0 %106  ;;  %v109_v20 = vpop.permute.xlu1 %108 }
  0x79   :  { %v37352_v21 = vsel %vm140_vm0, %v105_v17, %v107_v19  ;;  %v37375_v27 = vsel %vm140_vm0, %v107_v19, %v109_v20 }
  0x7a   :  { %44507 = vst [vmem:[#allocation2_spill] sm:$0xff] %v37352_v21  ;;  %181 = vmatprep.subr.mxu0 %v37352_v21  ;;  %2964 = vrot.lane.b32.xlu0 %v37257_v16, %s37061_s15  ;;  %44509 = vst [vmem:[#allocation4_spill] sm:$0xff] %v37375_v27 }
  0x7b   :  { %3669 = vrot.lane.b32.xlu1 %v37152_v0, %s37062_s18  ;;  %182 = vmatpush1.msra.mxu0 %v141_v23 }
  0x7c   :  { %v111_v24 = vpop.permute.xlu0 %110  ;;  %v113_v25 = vpop.permute.xlu1 %112  ;;  %34650 = vmatmul.mubr.msk.f32.vlgmr.msra.gmra.mrb[0].mxu0 %vm177_vm1, %v37357_v22 }
  0x7d   :  { %v37368_v26 = vsel %vm140_vm0, %v109_v20, %v111_v24  ;;  %316 = vmatprep.mubr.f32.mxu0 %v44298_v2  ;;  %v37398_v32 = vsel %vm140_vm0, %v111_v24, %v113_v25 }
  0x7e   :  { %44508 = vst [vmem:[#allocation3_spill] sm:$0xff] %v37368_v26  ;;  %3671 = vrot.lane.b32.xlu0 %v37168_v3, %s37062_s18  ;;  %252 = vmatprep.subr.mxu0 %v37368_v26  ;;  %44511 = vst [vmem:[#allocation6_spill] sm:$0xff] %v37398_v32 }
  0x7f   :  { %3667 = vrot.lane.b32.xlu1 %v37157_v1, %s37062_s18  ;;  %253 = vmatpush1.msra.mxu0 %v37375_v27 }
  0x80   :  { %v37385_v29 = vpop.permute.xlu0 %114  ;;  %v121_v30 = vpop.permute.xlu1 %120  ;;  %34651 = vmatmul.mubr.msk.f32.vlgmr.msra.gmra.mrb[2].mxu0 %vm177_vm1, %v37357_v22 }
  0x81   :  { %v37391_v31 = vsel %vm140_vm0, %v113_v25, %v37385_v29  ;;  %387 = vmatprep.mubr.f32.mxu0 %v44298_v2 }
  0x82   :  { %44510 = vst [vmem:[#allocation5_spill] sm:$0xff] %v37391_v31  ;;  %116 = vrot.lane.b32.xlu0 %v37383_v28, %s37058_s21  ;;  %323 = vmatprep.subr.mxu0 %v37391_v31 }
  0x83   :  { %3677 = vrot.lane.b32.xlu1 %v37187_v6, %s37062_s18  ;;  %324 = vmatpush1.msra.mxu0 %v37398_v32 }
  0x84   :  { %v37403_v33 = vpop.permute.xlu0 %122  ;;  %v37405_v34 = vpop.permute.xlu1 %118  ;;  %34652 = vmatmul.mubr.msk.f32.vlgmr.msra.gmra.mrb[4].mxu0 %vm177_vm1, %v37357_v22 }
  0x85   :  { %v37411_v35 = vsel %vm140_vm0, %v121_v30, %v37403_v33  ;;  %v37415_v36 = vsel %vm140_vm0, %v37405_v34, %v121_v30  ;;  %529 = vmatprep.mubr.f32.mxu0 %v44298_v2 }
  0x86   :  { %44512 = vst [vmem:[#allocation7_spill] sm:$0xff] %v37411_v35  ;;  %44513 = vst [vmem:[#allocation8_spill] sm:$0xff] %v37415_v36  ;;  %3679 = vrot.lane.b32.xlu0 %v37196_v7, %s37062_s18  ;;  %465 = vmatprep.subr.mxu0 %v37411_v35  ;;  %v37864_v35 = vld [vmem:[%s44286_s1 + $0x28] sm:$0xff] }
  0x87   :  { %3675 = vrot.lane.b32.xlu1 %v37182_v5, %s37062_s18  ;;  %466 = vmatpush1.msra.mxu0 %v37415_v36 }
  0x88   :  { %v129_v38 = vpop.permute.xlu0 %128  ;;  %v37429_v39 = vpop.permute.xlu1 %130  ;;  %34654 = vmatmul.mubr.msk.f32.vlgmr.msra.gmra.mrb[6].mxu0 %vm177_vm1, %v37357_v22 }
  0x89   :  { %v37435_v40 = vsel %vm140_vm0, %v129_v38, %v37429_v39  ;;  %671 = vmatprep.mubr.f32.mxu0 %v44298_v2 }
  0x8a   :  { %44514 = vst [vmem:[#allocation9_spill] sm:$0xff] %v37435_v40  ;;  %124 = vrot.lane.b32.xlu0 %v37427_v37, %s37058_s21  ;;  %607 = vmatprep.subr.mxu0 %v37435_v40 }
  0x8b   :  { %3685 = vrot.lane.b32.xlu1 %v37201_v8, %s37062_s18 }
  0x8c   :  { %v37443_v41 = vpop.permute.xlu0 %126  ;;  %v137_v42 = vpop.permute.xlu1 %136 }
  0x8d   :  { %v37447_v43 = vsel %vm140_vm0, %v37443_v41, %v129_v38 }
  0x8e   :  { %44515 = vst [vmem:[#allocation10_spill] sm:$0xff] %v37447_v43  ;;  %3687 = vrot.lane.b32.xlu0 %v37210_v9, %s37062_s18  ;;  %608 = vmatpush1.msra.mxu0 %v37447_v43 }
  0x8f   :  { %3683 = vrot.lane.b32.xlu1 %v37215_v10, %s37062_s18  ;;  %34656 = vmatmul.mubr.msk.f32.vlgmr.msra.gmra.mrb[8].mxu0 %vm177_vm1, %v37357_v22 }
  0x90   :  { %v37461_v45 = vpop.permute.xlu0 %138  ;;  %v37463_v46 = vpop.permute.xlu1 %134  ;;  %813 = vmatprep.mubr.f32.mxu0 %v44298_v2 }
  0x91   :  { %44516 = vst [vmem:[#allocation11_spill] sm:$0xff] %v37461_v45  ;;  %v37468_v47 = vsel %vm140_vm0, %v137_v42, %v37461_v45  ;;  %v37472_v48 = vsel %vm140_vm0, %v37463_v46, %v137_v42 }
  0x92   :  { %44517 = vst [vmem:[#allocation12_spill] sm:$0xff] %v37468_v47  ;;  %44518 = vst [vmem:[#allocation13_spill] sm:$0xff] %v37472_v48  ;;  %132 = vrot.lane.b32.xlu0 %v37459_v44, %s37058_s21  ;;  %749 = vmatprep.subr.mxu0 %v37468_v47 }
  0x93   :  { %3693 = vrot.lane.b32.xlu1 %v37224_v11, %s37062_s18  ;;  %750 = vmatpush1.msra.mxu0 %v37472_v48 }
  0x94   :  { %v1465_v49 = vpop.permute.xlu0 %1464  ;;  %34658 = vmatmul.mubr.msk.f32.vlgmr.msra.gmra.mrb[10].mxu0 %vm177_vm1, %v37357_v22  ;;  %v37482_v50 = vpop.permute.xlu1 %1466  ;;  %823 = vmatprep.subr.mxu0 %v37152_v0 }
  0x95   :  { %824 = vmatpush1.msra.mxu0 %v37157_v1  ;;  %887 = vmatprep.mubr.f32.mxu0 %v44298_v2  ;;  %v37537_v60 = vsel %vm1500_vm2, %v1465_v49, %v37482_v50 }
  0x96   :  { %3695 = vrot.lane.b32.xlu0 %v37229_v12, %s37062_s18  ;;  %965 = vmatprep.subr.mxu0 %v37187_v6  ;;  %44519 = vst [vmem:[#allocation14_spill] sm:$0xff] %v37537_v60 }
  0x97   :  { %3691 = vrot.lane.b32.xlu1 %v37238_v13, %s37062_s18 }
  0x98   :  { %v1463_v52 = vpop.permute.xlu0 %1462  ;;  %34659 = vmatmul.mubr.msk.f32.vlgmr.msra.gmra.mrb[0].mxu0 %vm177_vm1, %v37490_v51  ;;  %v1473_v53 = vpop.permute.xlu1 %1472 }
  0x99   :  { %966 = vmatpush1.msra.mxu0 %v37182_v5  ;;  %1029 = vmatprep.mubr.f32.mxu0 %v44298_v2  ;;  %v1501_v61 = vsel %vm1500_vm2, %v1463_v52, %v1465_v49 }
  0x9a   :  { %3701 = vrot.lane.b32.xlu0 %v37243_v14, %s37062_s18  ;;  %1107 = vmatprep.subr.mxu0 %v37201_v8 }
  0x9b   :  { %3703 = vrot.lane.b32.xlu1 %v37252_v15, %s37062_s18 }
  0x9c   :  { %v37506_v54 = vpop.permute.xlu0 %1474  ;;  %34661 = vmatmul.mubr.msk.f32.vlgmr.msra.gmra.mrb[4].mxu0 %vm177_vm1, %v37490_v51  ;;  %v37510_v55 = vpop.permute.xlu1 %1470 }
  0x9d   :  { %1108 = vmatpush1.msra.mxu0 %v37215_v10  ;;  %1171 = vmatprep.mubr.f32.mxu0 %v44298_v2  ;;  %v37554_v17 = vsel %vm1500_vm2, %v1473_v53, %v37506_v54  ;;  %v37571_v20 = vsel %vm1500_vm2, %v37510_v55, %v1473_v53 }
  0x9e   :  { %3699 = vrot.lane.b32.xlu0 %v37257_v16, %s37062_s18  ;;  %1249 = vmatprep.subr.mxu0 %v37224_v11  ;;  %44520 = vst [vmem:[#allocation15_spill] sm:$0xff] %v37554_v17  ;;  %44521 = vst [vmem:[#allocation16_spill] sm:$0xff] %v37571_v20 }
  0x9f   :  { %4404 = vrot.lane.b32.xlu1 %v37152_v0, %s37063_s28 }
  0xa0   :  { %v1481_v56 = vpop.permute.xlu0 %1480  ;;  %34663 = vmatmul.mubr.msk.f32.vlgmr.msra.gmra.mrb[6].mxu0 %vm177_vm1, %v37490_v51  ;;  %v37521_v57 = vpop.permute.xlu1 %1482 }
  0xa1   :  { %1250 = vmatpush1.msra.mxu0 %v37238_v13  ;;  %1313 = vmatprep.mubr.f32.mxu0 %v44298_v2  ;;  %v37578_v24 = vsel %vm1500_vm2, %v1481_v56, %v37521_v57 }
  0xa2   :  { %4406 = vrot.lane.b32.xlu0 %v37168_v3, %s37063_s28  ;;  %1391 = vmatprep.subr.mxu0 %v37243_v14  ;;  %44523 = vst [vmem:[#allocation18_spill] sm:$0xff] %v37578_v24 }
  0xa3   :  { %4402 = vrot.lane.b32.xlu1 %v37157_v1, %s37063_s28 }
  0xa4   :  { %v37530_v58 = vpop.permute.xlu0 %1478  ;;  %34665 = vmatmul.mubr.msk.f32.vlgmr.msra.gmra.mrb[8].mxu0 %vm177_vm1, %v37490_v51  ;;  %v1489_v59 = vpop.permute.xlu1 %1488 }
  0xa5   :  { %1392 = vmatpush1.msra.mxu0 %v37257_v16  ;;  %1455 = vmatprep.mubr.f32.mxu0 %v44298_v2  ;;  %v37592_v30 = vsel %vm1500_vm2, %v37530_v58, %v1481_v56 }
  0xa6   :  { %1540 = vmatprep.subr.mxu0 %v37537_v60  ;;  %4412 = vrot.lane.b32.xlu0 %v37187_v6, %s37063_s28  ;;  %44524 = vst [vmem:[#allocation19_spill] sm:$0xff] %v37592_v30 }
  0xa7   :  { %4414 = vrot.lane.b32.xlu1 %v37196_v7, %s37063_s28 }
  0xa8   :  { %v37546_v62 = vpop.permute.xlu0 %1490  ;;  %34667 = vmatmul.mubr.msk.f32.vlgmr.msra.gmra.mrb[10].mxu0 %vm177_vm1, %v37490_v51  ;;  %v37550_v63 = vpop.permute.xlu1 %1486 }
  0xa9   :  { %1541 = vmatpush1.msra.mxu0 %v1501_v61  ;;  %1604 = vmatprep.mubr.f32.mxu0 %v44298_v2  ;;  %v37597_v42 = vsel %vm1500_vm2, %v1489_v59, %v37546_v62  ;;  %v37611_v52 = vsel %vm1500_vm2, %v37550_v63, %v1489_v59 }
  0xaa   :  { %1682 = vmatprep.subr.mxu0 %v37554_v17  ;;  %4410 = vrot.lane.b32.xlu0 %v37182_v5, %s37063_s28  ;;  %44525 = vst [vmem:[#allocation20_spill] sm:$0xff] %v37597_v42  ;;  %44526 = vst [vmem:[#allocation21_spill] sm:$0xff] %v37611_v52  ;;  %v37755_v17 = vld [vmem:[%s44286_s1 + $0x20] sm:$0xff] }
  0xab   :  { %4420 = vrot.lane.b32.xlu1 %v37201_v8, %s37063_s28 }
  0xac   :  { %v1497_v19 = vpop.permute.xlu0 %1496  ;;  %34668 = vmatmul.mubr.msk.f32.vlgmr.msra.gmra.mrb[0].mxu0 %vm177_vm1, %v37560_v18  ;;  %v37573_v23 = vpop.permute.xlu1 %1498 }
  0xad   :  { %44522 = vst [vmem:[#allocation17_spill] sm:$0xff] %v37573_v23  ;;  %1683 = vmatpush1.msra.mxu0 %v37571_v20  ;;  %1746 = vmatprep.mubr.f32.mxu0 %v44298_v2  ;;  %v37616_v56 = vsel %vm1500_vm2, %v1497_v19, %v37573_v23 }
  0xae   :  { %1824 = vmatprep.subr.mxu0 %v37578_v24  ;;  %4422 = vrot.lane.b32.xlu0 %v37210_v9, %s37063_s28  ;;  %44527 = vst [vmem:[#allocation22_spill] sm:$0xff] %v37616_v56 }
  0xaf   :  { %4418 = vrot.lane.b32.xlu1 %v37215_v10, %s37063_s28 }
  0xb0   :  { %v37586_v25 = vpop.permute.xlu0 %1494  ;;  %34670 = vmatmul.mubr.msk.f32.vlgmr.msra.gmra.mrb[4].mxu0 %vm177_vm1, %v37560_v18  ;;  %v2200_v38 = vpop.permute.xlu1 %2199 }
  0xb1   :  { %1825 = vmatpush1.msra.mxu0 %v37592_v30  ;;  %1888 = vmatprep.mubr.f32.mxu0 %v44298_v2  ;;  %v37628_v61 = vsel %vm1500_vm2, %v37586_v25, %v1497_v19 }
  0xb2   :  { %1966 = vmatprep.subr.mxu0 %v37597_v42  ;;  %1468 = vrot.lane.b32.xlu0 %v37173_v4, %s37059_s13  ;;  %44528 = vst [vmem:[#allocation23_spill] sm:$0xff] %v37628_v61 }
  0xb3   :  { %4428 = vrot.lane.b32.xlu1 %v37224_v11, %s37063_s28 }
  0xb4   :  { %v37605_v49 = vpop.permute.xlu0 %2201  ;;  %34672 = vmatmul.mubr.msk.f32.vlgmr.msra.gmra.mrb[6].mxu0 %vm177_vm1, %v37560_v18  ;;  %v2198_v53 = vpop.permute.xlu1 %2197 }
  0xb5   :  { %1967 = vmatpush1.msra.mxu0 %v37611_v52  ;;  %2030 = vmatprep.mubr.f32.mxu0 %v44298_v2  ;;  %v37635_v2 = vsel %vm2235_vm3, %v2200_v38, %v37605_v49  ;;  %v2236_v19 = vsel %vm2235_vm3, %v2198_v53, %v2200_v38 }
  0xb6   :  { %2108 = vmatprep.subr.mxu0 %v37616_v56  ;;  %4430 = vrot.lane.b32.xlu0 %v37229_v12, %s37063_s28  ;;  %44529 = vst [vmem:[#allocation24_spill] sm:$0xff] %v37635_v2  ;;  %v44530_v56 = vmov 0.0  }
  0xb7   :  { %4426 = vrot.lane.b32.xlu1 %v37238_v13, %s37063_s28 }
  0xb8   :  { %v2208_v59 = vpop.permute.xlu0 %2207  ;;  %34674 = vmatmul.mubr.msk.f32.vlgmr.msra.gmra.mrb[8].mxu0 %vm177_vm1, %v37560_v18  ;;  %v37630_v52 = vpop.permute.xlu1 %2209 }
  0xb9   :  { %2109 = vmatpush1.msra.mxu0 %v37628_v61  ;;  %2172 = vmatprep.mubr.f32.mxu0 %v44530_v56  ;;  %v37650_v30 = vsel %vm2235_vm3, %v2208_v59, %v37630_v52 }
  0xba   :  { %2275 = vmatprep.subr.mxu0 %v37635_v2  ;;  %1476 = vrot.lane.b32.xlu0 %v37383_v28, %s37059_s13  ;;  %44531 = vst [vmem:[#allocation25_spill] sm:$0xff] %v37650_v30  ;;  %v37656_v2 = vld [vmem:[%s44286_s1 + $0x18] sm:$0xff] }
  0xbb   :  { %4436 = vrot.lane.b32.xlu1 %v37243_v14, %s37063_s28 }
  0xbc   :  { %v37644_v23 = vpop.permute.xlu0 %2205  ;;  %34676 = vmatmul.mubr.msk.f32.vlgmr.msra.gmra.mrb[10].mxu0 %vm177_vm1, %v37560_v18  ;;  %v2216_v61 = vpop.permute.xlu1 %2215 }
  0xbd   :  { %2276 = vmatpush1.msra.mxu0 %v2236_v19  ;;  %2339 = vmatprep.mubr.f32.mxu0 %v44530_v56  ;;  %v37669_v53 = vsel %vm2235_vm3, %v37644_v23, %v2208_v59 }
  0xbe   :  { %2417 = vmatprep.subr.mxu0 %v37650_v30  ;;  %4438 = vrot.lane.b32.xlu0 %v37252_v15, %s37063_s28  ;;  %44532 = vst [vmem:[#allocation26_spill] sm:$0xff] %v37669_v53 }
  0xbf   :  { %4434 = vrot.lane.b32.xlu1 %v37257_v16, %s37063_s28 }
  0xc0   :  { %v37663_v38 = vpop.permute.xlu0 %2217  ;;  %34677 = vmatmul.mubr.msk.f32.vlgmr.msra.gmra.mrb[0].mxu0 %vm177_vm1, %v37656_v2  ;;  %v37671_v19 = vpop.permute.xlu1 %2213 }
  0xc1   :  { %2418 = vmatpush1.msra.mxu0 %v37669_v53  ;;  %v37676_v30 = vsel %vm2235_vm3, %v2216_v61, %v37663_v38  ;;  %2481 = vmatprep.mubr.f32.mxu0 %v44530_v56  ;;  %v37688_v53 = vsel %vm2235_vm3, %v37671_v19, %v2216_v61 }
  0xc2   :  { %44533 = vst [vmem:[#allocation27_spill] sm:$0xff] %v37676_v30  ;;  %1484 = vrot.lane.b32.xlu0 %v37427_v37, %s37059_s13  ;;  %2559 = vmatprep.subr.mxu0 %v37676_v30  ;;  %44534 = vst [vmem:[#allocation28_spill] sm:$0xff] %v37688_v53 }
  0xc3   :  { %5139 = vrot.lane.b32.xlu1 %v37152_v0, %s37064_s17 }
  0xc4   :  { %v2224_v59 = vpop.permute.xlu0 %2223  ;;  %34679 = vmatmul.mubr.msk.f32.vlgmr.msra.gmra.mrb[4].mxu0 %vm177_vm1, %v37656_v2  ;;  %v37690_v42 = vpop.permute.xlu1 %2225 }
  0xc5   :  { %2560 = vmatpush1.msra.mxu0 %v37688_v53  ;;  %v37695_v20 = vsel %vm2235_vm3, %v2224_v59, %v37690_v42  ;;  %2623 = vmatprep.mubr.f32.mxu0 %v44530_v56 }
  0xc6   :  { %44535 = vst [vmem:[#allocation29_spill] sm:$0xff] %v37695_v20  ;;  %5141 = vrot.lane.b32.xlu0 %v37168_v3, %s37064_s17  ;;  %2701 = vmatprep.subr.mxu0 %v37695_v20 }
  0xc7   :  { %5137 = vrot.lane.b32.xlu1 %v37157_v1, %s37064_s17 }
  0xc8   :  { %v37703_v61 = vpop.permute.xlu0 %2221  ;;  %v2232_v30 = vpop.permute.xlu1 %2231  ;;  %34681 = vmatmul.mubr.msk.f32.vlgmr.msra.gmra.mrb[6].mxu0 %vm177_vm1, %v37656_v2 }
  0xc9   :  { %v37709_v53 = vsel %vm2235_vm3, %v37703_v61, %v2224_v59  ;;  %2765 = vmatprep.mubr.f32.mxu0 %v44530_v56 }
  0xca   :  { %44536 = vst [vmem:[#allocation30_spill] sm:$0xff] %v37709_v53  ;;  %1492 = vrot.lane.b32.xlu0 %v37459_v44, %s37059_s13  ;;  %2702 = vmatpush1.msra.mxu0 %v37709_v53 }
  0xcb   :  { %5147 = vrot.lane.b32.xlu1 %v37187_v6, %s37064_s17 }
  0xcc   :  { %v37717_v20 = vpop.permute.xlu0 %2233  ;;  %v37719_v24 = vpop.permute.xlu1 %2229  ;;  %34683 = vmatmul.mubr.msk.f32.vlgmr.msra.gmra.mrb[8].mxu0 %vm177_vm1, %v37656_v2 }
  0xcd   :  { %44537 = vst [vmem:[#allocation31_spill] sm:$0xff] %v37717_v20  ;;  %v37725_v59 = vsel %vm2235_vm3, %v2232_v30, %v37717_v20  ;;  %v37729_v48 = vsel %vm2235_vm3, %v37719_v24, %v2232_v30  ;;  %2907 = vmatprep.mubr.f32.mxu0 %v44530_v56 }
  0xce   :  { %44538 = vst [vmem:[#allocation32_spill] sm:$0xff] %v37725_v59  ;;  %44539 = vst [vmem:[#allocation33_spill] sm:$0xff] %v37729_v48  ;;  %5149 = vrot.lane.b32.xlu0 %v37196_v7, %s37064_s17  ;;  %2843 = vmatprep.subr.mxu0 %v37725_v59 }
  0xcf   :  { %5145 = vrot.lane.b32.xlu1 %v37182_v5, %s37064_s17  ;;  %2844 = vmatpush1.msra.mxu0 %v37729_v48 }
  0xd0   :  { %v2935_v53 = vpop.permute.xlu0 %2934  ;;  %v37738_v20 = vpop.permute.xlu1 %2936  ;;  %34685 = vmatmul.mubr.msk.f32.vlgmr.msra.gmra.mrb[10].mxu0 %vm177_vm1, %v37656_v2 }
  0xd1   :  { %v37744_v30 = vsel %vm2970_vm4, %v2935_v53, %v37738_v20  ;;  %3074 = vmatprep.mubr.f32.mxu0 %v44530_v56 }
  0xd2   :  { %44540 = vst [vmem:[#allocation34_spill] sm:$0xff] %v37744_v30  ;;  %2203 = vrot.lane.b32.xlu0 %v37173_v4, %s37060_s14  ;;  %3010 = vmatprep.subr.mxu0 %v37744_v30 }
  0xd3   :  { %5155 = vrot.lane.b32.xlu1 %v37201_v8, %s37064_s17 }
  0xd4   :  { %v2933_v48 = vpop.permute.xlu0 %2932  ;;  %v2943_v59 = vpop.permute.xlu1 %2942 }
  0xd5   :  { %v2971_v43 = vsel %vm2970_vm4, %v2933_v48, %v2935_v53 }
  0xd6   :  { %5157 = vrot.lane.b32.xlu0 %v37210_v9, %s37064_s17  ;;  %3011 = vmatpush1.msra.mxu0 %v2971_v43 }
  0xd7   :  { %5153 = vrot.lane.b32.xlu1 %v37215_v10, %s37064_s17  ;;  %34686 = vmatmul.mubr.msk.f32.vlgmr.msra.gmra.mrb[0].mxu0 %vm177_vm1, %v37755_v17 }
  0xd8   :  { %v37764_v30 = vpop.permute.xlu0 %2944  ;;  %v37766_v60 = vpop.permute.xlu1 %2940  ;;  %3216 = vmatprep.mubr.f32.mxu0 %v44530_v56 }
  0xd9   :  { %v37771_v36 = vsel %vm2970_vm4, %v2943_v59, %v37764_v30  ;;  %v37775_v48 = vsel %vm2970_vm4, %v37766_v60, %v2943_v59 }
  0xda   :  { %44541 = vst [vmem:[#allocation35_spill] sm:$0xff] %v37771_v36  ;;  %44542 = vst [vmem:[#allocation36_spill] sm:$0xff] %v37775_v48  ;;  %2211 = vrot.lane.b32.xlu0 %v37383_v28, %s37060_s14  ;;  %3152 = vmatprep.subr.mxu0 %v37771_v36 }
  0xdb   :  { %5163 = vrot.lane.b32.xlu1 %v37224_v11, %s37064_s17  ;;  %3153 = vmatpush1.msra.mxu0 %v37775_v48 }
  0xdc   :  { %v2951_v43 = vpop.permute.xlu0 %2950  ;;  %v37783_v53 = vpop.permute.xlu1 %2952  ;;  %34688 = vmatmul.mubr.msk.f32.vlgmr.msra.gmra.mrb[4].mxu0 %vm177_vm1, %v37755_v17 }
  0xdd   :  { %v37789_v59 = vsel %vm2970_vm4, %v2951_v43, %v37783_v53  ;;  %3358 = vmatprep.mubr.f32.mxu0 %v44530_v56 }
  0xde   :  { %44543 = vst [vmem:[#allocation37_spill] sm:$0xff] %v37789_v59  ;;  %5165 = vrot.lane.b32.xlu0 %v37229_v12, %s37064_s17  ;;  %3294 = vmatprep.subr.mxu0 %v37789_v59 }
  0xdf   :  { %5161 = vrot.lane.b32.xlu1 %v37238_v13, %s37064_s17 }
  0xe0   :  { %v37797_v36 = vpop.permute.xlu0 %2948  ;;  %v2959_v48 = vpop.permute.xlu1 %2958 }
  0xe1   :  { %v37801_v47 = vsel %vm2970_vm4, %v37797_v36, %v2951_v43 }
  0xe2   :  { %44544 = vst [vmem:[#allocation38_spill] sm:$0xff] %v37801_v47  ;;  %2219 = vrot.lane.b32.xlu0 %v37427_v37, %s37060_s14  ;;  %3295 = vmatpush1.msra.mxu0 %v37801_v47 }
  0xe3   :  { %5171 = vrot.lane.b32.xlu1 %v37243_v14, %s37064_s17  ;;  %34690 = vmatmul.mubr.msk.f32.vlgmr.msra.gmra.mrb[6].mxu0 %vm177_vm1, %v37755_v17 }
  0xe4   :  { %v37810_v59 = vpop.permute.xlu0 %2960  ;;  %v37812_v26 = vpop.permute.xlu1 %2956  ;;  %3500 = vmatprep.mubr.f32.mxu0 %v44530_v56 }
  0xe5   :  { %v37817_v43 = vsel %vm2970_vm4, %v2959_v48, %v37810_v59  ;;  %v37821_v45 = vsel %vm2970_vm4, %v37812_v26, %v2959_v48 }
  0xe6   :  { %44545 = vst [vmem:[#allocation39_spill] sm:$0xff] %v37817_v43  ;;  %44546 = vst [vmem:[#allocation40_spill] sm:$0xff] %v37821_v45  ;;  %5173 = vrot.lane.b32.xlu0 %v37252_v15, %s37064_s17  ;;  %3436 = vmatprep.subr.mxu0 %v37817_v43 }
  0xe7   :  { %5169 = vrot.lane.b32.xlu1 %v37257_v16, %s37064_s17  ;;  %3437 = vmatpush1.msra.mxu0 %v37821_v45 }
  0xe8   :  { %v2967_v47 = vpop.permute.xlu0 %2966  ;;  %v37829_v32 = vpop.permute.xlu1 %2968  ;;  %34692 = vmatmul.mubr.msk.f32.vlgmr.msra.gmra.mrb[8].mxu0 %vm177_vm1, %v37755_v17 }
  0xe9   :  { %44547 = vst [vmem:[#allocation41_spill] sm:$0xff] %v37829_v32  ;;  %v37835_v48 = vsel %vm2970_vm4, %v2967_v47, %v37829_v32  ;;  %3642 = vmatprep.mubr.f32.mxu0 %v44530_v56 }
  0xea   :  { %44548 = vst [vmem:[#allocation42_spill] sm:$0xff] %v37835_v48  ;;  %2227 = vrot.lane.b32.xlu0 %v37459_v44, %s37060_s14  ;;  %3578 = vmatprep.subr.mxu0 %v37835_v48 }
  0xeb   :  { %5874 = vrot.lane.b32.xlu1 %v37152_v0, %s37065_s22 }
  0xec   :  { %v37843_v43 = vpop.permute.xlu0 %2964 }
  0xed   :  { %v3670_v45 = vpop.permute.xlu1 %3669  ;;  %v37847_v40 = vsel %vm2970_vm4, %v37843_v43, %v2967_v47 }
  0xee   :  { %44549 = vst [vmem:[#allocation43_spill] sm:$0xff] %v37847_v40  ;;  %5876 = vrot.lane.b32.xlu0 %v37168_v3, %s37065_s22  ;;  %3579 = vmatpush1.msra.mxu0 %v37847_v40 }
  0xef   :  { %5872 = vrot.lane.b32.xlu1 %v37157_v1, %s37065_s22  ;;  %34694 = vmatmul.mubr.msk.f32.vlgmr.msra.gmra.mrb[10].mxu0 %vm177_vm1, %v37755_v17 }
  0xf0   :  { %v37856_v48 = vpop.permute.xlu0 %3671  ;;  %3809 = vmatprep.mubr.f32.mxu0 %v44530_v56 }
  0xf1   :  { %v3668_v32 = vpop.permute.xlu1 %3667  ;;  %v3707_v47 = vsel %vm3705_vm5, %v3670_v45, %v37856_v48 }
  0xf2   :  { %v3706_v40 = vsel %vm3705_vm5, %v3668_v32, %v3670_v45  ;;  %2938 = vrot.lane.b32.xlu0 %v37173_v4, %s37061_s15  ;;  %3745 = vmatprep.subr.mxu0 %v3707_v47 }
  0xf3   :  { %5882 = vrot.lane.b32.xlu1 %v37187_v6, %s37065_s22  ;;  %3746 = vmatpush1.msra.mxu0 %v3706_v40 }
  0xf4   :  { %v117_v31 = vpop.permute.xlu0 %116  ;;  %34695 = vmatmul.mubr.msk.f32.vlgmr.msra.gmra.mrb[0].mxu0 %vm177_vm1, %v37864_v35 }
  0xf5   :  { %v3678_v21 = vpop.permute.xlu1 %3677  ;;  %v37875_v27 = vsel %vm140_vm0, %v117_v31, %v37405_v34  ;;  %v37879_v32 = vsel %vm140_vm0, %v37385_v29, %v117_v31  ;;  %3951 = vmatprep.mubr.f32.mxu0 %v44530_v56 }
  0xf6   :  { %44550 = vst [vmem:[#allocation44_spill] sm:$0xff] %v37875_v27  ;;  %44551 = vst [vmem:[#allocation45_spill] sm:$0xff] %v37879_v32  ;;  %5884 = vrot.lane.b32.xlu0 %v37196_v7, %s37065_s22  ;;  %394 = vmatprep.subr.mxu1 %v37875_v27 }
  0xf7   :  { %5880 = vrot.lane.b32.xlu1 %v37182_v5, %s37065_s22  ;;  %395 = vmatpush1.msra.mxu1 %v37879_v32 }
  0xf8   :  { %v37888_v40 = vpop.permute.xlu0 %3679  ;;  %34653 = vmatmul.mubr.msk.f32.vlgmr.msra.gmra.mrb[0].mxu1 %vm177_vm1, %v37357_v22 }
  0xf9   :  { %v37892_v34 = vpop.permute.xlu1 %3675  ;;  %v3711_v29 = vsel %vm3705_vm5, %v3678_v21, %v37888_v40  ;;  %600 = vmatprep.mubr.f32.mxu1 %v44530_v56 }
  0xfa   :  { %2946 = vrot.lane.b32.xlu0 %v37383_v28, %s37061_s15  ;;  %3887 = vmatprep.subr.mxu0 %v3711_v29  ;;  %v3710_v31 = vsel %vm3705_vm5, %v37892_v34, %v3678_v21 }
  0xfb   :  { %5890 = vrot.lane.b32.xlu1 %v37201_v8, %s37065_s22  ;;  %3888 = vmatpush1.msra.mxu0 %v3710_v31 }
  0xfc   :  { %v125_v45 = vpop.permute.xlu0 %124  ;;  %34697 = vmatmul.mubr.msk.f32.vlgmr.msra.gmra.mrb[4].mxu0 %vm177_vm1, %v37864_v35 }
  0xfd   :  { %v3686_v47 = vpop.permute.xlu1 %3685  ;;  %v37907_v27 = vsel %vm140_vm0, %v125_v45, %v37443_v41  ;;  %v37911_v32 = vsel %vm140_vm0, %v37403_v33, %v125_v45  ;;  %4093 = vmatprep.mubr.f32.mxu0 %v44530_v56 }
  0xfe   :  { %44552 = vst [vmem:[#allocation46_spill] sm:$0xff] %v37907_v27  ;;  %44553 = vst [vmem:[#allocation47_spill] sm:$0xff] %v37911_v32  ;;  %5892 = vrot.lane.b32.xlu0 %v37210_v9, %s37065_s22  ;;  %536 = vmatprep.subr.mxu1 %v37907_v27 }
  0xff   :  { %5888 = vrot.lane.b32.xlu1 %v37215_v10, %s37065_s22  ;;  %537 = vmatpush1.msra.mxu1 %v37911_v32 }
 0x100   :  { %v37920_v21 = vpop.permute.xlu0 %3687  ;;  %34655 = vmatmul.mubr.msk.f32.vlgmr.msra.gmra.mrb[2].mxu1 %vm177_vm1, %v37357_v22 }
 0x101   :  { %v37924_v41 = vpop.permute.xlu1 %3683  ;;  %v3715_v33 = vsel %vm3705_vm5, %v3686_v47, %v37920_v21  ;;  %742 = vmatprep.mubr.f32.mxu1 %v44530_v56 }
 0x102   :  { %2954 = vrot.lane.b32.xlu0 %v37427_v37, %s37061_s15  ;;  %4029 = vmatprep.subr.mxu0 %v3715_v33  ;;  %v3714_v29 = vsel %vm3705_vm5, %v37924_v41, %v3686_v47 }
 0x103   :  { %5898 = vrot.lane.b32.xlu1 %v37224_v11, %s37065_s22  ;;  %4030 = vmatpush1.msra.mxu0 %v3714_v29 }
 0x104   :  { %v133_v31 = vpop.permute.xlu0 %132  ;;  %34699 = vmatmul.mubr.msk.f32.vlgmr.msra.gmra.mrb[6].mxu0 %vm177_vm1, %v37864_v35 }
 0x105   :  { %v3694_v45 = vpop.permute.xlu1 %3693  ;;  %v37939_v27 = vsel %vm140_vm0, %v133_v31, %v37463_v46  ;;  %v37943_v32 = vsel %vm140_vm0, %v37429_v39, %v133_v31  ;;  %4235 = vmatprep.mubr.f32.mxu0 %v44530_v56 }
 0x106   :  { %44554 = vst [vmem:[#allocation48_spill] sm:$0xff] %v37939_v27  ;;  %44555 = vst [vmem:[#allocation49_spill] sm:$0xff] %v37943_v32  ;;  %5900 = vrot.lane.b32.xlu0 %v37229_v12, %s37065_s22  ;;  %678 = vmatprep.subr.mxu1 %v37939_v27 }
 0x107   :  { %5896 = vrot.lane.b32.xlu1 %v37238_v13, %s37065_s22  ;;  %679 = vmatpush1.msra.mxu1 %v37943_v32 }
 0x108   :  { %v37952_v47 = vpop.permute.xlu0 %3695  ;;  %34657 = vmatmul.mubr.msk.f32.vlgmr.msra.gmra.mrb[4].mxu1 %vm177_vm1, %v37357_v22  ;;  %894 = vmatprep.subr.mxu1 %v37173_v4 }
 0x109   :  { %v37957_v39 = vpop.permute.xlu1 %3691  ;;  %v3719_v46 = vsel %vm3705_vm5, %v3694_v45, %v37952_v47  ;;  %895 = vmatpush1.msra.mxu1 %v37168_v3  ;;  %958 = vmatprep.mubr.f32.mxu1 %v44530_v56 }
 0x10a   :  { %2962 = vrot.lane.b32.xlu0 %v37459_v44, %s37061_s15  ;;  %4171 = vmatprep.subr.mxu0 %v3719_v46  ;;  %v3718_v33 = vsel %vm3705_vm5, %v37957_v39, %v3694_v45 }
 0x10b   :  { %5906 = vrot.lane.b32.xlu1 %v37243_v14, %s37065_s22  ;;  %4172 = vmatpush1.msra.mxu0 %v3718_v33 }
 0x10c   :  { %v3702_v22 = vpop.permute.xlu0 %3701  ;;  %34701 = vmatmul.mubr.msk.f32.vlgmr.msra.gmra.mrb[8].mxu0 %vm177_vm1, %v37864_v35  ;;  %34660 = vmatmul.mubr.msk.f32.vlgmr.msra.gmra.mrb[6].mxu1 %vm177_vm1, %v37490_v51 }
 0x10d   :  { %v3704_v29 = vpop.permute.xlu1 %3703  ;;  %4377 = vmatprep.mubr.f32.mxu0 %v44530_v56  ;;  %1036 = vmatprep.subr.mxu1 %v37383_v28 }
 0x10e   :  { %5908 = vrot.lane.b32.xlu0 %v37252_v15, %s37065_s22  ;;  %v3723_v31 = vsel %vm3705_vm5, %v3702_v22, %v3704_v29  ;;  %1037 = vmatpush1.msra.mxu1 %v37196_v7 }
 0x10f   :  { %5904 = vrot.lane.b32.xlu1 %v37257_v16, %s37065_s22  ;;  %4313 = vmatprep.subr.mxu0 %v3723_v31 }
 0x110   :  { %v37981_v14 = vpop.permute.xlu0 %3699  ;;  %1100 = vmatprep.mubr.f32.mxu1 %v44530_v56  ;;  %1178 = vmatprep.subr.mxu1 %v37427_v37 }
 0x111   :  { %v4405_v45 = vpop.permute.xlu1 %4404  ;;  %v3722_v46 = vsel %vm3705_vm5, %v37981_v14, %v3702_v22  ;;  %34662 = vmatmul.mubr.msk.f32.vlgmr.msra.gmra.mrb[0].mxu1 %vm177_vm1, %v37490_v51 }
 0x112   :  { %3673 = vrot.lane.b32.xlu0 %v37173_v4, %s37062_s18  ;;  %4314 = vmatpush1.msra.mxu0 %v3722_v46  ;;  %v38004_v4 = vld [vmem:[%s44286_s1 + $0x30] sm:$0xff] }
 0x113   :  { %6609 = vrot.lane.b32.xlu1 %v37152_v0, %s37066_s25  ;;  %34703 = vmatmul.mubr.msk.f32.vlgmr.msra.gmra.mrb[10].mxu0 %vm177_vm1, %v37864_v35 }
 0x114   :  { %v37995_v15 = vpop.permute.xlu0 %4406  ;;  %4544 = vmatprep.mubr.f32.mxu0 %v44530_v56  ;;  %1179 = vmatpush1.msra.mxu1 %v37210_v9 }
 0x115   :  { %v4403_v16 = vpop.permute.xlu1 %4402  ;;  %v4442_v33 = vsel %vm4440_vm6, %v4405_v45, %v37995_v15  ;;  %1242 = vmatprep.mubr.f32.mxu1 %v44530_v56  ;;  %1320 = vmatprep.subr.mxu1 %v37459_v44 }
 0x116   :  { %v4441_v0 = vsel %vm4440_vm6, %v4403_v16, %v4405_v45  ;;  %6611 = vrot.lane.b32.xlu0 %v37168_v3, %s37066_s25  ;;  %4480 = vmatprep.subr.mxu0 %v4442_v33 }
 0x117   :  { %6607 = vrot.lane.b32.xlu1 %v37157_v1, %s37066_s25  ;;  %4481 = vmatpush1.msra.mxu0 %v4441_v0 }
 0x118   :  { %v4413_v22 = vpop.permute.xlu0 %4412  ;;  %34704 = vmatmul.mubr.msk.f32.vlgmr.msra.gmra.mrb[0].mxu0 %vm177_vm1, %v38004_v4  ;;  %34664 = vmatmul.mubr.msk.f32.vlgmr.msra.gmra.mrb[2].mxu1 %vm177_vm1, %v37490_v51 }
 0x119   :  { %v38017_v29 = vpop.permute.xlu1 %4414  ;;  %4686 = vmatprep.mubr.f32.mxu0 %v44530_v56  ;;  %1321 = vmatpush1.msra.mxu1 %v37229_v12 }
 0x11a   :  { %3681 = vrot.lane.b32.xlu0 %v37383_v28, %s37062_s18  ;;  %v4446_v1 = vsel %vm4440_vm6, %v4413_v22, %v38017_v29  ;;  %1384 = vmatprep.mubr.f32.mxu1 %v44530_v56 }
 0x11b   :  { %6617 = vrot.lane.b32.xlu1 %v37187_v6, %s37066_s25  ;;  %4622 = vmatprep.subr.mxu0 %v4446_v1 }
 0x11c   :  { %v38028_v3 = vpop.permute.xlu0 %4410  ;;  %34666 = vmatmul.mubr.msk.f32.vlgmr.msra.gmra.mrb[4].mxu1 %vm177_vm1, %v37490_v51 }
 0x11d   :  { %v4421_v31 = vpop.permute.xlu1 %4420  ;;  %v4445_v45 = vsel %vm4440_vm6, %v38028_v3, %v4413_v22  ;;  %1675 = vmatprep.mubr.f32.mxu1 %v44530_v56 }
 0x11e   :  { %6619 = vrot.lane.b32.xlu0 %v37196_v7, %s37066_s25  ;;  %4623 = vmatpush1.msra.mxu0 %v4445_v45  ;;  %v38121_v45 = vld [vmem:[%s44285_s0 + $0x88] sm:$0xff] }
 0x11f   :  { %6615 = vrot.lane.b32.xlu1 %v37182_v5, %s37066_s25  ;;  %34706 = vmatmul.mubr.msk.f32.vlgmr.msra.gmra.mrb[4].mxu0 %vm177_vm1, %v38004_v4 }
 0x120   :  { %v38041_v6 = vpop.permute.xlu0 %4422  ;;  %4828 = vmatprep.mubr.f32.mxu0 %v44530_v56 }
 0x121   :  { %v38044_v51 = vpop.permute.xlu1 %4418  ;;  %v4450_v46 = vsel %vm4440_vm6, %v4421_v31, %v38041_v6 }
 0x122   :  { %3689 = vrot.lane.b32.xlu0 %v37427_v37, %s37062_s18  ;;  %4764 = vmatprep.subr.mxu0 %v4450_v46  ;;  %v4449_v7 = vsel %vm4440_vm6, %v38044_v51, %v4421_v31 }
 0x123   :  { %6625 = vrot.lane.b32.xlu1 %v37201_v8, %s37066_s25  ;;  %4765 = vmatpush1.msra.mxu0 %v4449_v7 }
 0x124   :  { %v1469_v5 = vpop.permute.xlu0 %1468  ;;  %34708 = vmatmul.mubr.msk.f32.vlgmr.msra.gmra.mrb[6].mxu0 %vm177_vm1, %v38004_v4 }
 0x125   :  { %v4429_v16 = vpop.permute.xlu1 %4428  ;;  %v38058_v33 = vsel %vm1500_vm2, %v1469_v5, %v37510_v55  ;;  %v38062_v0 = vsel %vm1500_vm2, %v37482_v50, %v1469_v5  ;;  %4970 = vmatprep.mubr.f32.mxu0 %v44530_v56 }
 0x126   :  { %44556 = vst [vmem:[#allocation50_spill] sm:$0xff] %v38058_v33  ;;  %44557 = vst [vmem:[#allocation51_spill] sm:$0xff] %v38062_v0  ;;  %6627 = vrot.lane.b32.xlu0 %v37210_v9, %s37066_s25  ;;  %1611 = vmatprep.subr.mxu1 %v38058_v33 }
 0x127   :  { %6623 = vrot.lane.b32.xlu1 %v37215_v10, %s37066_s25  ;;  %1612 = vmatpush1.msra.mxu1 %v38062_v0 }
 0x128   :  { %v38071_v8 = vpop.permute.xlu0 %4430  ;;  %34669 = vmatmul.mubr.msk.f32.vlgmr.msra.gmra.mrb[6].mxu1 %vm177_vm1, %v37560_v18 }
 0x129   :  { %v38075_v55 = vpop.permute.xlu1 %4426  ;;  %v4454_v50 = vsel %vm4440_vm6, %v4429_v16, %v38071_v8  ;;  %1817 = vmatprep.mubr.f32.mxu1 %v44530_v56 }
 0x12a   :  { %3697 = vrot.lane.b32.xlu0 %v37459_v44, %s37062_s18  ;;  %4906 = vmatprep.subr.mxu0 %v4454_v50  ;;  %v4453_v9 = vsel %vm4440_vm6, %v38075_v55, %v4429_v16  ;;  %v38139_v50 = vld [vmem:[%s44285_s0 + $0x90] sm:$0xff] }
 0x12b   :  { %6633 = vrot.lane.b32.xlu1 %v37224_v11, %s37066_s25  ;;  %4907 = vmatpush1.msra.mxu0 %v4453_v9 }
 0x12c   :  { %v1477_v10 = vpop.permute.xlu0 %1476  ;;  %34710 = vmatmul.mubr.msk.f32.vlgmr.msra.gmra.mrb[8].mxu0 %vm177_vm1, %v38004_v4 }
 0x12d   :  { %v4437_v22 = vpop.permute.xlu1 %4436  ;;  %v38090_v1 = vsel %vm1500_vm2, %v1477_v10, %v37530_v58  ;;  %v38094_v31 = vsel %vm1500_vm2, %v37506_v54, %v1477_v10  ;;  %5112 = vmatprep.mubr.f32.mxu0 %v44530_v56 }
 0x12e   :  { %44558 = vst [vmem:[#allocation52_spill] sm:$0xff] %v38090_v1  ;;  %44559 = vst [vmem:[#allocation53_spill] sm:$0xff] %v38094_v31  ;;  %6635 = vrot.lane.b32.xlu0 %v37229_v12, %s37066_s25  ;;  %1753 = vmatprep.subr.mxu1 %v38090_v1  ;;  %v38112_v12 = vld [vmem:[%s44285_s0 + $0x18] sm:$0xff] }
 0x12f   :  { %6631 = vrot.lane.b32.xlu1 %v37238_v13, %s37066_s25  ;;  %1754 = vmatpush1.msra.mxu1 %v38094_v31 }
 0x130   :  { %v4439_v11 = vpop.permute.xlu0 %4438  ;;  %34671 = vmatmul.mubr.msk.f32.vlgmr.msra.gmra.mrb[0].mxu1 %vm177_vm1, %v37560_v18 }
 0x131   :  { %v38105_v58 = vpop.permute.xlu1 %4434  ;;  %v4458_v54 = vsel %vm4440_vm6, %v4437_v22, %v4439_v11  ;;  %1959 = vmatprep.mubr.f32.mxu1 %v44530_v56 }
 0x132   :  { %4408 = vrot.lane.b32.xlu0 %v38112_v12, %s37063_s28  ;;  %5048 = vmatprep.subr.mxu0 %v4458_v54  ;;  %v4457_v13 = vsel %vm4440_vm6, %v38105_v58, %v4437_v22  ;;  %v38161_v22 = vld [vmem:[%s44286_s1 + $0x38] sm:$0xff]  ;;  %v38170_v54 = vld [vmem:[%s44285_s0 + $0x8] sm:$0xff] }
 0x133   :  { %6641 = vrot.lane.b32.xlu1 %v38121_v45, %s37066_s25  ;;  %5049 = vmatpush1.msra.mxu0 %v4457_v13 }
 0x134   :  { %v1485_v46 = vpop.permute.xlu0 %1484  ;;  %34712 = vmatmul.mubr.msk.f32.vlgmr.msra.gmra.mrb[10].mxu0 %vm177_vm1, %v38004_v4 }
 0x135   :  { %v5140_v7 = vpop.permute.xlu1 %5139  ;;  %v38129_v5 = vsel %vm1500_vm2, %v1485_v46, %v37550_v63  ;;  %v38133_v16 = vsel %vm1500_vm2, %v37521_v57, %v1485_v46  ;;  %5279 = vmatprep.mubr.f32.mxu0 %v44530_v56  ;;  %v38147_v63 = vld [vmem:[%s44285_s0 + $0x80] sm:$0xff] }
 0x136   :  { %44560 = vst [vmem:[#allocation54_spill] sm:$0xff] %v38129_v5  ;;  %44561 = vst [vmem:[#allocation55_spill] sm:$0xff] %v38133_v16  ;;  %6643 = vrot.lane.b32.xlu0 %v38139_v50, %s37066_s25  ;;  %1895 = vmatprep.subr.mxu1 %v38129_v5 }
 0x137   :  { %6639 = vrot.lane.b32.xlu1 %v38147_v63, %s37066_s25  ;;  %1896 = vmatpush1.msra.mxu1 %v38133_v16  ;;  %v38329_v16 = vld [vmem:[%s44285_s0 + $0x70] sm:$0xff] }
 0x138   :  { %v38152_v57 = vpop.permute.xlu0 %5141  ;;  %34673 = vmatmul.mubr.msk.f32.vlgmr.msra.gmra.mrb[2].mxu1 %vm177_vm1, %v37560_v18 }
 0x139   :  { %v5138_v9 = vpop.permute.xlu1 %5137  ;;  %v5177_v10 = vsel %vm5175_vm7, %v5140_v7, %v38152_v57  ;;  %2101 = vmatprep.mubr.f32.mxu1 %v44530_v56 }
 0x13a   :  { %v5176_v11 = vsel %vm5175_vm7, %v5138_v9, %v5140_v7  ;;  %4416 = vrot.lane.b32.xlu0 %v37383_v28, %s37063_s28  ;;  %5215 = vmatprep.subr.mxu0 %v5177_v10  ;;  %v38188_v9 = vld [vmem:[%s44285_s0 + $0x10] sm:$0xff] }
 0x13b   :  { %7344 = vrot.lane.b32.xlu1 %v38170_v54, %s37067_s12  ;;  %5216 = vmatpush1.msra.mxu0 %v5176_v11 }
 0x13c   :  { %v1493_v13 = vpop.permute.xlu0 %1492  ;;  %34713 = vmatmul.mubr.msk.f32.vlgmr.msra.gmra.mrb[0].mxu0 %vm177_vm1, %v38161_v22 }
 0x13d   :  { %v5148_v46 = vpop.permute.xlu1 %5147  ;;  %v38178_v7 = vsel %vm1500_vm2, %v1493_v13, %v37586_v25  ;;  %v38182_v28 = vsel %vm1500_vm2, %v37546_v62, %v1493_v13  ;;  %5421 = vmatprep.mubr.f32.mxu0 %v44530_v56  ;;  %v38196_v25 = vld [vmem:[%s44285_s0] sm:$0xff] }
 0x13e   :  { %44562 = vst [vmem:[#allocation56_spill] sm:$0xff] %v38178_v7  ;;  %44563 = vst [vmem:[#allocation57_spill] sm:$0xff] %v38182_v28  ;;  %7346 = vrot.lane.b32.xlu0 %v38188_v9, %s37067_s12  ;;  %2037 = vmatprep.subr.mxu1 %v38178_v7  ;;  %v38217_v7 = vld [vmem:[%s44285_s0 + $0x28] sm:$0xff] }
 0x13f   :  { %7342 = vrot.lane.b32.xlu1 %v38196_v25, %s37067_s12  ;;  %2038 = vmatpush1.msra.mxu1 %v38182_v28 }
 0x140   :  { %v38201_v62 = vpop.permute.xlu0 %5149  ;;  %34675 = vmatmul.mubr.msk.f32.vlgmr.msra.gmra.mrb[4].mxu1 %vm177_vm1, %v37560_v18 }
 0x141   :  { %v38205_v10 = vpop.permute.xlu1 %5145  ;;  %v5181_v11 = vsel %vm5175_vm7, %v5148_v46, %v38201_v62  ;;  %2410 = vmatprep.mubr.f32.mxu1 %v44530_v56 }
 0x142   :  { %4424 = vrot.lane.b32.xlu0 %v37427_v37, %s37063_s28  ;;  %5357 = vmatprep.subr.mxu0 %v5181_v11  ;;  %v5180_v13 = vsel %vm5175_vm7, %v38205_v10, %v5148_v46  ;;  %v38235_v11 = vld [vmem:[%s44285_s0 + $0x30] sm:$0xff] }
 0x143   :  { %7352 = vrot.lane.b32.xlu1 %v38217_v7, %s37067_s12  ;;  %5358 = vmatpush1.msra.mxu0 %v5180_v13 }
 0x144   :  { %v2204_v18 = vpop.permute.xlu0 %2203  ;;  %34715 = vmatmul.mubr.msk.f32.vlgmr.msra.gmra.mrb[4].mxu0 %vm177_vm1, %v38161_v22 }
 0x145   :  { %v5156_v5 = vpop.permute.xlu1 %5155  ;;  %v38225_v37 = vsel %vm2235_vm3, %v2204_v18, %v37644_v23  ;;  %v38229_v46 = vsel %vm2235_vm3, %v37605_v49, %v2204_v18  ;;  %5563 = vmatprep.mubr.f32.mxu0 %v44530_v56  ;;  %v38243_v23 = vld [vmem:[%s44285_s0 + $0x20] sm:$0xff] }
 0x146   :  { %44564 = vst [vmem:[#allocation58_spill] sm:$0xff] %v38225_v37  ;;  %44565 = vst [vmem:[#allocation59_spill] sm:$0xff] %v38229_v46  ;;  %7354 = vrot.lane.b32.xlu0 %v38235_v11, %s37067_s12  ;;  %2346 = vmatprep.subr.mxu1 %v38225_v37 }
 0x147   :  { %7350 = vrot.lane.b32.xlu1 %v38243_v23, %s37067_s12  ;;  %2347 = vmatpush1.msra.mxu1 %v38229_v46  ;;  %v38264_v46 = vld [vmem:[%s44285_s0 + $0x48] sm:$0xff] }
 0x148   :  { %v38248_v49 = vpop.permute.xlu0 %5157  ;;  %34678 = vmatmul.mubr.msk.f32.vlgmr.msra.gmra.mrb[6].mxu1 %vm177_vm1, %v37656_v2 }
 0x149   :  { %v38252_v13 = vpop.permute.xlu1 %5153  ;;  %v5185_v18 = vsel %vm5175_vm7, %v5156_v5, %v38248_v49  ;;  %2552 = vmatprep.mubr.f32.mxu1 %v44530_v56 }
 0x14a   :  { %4432 = vrot.lane.b32.xlu0 %v37459_v44, %s37063_s28  ;;  %5499 = vmatprep.subr.mxu0 %v5185_v18  ;;  %v5184_v37 = vsel %vm5175_vm7, %v38252_v13, %v5156_v5  ;;  %v38282_v18 = vld [vmem:[%s44285_s0 + $0x50] sm:$0xff]  ;;  %s37069_s28 = smov 62  }
 0x14b   :  { %7360 = vrot.lane.b32.xlu1 %v38264_v46, %s37067_s12  ;;  %5500 = vmatpush1.msra.mxu0 %v5184_v37 }
 0x14c   :  { %v2212_v1 = vpop.permute.xlu0 %2211  ;;  %34717 = vmatmul.mubr.msk.f32.vlgmr.msra.gmra.mrb[6].mxu0 %vm177_vm1, %v38161_v22 }
 0x14d   :  { %v5164_v33 = vpop.permute.xlu1 %5163  ;;  %v38272_v44 = vsel %vm2235_vm3, %v2212_v1, %v37671_v19  ;;  %v38276_v5 = vsel %vm2235_vm3, %v37630_v52, %v2212_v1  ;;  %5705 = vmatprep.mubr.f32.mxu0 %v44530_v56  ;;  %v38290_v19 = vld [vmem:[%s44285_s0 + $0x40] sm:$0xff] }
 0x14e   :  { %44566 = vst [vmem:[#allocation60_spill] sm:$0xff] %v38272_v44  ;;  %44567 = vst [vmem:[#allocation61_spill] sm:$0xff] %v38276_v5  ;;  %7362 = vrot.lane.b32.xlu0 %v38282_v18, %s37067_s12  ;;  %2488 = vmatprep.subr.mxu1 %v38272_v44 }
 0x14f   :  { %7358 = vrot.lane.b32.xlu1 %v38290_v19, %s37067_s12  ;;  %2489 = vmatpush1.msra.mxu1 %v38276_v5  ;;  %v38311_v5 = vld [vmem:[%s44285_s0 + $0x68] sm:$0xff] }
 0x150   :  { %v38295_v52 = vpop.permute.xlu0 %5165  ;;  %34680 = vmatmul.mubr.msk.f32.vlgmr.msra.gmra.mrb[0].mxu1 %vm177_vm1, %v37656_v2 }
 0x151   :  { %v38299_v1 = vpop.permute.xlu1 %5161  ;;  %v5189_v37 = vsel %vm5175_vm7, %v5164_v33, %v38295_v52  ;;  %2694 = vmatprep.mubr.f32.mxu1 %v44530_v56 }
 0x152   :  { %5143 = vrot.lane.b32.xlu0 %v38112_v12, %s37064_s17  ;;  %5641 = vmatprep.subr.mxu0 %v5189_v37  ;;  %v5188_v44 = vsel %vm5175_vm7, %v38299_v1, %v5164_v33 }
 0x153   :  { %7368 = vrot.lane.b32.xlu1 %v38311_v5, %s37067_s12  ;;  %5642 = vmatpush1.msra.mxu0 %v5188_v44 }
 0x154   :  { %v2220_v28 = vpop.permute.xlu0 %2219  ;;  %34719 = vmatmul.mubr.msk.f32.vlgmr.msra.gmra.mrb[8].mxu0 %vm177_vm1, %v38161_v22 }
 0x155   :  { %v5172_v27 = vpop.permute.xlu1 %5171  ;;  %v38319_v37 = vsel %vm2235_vm3, %v2220_v28, %v37703_v61  ;;  %v38323_v33 = vsel %vm2235_vm3, %v37663_v38, %v2220_v28  ;;  %5847 = vmatprep.mubr.f32.mxu0 %v44530_v56  ;;  %v38337_v61 = vld [vmem:[%s44285_s0 + $0x60] sm:$0xff] }
 0x156   :  { %44568 = vst [vmem:[#allocation62_spill] sm:$0xff] %v38319_v37  ;;  %44569 = vst [vmem:[#allocation63_spill] sm:$0xff] %v38323_v33  ;;  %7370 = vrot.lane.b32.xlu0 %v38329_v16, %s37067_s12  ;;  %2630 = vmatprep.subr.mxu1 %v38319_v37  ;;  %v38351_v37 = vld [vmem:[%s44285_s0 + $0x38] sm:$0xff] }
 0x157   :  { %7366 = vrot.lane.b32.xlu1 %v38337_v61, %s37067_s12  ;;  %2631 = vmatpush1.msra.mxu1 %v38323_v33 }
 0x158   :  { %v5174_v38 = vpop.permute.xlu0 %5173  ;;  %34682 = vmatmul.mubr.msk.f32.vlgmr.msra.gmra.mrb[2].mxu1 %vm177_vm1, %v37656_v2 }
 0x159   :  { %v38344_v28 = vpop.permute.xlu1 %5169  ;;  %v5193_v44 = vsel %vm5175_vm7, %v5172_v27, %v5174_v38  ;;  %2836 = vmatprep.mubr.f32.mxu1 %v44530_v56 }
 0x15a   :  { %5151 = vrot.lane.b32.xlu0 %v38351_v37, %s37064_s17  ;;  %5783 = vmatprep.subr.mxu0 %v5193_v44  ;;  %v5192_v33 = vsel %vm5175_vm7, %v38344_v28, %v5172_v27  ;;  %v38392_v44 = vld [vmem:[%s44285_s0 + $0x58] sm:$0xff] }
 0x15b   :  { %7376 = vrot.lane.b32.xlu1 %v38121_v45, %s37067_s12  ;;  %5784 = vmatpush1.msra.mxu0 %v5192_v33 }
 0x15c   :  { %v2228_v31 = vpop.permute.xlu0 %2227  ;;  %34721 = vmatmul.mubr.msk.f32.vlgmr.msra.gmra.mrb[10].mxu0 %vm177_vm1, %v38161_v22 }
 0x15d   :  { %v5875_v38 = vpop.permute.xlu1 %5874  ;;  %v38363_v0 = vsel %vm2235_vm3, %v2228_v31, %v37719_v24  ;;  %v38367_v32 = vsel %vm2235_vm3, %v37690_v42, %v2228_v31  ;;  %6014 = vmatprep.mubr.f32.mxu0 %v44530_v56  ;;  %v38385_v31 = vld [vmem:[%s44286_s1 + $0x40] sm:$0xff] }
 0x15e   :  { %44570 = vst [vmem:[#allocation64_spill] sm:$0xff] %v38363_v0  ;;  %44571 = vst [vmem:[#allocation65_spill] sm:$0xff] %v38367_v32  ;;  %7378 = vrot.lane.b32.xlu0 %v38139_v50, %s37067_s12  ;;  %2772 = vmatprep.subr.mxu1 %v38363_v0 }
 0x15f   :  { %7374 = vrot.lane.b32.xlu1 %v38147_v63, %s37067_s12  ;;  %2773 = vmatpush1.msra.mxu1 %v38367_v32 }
 0x160   :  { %v38376_v27 = vpop.permute.xlu0 %5876  ;;  %34684 = vmatmul.mubr.msk.f32.vlgmr.msra.gmra.mrb[4].mxu1 %vm177_vm1, %v37656_v2 }
 0x161   :  { %v5873_v24 = vpop.permute.xlu1 %5872  ;;  %v5912_v42 = vsel %vm5910_vm8, %v5875_v38, %v38376_v27  ;;  %3145 = vmatprep.mubr.f32.mxu1 %v44530_v56 }
 0x162   :  { %v5911_v33 = vsel %vm5910_vm8, %v5873_v24, %v5875_v38  ;;  %5159 = vrot.lane.b32.xlu0 %v38392_v44, %s37064_s17  ;;  %5950 = vmatprep.subr.mxu0 %v5912_v42 }
 0x163   :  { %8079 = vrot.lane.b32.xlu1 %v38170_v54, %s37068_s30  ;;  %5951 = vmatpush1.msra.mxu0 %v5911_v33  ;;  %v38427_v33 = vld [vmem:[%s44285_s0 + $0x78] sm:$0xff] }
 0x164   :  { %v2939_v2 = vpop.permute.xlu0 %2938  ;;  %34722 = vmatmul.mubr.msk.f32.vlgmr.msra.gmra.mrb[0].mxu0 %vm177_vm1, %v38385_v31 }
 0x165   :  { %v5883_v0 = vpop.permute.xlu1 %5882  ;;  %v38402_v38 = vsel %vm2970_vm4, %v2939_v2, %v37766_v60  ;;  %v38406_v24 = vsel %vm2970_vm4, %v37738_v20, %v2939_v2  ;;  %6156 = vmatprep.mubr.f32.mxu0 %v44530_v56 }
 0x166   :  { %44572 = vst [vmem:[#allocation66_spill] sm:$0xff] %v38402_v38  ;;  %44573 = vst [vmem:[#allocation67_spill] sm:$0xff] %v38406_v24  ;;  %8081 = vrot.lane.b32.xlu0 %v38188_v9, %s37068_s30  ;;  %3081 = vmatprep.subr.mxu1 %v38402_v38 }
 0x167   :  { %8077 = vrot.lane.b32.xlu1 %v38196_v25, %s37068_s30  ;;  %3082 = vmatpush1.msra.mxu1 %v38406_v24 }
 0x168   :  { %v38415_v42 = vpop.permute.xlu0 %5884  ;;  %34687 = vmatmul.mubr.msk.f32.vlgmr.msra.gmra.mrb[6].mxu1 %vm177_vm1, %v37755_v17 }
 0x169   :  { %44574 = vst [vmem:[#allocation68_spill] sm:$0xff] %v38415_v42  ;;  %v38419_v60 = vpop.permute.xlu1 %5880  ;;  %v5916_v20 = vsel %vm5910_vm8, %v5883_v0, %v38415_v42  ;;  %3287 = vmatprep.mubr.f32.mxu1 %v44530_v56 }
 0x16a   :  { %5167 = vrot.lane.b32.xlu0 %v38427_v33, %s37064_s17  ;;  %6092 = vmatprep.subr.mxu0 %v5916_v20  ;;  %v5915_v2 = vsel %vm5910_vm8, %v38419_v60, %v5883_v0  ;;  %s37080_s17 = smov 122  }
 0x16b   :  { %8087 = vrot.lane.b32.xlu1 %v38217_v7, %s37068_s30  ;;  %6093 = vmatpush1.msra.mxu0 %v5915_v2 }
 0x16c   :  { %v2947_v38 = vpop.permute.xlu0 %2946  ;;  %34724 = vmatmul.mubr.msk.f32.vlgmr.msra.gmra.mrb[4].mxu0 %vm177_vm1, %v38385_v31 }
 0x16d   :  { %v5891_v24 = vpop.permute.xlu1 %5890  ;;  %v38439_v32 = vsel %vm2970_vm4, %v2947_v38, %v37797_v36  ;;  %v38443_v42 = vsel %vm2970_vm4, %v37764_v30, %v2947_v38  ;;  %6298 = vmatprep.mubr.f32.mxu0 %v44530_v56 }
 0x16e   :  { %44575 = vst [vmem:[#allocation69_spill] sm:$0xff] %v38439_v32  ;;  %44576 = vst [vmem:[#allocation70_spill] sm:$0xff] %v38443_v42  ;;  %8089 = vrot.lane.b32.xlu0 %v38235_v11, %s37068_s30  ;;  %3223 = vmatprep.subr.mxu1 %v38439_v32 }
 0x16f   :  { %8085 = vrot.lane.b32.xlu1 %v38243_v23, %s37068_s30  ;;  %3224 = vmatpush1.msra.mxu1 %v38443_v42 }
 0x170   :  { %v38452_v0 = vpop.permute.xlu0 %5892  ;;  %34689 = vmatmul.mubr.msk.f32.vlgmr.msra.gmra.mrb[0].mxu1 %vm177_vm1, %v37755_v17 }
 0x171   :  { %v38456_v36 = vpop.permute.xlu1 %5888  ;;  %v5920_v30 = vsel %vm5910_vm8, %v5891_v24, %v38452_v0  ;;  %3429 = vmatprep.mubr.f32.mxu1 %v44530_v56 }
 0x172   :  { %5878 = vrot.lane.b32.xlu0 %v38112_v12, %s37065_s22  ;;  %6234 = vmatprep.subr.mxu0 %v5920_v30  ;;  %v5919_v38 = vsel %vm5910_vm8, %v38456_v36, %v5891_v24 }
 0x173   :  { %8095 = vrot.lane.b32.xlu1 %v38264_v46, %s37068_s30  ;;  %6235 = vmatpush1.msra.mxu0 %v5919_v38 }
 0x174   :  { %v2955_v20 = vpop.permute.xlu0 %2954  ;;  %34726 = vmatmul.mubr.msk.f32.vlgmr.msra.gmra.mrb[6].mxu0 %vm177_vm1, %v38385_v31 }
 0x175   :  { %v5899_v2 = vpop.permute.xlu1 %5898  ;;  %v38471_v32 = vsel %vm2970_vm4, %v2955_v20, %v37812_v26  ;;  %v38475_v42 = vsel %vm2970_vm4, %v37783_v53, %v2955_v20  ;;  %6440 = vmatprep.mubr.f32.mxu0 %v44530_v56 }
 0x176   :  { %44577 = vst [vmem:[#allocation71_spill] sm:$0xff] %v38471_v32  ;;  %44578 = vst [vmem:[#allocation72_spill] sm:$0xff] %v38475_v42  ;;  %8097 = vrot.lane.b32.xlu0 %v38282_v18, %s37068_s30  ;;  %3365 = vmatprep.subr.mxu1 %v38471_v32 }
 0x177   :  { %8093 = vrot.lane.b32.xlu1 %v38290_v19, %s37068_s30  ;;  %3366 = vmatpush1.msra.mxu1 %v38475_v42 }
 0x178   :  { %v38484_v24 = vpop.permute.xlu0 %5900  ;;  %34691 = vmatmul.mubr.msk.f32.vlgmr.msra.gmra.mrb[2].mxu1 %vm177_vm1, %v37755_v17 }
 0x179   :  { %v38488_v26 = vpop.permute.xlu1 %5896  ;;  %v5924_v53 = vsel %vm5910_vm8, %v5899_v2, %v38484_v24  ;;  %3571 = vmatprep.mubr.f32.mxu1 %v44530_v56 }
 0x17a   :  { %5886 = vrot.lane.b32.xlu0 %v38351_v37, %s37065_s22  ;;  %6376 = vmatprep.subr.mxu0 %v5924_v53  ;;  %v5923_v30 = vsel %vm5910_vm8, %v38488_v26, %v5899_v2 }
 0x17b   :  { %8103 = vrot.lane.b32.xlu1 %v38311_v5, %s37068_s30  ;;  %6377 = vmatpush1.msra.mxu0 %v5923_v30 }
 0x17c   :  { %v2963_v38 = vpop.permute.xlu0 %2962  ;;  %34728 = vmatmul.mubr.msk.f32.vlgmr.msra.gmra.mrb[8].mxu0 %vm177_vm1, %v38385_v31 }
 0x17d   :  { %v5907_v20 = vpop.permute.xlu1 %5906  ;;  %v38503_v32 = vsel %vm2970_vm4, %v2963_v38, %v37843_v43  ;;  %v38507_v42 = vsel %vm2970_vm4, %v37810_v59, %v2963_v38  ;;  %6582 = vmatprep.mubr.f32.mxu0 %v44530_v56 }
 0x17e   :  { %8105 = vrot.lane.b32.xlu0 %v38329_v16, %s37068_s30  ;;  %3507 = vmatprep.subr.mxu1 %v38503_v32 }
 0x17f   :  { %8101 = vrot.lane.b32.xlu1 %v38337_v61, %s37068_s30  ;;  %3508 = vmatpush1.msra.mxu1 %v38507_v42 }
 0x180   :  { %v5909_v2 = vpop.permute.xlu0 %5908  ;;  %34693 = vmatmul.mubr.msk.f32.vlgmr.msra.gmra.mrb[4].mxu1 %vm177_vm1, %v37755_v17 }
 0x181   :  { %v38518_v43 = vpop.permute.xlu1 %5904  ;;  %v5928_v59 = vsel %vm5910_vm8, %v5907_v20, %v5909_v2  ;;  %3880 = vmatprep.mubr.f32.mxu1 %v44530_v56 }
 0x182   :  { %5894 = vrot.lane.b32.xlu0 %v38392_v44, %s37065_s22  ;;  %6518 = vmatprep.subr.mxu0 %v5928_v59  ;;  %v5927_v53 = vsel %vm5910_vm8, %v38518_v43, %v5907_v20  ;;  %v38548_v59 = vld [vmem:[%s44286_s1 + $0x48] sm:$0xff] }
 0x183   :  { %8111 = vrot.lane.b32.xlu1 %v38121_v45, %s37068_s30  ;;  %6519 = vmatpush1.msra.mxu0 %v5927_v53 }
 0x184   :  { %v3674_v30 = vpop.permute.xlu0 %3673  ;;  %34730 = vmatmul.mubr.msk.f32.vlgmr.msra.gmra.mrb[10].mxu0 %vm177_vm1, %v38385_v31 }
 0x185   :  { %v6610_v17 = vpop.permute.xlu1 %6609  ;;  %v3709_v38 = vsel %vm3705_vm5, %v3674_v30, %v37892_v34  ;;  %v3708_v2 = vsel %vm3705_vm5, %v37856_v48, %v3674_v30  ;;  %6749 = vmatprep.mubr.f32.mxu0 %v44530_v56 }
 0x186   :  { %8113 = vrot.lane.b32.xlu0 %v38139_v50, %s37068_s30  ;;  %3816 = vmatprep.subr.mxu1 %v3709_v38 }
 0x187   :  { %8109 = vrot.lane.b32.xlu1 %v38147_v63, %s37068_s30  ;;  %3817 = vmatpush1.msra.mxu1 %v3708_v2 }
 0x188   :  { %v38539_v20 = vpop.permute.xlu0 %6611  ;;  %34696 = vmatmul.mubr.msk.f32.vlgmr.msra.gmra.mrb[6].mxu1 %vm177_vm1, %v37864_v35 }
 0x189   :  { %v6608_v34 = vpop.permute.xlu1 %6607  ;;  %v6647_v48 = vsel %vm6645_vm9, %v6610_v17, %v38539_v20  ;;  %4022 = vmatprep.mubr.f32.mxu1 %v44530_v56 }
 0x18a   :  { %v6646_v53 = vsel %vm6645_vm9, %v6608_v34, %v6610_v17  ;;  %5902 = vrot.lane.b32.xlu0 %v38427_v33, %s37065_s22  ;;  %6685 = vmatprep.subr.mxu0 %v6647_v48 }
 0x18b   :  { %8814 = vrot.lane.b32.xlu1 %v38170_v54, %s37069_s28  ;;  %6686 = vmatpush1.msra.mxu0 %v6646_v53 }
 0x18c   :  { %v3682_v30 = vpop.permute.xlu0 %3681  ;;  %34731 = vmatmul.mubr.msk.f32.vlgmr.msra.gmra.mrb[0].mxu0 %vm177_vm1, %v38548_v59 }
 0x18d   :  { %v6618_v38 = vpop.permute.xlu1 %6617  ;;  %v3713_v2 = vsel %vm3705_vm5, %v3682_v30, %v37924_v41  ;;  %v3712_v17 = vsel %vm3705_vm5, %v37888_v40, %v3682_v30  ;;  %6891 = vmatprep.mubr.f32.mxu0 %v44530_v56 }
 0x18e   :  { %8816 = vrot.lane.b32.xlu0 %v38188_v9, %s37069_s28  ;;  %3958 = vmatprep.subr.mxu1 %v3713_v2 }
 0x18f   :  { %8812 = vrot.lane.b32.xlu1 %v38196_v25, %s37069_s28  ;;  %3959 = vmatpush1.msra.mxu1 %v3712_v17 }
 0x190   :  { %v38567_v34 = vpop.permute.xlu0 %6619  ;;  %34698 = vmatmul.mubr.msk.f32.vlgmr.msra.gmra.mrb[0].mxu1 %vm177_vm1, %v37864_v35 }
 0x191   :  { %v38571_v48 = vpop.permute.xlu1 %6615  ;;  %v6651_v40 = vsel %vm6645_vm9, %v6618_v38, %v38567_v34  ;;  %4164 = vmatprep.mubr.f32.mxu1 %v44530_v56 }
 0x192   :  { %6613 = vrot.lane.b32.xlu0 %v38112_v12, %s37066_s25  ;;  %6827 = vmatprep.subr.mxu0 %v6651_v40  ;;  %v6650_v41 = vsel %vm6645_vm9, %v38571_v48, %v6618_v38 }
 0x193   :  { %8822 = vrot.lane.b32.xlu1 %v38217_v7, %s37069_s28  ;;  %6828 = vmatpush1.msra.mxu0 %v6650_v41 }
 0x194   :  { %v3690_v53 = vpop.permute.xlu0 %3689  ;;  %34733 = vmatmul.mubr.msk.f32.vlgmr.msra.gmra.mrb[4].mxu0 %vm177_vm1, %v38548_v59 }
 0x195   :  { %v6626_v30 = vpop.permute.xlu1 %6625  ;;  %v3717_v2 = vsel %vm3705_vm5, %v3690_v53, %v37957_v39  ;;  %v3716_v17 = vsel %vm3705_vm5, %v37920_v21, %v3690_v53  ;;  %7033 = vmatprep.mubr.f32.mxu0 %v44530_v56 }
 0x196   :  { %8824 = vrot.lane.b32.xlu0 %v38235_v11, %s37069_s28  ;;  %4100 = vmatprep.subr.mxu1 %v3717_v2 }
 0x197   :  { %8820 = vrot.lane.b32.xlu1 %v38243_v23, %s37069_s28  ;;  %4101 = vmatpush1.msra.mxu1 %v3716_v17 }
 0x198   :  { %v38593_v38 = vpop.permute.xlu0 %6627  ;;  %34700 = vmatmul.mubr.msk.f32.vlgmr.msra.gmra.mrb[2].mxu1 %vm177_vm1, %v37864_v35 }
 0x199   :  { %v38597_v40 = vpop.permute.xlu1 %6623  ;;  %v6655_v21 = vsel %vm6645_vm9, %v6626_v30, %v38593_v38  ;;  %4306 = vmatprep.mubr.f32.mxu1 %v44530_v56 }
 0x19a   :  { %6621 = vrot.lane.b32.xlu0 %v38351_v37, %s37066_s25  ;;  %6969 = vmatprep.subr.mxu0 %v6655_v21  ;;  %v6654_v39 = vsel %vm6645_vm9, %v38597_v40, %v6626_v30 }
 0x19b   :  { %8830 = vrot.lane.b32.xlu1 %v38264_v46, %s37069_s28  ;;  %6970 = vmatpush1.msra.mxu0 %v6654_v39 }
 0x19c   :  { %v3698_v41 = vpop.permute.xlu0 %3697  ;;  %34735 = vmatmul.mubr.msk.f32.vlgmr.msra.gmra.mrb[6].mxu0 %vm177_vm1, %v38548_v59 }
 0x19d   :  { %v6634_v53 = vpop.permute.xlu1 %6633  ;;  %v3721_v2 = vsel %vm3705_vm5, %v3698_v41, %v37981_v14  ;;  %v3720_v17 = vsel %vm3705_vm5, %v37952_v47, %v3698_v41  ;;  %7175 = vmatprep.mubr.f32.mxu0 %v44530_v56 }
 0x19e   :  { %8832 = vrot.lane.b32.xlu0 %v38282_v18, %s37069_s28  ;;  %4242 = vmatprep.subr.mxu1 %v3721_v2 }
 0x19f   :  { %8828 = vrot.lane.b32.xlu1 %v38290_v19, %s37069_s28  ;;  %4243 = vmatpush1.msra.mxu1 %v3720_v17 }
 0x1a0   :  { %v38619_v30 = vpop.permute.xlu0 %6635  ;;  %34702 = vmatmul.mubr.msk.f32.vlgmr.msra.gmra.mrb[4].mxu1 %vm177_vm1, %v37864_v35 }
 0x1a1   :  { %v38623_v21 = vpop.permute.xlu1 %6631  ;;  %v6659_v47 = vsel %vm6645_vm9, %v6634_v53, %v38619_v30  ;;  %4615 = vmatprep.mubr.f32.mxu1 %v44530_v56 }
 0x1a2   :  { %6629 = vrot.lane.b32.xlu0 %v38392_v44, %s37066_s25  ;;  %7111 = vmatprep.subr.mxu0 %v6659_v47  ;;  %v6658_v14 = vsel %vm6645_vm9, %v38623_v21, %v6634_v53 }
 0x1a3   :  { %8838 = vrot.lane.b32.xlu1 %v38311_v5, %s37069_s28  ;;  %7112 = vmatpush1.msra.mxu0 %v6658_v14 }
 0x1a4   :  { %v4409_v39 = vpop.permute.xlu0 %4408  ;;  %34737 = vmatmul.mubr.msk.f32.vlgmr.msra.gmra.mrb[8].mxu0 %vm177_vm1, %v38548_v59 }
 0x1a5   :  { %v6642_v35 = vpop.permute.xlu1 %6641  ;;  %v4444_v41 = vsel %vm4440_vm6, %v4409_v39, %v38028_v3  ;;  %v4443_v2 = vsel %vm4440_vm6, %v37995_v15, %v4409_v39  ;;  %7317 = vmatprep.mubr.f32.mxu0 %v44530_v56 }
 0x1a6   :  { %8840 = vrot.lane.b32.xlu0 %v38329_v16, %s37069_s28  ;;  %4551 = vmatprep.subr.mxu1 %v4444_v41 }
 0x1a7   :  { %8836 = vrot.lane.b32.xlu1 %v38337_v61, %s37069_s28  ;;  %4552 = vmatpush1.msra.mxu1 %v4443_v2  ;;  %v38677_v2 = vld [vmem:[%s44286_s1 + $0x50] sm:$0xff] }
 0x1a8   :  { %v6644_v53 = vpop.permute.xlu0 %6643  ;;  %34705 = vmatmul.mubr.msk.f32.vlgmr.msra.gmra.mrb[6].mxu1 %vm177_vm1, %v38004_v4 }
 0x1a9   :  { %v38647_v17 = vpop.permute.xlu1 %6639  ;;  %v6663_v3 = vsel %vm6645_vm9, %v6642_v35, %v6644_v53  ;;  %4757 = vmatprep.mubr.f32.mxu1 %v44530_v56 }
 0x1aa   :  { %6637 = vrot.lane.b32.xlu0 %v38427_v33, %s37066_s25  ;;  %7253 = vmatprep.subr.mxu0 %v6663_v3  ;;  %v6662_v15 = vsel %vm6645_vm9, %v38647_v17, %v6642_v35  ;;  %s37085_s25 = smov 121  }
 0x1ab   :  { %8846 = vrot.lane.b32.xlu1 %v38121_v45, %s37069_s28  ;;  %7254 = vmatpush1.msra.mxu0 %v6662_v15 }
 0x1ac   :  { %v4417_v47 = vpop.permute.xlu0 %4416  ;;  %34739 = vmatmul.mubr.msk.f32.vlgmr.msra.gmra.mrb[10].mxu0 %vm177_vm1, %v38548_v59 }
 0x1ad   :  { %v7345_v14 = vpop.permute.xlu1 %7344  ;;  %v4448_v39 = vsel %vm4440_vm6, %v4417_v47, %v38044_v51  ;;  %v4447_v41 = vsel %vm4440_vm6, %v38017_v29, %v4417_v47  ;;  %7484 = vmatprep.mubr.f32.mxu0 %v44530_v56 }
 0x1ae   :  { %8848 = vrot.lane.b32.xlu0 %v38139_v50, %s37069_s28  ;;  %4693 = vmatprep.subr.mxu1 %v4448_v39 }
 0x1af   :  { %8844 = vrot.lane.b32.xlu1 %v38147_v63, %s37069_s28  ;;  %4694 = vmatpush1.msra.mxu1 %v4447_v41 }
 0x1b0   :  { %v38668_v35 = vpop.permute.xlu0 %7346  ;;  %34707 = vmatmul.mubr.msk.f32.vlgmr.msra.gmra.mrb[0].mxu1 %vm177_vm1, %v38004_v4 }
 0x1b1   :  { %v7343_v51 = vpop.permute.xlu1 %7342  ;;  %v7382_v29 = vsel %vm7380_vm10, %v7345_v14, %v38668_v35  ;;  %4899 = vmatprep.mubr.f32.mxu1 %v44530_v56 }
 0x1b2   :  { %v7381_v53 = vsel %vm7380_vm10, %v7343_v51, %v7345_v14  ;;  %7348 = vrot.lane.b32.xlu0 %v38112_v12, %s37067_s12  ;;  %7420 = vmatprep.subr.mxu0 %v7382_v29 }
 0x1b3   :  { %9549 = vrot.lane.b32.xlu1 %v38170_v54, %s37070_s23  ;;  %7421 = vmatpush1.msra.mxu0 %v7381_v53 }
 0x1b4   :  { %v4425_v3 = vpop.permute.xlu0 %4424  ;;  %34740 = vmatmul.mubr.msk.f32.vlgmr.msra.gmra.mrb[0].mxu0 %vm177_vm1, %v38677_v2 }
 0x1b5   :  { %v7353_v15 = vpop.permute.xlu1 %7352  ;;  %v4452_v47 = vsel %vm4440_vm6, %v4425_v3, %v38075_v55  ;;  %v4451_v14 = vsel %vm4440_vm6, %v38041_v6, %v4425_v3  ;;  %7626 = vmatprep.mubr.f32.mxu0 %v44530_v56 }
 0x1b6   :  { %9551 = vrot.lane.b32.xlu0 %v38188_v9, %s37070_s23  ;;  %4835 = vmatprep.subr.mxu1 %v4452_v47 }
 0x1b7   :  { %9547 = vrot.lane.b32.xlu1 %v38196_v25, %s37070_s23  ;;  %4836 = vmatpush1.msra.mxu1 %v4451_v14 }
 0x1b8   :  { %v38696_v39 = vpop.permute.xlu0 %7354  ;;  %34709 = vmatmul.mubr.msk.f32.vlgmr.msra.gmra.mrb[2].mxu1 %vm177_vm1, %v38004_v4 }
 0x1b9   :  { %v38700_v41 = vpop.permute.xlu1 %7350  ;;  %v7386_v6 = vsel %vm7380_vm10, %v7353_v15, %v38696_v39  ;;  %5041 = vmatprep.mubr.f32.mxu1 %v44530_v56 }
 0x1ba   :  { %7356 = vrot.lane.b32.xlu0 %v38351_v37, %s37067_s12  ;;  %7562 = vmatprep.subr.mxu0 %v7386_v6  ;;  %v7385_v55 = vsel %vm7380_vm10, %v38700_v41, %v7353_v15 }
 0x1bb   :  { %9557 = vrot.lane.b32.xlu1 %v38217_v7, %s37070_s23  ;;  %7563 = vmatpush1.msra.mxu0 %v7385_v55 }
 0x1bc   :  { %v4433_v51 = vpop.permute.xlu0 %4432  ;;  %34742 = vmatmul.mubr.msk.f32.vlgmr.msra.gmra.mrb[4].mxu0 %vm177_vm1, %v38677_v2 }
 0x1bd   :  { %v7361_v29 = vpop.permute.xlu1 %7360  ;;  %v4456_v53 = vsel %vm4440_vm6, %v4433_v51, %v38105_v58  ;;  %v4455_v3 = vsel %vm4440_vm6, %v38071_v8, %v4433_v51  ;;  %7768 = vmatprep.mubr.f32.mxu0 %v44530_v56  ;;  %vm11790_vm6 = vcmask 252928  }
 0x1be   :  { %9559 = vrot.lane.b32.xlu0 %v38235_v11, %s37070_s23  ;;  %4977 = vmatprep.subr.mxu1 %v4456_v53 }
 0x1bf   :  { %9555 = vrot.lane.b32.xlu1 %v38243_v23, %s37070_s23  ;;  %4978 = vmatpush1.msra.mxu1 %v4455_v3 }
 0x1c0   :  { %v38722_v15 = vpop.permute.xlu0 %7362  ;;  %34711 = vmatmul.mubr.msk.f32.vlgmr.msra.gmra.mrb[4].mxu1 %vm177_vm1, %v38004_v4 }
 0x1c1   :  { %v38726_v47 = vpop.permute.xlu1 %7358  ;;  %v7390_v8 = vsel %vm7380_vm10, %v7361_v29, %v38722_v15  ;;  %5350 = vmatprep.mubr.f32.mxu1 %v44530_v56 }
 0x1c2   :  { %7364 = vrot.lane.b32.xlu0 %v38392_v44, %s37067_s12  ;;  %7704 = vmatprep.subr.mxu0 %v7390_v8  ;;  %v7389_v58 = vsel %vm7380_vm10, %v38726_v47, %v7361_v29 }
 0x1c3   :  { %9565 = vrot.lane.b32.xlu1 %v38264_v46, %s37070_s23  ;;  %7705 = vmatpush1.msra.mxu0 %v7389_v58 }
 0x1c4   :  { %v5144_v14 = vpop.permute.xlu0 %5143  ;;  %34744 = vmatmul.mubr.msk.f32.vlgmr.msra.gmra.mrb[6].mxu0 %vm177_vm1, %v38677_v2 }
 0x1c5   :  { %v7369_v4 = vpop.permute.xlu1 %7368  ;;  %v5179_v6 = vsel %vm5175_vm7, %v5144_v14, %v38205_v10  ;;  %v5178_v55 = vsel %vm5175_vm7, %v38152_v57, %v5144_v14  ;;  %7910 = vmatprep.mubr.f32.mxu0 %v44530_v56 }
 0x1c6   :  { %9567 = vrot.lane.b32.xlu0 %v38282_v18, %s37070_s23  ;;  %5286 = vmatprep.subr.mxu1 %v5179_v6 }
 0x1c7   :  { %9563 = vrot.lane.b32.xlu1 %v38290_v19, %s37070_s23  ;;  %5287 = vmatpush1.msra.mxu1 %v5178_v55 }
 0x1c8   :  { %v38748_v51 = vpop.permute.xlu0 %7370  ;;  %34714 = vmatmul.mubr.msk.f32.vlgmr.msra.gmra.mrb[6].mxu1 %vm177_vm1, %v38161_v22 }
 0x1c9   :  { %v38752_v29 = vpop.permute.xlu1 %7366  ;;  %v7394_v57 = vsel %vm7380_vm10, %v7369_v4, %v38748_v51  ;;  %5492 = vmatprep.mubr.f32.mxu1 %v44530_v56 }
 0x1ca   :  { %7372 = vrot.lane.b32.xlu0 %v38427_v33, %s37067_s12  ;;  %7846 = vmatprep.subr.mxu0 %v7394_v57  ;;  %v7393_v10 = vsel %vm7380_vm10, %v38752_v29, %v7369_v4 }
 0x1cb   :  { %9573 = vrot.lane.b32.xlu1 %v38311_v5, %s37070_s23  ;;  %7847 = vmatpush1.msra.mxu0 %v7393_v10 }
 0x1cc   :  { %v5152_v53 = vpop.permute.xlu0 %5151  ;;  %34746 = vmatmul.mubr.msk.f32.vlgmr.msra.gmra.mrb[8].mxu0 %vm177_vm1, %v38677_v2 }
 0x1cd   :  { %v7377_v3 = vpop.permute.xlu1 %7376  ;;  %v5183_v8 = vsel %vm5175_vm7, %v5152_v53, %v38252_v13  ;;  %v5182_v58 = vsel %vm5175_vm7, %v38201_v62, %v5152_v53  ;;  %8052 = vmatprep.mubr.f32.mxu0 %v44530_v56  ;;  %v38806_v53 = vld [vmem:[%s44286_s1 + $0x58] sm:$0xff] }
 0x1ce   :  { %9575 = vrot.lane.b32.xlu0 %v38329_v16, %s37070_s23  ;;  %5428 = vmatprep.subr.mxu1 %v5183_v8 }
 0x1cf   :  { %9571 = vrot.lane.b32.xlu1 %v38337_v61, %s37070_s23  ;;  %5429 = vmatpush1.msra.mxu1 %v5182_v58 }
 0x1d0   :  { %v7379_v14 = vpop.permute.xlu0 %7378  ;;  %34716 = vmatmul.mubr.msk.f32.vlgmr.msra.gmra.mrb[0].mxu1 %vm177_vm1, %v38161_v22 }
 0x1d1   :  { %v38776_v4 = vpop.permute.xlu1 %7374  ;;  %v7398_v13 = vsel %vm7380_vm10, %v7377_v3, %v7379_v14  ;;  %5634 = vmatprep.mubr.f32.mxu1 %v44530_v56 }
 0x1d2   :  { %8083 = vrot.lane.b32.xlu0 %v38112_v12, %s37068_s30  ;;  %7988 = vmatprep.subr.mxu0 %v7398_v13  ;;  %v7397_v62 = vsel %vm7380_vm10, %v38776_v4, %v7377_v3 }
 0x1d3   :  { %9581 = vrot.lane.b32.xlu1 %v38121_v45, %s37070_s23  ;;  %7989 = vmatpush1.msra.mxu0 %v7397_v62 }
 0x1d4   :  { %v5160_v6 = vpop.permute.xlu0 %5159  ;;  %34748 = vmatmul.mubr.msk.f32.vlgmr.msra.gmra.mrb[10].mxu0 %vm177_vm1, %v38677_v2 }
 0x1d5   :  { %v8080_v55 = vpop.permute.xlu1 %8079  ;;  %v5187_v57 = vsel %vm5175_vm7, %v5160_v6, %v38299_v1  ;;  %v5186_v10 = vsel %vm5175_vm7, %v38248_v49, %v5160_v6  ;;  %8219 = vmatprep.mubr.f32.mxu0 %v44530_v56 }
 0x1d6   :  { %9583 = vrot.lane.b32.xlu0 %v38139_v50, %s37070_s23  ;;  %5570 = vmatprep.subr.mxu1 %v5187_v57 }
 0x1d7   :  { %9579 = vrot.lane.b32.xlu1 %v38147_v63, %s37070_s23  ;;  %5571 = vmatpush1.msra.mxu1 %v5186_v10 }
 0x1d8   :  { %v38797_v45 = vpop.permute.xlu0 %8081  ;;  %34718 = vmatmul.mubr.msk.f32.vlgmr.msra.gmra.mrb[2].mxu1 %vm177_vm1, %v38161_v22 }
 0x1d9   :  { %v8078_v1 = vpop.permute.xlu1 %8077  ;;  %v8117_v49 = vsel %vm8115_vm11, %v8080_v55, %v38797_v45  ;;  %5776 = vmatprep.mubr.f32.mxu1 %v44530_v56 }
 0x1da   :  { %v8116_v50 = vsel %vm8115_vm11, %v8078_v1, %v8080_v55  ;;  %8091 = vrot.lane.b32.xlu0 %v38351_v37, %s37068_s30  ;;  %8155 = vmatprep.subr.mxu0 %v8117_v49  ;;  %v44579_v55 = vld [vmem:[#allocation68_spill] sm:$0xff] }
 0x1db   :  { %10284 = vrot.lane.b32.xlu1 %v38170_v54, %s37071_s27  ;;  %8156 = vmatpush1.msra.mxu0 %v8116_v50 }
 0x1dc   :  { %v5168_v63 = vpop.permute.xlu0 %5167  ;;  %34749 = vmatmul.mubr.msk.f32.vlgmr.msra.gmra.mrb[0].mxu0 %vm177_vm1, %v38806_v53 }
 0x1dd   :  { %v8088_v3 = vpop.permute.xlu1 %8087  ;;  %v5191_v8 = vsel %vm5175_vm7, %v5168_v63, %v38344_v28  ;;  %v5190_v58 = vsel %vm5175_vm7, %v38295_v52, %v5168_v63  ;;  %8361 = vmatprep.mubr.f32.mxu0 %v44530_v56  ;;  %vm12525_vm7 = vcmask 244736  }
 0x1de   :  { %10286 = vrot.lane.b32.xlu0 %v38188_v9, %s37071_s27  ;;  %5712 = vmatprep.subr.mxu1 %v5191_v8 }
 0x1df   :  { %10282 = vrot.lane.b32.xlu1 %v38196_v25, %s37071_s27  ;;  %5713 = vmatpush1.msra.mxu1 %v5190_v58  ;;  %v38930_v58 = vld [vmem:[%s44285_s0 + $0x90] sm:$0xff] }
 0x1e0   :  { %v38825_v54 = vpop.permute.xlu0 %8089  ;;  %34720 = vmatmul.mubr.msk.f32.vlgmr.msra.gmra.mrb[4].mxu1 %vm177_vm1, %v38161_v22 }
 0x1e1   :  { %v38829_v14 = vpop.permute.xlu1 %8085  ;;  %v8121_v52 = vsel %vm8115_vm11, %v8088_v3, %v38825_v54  ;;  %6085 = vmatprep.mubr.f32.mxu1 %v44530_v56 }
 0x1e2   :  { %8099 = vrot.lane.b32.xlu0 %v38392_v44, %s37068_s30  ;;  %8297 = vmatprep.subr.mxu0 %v8121_v52  ;;  %v8120_v9 = vsel %vm8115_vm11, %v38829_v14, %v8088_v3  ;;  %v38937_v52 = vld [vmem:[%s44285_s0 + $0x80] sm:$0xff] }
 0x1e3   :  { %10292 = vrot.lane.b32.xlu1 %v38217_v7, %s37071_s27  ;;  %8298 = vmatpush1.msra.mxu0 %v8120_v9 }
 0x1e4   :  { %v5879_v25 = vpop.permute.xlu0 %5878  ;;  %34751 = vmatmul.mubr.msk.f32.vlgmr.msra.gmra.mrb[4].mxu0 %vm177_vm1, %v38806_v53 }
 0x1e5   :  { %v8096_v22 = vpop.permute.xlu1 %8095  ;;  %v5914_v28 = vsel %vm5910_vm8, %v5879_v25, %v38419_v60  ;;  %v5913_v13 = vsel %vm5910_vm8, %v38376_v27, %v5879_v25  ;;  %8503 = vmatprep.mubr.f32.mxu0 %v44530_v56  ;;  %v38950_v25 = vld [vmem:[%s44286_s1 + $0x60] sm:$0xff] }
 0x1e6   :  { %10294 = vrot.lane.b32.xlu0 %v38235_v11, %s37071_s27  ;;  %6021 = vmatprep.subr.mxu1 %v5914_v28 }
 0x1e7   :  { %10290 = vrot.lane.b32.xlu1 %v38243_v23, %s37071_s27  ;;  %6022 = vmatpush1.msra.mxu1 %v5913_v13 }
 0x1e8   :  { %v38851_v7 = vpop.permute.xlu0 %8097  ;;  %34723 = vmatmul.mubr.msk.f32.vlgmr.msra.gmra.mrb[6].mxu1 %vm177_vm1, %v38385_v31 }
 0x1e9   :  { %v38855_v62 = vpop.permute.xlu1 %8093  ;;  %v8125_v27 = vsel %vm8115_vm11, %v8096_v22, %v38851_v7  ;;  %6227 = vmatprep.mubr.f32.mxu1 %v44530_v56 }
 0x1ea   :  { %8107 = vrot.lane.b32.xlu0 %v38427_v33, %s37068_s30  ;;  %8439 = vmatprep.subr.mxu0 %v8125_v27  ;;  %v8124_v11 = vsel %vm8115_vm11, %v38855_v62, %v8096_v22  ;;  %s37075_s30 = smov 29  }
 0x1eb   :  { %10300 = vrot.lane.b32.xlu1 %v38264_v46, %s37071_s27  ;;  %8440 = vmatpush1.msra.mxu0 %v8124_v11 }
 0x1ec   :  { %v5887_v23 = vpop.permute.xlu0 %5886  ;;  %34753 = vmatmul.mubr.msk.f32.vlgmr.msra.gmra.mrb[6].mxu0 %vm177_vm1, %v38806_v53 }
 0x1ed   :  { %v8104_v60 = vpop.permute.xlu1 %8103  ;;  %v5918_v6 = vsel %vm5910_vm8, %v5887_v23, %v38456_v36  ;;  %v5917_v57 = vsel %vm5910_vm8, %v44579_v55, %v5887_v23  ;;  %8645 = vmatprep.mubr.f32.mxu0 %v44530_v56  ;;  %v38973_v23 = vld [vmem:[%s44285_s0 + $0x10] sm:$0xff] }
 0x1ee   :  { %10302 = vrot.lane.b32.xlu0 %v38282_v18, %s37071_s27  ;;  %6163 = vmatprep.subr.mxu1 %v5918_v6 }
 0x1ef   :  { %10298 = vrot.lane.b32.xlu1 %v38290_v19, %s37071_s27  ;;  %6164 = vmatpush1.msra.mxu1 %v5917_v57  ;;  %v39000_v57 = vld [vmem:[%s44285_s0 + $0x28] sm:$0xff] }
 0x1f0   :  { %v38877_v46 = vpop.permute.xlu0 %8105  ;;  %34725 = vmatmul.mubr.msk.f32.vlgmr.msra.gmra.mrb[0].mxu1 %vm177_vm1, %v38385_v31 }
 0x1f1   :  { %v38881_v10 = vpop.permute.xlu1 %8101  ;;  %v8129_v36 = vsel %vm8115_vm11, %v8104_v60, %v38877_v46  ;;  %6369 = vmatprep.mubr.f32.mxu1 %v44530_v56 }
 0x1f2   :  { %8818 = vrot.lane.b32.xlu0 %v38112_v12, %s37069_s28  ;;  %8581 = vmatprep.subr.mxu0 %v8129_v36  ;;  %v8128_v18 = vsel %vm8115_vm11, %v38881_v10, %v8104_v60  ;;  %v38980_v60 = vld [vmem:[%s44285_s0] sm:$0xff]  ;;  %v39004_v36 = vpop.f32.mrb[2].mxu0 }
 0x1f3   :  { %10308 = vrot.lane.b32.xlu1 %v38311_v5, %s37071_s27  ;;  %8582 = vmatpush1.msra.mxu0 %v8128_v18 }
 0x1f4   :  { %v5895_v19 = vpop.permute.xlu0 %5894  ;;  %34755 = vmatmul.mubr.msk.f32.vlgmr.msra.gmra.mrb[8].mxu0 %vm177_vm1, %v38806_v53 }
 0x1f5   :  { %v8112_v1 = vpop.permute.xlu1 %8111  ;;  %v5922_v49 = vsel %vm5910_vm8, %v5895_v19, %v38488_v26  ;;  %v5921_v50 = vsel %vm5910_vm8, %v38452_v0, %v5895_v19  ;;  %8787 = vmatprep.mubr.f32.mxu0 %v44530_v56  ;;  %v39008_v19 = vpop.f32.mrb[3].mxu0 }
 0x1f6   :  { %10310 = vrot.lane.b32.xlu0 %v38329_v16, %s37071_s27  ;;  %6305 = vmatprep.subr.mxu1 %v5922_v49 }
 0x1f7   :  { %10306 = vrot.lane.b32.xlu1 %v38337_v61, %s37071_s27  ;;  %6306 = vmatpush1.msra.mxu1 %v5921_v50  ;;  %v38916_v61 = vld [vmem:[%s44285_s0 + $0x88] sm:$0xff] }
 0x1f8   :  { %v8114_v12 = vpop.permute.xlu0 %8113  ;;  %34727 = vmatmul.mubr.msk.f32.vlgmr.msra.gmra.mrb[2].mxu1 %vm177_vm1, %v38385_v31 }
 0x1f9   :  { %v38905_v5 = vpop.permute.xlu1 %8109  ;;  %v8133_v26 = vsel %vm8115_vm11, %v8112_v1, %v8114_v12  ;;  %6511 = vmatprep.mubr.f32.mxu1 %v44530_v56  ;;  %v39018_v12 = vld [vmem:[%s44285_s0 + $0x30] sm:$0xff] }
 0x1fa   :  { %8826 = vrot.lane.b32.xlu0 %v38351_v37, %s37069_s28  ;;  %8723 = vmatprep.subr.mxu0 %v8133_v26  ;;  %v8132_v16 = vsel %vm8115_vm11, %v38905_v5, %v8112_v1  ;;  %v39025_v26 = vld [vmem:[%s44285_s0 + $0x20] sm:$0xff] }
 0x1fb   :  { %10316 = vrot.lane.b32.xlu1 %v38916_v61, %s37071_s27  ;;  %8724 = vmatpush1.msra.mxu0 %v8132_v16 }
 0x1fc   :  { %v5903_v0 = vpop.permute.xlu0 %5902  ;;  %34757 = vmatmul.mubr.msk.f32.vlgmr.msra.gmra.mrb[10].mxu0 %vm177_vm1, %v38806_v53 }
 0x1fd   :  { %v8815_v63 = vpop.permute.xlu1 %8814  ;;  %v5926_v3 = vsel %vm5910_vm8, %v5903_v0, %v38518_v43  ;;  %v5925_v8 = vsel %vm5910_vm8, %v38484_v24, %v5903_v0  ;;  %8954 = vmatprep.mubr.f32.mxu0 %v44530_v56  ;;  %v39041_v0 = vld [vmem:[%s44285_s0 + $0x18] sm:$0xff]  ;;  %vm13260_vm8 = vcmask 236544  }
 0x1fe   :  { %10318 = vrot.lane.b32.xlu0 %v38930_v58, %s37071_s27  ;;  %6447 = vmatprep.subr.mxu1 %v5926_v3  ;;  %v39050_v3 = vld [vmem:[%s44285_s0 + $0x48] sm:$0xff] }
 0x1ff   :  { %10314 = vrot.lane.b32.xlu1 %v38937_v52, %s37071_s27  ;;  %6448 = vmatpush1.msra.mxu1 %v5925_v8 }
 0x200   :  { %v38941_v24 = vpop.permute.xlu0 %8816  ;;  %34729 = vmatmul.mubr.msk.f32.vlgmr.msra.gmra.mrb[4].mxu1 %vm177_vm1, %v38385_v31  ;;  %v38959_v31 = vld [vmem:[%s44285_s0 + $0x8] sm:$0xff] }
 0x201   :  { %v8813_v43 = vpop.permute.xlu1 %8812  ;;  %v8852_v9 = vsel %vm8850_vm12, %v8815_v63, %v38941_v24  ;;  %6820 = vmatprep.mubr.f32.mxu1 %v44530_v56 }
 0x202   :  { %v8851_v22 = vsel %vm8850_vm12, %v8813_v43, %v8815_v63  ;;  %8834 = vrot.lane.b32.xlu0 %v38392_v44, %s37069_s28  ;;  %8890 = vmatprep.subr.mxu0 %v8852_v9 }
 0x203   :  { %11019 = vrot.lane.b32.xlu1 %v38959_v31, %s37072_s29  ;;  %8891 = vmatpush1.msra.mxu0 %v8851_v22 }
 0x204   :  { %v6614_v28 = vpop.permute.xlu0 %6613  ;;  %34758 = vmatmul.mubr.msk.f32.vlgmr.msra.gmra.mrb[0].mxu0 %vm177_vm1, %v38950_v25 }
 0x205   :  { %v8823_v13 = vpop.permute.xlu1 %8822  ;;  %v6649_v27 = vsel %vm6645_vm9, %v6614_v28, %v38571_v48  ;;  %v6648_v11 = vsel %vm6645_vm9, %v38539_v20, %v6614_v28  ;;  %9096 = vmatprep.mubr.f32.mxu0 %v44530_v56  ;;  %v39064_v28 = vld [vmem:[%s44285_s0 + $0x50] sm:$0xff] }
 0x206   :  { %11021 = vrot.lane.b32.xlu0 %v38973_v23, %s37072_s29  ;;  %6756 = vmatprep.subr.mxu1 %v6649_v27 }
 0x207   :  { %11017 = vrot.lane.b32.xlu1 %v38980_v60, %s37072_s29  ;;  %6757 = vmatpush1.msra.mxu1 %v6648_v11 }
 0x208   :  { %v38984_v20 = vpop.permute.xlu0 %8824  ;;  %34732 = vmatmul.mubr.msk.f32.vlgmr.msra.gmra.mrb[6].mxu1 %vm177_vm1, %v38548_v59 }
 0x209   :  { %v38988_v48 = vpop.permute.xlu1 %8820  ;;  %v8856_v6 = vsel %vm8850_vm12, %v8823_v13, %v38984_v20  ;;  %6962 = vmatprep.mubr.f32.mxu1 %v44530_v56 }
 0x20a   :  { %8842 = vrot.lane.b32.xlu0 %v38427_v33, %s37069_s28  ;;  %9032 = vmatprep.subr.mxu0 %v8856_v6  ;;  %v8855_v55 = vsel %vm8850_vm12, %v38988_v48, %v8823_v13  ;;  %v39071_v13 = vld [vmem:[%s44285_s0 + $0x40] sm:$0xff]  ;;  %v39091_v6 = vld [vmem:[%s44285_s0 + $0x68] sm:$0xff] }
 0x20b   :  { %11027 = vrot.lane.b32.xlu1 %v39000_v57, %s37072_s29  ;;  %9033 = vmatpush1.msra.mxu0 %v8855_v55 }
 0x20c   :  { %v6622_v18 = vpop.permute.xlu0 %6621  ;;  %34760 = vmatmul.mubr.msk.f32.vlgmr.msra.gmra.mrb[4].mxu0 %vm177_vm1, %v38950_v25 }
 0x20d   :  { %v8831_v1 = vpop.permute.xlu1 %8830  ;;  %v6653_v49 = vsel %vm6645_vm9, %v6622_v18, %v38597_v40  ;;  %v6652_v50 = vsel %vm6645_vm9, %v38567_v34, %v6622_v18  ;;  %9238 = vmatprep.mubr.f32.mxu0 %v44530_v56 }
 0x20e   :  { %11029 = vrot.lane.b32.xlu0 %v39018_v12, %s37072_s29  ;;  %6898 = vmatprep.subr.mxu1 %v6653_v49  ;;  %v39105_v49 = vld [vmem:[%s44285_s0 + $0x70] sm:$0xff] }
 0x20f   :  { %11025 = vrot.lane.b32.xlu1 %v39025_v26, %s37072_s29  ;;  %6899 = vmatpush1.msra.mxu1 %v6652_v50  ;;  %v39112_v50 = vld [vmem:[%s44285_s0 + $0x60] sm:$0xff] }
 0x210   :  { %v39029_v34 = vpop.permute.xlu0 %8832  ;;  %34734 = vmatmul.mubr.msk.f32.vlgmr.msra.gmra.mrb[0].mxu1 %vm177_vm1, %v38548_v59 }
 0x211   :  { %v39033_v40 = vpop.permute.xlu1 %8828  ;;  %v8860_v16 = vsel %vm8850_vm12, %v8831_v1, %v39029_v34  ;;  %7104 = vmatprep.mubr.f32.mxu1 %v44530_v56 }
 0x212   :  { %9553 = vrot.lane.b32.xlu0 %v39041_v0, %s37070_s23  ;;  %9174 = vmatprep.subr.mxu0 %v8860_v16  ;;  %v8859_v63 = vsel %vm8850_vm12, %v39033_v40, %v8831_v1 }
 0x213   :  { %11035 = vrot.lane.b32.xlu1 %v39050_v3, %s37072_s29  ;;  %9175 = vmatpush1.msra.mxu0 %v8859_v63 }
 0x214   :  { %v6630_v8 = vpop.permute.xlu0 %6629  ;;  %34762 = vmatmul.mubr.msk.f32.vlgmr.msra.gmra.mrb[6].mxu0 %vm177_vm1, %v38950_v25 }
 0x215   :  { %v8839_v43 = vpop.permute.xlu1 %8838  ;;  %v6657_v9 = vsel %vm6645_vm9, %v6630_v8, %v38623_v21  ;;  %v6656_v22 = vsel %vm6645_vm9, %v38593_v38, %v6630_v8  ;;  %9380 = vmatprep.mubr.f32.mxu0 %v44530_v56 }
 0x216   :  { %11037 = vrot.lane.b32.xlu0 %v39064_v28, %s37072_s29  ;;  %7040 = vmatprep.subr.mxu1 %v6657_v9 }
 0x217   :  { %11033 = vrot.lane.b32.xlu1 %v39071_v13, %s37072_s29  ;;  %7041 = vmatpush1.msra.mxu1 %v6656_v22  ;;  %v39148_v22 = vld [vmem:[%s44286_s1 + $0x68] sm:$0xff] }
 0x218   :  { %v39075_v38 = vpop.permute.xlu0 %8840  ;;  %34736 = vmatmul.mubr.msk.f32.vlgmr.msra.gmra.mrb[2].mxu1 %vm177_vm1, %v38548_v59 }
 0x219   :  { %v39079_v21 = vpop.permute.xlu1 %8836  ;;  %v8864_v27 = vsel %vm8850_vm12, %v8839_v43, %v39075_v38  ;;  %7246 = vmatprep.mubr.f32.mxu1 %v44530_v56 }
 0x21a   :  { %9561 = vrot.lane.b32.xlu0 %v38351_v37, %s37070_s23  ;;  %9316 = vmatprep.subr.mxu0 %v8864_v27  ;;  %v8863_v11 = vsel %vm8850_vm12, %v39079_v21, %v8839_v43 }
 0x21b   :  { %11043 = vrot.lane.b32.xlu1 %v39091_v6, %s37072_s29  ;;  %9317 = vmatpush1.msra.mxu0 %v8863_v11 }
 0x21c   :  { %v6638_v55 = vpop.permute.xlu0 %6637  ;;  %34764 = vmatmul.mubr.msk.f32.vlgmr.msra.gmra.mrb[8].mxu0 %vm177_vm1, %v38950_v25 }
 0x21d   :  { %v8847_v18 = vpop.permute.xlu1 %8846  ;;  %v6661_v37 = vsel %vm6645_vm9, %v6638_v55, %v38647_v17  ;;  %v6660_v1 = vsel %vm6645_vm9, %v38619_v30, %v6638_v55  ;;  %9522 = vmatprep.mubr.f32.mxu0 %v44530_v56  ;;  %vm13995_vm9 = vcmask 228352  }
 0x21e   :  { %11045 = vrot.lane.b32.xlu0 %v39105_v49, %s37072_s29  ;;  %7182 = vmatprep.subr.mxu1 %v6661_v37 }
 0x21f   :  { %11041 = vrot.lane.b32.xlu1 %v39112_v50, %s37072_s29  ;;  %7183 = vmatpush1.msra.mxu1 %v6660_v1 }
 0x220   :  { %v8849_v30 = vpop.permute.xlu0 %8848  ;;  %34738 = vmatmul.mubr.msk.f32.vlgmr.msra.gmra.mrb[4].mxu1 %vm177_vm1, %v38548_v59 }
 0x221   :  { %v39118_v17 = vpop.permute.xlu1 %8844  ;;  %v8868_v16 = vsel %vm8850_vm12, %v8847_v18, %v8849_v30  ;;  %7555 = vmatprep.mubr.f32.mxu1 %v44530_v56 }
 0x222   :  { %9569 = vrot.lane.b32.xlu0 %v38392_v44, %s37070_s23  ;;  %9458 = vmatprep.subr.mxu0 %v8868_v16  ;;  %v8867_v63 = vsel %vm8850_vm12, %v39118_v17, %v8847_v18 }
 0x223   :  { %11051 = vrot.lane.b32.xlu1 %v38916_v61, %s37072_s29  ;;  %9459 = vmatpush1.msra.mxu0 %v8867_v63 }
 0x224   :  { %v7349_v8 = vpop.permute.xlu0 %7348  ;;  %34766 = vmatmul.mubr.msk.f32.vlgmr.msra.gmra.mrb[10].mxu0 %vm177_vm1, %v38950_v25 }
 0x225   :  { %v9550_v59 = vpop.permute.xlu1 %9549  ;;  %v7384_v43 = vsel %vm7380_vm10, %v7349_v8, %v38700_v41  ;;  %v7383_v9 = vsel %vm7380_vm10, %v38668_v35, %v7349_v8  ;;  %9689 = vmatprep.mubr.f32.mxu0 %v44530_v56 }
 0x226   :  { %11053 = vrot.lane.b32.xlu0 %v38930_v58, %s37072_s29  ;;  %7491 = vmatprep.subr.mxu1 %v7384_v43 }
 0x227   :  { %11049 = vrot.lane.b32.xlu1 %v38937_v52, %s37072_s29  ;;  %7492 = vmatpush1.msra.mxu1 %v7383_v9 }
 0x228   :  { %v39139_v44 = vpop.permute.xlu0 %9551  ;;  %34741 = vmatmul.mubr.msk.f32.vlgmr.msra.gmra.mrb[6].mxu1 %vm177_vm1, %v38677_v2 }
 0x229   :  { %v9548_v41 = vpop.permute.xlu1 %9547  ;;  %v9587_v35 = vsel %vm9585_vm13, %v9550_v59, %v39139_v44  ;;  %7697 = vmatprep.mubr.f32.mxu1 %v44530_v56 }
 0x22a   :  { %v9586_v27 = vsel %vm9585_vm13, %v9548_v41, %v9550_v59  ;;  %9577 = vrot.lane.b32.xlu0 %v38427_v33, %s37070_s23  ;;  %9625 = vmatprep.subr.mxu0 %v9587_v35 }
 0x22b   :  { %11754 = vrot.lane.b32.xlu1 %v38959_v31, %s37073_s26  ;;  %9626 = vmatpush1.msra.mxu0 %v9586_v27 }
 0x22c   :  { %v7357_v11 = vpop.permute.xlu0 %7356  ;;  %34767 = vmatmul.mubr.msk.f32.vlgmr.msra.gmra.mrb[0].mxu0 %vm177_vm1, %v39148_v22 }
 0x22d   :  { %v9558_v55 = vpop.permute.xlu1 %9557  ;;  %v7388_v18 = vsel %vm7380_vm10, %v7357_v11, %v38726_v47  ;;  %v7387_v37 = vsel %vm7380_vm10, %v38696_v39, %v7357_v11  ;;  %9831 = vmatprep.mubr.f32.mxu0 %v44530_v56 }
 0x22e   :  { %11756 = vrot.lane.b32.xlu0 %v38973_v23, %s37073_s26  ;;  %7633 = vmatprep.subr.mxu1 %v7388_v18 }
 0x22f   :  { %11752 = vrot.lane.b32.xlu1 %v38980_v60, %s37073_s26  ;;  %7634 = vmatpush1.msra.mxu1 %v7387_v37 }
 0x230   :  { %v39167_v33 = vpop.permute.xlu0 %9559  ;;  %34743 = vmatmul.mubr.msk.f32.vlgmr.msra.gmra.mrb[0].mxu1 %vm177_vm1, %v38677_v2 }
 0x231   :  { %v39171_v1 = vpop.permute.xlu1 %9555  ;;  %v9591_v39 = vsel %vm9585_vm13, %v9558_v55, %v39167_v33  ;;  %7839 = vmatprep.mubr.f32.mxu1 %v44530_v56 }
 0x232   :  { %10288 = vrot.lane.b32.xlu0 %v39041_v0, %s37071_s27  ;;  %9767 = vmatprep.subr.mxu0 %v9591_v39  ;;  %v9590_v47 = vsel %vm9585_vm13, %v39171_v1, %v9558_v55 }
 0x233   :  { %11762 = vrot.lane.b32.xlu1 %v39000_v57, %s37073_s26  ;;  %9768 = vmatpush1.msra.mxu0 %v9590_v47 }
 0x234   :  { %v7365_v30 = vpop.permute.xlu0 %7364  ;;  %34769 = vmatmul.mubr.msk.f32.vlgmr.msra.gmra.mrb[4].mxu0 %vm177_vm1, %v39148_v22 }
 0x235   :  { %v9566_v16 = vpop.permute.xlu1 %9565  ;;  %v7392_v63 = vsel %vm7380_vm10, %v7365_v30, %v38752_v29  ;;  %v7391_v8 = vsel %vm7380_vm10, %v38722_v15, %v7365_v30  ;;  %9973 = vmatprep.mubr.f32.mxu0 %v44530_v56  ;;  %v39205_v29 = vld [vmem:[%s44285_s0 + $0x38] sm:$0xff] }
 0x236   :  { %11764 = vrot.lane.b32.xlu0 %v39018_v12, %s37073_s26  ;;  %7775 = vmatprep.subr.mxu1 %v7392_v63 }
 0x237   :  { %11760 = vrot.lane.b32.xlu1 %v39025_v26, %s37073_s26  ;;  %7776 = vmatpush1.msra.mxu1 %v7391_v8 }
 0x238   :  { %v39193_v59 = vpop.permute.xlu0 %9567  ;;  %34745 = vmatmul.mubr.msk.f32.vlgmr.msra.gmra.mrb[2].mxu1 %vm177_vm1, %v38677_v2 }
 0x239   :  { %v39197_v43 = vpop.permute.xlu1 %9563  ;;  %v9595_v15 = vsel %vm9585_vm13, %v9566_v16, %v39193_v59  ;;  %7981 = vmatprep.mubr.f32.mxu1 %v44530_v56 }
 0x23a   :  { %10296 = vrot.lane.b32.xlu0 %v39205_v29, %s37071_s27  ;;  %9909 = vmatprep.subr.mxu0 %v9595_v15  ;;  %v9594_v9 = vsel %vm9585_vm13, %v39197_v43, %v9566_v16 }
 0x23b   :  { %11770 = vrot.lane.b32.xlu1 %v39050_v3, %s37073_s26  ;;  %9910 = vmatpush1.msra.mxu0 %v9594_v9 }
 0x23c   :  { %v7373_v41 = vpop.permute.xlu0 %7372  ;;  %34771 = vmatmul.mubr.msk.f32.vlgmr.msra.gmra.mrb[6].mxu0 %vm177_vm1, %v39148_v22 }
 0x23d   :  { %v9574_v35 = vpop.permute.xlu1 %9573  ;;  %v7396_v27 = vsel %vm7380_vm10, %v7373_v41, %v38776_v4  ;;  %v7395_v11 = vsel %vm7380_vm10, %v38748_v51, %v7373_v41  ;;  %10115 = vmatprep.mubr.f32.mxu0 %v44530_v56  ;;  %v39236_v4 = vld [vmem:[%s44285_s0 + $0x58] sm:$0xff] }
 0x23e   :  { %11772 = vrot.lane.b32.xlu0 %v39064_v28, %s37073_s26  ;;  %7917 = vmatprep.subr.mxu1 %v7396_v27 }
 0x23f   :  { %11768 = vrot.lane.b32.xlu1 %v39071_v13, %s37073_s26  ;;  %7918 = vmatpush1.msra.mxu1 %v7395_v11  ;;  %v39292_v11 = vld [vmem:[%s44286_s1 + $0x70] sm:$0xff] }
 0x240   :  { %v39224_v55 = vpop.permute.xlu0 %9575  ;;  %34747 = vmatmul.mubr.msk.f32.vlgmr.msra.gmra.mrb[4].mxu1 %vm177_vm1, %v38677_v2 }
 0x241   :  { %v39228_v18 = vpop.permute.xlu1 %9571  ;;  %v9599_v51 = vsel %vm9585_vm13, %v9574_v35, %v39224_v55  ;;  %8290 = vmatprep.mubr.f32.mxu1 %v44530_v56 }
 0x242   :  { %10304 = vrot.lane.b32.xlu0 %v39236_v4, %s37071_s27  ;;  %10051 = vmatprep.subr.mxu0 %v9599_v51  ;;  %v9598_v37 = vsel %vm9585_vm13, %v39228_v18, %v9574_v35 }
 0x243   :  { %11778 = vrot.lane.b32.xlu1 %v39091_v6, %s37073_s26  ;;  %10052 = vmatpush1.msra.mxu0 %v9598_v37 }
 0x244   :  { %v8084_v2 = vpop.permute.xlu0 %8083  ;;  %34773 = vmatmul.mubr.msk.f32.vlgmr.msra.gmra.mrb[8].mxu0 %vm177_vm1, %v39148_v22 }
 0x245   :  { %v9582_v39 = vpop.permute.xlu1 %9581  ;;  %v8119_v47 = vsel %vm8115_vm11, %v8084_v2, %v38829_v14  ;;  %v8118_v30 = vsel %vm8115_vm11, %v38797_v45, %v8084_v2  ;;  %10257 = vmatprep.mubr.f32.mxu0 %v44530_v56  ;;  %v39264_v45 = vld [vmem:[%s44285_s0 + $0x78] sm:$0xff] }
 0x246   :  { %11780 = vrot.lane.b32.xlu0 %v39105_v49, %s37073_s26  ;;  %8226 = vmatprep.subr.mxu1 %v8119_v47 }
 0x247   :  { %11776 = vrot.lane.b32.xlu1 %v39112_v50, %s37073_s26  ;;  %8227 = vmatpush1.msra.mxu1 %v8118_v30 }
 0x248   :  { %v9584_v16 = vpop.permute.xlu0 %9583  ;;  %34750 = vmatmul.mubr.msk.f32.vlgmr.msra.gmra.mrb[6].mxu1 %vm177_vm1, %v38806_v53 }
 0x249   :  { %v39257_v63 = vpop.permute.xlu1 %9579  ;;  %v9603_v14 = vsel %vm9585_vm13, %v9582_v39, %v9584_v16  ;;  %8432 = vmatprep.mubr.f32.mxu1 %v44530_v56 }
 0x24a   :  { %10312 = vrot.lane.b32.xlu0 %v39264_v45, %s37071_s27  ;;  %10193 = vmatprep.subr.mxu0 %v9603_v14  ;;  %v9602_v8 = vsel %vm9585_vm13, %v39257_v63, %v9582_v39 }
 0x24b   :  { %11786 = vrot.lane.b32.xlu1 %v38916_v61, %s37073_s26  ;;  %10194 = vmatpush1.msra.mxu0 %v9602_v8 }
 0x24c   :  { %v8092_v15 = vpop.permute.xlu0 %8091  ;;  %34775 = vmatmul.mubr.msk.f32.vlgmr.msra.gmra.mrb[10].mxu0 %vm177_vm1, %v39148_v22 }
 0x24d   :  { %v10285_v9 = vpop.permute.xlu1 %10284  ;;  %v8123_v41 = vsel %vm8115_vm11, %v8092_v15, %v38855_v62  ;;  %v8122_v35 = vsel %vm8115_vm11, %v38825_v54, %v8092_v15  ;;  %10424 = vmatprep.mubr.f32.mxu0 %v44530_v56 }
 0x24e   :  { %11788 = vrot.lane.b32.xlu0 %v38930_v58, %s37073_s26  ;;  %8368 = vmatprep.subr.mxu1 %v8123_v41 }
 0x24f   :  { %11784 = vrot.lane.b32.xlu1 %v38937_v52, %s37073_s26  ;;  %8369 = vmatpush1.msra.mxu1 %v8122_v35 }
 0x250   :  { %v39283_v27 = vpop.permute.xlu0 %10286  ;;  %34752 = vmatmul.mubr.msk.f32.vlgmr.msra.gmra.mrb[0].mxu1 %vm177_vm1, %v38806_v53 }
 0x251   :  { %v10283_v62 = vpop.permute.xlu1 %10282  ;;  %v10322_v54 = vsel %vm10320_vm14, %v10285_v9, %v39283_v27  ;;  %8574 = vmatprep.mubr.f32.mxu1 %v44530_v56 }
 0x252   :  { %v10321_v51 = vsel %vm10320_vm14, %v10283_v62, %v10285_v9  ;;  %11023 = vrot.lane.b32.xlu0 %v39041_v0, %s37072_s29  ;;  %10360 = vmatprep.subr.mxu0 %v10322_v54 }
 0x253   :  { %12489 = vrot.lane.b32.xlu1 %v38959_v31, %s37074_s24  ;;  %10361 = vmatpush1.msra.mxu0 %v10321_v51 }
 0x254   :  { %v8100_v37 = vpop.permute.xlu0 %8099  ;;  %34776 = vmatmul.mubr.msk.f32.vlgmr.msra.gmra.mrb[0].mxu0 %vm177_vm1, %v39292_v11 }
 0x255   :  { %v10293_v2 = vpop.permute.xlu1 %10292  ;;  %v8127_v39 = vsel %vm8115_vm11, %v8100_v37, %v38881_v10  ;;  %v8126_v47 = vsel %vm8115_vm11, %v38851_v7, %v8100_v37  ;;  %10566 = vmatprep.mubr.f32.mxu0 %v44530_v56 }
 0x256   :  { %12491 = vrot.lane.b32.xlu0 %v38973_v23, %s37074_s24  ;;  %8510 = vmatprep.subr.mxu1 %v8127_v39 }
 0x257   :  { %12487 = vrot.lane.b32.xlu1 %v38980_v60, %s37074_s24  ;;  %8511 = vmatpush1.msra.mxu1 %v8126_v47 }
 0x258   :  { %v39311_v30 = vpop.permute.xlu0 %10294  ;;  %34754 = vmatmul.mubr.msk.f32.vlgmr.msra.gmra.mrb[2].mxu1 %vm177_vm1, %v38806_v53 }
 0x259   :  { %v39315_v16 = vpop.permute.xlu1 %10290  ;;  %v10326_v7 = vsel %vm10320_vm14, %v10293_v2, %v39311_v30  ;;  %8716 = vmatprep.mubr.f32.mxu1 %v44530_v56 }
 0x25a   :  { %11031 = vrot.lane.b32.xlu0 %v39205_v29, %s37072_s29  ;;  %10502 = vmatprep.subr.mxu0 %v10326_v7  ;;  %v10325_v10 = vsel %vm10320_vm14, %v39315_v16, %v10293_v2 }
 0x25b   :  { %12497 = vrot.lane.b32.xlu1 %v39000_v57, %s37074_s24  ;;  %10503 = vmatpush1.msra.mxu0 %v10325_v10 }
 0x25c   :  { %v8108_v14 = vpop.permute.xlu0 %8107  ;;  %34778 = vmatmul.mubr.msk.f32.vlgmr.msra.gmra.mrb[4].mxu0 %vm177_vm1, %v39292_v11 }
 0x25d   :  { %v10301_v8 = vpop.permute.xlu1 %10300  ;;  %v8131_v15 = vsel %vm8115_vm11, %v8108_v14, %v38905_v5  ;;  %v8130_v9 = vsel %vm8115_vm11, %v38877_v46, %v8108_v14  ;;  %10708 = vmatprep.mubr.f32.mxu0 %v44530_v56  ;;  %vm20129_vm11 = vcmask 998400  }
 0x25e   :  { %12499 = vrot.lane.b32.xlu0 %v39018_v12, %s37074_s24  ;;  %8652 = vmatprep.subr.mxu1 %v8131_v15 }
 0x25f   :  { %12495 = vrot.lane.b32.xlu1 %v39025_v26, %s37074_s24  ;;  %8653 = vmatpush1.msra.mxu1 %v8130_v9 }
 0x260   :  { %v39337_v41 = vpop.permute.xlu0 %10302  ;;  %34756 = vmatmul.mubr.msk.f32.vlgmr.msra.gmra.mrb[4].mxu1 %vm177_vm1, %v38806_v53 }
 0x261   :  { %v39341_v35 = vpop.permute.xlu1 %10298  ;;  %v10330_v46 = vsel %vm10320_vm14, %v10301_v8, %v39337_v41  ;;  %9025 = vmatprep.mubr.f32.mxu1 %v44530_v56 }
 0x262   :  { %11039 = vrot.lane.b32.xlu0 %v39236_v4, %s37072_s29  ;;  %10644 = vmatprep.subr.mxu0 %v10330_v46  ;;  %v10329_v5 = vsel %vm10320_vm14, %v39341_v35, %v10301_v8 }
 0x263   :  { %12505 = vrot.lane.b32.xlu1 %v39050_v3, %s37074_s24  ;;  %10645 = vmatpush1.msra.mxu0 %v10329_v5 }
 0x264   :  { %v8819_v62 = vpop.permute.xlu0 %8818  ;;  %34780 = vmatmul.mubr.msk.f32.vlgmr.msra.gmra.mrb[6].mxu0 %vm177_vm1, %v39292_v11 }
 0x265   :  { %v10309_v53 = vpop.permute.xlu1 %10308  ;;  %v8854_v54 = vsel %vm8850_vm12, %v8819_v62, %v38988_v48  ;;  %v8853_v51 = vsel %vm8850_vm12, %v38941_v24, %v8819_v62  ;;  %10850 = vmatprep.mubr.f32.mxu0 %v44530_v56 }
 0x266   :  { %12507 = vrot.lane.b32.xlu0 %v39064_v28, %s37074_s24  ;;  %8961 = vmatprep.subr.mxu1 %v8854_v54 }
 0x267   :  { %12503 = vrot.lane.b32.xlu1 %v39071_v13, %s37074_s24  ;;  %8962 = vmatpush1.msra.mxu1 %v8853_v51 }
 0x268   :  { %v39363_v37 = vpop.permute.xlu0 %10310  ;;  %34759 = vmatmul.mubr.msk.f32.vlgmr.msra.gmra.mrb[6].mxu1 %vm177_vm1, %v38950_v25 }
 0x269   :  { %v39367_v2 = vpop.permute.xlu1 %10306  ;;  %v10334_v24 = vsel %vm10320_vm14, %v10309_v53, %v39363_v37  ;;  %9167 = vmatprep.mubr.f32.mxu1 %v44530_v56 }
 0x26a   :  { %11047 = vrot.lane.b32.xlu0 %v39264_v45, %s37072_s29  ;;  %10786 = vmatprep.subr.mxu0 %v10334_v24  ;;  %v10333_v48 = vsel %vm10320_vm14, %v39367_v2, %v10309_v53  ;;  %v39421_v53 = vld [vmem:[%s44286_s1 + $0x78] sm:$0xff]  ;;  %s37087_s29 = smov 113  }
 0x26b   :  { %12513 = vrot.lane.b32.xlu1 %v39091_v6, %s37074_s24  ;;  %10787 = vmatpush1.msra.mxu0 %v10333_v48 }
 0x26c   :  { %v8827_v39 = vpop.permute.xlu0 %8826  ;;  %34782 = vmatmul.mubr.msk.f32.vlgmr.msra.gmra.mrb[8].mxu0 %vm177_vm1, %v39292_v11 }
 0x26d   :  { %v10317_v47 = vpop.permute.xlu1 %10316  ;;  %v8858_v7 = vsel %vm8850_vm12, %v8827_v39, %v39033_v40  ;;  %v8857_v10 = vsel %vm8850_vm12, %v38984_v20, %v8827_v39  ;;  %10992 = vmatprep.mubr.f32.mxu0 %v44530_v56 }
 0x26e   :  { %12515 = vrot.lane.b32.xlu0 %v39105_v49, %s37074_s24  ;;  %9103 = vmatprep.subr.mxu1 %v8858_v7 }
 0x26f   :  { %12511 = vrot.lane.b32.xlu1 %v39112_v50, %s37074_s24  ;;  %9104 = vmatpush1.msra.mxu1 %v8857_v10 }
 0x270   :  { %v10319_v14 = vpop.permute.xlu0 %10318  ;;  %34761 = vmatmul.mubr.msk.f32.vlgmr.msra.gmra.mrb[0].mxu1 %vm177_vm1, %v38950_v25 }
 0x271   :  { %v39391_v8 = vpop.permute.xlu1 %10314  ;;  %v10338_v40 = vsel %vm10320_vm14, %v10317_v47, %v10319_v14  ;;  %9309 = vmatprep.mubr.f32.mxu1 %v44530_v56 }
 0x272   :  { %11758 = vrot.lane.b32.xlu0 %v39041_v0, %s37073_s26  ;;  %10928 = vmatprep.subr.mxu0 %v10338_v40  ;;  %v10337_v20 = vsel %vm10320_vm14, %v39391_v8, %v10317_v47 }
 0x273   :  { %12521 = vrot.lane.b32.xlu1 %v38916_v61, %s37074_s24  ;;  %10929 = vmatpush1.msra.mxu0 %v10337_v20 }
 0x274   :  { %v8835_v15 = vpop.permute.xlu0 %8834  ;;  %34784 = vmatmul.mubr.msk.f32.vlgmr.msra.gmra.mrb[10].mxu0 %vm177_vm1, %v39292_v11 }
 0x275   :  { %v11020_v9 = vpop.permute.xlu1 %11019  ;;  %v8862_v46 = vsel %vm8850_vm12, %v8835_v15, %v39079_v21  ;;  %v8861_v5 = vsel %vm8850_vm12, %v39029_v34, %v8835_v15  ;;  %11159 = vmatprep.mubr.f32.mxu0 %v44530_v56 }
 0x276   :  { %12523 = vrot.lane.b32.xlu0 %v38930_v58, %s37074_s24  ;;  %9245 = vmatprep.subr.mxu1 %v8862_v46 }
 0x277   :  { %12519 = vrot.lane.b32.xlu1 %v38937_v52, %s37074_s24  ;;  %9246 = vmatpush1.msra.mxu1 %v8861_v5 }
 0x278   :  { %v39412_v62 = vpop.permute.xlu0 %11021  ;;  %34763 = vmatmul.mubr.msk.f32.vlgmr.msra.gmra.mrb[2].mxu1 %vm177_vm1, %v38950_v25 }
 0x279   :  { %v11018_v21 = vpop.permute.xlu1 %11017  ;;  %v11057_v34 = vsel %vm11055_vm15, %v11020_v9, %v39412_v62  ;;  %9451 = vmatprep.mubr.f32.mxu1 %v44530_v56 }
 0x27a   :  { %v11056_v54 = vsel %vm11055_vm15, %v11018_v21, %v11020_v9  ;;  %11766 = vrot.lane.b32.xlu0 %v39205_v29, %s37073_s26  ;;  %11095 = vmatprep.subr.mxu0 %v11057_v34 }
 0x27b   :  { %13224 = vrot.lane.b32.xlu1 %v38959_v31, %s37075_s30  ;;  %11096 = vmatpush1.msra.mxu0 %v11056_v54 }
 0x27c   :  { %v8843_v51 = vpop.permute.xlu0 %8842  ;;  %34785 = vmatmul.mubr.msk.f32.vlgmr.msra.gmra.mrb[0].mxu0 %vm177_vm1, %v39421_v53 }
 0x27d   :  { %v11028_v24 = vpop.permute.xlu1 %11027  ;;  %v8866_v48 = vsel %vm8850_vm12, %v8843_v51, %v39118_v17  ;;  %v8865_v39 = vsel %vm8850_vm12, %v39075_v38, %v8843_v51  ;;  %11301 = vmatprep.mubr.f32.mxu0 %v44530_v56 }
 0x27e   :  { %13226 = vrot.lane.b32.xlu0 %v38973_v23, %s37075_s30  ;;  %9387 = vmatprep.subr.mxu1 %v8866_v48 }
 0x27f   :  { %13222 = vrot.lane.b32.xlu1 %v38980_v60, %s37075_s30  ;;  %9388 = vmatpush1.msra.mxu1 %v8865_v39 }
 0x280   :  { %v39440_v47 = vpop.permute.xlu0 %11029  ;;  %34765 = vmatmul.mubr.msk.f32.vlgmr.msra.gmra.mrb[4].mxu1 %vm177_vm1, %v38950_v25 }
 0x281   :  { %v39444_v7 = vpop.permute.xlu1 %11025  ;;  %v11061_v38 = vsel %vm11055_vm15, %v11028_v24, %v39440_v47  ;;  %9760 = vmatprep.mubr.f32.mxu1 %v44530_v56 }
 0x282   :  { %11774 = vrot.lane.b32.xlu0 %v39236_v4, %s37073_s26  ;;  %11237 = vmatprep.subr.mxu0 %v11061_v38  ;;  %v11060_v17 = vsel %vm11055_vm15, %v39444_v7, %v11028_v24 }
 0x283   :  { %13232 = vrot.lane.b32.xlu1 %v39000_v57, %s37075_s30  ;;  %11238 = vmatpush1.msra.mxu0 %v11060_v17 }
 0x284   :  { %v9554_v10 = vpop.permute.xlu0 %9553  ;;  %34787 = vmatmul.mubr.msk.f32.vlgmr.msra.gmra.mrb[4].mxu0 %vm177_vm1, %v39421_v53 }
 0x285   :  { %v11036_v25 = vpop.permute.xlu1 %11035  ;;  %v9589_v14 = vsel %vm9585_vm13, %v9554_v10, %v39171_v1  ;;  %v9588_v40 = vsel %vm9585_vm13, %v39139_v44, %v9554_v10  ;;  %11443 = vmatprep.mubr.f32.mxu0 %v44530_v56 }
 0x286   :  { %13234 = vrot.lane.b32.xlu0 %v39018_v12, %s37075_s30  ;;  %9696 = vmatprep.subr.mxu1 %v9589_v14 }
 0x287   :  { %13230 = vrot.lane.b32.xlu1 %v39025_v26, %s37075_s30  ;;  %9697 = vmatpush1.msra.mxu1 %v9588_v40 }
 0x288   :  { %v39466_v20 = vpop.permute.xlu0 %11037  ;;  %34768 = vmatmul.mubr.msk.f32.vlgmr.msra.gmra.mrb[6].mxu1 %vm177_vm1, %v39148_v22 }
 0x289   :  { %v39470_v15 = vpop.permute.xlu1 %11033  ;;  %v11065_v44 = vsel %vm11055_vm15, %v11036_v25, %v39466_v20  ;;  %9902 = vmatprep.mubr.f32.mxu1 %v44530_v56 }
 0x28a   :  { %11782 = vrot.lane.b32.xlu0 %v39264_v45, %s37073_s26  ;;  %11379 = vmatprep.subr.mxu0 %v11065_v44  ;;  %v11064_v1 = vsel %vm11055_vm15, %v39470_v15, %v11036_v25  ;;  %v39550_v44 = vld [vmem:[%s44286_s1 + $0x80] sm:$0xff]  ;;  %s37079_s26 = smov 56  }
 0x28b   :  { %13240 = vrot.lane.b32.xlu1 %v39050_v3, %s37075_s30  ;;  %11380 = vmatpush1.msra.mxu0 %v11064_v1 }
 0x28c   :  { %v9562_v9 = vpop.permute.xlu0 %9561  ;;  %34789 = vmatmul.mubr.msk.f32.vlgmr.msra.gmra.mrb[6].mxu0 %vm177_vm1, %v39421_v53 }
 0x28d   :  { %v11044_v46 = vpop.permute.xlu1 %11043  ;;  %v9593_v5 = vsel %vm9585_vm13, %v9562_v9, %v39197_v43  ;;  %v9592_v21 = vsel %vm9585_vm13, %v39167_v33, %v9562_v9  ;;  %11585 = vmatprep.mubr.f32.mxu0 %v44530_v56 }
 0x28e   :  { %13242 = vrot.lane.b32.xlu0 %v39064_v28, %s37075_s30  ;;  %9838 = vmatprep.subr.mxu1 %v9593_v5 }
 0x28f   :  { %13238 = vrot.lane.b32.xlu1 %v39071_v13, %s37075_s30  ;;  %9839 = vmatpush1.msra.mxu1 %v9592_v21 }
 0x290   :  { %v39492_v34 = vpop.permute.xlu0 %11045  ;;  %34770 = vmatmul.mubr.msk.f32.vlgmr.msra.gmra.mrb[0].mxu1 %vm177_vm1, %v39148_v22 }
 0x291   :  { %v39496_v54 = vpop.permute.xlu1 %11041  ;;  %v11069_v33 = vsel %vm11055_vm15, %v11044_v46, %v39492_v34  ;;  %10044 = vmatprep.mubr.f32.mxu1 %v44530_v56 }
 0x292   :  { %12493 = vrot.lane.b32.xlu0 %v39041_v0, %s37074_s24  ;;  %11521 = vmatprep.subr.mxu0 %v11069_v33  ;;  %v11068_v43 = vsel %vm11055_vm15, %v39496_v54, %v11044_v46 }
 0x293   :  { %13248 = vrot.lane.b32.xlu1 %v39091_v6, %s37075_s30  ;;  %11522 = vmatpush1.msra.mxu0 %v11068_v43 }
 0x294   :  { %v9570_v51 = vpop.permute.xlu0 %9569  ;;  %34791 = vmatmul.mubr.msk.f32.vlgmr.msra.gmra.mrb[8].mxu0 %vm177_vm1, %v39421_v53 }
 0x295   :  { %v11052_v24 = vpop.permute.xlu1 %11051  ;;  %v9597_v48 = vsel %vm9585_vm13, %v9570_v51, %v39228_v18  ;;  %v9596_v39 = vsel %vm9585_vm13, %v39193_v59, %v9570_v51  ;;  %11727 = vmatprep.mubr.f32.mxu0 %v44530_v56 }
 0x296   :  { %13250 = vrot.lane.b32.xlu0 %v39105_v49, %s37075_s30  ;;  %9980 = vmatprep.subr.mxu1 %v9597_v48 }
 0x297   :  { %13246 = vrot.lane.b32.xlu1 %v39112_v50, %s37075_s30  ;;  %9981 = vmatpush1.msra.mxu1 %v9596_v39 }
 0x298   :  { %v11054_v38 = vpop.permute.xlu0 %11053  ;;  %34772 = vmatmul.mubr.msk.f32.vlgmr.msra.gmra.mrb[2].mxu1 %vm177_vm1, %v39148_v22 }
 0x299   :  { %v39520_v17 = vpop.permute.xlu1 %11049  ;;  %v11073_v18 = vsel %vm11055_vm15, %v11052_v24, %v11054_v38  ;;  %10186 = vmatprep.mubr.f32.mxu1 %v44530_v56 }
 0x29a   :  { %12501 = vrot.lane.b32.xlu0 %v39205_v29, %s37074_s24  ;;  %11663 = vmatprep.subr.mxu0 %v11073_v18  ;;  %v11072_v59 = vsel %vm11055_vm15, %v39520_v17, %v11052_v24 }
 0x29b   :  { %13256 = vrot.lane.b32.xlu1 %v38916_v61, %s37075_s30  ;;  %11664 = vmatpush1.msra.mxu0 %v11072_v59 }
 0x29c   :  { %v9578_v10 = vpop.permute.xlu0 %9577  ;;  %34793 = vmatmul.mubr.msk.f32.vlgmr.msra.gmra.mrb[10].mxu0 %vm177_vm1, %v39421_v53 }
 0x29d   :  { %v11755_v25 = vpop.permute.xlu1 %11754  ;;  %v9601_v14 = vsel %vm9585_vm13, %v9578_v10, %v39257_v63  ;;  %v9600_v40 = vsel %vm9585_vm13, %v39224_v55, %v9578_v10  ;;  %11894 = vmatprep.mubr.f32.mxu0 %v44530_v56  ;;  %v39674_v10 = vld [vmem:[%s44285_s0 + $0x90] sm:$0xff]  ;;  %vm20757_vm13 = vcmask 982016  }
 0x29e   :  { %13258 = vrot.lane.b32.xlu0 %v38930_v58, %s37075_s30  ;;  %10122 = vmatprep.subr.mxu1 %v9601_v14 }
 0x29f   :  { %13254 = vrot.lane.b32.xlu1 %v38937_v52, %s37075_s30  ;;  %10123 = vmatpush1.msra.mxu1 %v9600_v40  ;;  %v39694_v40 = vld [vmem:[%s44286_s1 + $0x88] sm:$0xff] }
 0x2a0   :  { %v39541_v61 = vpop.permute.xlu0 %11756  ;;  %34774 = vmatmul.mubr.msk.f32.vlgmr.msra.gmra.mrb[4].mxu1 %vm177_vm1, %v39148_v22 }
 0x2a1   :  { %v11753_v63 = vpop.permute.xlu1 %11752  ;;  %v11792_v55 = vsel %vm11790_vm6, %v11755_v25, %v39541_v61  ;;  %10495 = vmatprep.mubr.f32.mxu1 %v44530_v56 }
 0x2a2   :  { %v11791_v58 = vsel %vm11790_vm6, %v11753_v63, %v11755_v25  ;;  %12509 = vrot.lane.b32.xlu0 %v39236_v4, %s37074_s24  ;;  %11830 = vmatprep.subr.mxu0 %v11792_v55  ;;  %v39681_v25 = vld [vmem:[%s44285_s0 + $0x80] sm:$0xff] }
 0x2a3   :  { %13959 = vrot.lane.b32.xlu1 %v38959_v31, %s37076_s19  ;;  %11831 = vmatpush1.msra.mxu0 %v11791_v58 }
 0x2a4   :  { %v10289_v52 = vpop.permute.xlu0 %10288  ;;  %34794 = vmatmul.mubr.msk.f32.vlgmr.msra.gmra.mrb[0].mxu0 %vm177_vm1, %v39550_v44 }
 0x2a5   :  { %v11763_v22 = vpop.permute.xlu1 %11762  ;;  %v10324_v1 = vsel %vm10320_vm14, %v10289_v52, %v39315_v16  ;;  %v10323_v9 = vsel %vm10320_vm14, %v39283_v27, %v10289_v52  ;;  %12036 = vmatprep.mubr.f32.mxu0 %v44530_v56 }
 0x2a6   :  { %13961 = vrot.lane.b32.xlu0 %v38973_v23, %s37076_s19  ;;  %10431 = vmatprep.subr.mxu1 %v10324_v1  ;;  %v57_v1 = vld [vmem:[%s44285_s0 + $0x98] sm:$0xff] }
 0x2a7   :  { %13957 = vrot.lane.b32.xlu1 %v38980_v60, %s37076_s19  ;;  %10432 = vmatpush1.msra.mxu1 %v10323_v9 }
 0x2a8   :  { %v39569_v31 = vpop.permute.xlu0 %11764  ;;  %34777 = vmatmul.mubr.msk.f32.vlgmr.msra.gmra.mrb[6].mxu1 %vm177_vm1, %v39292_v11 }
 0x2a9   :  { %v39573_v46 = vpop.permute.xlu1 %11760  ;;  %v11796_v27 = vsel %vm11790_vm6, %v11763_v22, %v39569_v31  ;;  %10637 = vmatprep.mubr.f32.mxu1 %v44530_v56 }
 0x2aa   :  { %12517 = vrot.lane.b32.xlu0 %v39264_v45, %s37074_s24  ;;  %11972 = vmatprep.subr.mxu0 %v11796_v27  ;;  %v11795_v23 = vsel %vm11790_vm6, %v39573_v46, %v11763_v22  ;;  %s37081_s24 = smov 120  }
 0x2ab   :  { %13967 = vrot.lane.b32.xlu1 %v39000_v57, %s37076_s19  ;;  %11973 = vmatpush1.msra.mxu0 %v11795_v23 }
 0x2ac   :  { %v10297_v60 = vpop.permute.xlu0 %10296  ;;  %34796 = vmatmul.mubr.msk.f32.vlgmr.msra.gmra.mrb[4].mxu0 %vm177_vm1, %v39550_v44 }
 0x2ad   :  { %v11771_v16 = vpop.permute.xlu1 %11770  ;;  %v10328_v5 = vsel %vm10320_vm14, %v10297_v60, %v39341_v35  ;;  %v10327_v21 = vsel %vm10320_vm14, %v39311_v30, %v10297_v60  ;;  %12178 = vmatprep.mubr.f32.mxu0 %v44530_v56 }
 0x2ae   :  { %13969 = vrot.lane.b32.xlu0 %v39018_v12, %s37076_s19  ;;  %10573 = vmatprep.subr.mxu1 %v10328_v5 }
 0x2af   :  { %13965 = vrot.lane.b32.xlu1 %v39025_v26, %s37076_s19  ;;  %10574 = vmatpush1.msra.mxu1 %v10327_v21 }
 0x2b0   :  { %v39595_v57 = vpop.permute.xlu0 %11772  ;;  %34779 = vmatmul.mubr.msk.f32.vlgmr.msra.gmra.mrb[0].mxu1 %vm177_vm1, %v39292_v11 }
 0x2b1   :  { %v39599_v33 = vpop.permute.xlu1 %11768  ;;  %v11800_v30 = vsel %vm11790_vm6, %v11771_v16, %v39595_v57  ;;  %10779 = vmatprep.mubr.f32.mxu1 %v44530_v56 }
 0x2b2   :  { %13228 = vrot.lane.b32.xlu0 %v39041_v0, %s37075_s30  ;;  %12114 = vmatprep.subr.mxu0 %v11800_v30  ;;  %v11799_v12 = vsel %vm11790_vm6, %v39599_v33, %v11771_v16 }
 0x2b3   :  { %13975 = vrot.lane.b32.xlu1 %v39050_v3, %s37076_s19  ;;  %12115 = vmatpush1.msra.mxu0 %v11799_v12 }
 0x2b4   :  { %v10305_v26 = vpop.permute.xlu0 %10304  ;;  %34798 = vmatmul.mubr.msk.f32.vlgmr.msra.gmra.mrb[6].mxu0 %vm177_vm1, %v39550_v44 }
 0x2b5   :  { %v11779_v35 = vpop.permute.xlu1 %11778  ;;  %v10332_v43 = vsel %vm10320_vm14, %v10305_v26, %v39367_v2  ;;  %v10331_v51 = vsel %vm10320_vm14, %v39337_v41, %v10305_v26  ;;  %12320 = vmatprep.mubr.f32.mxu0 %v44530_v56 }
 0x2b6   :  { %13977 = vrot.lane.b32.xlu0 %v39064_v28, %s37076_s19  ;;  %10715 = vmatprep.subr.mxu1 %v10332_v43 }
 0x2b7   :  { %13973 = vrot.lane.b32.xlu1 %v39071_v13, %s37076_s19  ;;  %10716 = vmatpush1.msra.mxu1 %v10331_v51 }
 0x2b8   :  { %v39621_v3 = vpop.permute.xlu0 %11780  ;;  %34781 = vmatmul.mubr.msk.f32.vlgmr.msra.gmra.mrb[2].mxu1 %vm177_vm1, %v39292_v11 }
 0x2b9   :  { %v39625_v24 = vpop.permute.xlu1 %11776  ;;  %v11804_v41 = vsel %vm11790_vm6, %v11779_v35, %v39621_v3  ;;  %10921 = vmatprep.mubr.f32.mxu1 %v44530_v56 }
 0x2ba   :  { %13236 = vrot.lane.b32.xlu0 %v39205_v29, %s37075_s30  ;;  %12256 = vmatprep.subr.mxu0 %v11804_v41  ;;  %v11803_v28 = vsel %vm11790_vm6, %v39625_v24, %v11779_v35 }
 0x2bb   :  { %13983 = vrot.lane.b32.xlu1 %v39091_v6, %s37076_s19  ;;  %12257 = vmatpush1.msra.mxu0 %v11803_v28 }
 0x2bc   :  { %v10313_v13 = vpop.permute.xlu0 %10312  ;;  %34800 = vmatmul.mubr.msk.f32.vlgmr.msra.gmra.mrb[8].mxu0 %vm177_vm1, %v39550_v44 }
 0x2bd   :  { %v11787_v2 = vpop.permute.xlu1 %11786  ;;  %v10336_v48 = vsel %vm10320_vm14, %v10313_v13, %v39391_v8  ;;  %v10335_v39 = vsel %vm10320_vm14, %v39363_v37, %v10313_v13  ;;  %12462 = vmatprep.mubr.f32.mxu0 %v44530_v56 }
 0x2be   :  { %13985 = vrot.lane.b32.xlu0 %v39105_v49, %s37076_s19  ;;  %10857 = vmatprep.subr.mxu1 %v10336_v48 }
 0x2bf   :  { %13981 = vrot.lane.b32.xlu1 %v39112_v50, %s37076_s19  ;;  %10858 = vmatpush1.msra.mxu1 %v10335_v39  ;;  %v39660_v50 = vld [vmem:[%s44285_s0 + $0x88] sm:$0xff] }
 0x2c0   :  { %v11789_v6 = vpop.permute.xlu0 %11788  ;;  %34783 = vmatmul.mubr.msk.f32.vlgmr.msra.gmra.mrb[4].mxu1 %vm177_vm1, %v39292_v11 }
 0x2c1   :  { %v39649_v38 = vpop.permute.xlu1 %11784  ;;  %v11808_v8 = vsel %vm11790_vm6, %v11787_v2, %v11789_v6  ;;  %11230 = vmatprep.mubr.f32.mxu1 %v44530_v56 }
 0x2c2   :  { %13244 = vrot.lane.b32.xlu0 %v39236_v4, %s37075_s30  ;;  %12398 = vmatprep.subr.mxu0 %v11808_v8  ;;  %v11807_v49 = vsel %vm11790_vm6, %v39649_v38, %v11787_v2 }
 0x2c3   :  { %13991 = vrot.lane.b32.xlu1 %v39660_v50, %s37076_s19  ;;  %12399 = vmatpush1.msra.mxu0 %v11807_v49 }
 0x2c4   :  { %v11024_v11 = vpop.permute.xlu0 %11023  ;;  %34802 = vmatmul.mubr.msk.f32.vlgmr.msra.gmra.mrb[10].mxu0 %vm177_vm1, %v39550_v44 }
 0x2c5   :  { %v12490_v37 = vpop.permute.xlu1 %12489  ;;  %v11059_v18 = vsel %vm11055_vm15, %v11024_v11, %v39444_v7  ;;  %v11058_v59 = vsel %vm11055_vm15, %v39412_v62, %v11024_v11  ;;  %12629 = vmatprep.mubr.f32.mxu0 %v44530_v56 }
 0x2c6   :  { %13993 = vrot.lane.b32.xlu0 %v39674_v10, %s37076_s19  ;;  %11166 = vmatprep.subr.mxu1 %v11059_v18 }
 0x2c7   :  { %13989 = vrot.lane.b32.xlu1 %v39681_v25, %s37076_s19  ;;  %11167 = vmatpush1.msra.mxu1 %v11058_v59 }
 0x2c8   :  { %v39685_v62 = vpop.permute.xlu0 %12491  ;;  %34786 = vmatmul.mubr.msk.f32.vlgmr.msra.gmra.mrb[6].mxu1 %vm177_vm1, %v39421_v53 }
 0x2c9   :  { %v12488_v7 = vpop.permute.xlu1 %12487  ;;  %v12527_v14 = vsel %vm12525_vm7, %v12490_v37, %v39685_v62  ;;  %11372 = vmatprep.mubr.f32.mxu1 %v44530_v56 }
 0x2ca   :  { %v12526_v63 = vsel %vm12525_vm7, %v12488_v7, %v12490_v37  ;;  %13252 = vrot.lane.b32.xlu0 %v39264_v45, %s37075_s30  ;;  %12565 = vmatprep.subr.mxu0 %v12527_v14 }
 0x2cb   :  { %13963 = vrot.lane.b32.xlu1 %v39041_v0, %s37076_s19  ;;  %12566 = vmatpush1.msra.mxu0 %v12526_v63 }
 0x2cc   :  { %v11032_v55 = vpop.permute.xlu0 %11031  ;;  %34803 = vmatmul.mubr.msk.f32.vlgmr.msra.gmra.mrb[0].mxu0 %vm177_vm1, %v39694_v40 }
 0x2cd   :  { %v12498_v58 = vpop.permute.xlu1 %12497  ;;  %v11063_v52 = vsel %vm11055_vm15, %v11032_v55, %v39470_v15  ;;  %v11062_v22 = vsel %vm11055_vm15, %v39440_v47, %v11032_v55  ;;  %12771 = vmatprep.mubr.f32.mxu0 %v44530_v56 }
 0x2ce   :  { %13971 = vrot.lane.b32.xlu0 %v39205_v29, %s37076_s19  ;;  %11308 = vmatprep.subr.mxu1 %v11063_v52 }
 0x2cf   :  { %13979 = vrot.lane.b32.xlu1 %v39236_v4, %s37076_s19  ;;  %11309 = vmatpush1.msra.mxu1 %v11062_v22 }
 0x2d0   :  { %v39713_v0 = vpop.permute.xlu0 %12499  ;;  %34788 = vmatmul.mubr.msk.f32.vlgmr.msra.gmra.mrb[0].mxu1 %vm177_vm1, %v39421_v53 }
 0x2d1   :  { %v39720_v47 = vpop.permute.xlu1 %12495  ;;  %v12531_v15 = vsel %vm12525_vm7, %v12498_v58, %v39713_v0  ;;  %11514 = vmatprep.mubr.f32.mxu1 %v44530_v56 }
 0x2d2   :  { %13987 = vrot.lane.b32.xlu0 %v39264_v45, %s37076_s19  ;;  %12707 = vmatprep.subr.mxu0 %v12531_v15  ;;  %v12530_v29 = vsel %vm12525_vm7, %v39720_v47, %v12498_v58 }
 0x2d3   :  { %15353 = vrot.lane.b32.xlu1 %v57_v1, %s37058_s21  ;;  %12708 = vmatpush1.msra.mxu0 %v12530_v29 }
 0x2d4   :  { %v11040_v4 = vpop.permute.xlu0 %11039  ;;  %34805 = vmatmul.mubr.msk.f32.vlgmr.msra.gmra.mrb[4].mxu0 %vm177_vm1, %v39694_v40 }
 0x2d5   :  { %v12506_v9 = vpop.permute.xlu1 %12505  ;;  %v11067_v27 = vsel %vm11055_vm15, %v11040_v4, %v39496_v54  ;;  %v11066_v23 = vsel %vm11055_vm15, %v39466_v20, %v11040_v4  ;;  %12913 = vmatprep.mubr.f32.mxu0 %v44530_v56 }
 0x2d6   :  { %16017 = vrot.lane.b32.xlu0 %v57_v1, %s37059_s13  ;;  %11450 = vmatprep.subr.mxu1 %v11067_v27 }
 0x2d7   :  { %16681 = vrot.lane.b32.xlu1 %v57_v1, %s37060_s14  ;;  %11451 = vmatpush1.msra.mxu1 %v11066_v23 }
 0x2d8   :  { %v39739_v45 = vpop.permute.xlu0 %12507  ;;  %34790 = vmatmul.mubr.msk.f32.vlgmr.msra.gmra.mrb[2].mxu1 %vm177_vm1, %v39421_v53 }
 0x2d9   :  { %v39743_v60 = vpop.permute.xlu1 %12503  ;;  %v12535_v54 = vsel %vm12525_vm7, %v12506_v9, %v39739_v45  ;;  %11656 = vmatprep.mubr.f32.mxu1 %v44530_v56 }
 0x2da   :  { %17345 = vrot.lane.b32.xlu0 %v57_v1, %s37061_s15  ;;  %12849 = vmatprep.subr.mxu0 %v12535_v54  ;;  %v12534_v20 = vsel %vm12525_vm7, %v39743_v60, %v12506_v9 }
 0x2db   :  { %12850 = vmatpush1.msra.mxu0 %v12534_v20 }
 0x2dc   :  { %v11048_v16 = vpop.permute.xlu0 %11047  ;;  %34807 = vmatmul.mubr.msk.f32.vlgmr.msra.gmra.mrb[6].mxu0 %vm177_vm1, %v39694_v40 }
 0x2dd   :  { %v12514_v5 = vpop.permute.xlu1 %12513  ;;  %v11071_v21 = vsel %vm11055_vm15, %v11048_v16, %v39520_v17  ;;  %v11070_v30 = vsel %vm11055_vm15, %v39492_v34, %v11048_v16  ;;  %13055 = vmatprep.mubr.f32.mxu0 %v44530_v56 }
 0x2de   :  { %11592 = vmatprep.subr.mxu1 %v11071_v21 }
 0x2df   :  { %11593 = vmatpush1.msra.mxu1 %v11070_v30 }
 0x2e0   :  { %v39758_v12 = vpop.permute.xlu0 %12515  ;;  %34792 = vmatmul.mubr.msk.f32.vlgmr.msra.gmra.mrb[4].mxu1 %vm177_vm1, %v39421_v53 }
 0x2e1   :  { %v39762_v26 = vpop.permute.xlu1 %12511  ;;  %v12539_v35 = vsel %vm12525_vm7, %v12514_v5, %v39758_v12  ;;  %11965 = vmatprep.mubr.f32.mxu1 %v44530_v56 }
 0x2e2   :  { %12991 = vmatprep.subr.mxu0 %v12539_v35  ;;  %v12538_v34 = vsel %vm12525_vm7, %v39762_v26, %v12514_v5 }
 0x2e3   :  { %12992 = vmatpush1.msra.mxu0 %v12538_v34 }
 0x2e4   :  { %v11759_v17 = vpop.permute.xlu0 %11758  ;;  %34809 = vmatmul.mubr.msk.f32.vlgmr.msra.gmra.mrb[8].mxu0 %vm177_vm1, %v39694_v40 }
 0x2e5   :  { %v12522_v43 = vpop.permute.xlu1 %12521  ;;  %v11794_v53 = vsel %vm11790_vm6, %v11759_v17, %v39573_v46  ;;  %v11793_v51 = vsel %vm11790_vm6, %v39541_v61, %v11759_v17  ;;  %13197 = vmatprep.mubr.f32.mxu0 %v44530_v56 }
 0x2e6   :  { %11901 = vmatprep.subr.mxu1 %v11794_v53 }
 0x2e7   :  { %11902 = vmatpush1.msra.mxu1 %v11793_v51 }
 0x2e8   :  { %v12524_v41 = vpop.permute.xlu0 %12523  ;;  %34795 = vmatmul.mubr.msk.f32.vlgmr.msra.gmra.mrb[6].mxu1 %vm177_vm1, %v39550_v44 }
 0x2e9   :  { %v39778_v28 = vpop.permute.xlu1 %12519  ;;  %v12543_v13 = vsel %vm12525_vm7, %v12522_v43, %v12524_v41  ;;  %12107 = vmatprep.mubr.f32.mxu1 %v44530_v56 }
 0x2ea   :  { %13133 = vmatprep.subr.mxu0 %v12543_v13  ;;  %v12542_v46 = vsel %vm12525_vm7, %v39778_v28, %v12522_v43 }
 0x2eb   :  { %13134 = vmatpush1.msra.mxu0 %v12542_v46 }
 0x2ec   :  { %v11767_v61 = vpop.permute.xlu0 %11766  ;;  %34811 = vmatmul.mubr.msk.f32.vlgmr.msra.gmra.mrb[10].mxu0 %vm177_vm1, %v39694_v40 }
 0x2ed   :  { %v13225_v2 = vpop.permute.xlu1 %13224  ;;  %v11798_v48 = vsel %vm11790_vm6, %v11767_v61, %v39599_v33  ;;  %v11797_v39 = vsel %vm11790_vm6, %v39569_v31, %v11767_v61  ;;  %13364 = vmatprep.mubr.f32.mxu0 %v44530_v56  ;;  %v39800_v33 = vld [vmem:[%s44286_s1 + $0x90] sm:$0xff] }
 0x2ee   :  { %12043 = vmatprep.subr.mxu1 %v11798_v48 }
 0x2ef   :  { %12044 = vmatpush1.msra.mxu1 %v11797_v39 }
 0x2f0   :  { %v39791_v6 = vpop.permute.xlu0 %13226  ;;  %34797 = vmatmul.mubr.msk.f32.vlgmr.msra.gmra.mrb[0].mxu1 %vm177_vm1, %v39550_v44 }
 0x2f1   :  { %v13223_v8 = vpop.permute.xlu1 %13222  ;;  %v13262_v49 = vsel %vm13260_vm8, %v13225_v2, %v39791_v6  ;;  %12249 = vmatprep.mubr.f32.mxu1 %v44530_v56 }
 0x2f2   :  { %v13261_v31 = vsel %vm13260_vm8, %v13223_v8, %v13225_v2  ;;  %13300 = vmatprep.subr.mxu0 %v13262_v49  ;;  %v18009_v8 = vld [vmem:[%s44287_s2] sm:$0xff]  ;;  %s37086_s2 = smov 117  }
 0x2f3   :  { %13301 = vmatpush1.msra.mxu0 %v13261_v31 }
 0x2f4   :  { %v11775_v11 = vpop.permute.xlu0 %11774  ;;  %34812 = vmatmul.mubr.msk.f32.vlgmr.msra.gmra.mrb[0].mxu0 %vm177_vm1, %v39800_v33 }
 0x2f5   :  { %v13233_v37 = vpop.permute.xlu1 %13232  ;;  %v11802_v18 = vsel %vm11790_vm6, %v11775_v11, %v39625_v24  ;;  %v11801_v59 = vsel %vm11790_vm6, %v39595_v57, %v11775_v11  ;;  %13506 = vmatprep.mubr.f32.mxu0 %v44530_v56 }
 0x2f6   :  { %12185 = vmatprep.subr.mxu1 %v11802_v18 }
 0x2f7   :  { %12186 = vmatpush1.msra.mxu1 %v11801_v59 }
 0x2f8   :  { %v39811_v7 = vpop.permute.xlu0 %13234  ;;  %34799 = vmatmul.mubr.msk.f32.vlgmr.msra.gmra.mrb[2].mxu1 %vm177_vm1, %v39550_v44 }
 0x2f9   :  { %v39815_v14 = vpop.permute.xlu1 %13230  ;;  %v13266_v63 = vsel %vm13260_vm8, %v13233_v37, %v39811_v7  ;;  %12391 = vmatprep.mubr.f32.mxu1 %v44530_v56 }
 0x2fa   :  { %13442 = vmatprep.subr.mxu0 %v13266_v63  ;;  %v13265_v57 = vsel %vm13260_vm8, %v39815_v14, %v13233_v37 }
 0x2fb   :  { %13443 = vmatpush1.msra.mxu0 %v13265_v57 }
 0x2fc   :  { %v11783_v24 = vpop.permute.xlu0 %11782  ;;  %34814 = vmatmul.mubr.msk.f32.vlgmr.msra.gmra.mrb[4].mxu0 %vm177_vm1, %v39800_v33 }
 0x2fd   :  { %v13241_v55 = vpop.permute.xlu1 %13240  ;;  %v11806_v58 = vsel %vm11790_vm6, %v11783_v24, %v39649_v38  ;;  %v11805_v52 = vsel %vm11790_vm6, %v39621_v3, %v11783_v24  ;;  %13648 = vmatprep.mubr.f32.mxu0 %v44530_v56 }
 0x2fe   :  { %12327 = vmatprep.subr.mxu1 %v11806_v58 }
 0x2ff   :  { %12328 = vmatpush1.msra.mxu1 %v11805_v52 }
 0x300   :  { %v39829_v22 = vpop.permute.xlu0 %13242  ;;  %34801 = vmatmul.mubr.msk.f32.vlgmr.msra.gmra.mrb[4].mxu1 %vm177_vm1, %v39550_v44 }
 0x301   :  { %v39833_v1 = vpop.permute.xlu1 %13238  ;;  %v13270_v15 = vsel %vm13260_vm8, %v13241_v55, %v39829_v22  ;;  %12700 = vmatprep.mubr.f32.mxu1 %v44530_v56 }
 0x302   :  { %13584 = vmatprep.subr.mxu0 %v13270_v15  ;;  %v13269_v3 = vsel %vm13260_vm8, %v39833_v1, %v13241_v55 }
 0x303   :  { %13585 = vmatpush1.msra.mxu0 %v13269_v3 }
 0x304   :  { %v12494_v38 = vpop.permute.xlu0 %12493  ;;  %34816 = vmatmul.mubr.msk.f32.vlgmr.msra.gmra.mrb[6].mxu0 %vm177_vm1, %v39800_v33 }
 0x305   :  { %v13249_v29 = vpop.permute.xlu1 %13248  ;;  %v12529_v44 = vsel %vm12525_vm7, %v12494_v38, %v39720_v47  ;;  %v12528_v4 = vsel %vm12525_vm7, %v39685_v62, %v12494_v38  ;;  %13790 = vmatprep.mubr.f32.mxu0 %v44530_v56 }
 0x306   :  { %12636 = vmatprep.subr.mxu1 %v12529_v44 }
 0x307   :  { %12637 = vmatpush1.msra.mxu1 %v12528_v4 }
 0x308   :  { %v39847_v9 = vpop.permute.xlu0 %13250  ;;  %34804 = vmatmul.mubr.msk.f32.vlgmr.msra.gmra.mrb[6].mxu1 %vm177_vm1, %v39694_v40 }
 0x309   :  { %v39851_v27 = vpop.permute.xlu1 %13246  ;;  %v13274_v23 = vsel %vm13260_vm8, %v13249_v29, %v39847_v9  ;;  %12842 = vmatprep.mubr.f32.mxu1 %v44530_v56 }
 0x30a   :  { %13726 = vmatprep.subr.mxu0 %v13274_v23  ;;  %v13273_v62 = vsel %vm13260_vm8, %v39851_v27, %v13249_v29 }
 0x30b   :  { %13727 = vmatpush1.msra.mxu0 %v13273_v62 }
 0x30c   :  { %v12502_v47 = vpop.permute.xlu0 %12501  ;;  %34818 = vmatmul.mubr.msk.f32.vlgmr.msra.gmra.mrb[8].mxu0 %vm177_vm1, %v39800_v33 }
 0x30d   :  { %v13257_v54 = vpop.permute.xlu1 %13256  ;;  %v12533_v20 = vsel %vm12525_vm7, %v12502_v47, %v39743_v60  ;;  %v12532_v16 = vsel %vm12525_vm7, %v39713_v0, %v12502_v47  ;;  %13932 = vmatprep.mubr.f32.mxu0 %v44530_v56 }
 0x30e   :  { %12778 = vmatprep.subr.mxu1 %v12533_v20  ;;  %v37019_v20 = vld [vmem:[%s44285_s0 + $0x8] sm:$0xff] }
 0x30f   :  { %12779 = vmatpush1.msra.mxu1 %v12532_v16  ;;  %v39972_v16 = vld [vmem:[%s44286_s1 + $0xa0] sm:$0xff] }
 0x310   :  { %v13259_v5 = vpop.permute.xlu0 %13258  ;;  %34806 = vmatmul.mubr.msk.f32.vlgmr.msra.gmra.mrb[0].mxu1 %vm177_vm1, %v39694_v40 }
 0x311   :  { %v39867_v21 = vpop.permute.xlu1 %13254  ;;  %v13278_v30 = vsel %vm13260_vm8, %v13257_v54, %v13259_v5  ;;  %12984 = vmatprep.mubr.f32.mxu1 %v44530_v56  ;;  %v37020_v5 = vld [vmem:[%s44285_s0 + $0x30] sm:$0xff] }
 0x312   :  { %13868 = vmatprep.subr.mxu0 %v13278_v30  ;;  %v13277_v60 = vsel %vm13260_vm8, %v39867_v21, %v13257_v54 }
 0x313   :  { %13869 = vmatpush1.msra.mxu0 %v13277_v60 }
 0x314   :  { %v12510_v0 = vpop.permute.xlu0 %12509  ;;  %34820 = vmatmul.mubr.msk.f32.vlgmr.msra.gmra.mrb[10].mxu0 %vm177_vm1, %v39800_v33 }
 0x315   :  { %v13960_v35 = vpop.permute.xlu1 %13959  ;;  %v12537_v34 = vsel %vm12525_vm7, %v12510_v0, %v39762_v26  ;;  %v12536_v17 = vsel %vm12525_vm7, %v39739_v45, %v12510_v0  ;;  %14099 = vmatprep.mubr.f32.mxu0 %v44530_v56  ;;  %v39889_v26 = vld [vmem:[%s44286_s1 + $0x98] sm:$0xff] }
 0x316   :  { %12920 = vmatprep.subr.mxu1 %v12537_v34  ;;  %v37022_v34 = vld [vmem:[%s44285_s0 + $0x50] sm:$0xff] }
 0x317   :  { %12921 = vmatpush1.msra.mxu1 %v12536_v17 }
 0x318   :  { %v39880_v43 = vpop.permute.xlu0 %13961  ;;  %34808 = vmatmul.mubr.msk.f32.vlgmr.msra.gmra.mrb[2].mxu1 %vm177_vm1, %v39694_v40 }
 0x319   :  { %v13958_v53 = vpop.permute.xlu1 %13957  ;;  %v13997_v51 = vsel %vm13995_vm9, %v13960_v35, %v39880_v43  ;;  %13126 = vmatprep.mubr.f32.mxu1 %v44530_v56 }
 0x31a   :  { %v13996_v45 = vsel %vm13995_vm9, %v13958_v53, %v13960_v35  ;;  %14035 = vmatprep.subr.mxu0 %v13997_v51  ;;  %v37021_v35 = vld [vmem:[%s44285_s0 + $0x28] sm:$0xff] }
 0x31b   :  { %14036 = vmatpush1.msra.mxu0 %v13996_v45  ;;  %v37023_v53 = vld [vmem:[%s44285_s0 + $0x48] sm:$0xff]  ;;  %v37024_v45 = vld [vmem:[%s44285_s0 + $0x70] sm:$0xff] }
 0x31c   :  { %v12518_v41 = vpop.permute.xlu0 %12517  ;;  %34821 = vmatmul.mubr.msk.f32.vlgmr.msra.gmra.mrb[0].mxu0 %vm177_vm1, %v39889_v26 }
 0x31d   :  { %v13968_v13 = vpop.permute.xlu1 %13967  ;;  %v12541_v46 = vsel %vm12525_vm7, %v12518_v41, %v39778_v28  ;;  %v12540_v61 = vsel %vm12525_vm7, %v39758_v12, %v12518_v41  ;;  %14241 = vmatprep.mubr.f32.mxu0 %v44530_v56  ;;  %v37077_v28 = vmov 0  }
 0x31e   :  { %13062 = vmatprep.subr.mxu1 %v12541_v46  ;;  %36625 = vset.pattern.permute.xlu1 %v37077_v28 }
 0x31f   :  { %13063 = vmatpush1.msra.mxu1 %v12540_v61  ;;  %18012 = vperm.xlu1 %36625, %v18009_v8   ;;  %v44580_v61 = vld [vmem:[#allocation4_spill] sm:$0xff]  ;;  %v44584_v8 = vld [vmem:[#allocation47_spill] sm:$0xff] }
 0x320   :  { %v39900_v2 = vpop.permute.xlu0 %13969  ;;  %34810 = vmatmul.mubr.msk.f32.vlgmr.msra.gmra.mrb[4].mxu1 %vm177_vm1, %v39694_v40  ;;  %36626 = vset.pattern.permute.xlu0 %v37077_v28  ;;  %v44583_v28 = vld [vmem:[#allocation5_spill] sm:$0xff] }
 0x321   :  { %v39904_v48 = vpop.permute.xlu1 %13965  ;;  %v14001_v39 = vsel %vm13995_vm9, %v13968_v13, %v39900_v2  ;;  %13435 = vmatprep.mubr.f32.mxu1 %v44530_v56 }
 0x322   :  { %14177 = vmatprep.subr.mxu0 %v14001_v39  ;;  %v14000_v12 = vsel %vm13995_vm9, %v39904_v48, %v13968_v13  ;;  %v37025_v13 = vld [vmem:[%s44285_s0 + $0x68] sm:$0xff]  ;;  %v37028_v39 = vld [vmem:[%s44285_s0 + $0x40] sm:$0xff] }
 0x323   :  { %14178 = vmatpush1.msra.mxu0 %v14000_v12  ;;  %v37029_v12 = vld [vmem:[%s44285_s0 + $0x38] sm:$0xff] }
 0x324   :  { %v13229_v40 = vpop.permute.xlu0 %13228  ;;  %34823 = vmatmul.mubr.msk.f32.vlgmr.msra.gmra.mrb[4].mxu0 %vm177_vm1, %v39889_v26 }
 0x325   :  { %v13976_v49 = vpop.permute.xlu1 %13975  ;;  %v13264_v31 = vsel %vm13260_vm8, %v13229_v40, %v39815_v14  ;;  %v13263_v11 = vsel %vm13260_vm8, %v39791_v6, %v13229_v40  ;;  %14383 = vmatprep.mubr.f32.mxu0 %v44530_v56  ;;  %v37030_v40 = vld [vmem:[%s44285_s0 + $0x60] sm:$0xff] }
 0x326   :  { %13371 = vmatprep.subr.mxu1 %v13264_v31  ;;  %v44585_v31 = vld [vmem:[#allocation7_spill] sm:$0xff] }
 0x327   :  { %13372 = vmatpush1.msra.mxu1 %v13263_v11 }
 0x328   :  { %v39921_v37 = vpop.permute.xlu0 %13977  ;;  %34813 = vmatmul.mubr.msk.f32.vlgmr.msra.gmra.mrb[6].mxu1 %vm177_vm1, %v39800_v33 }
 0x329   :  { %v13974_v18 = vpop.permute.xlu1 %13973  ;;  %v14005_v59 = vsel %vm13995_vm9, %v13976_v49, %v39921_v37  ;;  %13577 = vmatprep.mubr.f32.mxu1 %v44530_v56 }
 0x32a   :  { %14319 = vmatprep.subr.mxu0 %v14005_v59  ;;  %v14004_v14 = vsel %vm13995_vm9, %v13974_v18, %v13976_v49  ;;  %v37031_v49 = vld [vmem:[%s44285_s0 + $0x58] sm:$0xff] }
 0x32b   :  { %14320 = vmatpush1.msra.mxu0 %v14004_v14  ;;  %v44587_v59 = vld [vmem:[#allocation9_spill] sm:$0xff]  ;;  %v44588_v14 = vld [vmem:[#allocation6_spill] sm:$0xff] }
 0x32c   :  { %v13237_v6 = vpop.permute.xlu0 %13236  ;;  %34825 = vmatmul.mubr.msk.f32.vlgmr.msra.gmra.mrb[6].mxu0 %vm177_vm1, %v39889_v26 }
 0x32d   :  { %v13984_v63 = vpop.permute.xlu1 %13983  ;;  %v13268_v57 = vsel %vm13260_vm8, %v13237_v6, %v39833_v1  ;;  %v13267_v24 = vsel %vm13260_vm8, %v39811_v7, %v13237_v6  ;;  %14525 = vmatprep.mubr.f32.mxu0 %v44530_v56  ;;  %v44589_v6 = vld [vmem:[#allocation11_spill] sm:$0xff] }
 0x32e   :  { %13513 = vmatprep.subr.mxu1 %v13268_v57  ;;  %v44591_v57 = vld [vmem:[#allocation12_spill] sm:$0xff] }
 0x32f   :  { %13514 = vmatpush1.msra.mxu1 %v13267_v24  ;;  %v44592_v24 = vld [vmem:[#allocation8_spill] sm:$0xff] }
 0x330   :  { %v39936_v55 = vpop.permute.xlu0 %13985  ;;  %34815 = vmatmul.mubr.msk.f32.vlgmr.msra.gmra.mrb[0].mxu1 %vm177_vm1, %v39800_v33 }
 0x331   :  { %v13982_v58 = vpop.permute.xlu1 %13981  ;;  %v14009_v52 = vsel %vm13995_vm9, %v13984_v63, %v39936_v55  ;;  %13719 = vmatprep.mubr.f32.mxu1 %v44530_v56 }
 0x332   :  { %14461 = vmatprep.subr.mxu0 %v14009_v52  ;;  %v14008_v1 = vsel %vm13995_vm9, %v13982_v58, %v13984_v63  ;;  %v44590_v63 = vld [vmem:[#allocation3_spill] sm:$0xff]  ;;  %v44595_v52 = vld [vmem:[#allocation14_spill] sm:$0xff] }
 0x333   :  { %14462 = vmatpush1.msra.mxu0 %v14008_v1  ;;  %v44596_v1 = vld [vmem:[#allocation10_spill] sm:$0xff] }
 0x334   :  { %v13245_v7 = vpop.permute.xlu0 %13244  ;;  %34827 = vmatmul.mubr.msk.f32.vlgmr.msra.gmra.mrb[8].mxu0 %vm177_vm1, %v39889_v26 }
 0x335   :  { %v13992_v15 = vpop.permute.xlu1 %13991  ;;  %v13272_v3 = vsel %vm13260_vm8, %v13245_v7, %v39851_v27  ;;  %v13271_v38 = vsel %vm13260_vm8, %v39829_v22, %v13245_v7  ;;  %14667 = vmatprep.mubr.f32.mxu0 %v44530_v56  ;;  %v37018_v22 = vld [vmem:[%s44285_s0 + $0x10] sm:$0xff] }
 0x336   :  { %13655 = vmatprep.subr.mxu1 %v13272_v3  ;;  %v80_v7 = vld [vmem:[%s44286_s1 + $0xb0] sm:$0xff]  ;;  %v44598_v3 = vld [vmem:[#allocation46_spill] sm:$0xff] }
 0x337   :  { %13656 = vmatpush1.msra.mxu1 %v13271_v38  ;;  %v44599_v38 = vld [vmem:[#allocation15_spill] sm:$0xff] }
 0x338   :  { %v13994_v29 = vpop.permute.xlu0 %13993  ;;  %34817 = vmatmul.mubr.msk.f32.vlgmr.msra.gmra.mrb[2].mxu1 %vm177_vm1, %v39800_v33 }
 0x339   :  { %v13990_v44 = vpop.permute.xlu1 %13989  ;;  %v14013_v4 = vsel %vm13995_vm9, %v13992_v15, %v13994_v29  ;;  %13861 = vmatprep.mubr.f32.mxu1 %v44530_v56  ;;  %v44600_v29 = vld [vmem:[#allocation13_spill] sm:$0xff] }
 0x33a   :  { %14603 = vmatprep.subr.mxu0 %v14013_v4  ;;  %v14012_v23 = vsel %vm13995_vm9, %v13990_v44, %v13992_v15  ;;  %v44597_v15 = vld [vmem:[#allocation53_spill] sm:$0xff]  ;;  %v44602_v4 = vld [vmem:[#allocation48_spill] sm:$0xff] }
 0x33b   :  { %14604 = vmatpush1.msra.mxu0 %v14012_v23  ;;  %v44603_v23 = vld [vmem:[#allocation18_spill] sm:$0xff] }
 0x33c   :  { %v13253_v27 = vpop.permute.xlu0 %13252  ;;  %34829 = vmatmul.mubr.msk.f32.vlgmr.msra.gmra.mrb[10].mxu0 %vm177_vm1, %v39889_v26  ;;  %14695 = vmatprep.subr.mxu0 %v37018_v22 }
 0x33d   :  { %v13964_v62 = vpop.permute.xlu1 %13963  ;;  %v13276_v47 = vsel %vm13260_vm8, %v13253_v27, %v39867_v21  ;;  %v13275_v54 = vsel %vm13260_vm8, %v39847_v9, %v13253_v27  ;;  %14696 = vmatpush1.msra.mxu0 %v37019_v20  ;;  %14759 = vmatprep.mubr.f32.mxu0 %v44530_v56  ;;  %v44604_v27 = vld [vmem:[#allocation16_spill] sm:$0xff]  ;;  %v44608_v20 = vld [vmem:[#allocation19_spill] sm:$0xff] }
 0x33e   :  { %13797 = vmatprep.subr.mxu1 %v13276_v47  ;;  %14837 = vmatprep.subr.mxu0 %v37020_v5  ;;  %v13999_v9 = vsel %vm13995_vm9, %v13964_v62, %v39904_v48  ;;  %v13998_v30 = vsel %vm13995_vm9, %v39880_v43, %v13964_v62  ;;  %v44582_v48 = vld [vmem:[#allocation45_spill] sm:$0xff]  ;;  %v44606_v47 = vld [vmem:[#allocation50_spill] sm:$0xff] }
 0x33f   :  { %13798 = vmatpush1.msra.mxu1 %v13275_v54  ;;  %v44605_v62 = vld [vmem:[#allocation57_spill] sm:$0xff]  ;;  %v44607_v54 = vld [vmem:[#allocation20_spill] sm:$0xff] }
 0x340   :  { %v13972_v21 = vpop.permute.xlu0 %13971  ;;  %34819 = vmatmul.mubr.msk.f32.vlgmr.msra.gmra.mrb[4].mxu1 %vm177_vm1, %v39800_v33  ;;  %14106 = vmatprep.subr.mxu1 %v13999_v9  ;;  %v44610_v9 = vld [vmem:[#allocation52_spill] sm:$0xff] }
 0x341   :  { %34830 = vmatmul.mubr.msk.f32.vlgmr.msra.gmra.mrb[0].mxu0 %vm177_vm1, %v39972_v16  ;;  %14107 = vmatpush1.msra.mxu1 %v13998_v30  ;;  %v14003_v60 = vsel %vm13995_vm9, %v13972_v21, %v13974_v18  ;;  %v13980_v0 = vpop.permute.xlu1 %13979  ;;  %v14002_v33 = vsel %vm13995_vm9, %v39900_v2, %v13972_v21  ;;  %v44581_v2 = vld [vmem:[#allocation2_spill] sm:$0xff]  ;;  %v37032_v18 = vld [vmem:[%s44285_s0 + $0x78] sm:$0xff] }
 0x342   :  { %14248 = vmatprep.subr.mxu1 %v14003_v60  ;;  %14170 = vmatprep.mubr.f32.mxu1 %v44530_v56  ;;  %v14007_v17 = vsel %vm13995_vm9, %v13980_v0, %v13982_v58  ;;  %v14006_v51 = vsel %vm13995_vm9, %v39921_v37, %v13980_v0  ;;  %v44586_v37 = vld [vmem:[#allocation49_spill] sm:$0xff]  ;;  %v44594_v58 = vld [vmem:[#allocation44_spill] sm:$0xff]  ;;  %v44611_v21 = vld [vmem:[#allocation22_spill] sm:$0xff] }
 0x343   :  { %14838 = vmatpush1.msra.mxu0 %v37021_v35  ;;  %14901 = vmatprep.mubr.f32.mxu0 %v44530_v56  ;;  %v44612_v30 = vld [vmem:[#allocation21_spill] sm:$0xff]  ;;  %v44613_v60 = vld [vmem:[#allocation59_spill] sm:$0xff]  ;;  %v44614_v0 = vld [vmem:[#allocation54_spill] sm:$0xff] }
 0x344   :  { %34822 = vmatmul.mubr.msk.f32.vlgmr.msra.gmra.mrb[6].mxu1 %vm177_vm1, %v39889_v26  ;;  %14979 = vmatprep.subr.mxu0 %v37022_v34  ;;  %v13988_v43 = vpop.permute.xlu0 %13987  ;;  %v44615_v35 = vld [vmem:[#allocation24_spill] sm:$0xff]  ;;  %v81_v34 = vld [vmem:[%s44286_s1 + $0xb8] sm:$0xff] }
 0x345   :  { %14249 = vmatpush1.msra.mxu1 %v14002_v33  ;;  %34832 = vmatmul.mubr.msk.f32.vlgmr.msra.gmra.mrb[4].mxu0 %vm177_vm1, %v39972_v16  ;;  %v14011_v41 = vsel %vm13995_vm9, %v13988_v43, %v13990_v44  ;;  %v14010_v46 = vsel %vm13995_vm9, %v39936_v55, %v13988_v43  ;;  %v15354_v11 = vpop.permute.xlu1 %15353  ;;  %v44593_v55 = vld [vmem:[#allocation51_spill] sm:$0xff]  ;;  %v44618_v43 = vld [vmem:[#allocation56_spill] sm:$0xff] }
 0x346   :  { %14390 = vmatprep.subr.mxu1 %v14007_v17  ;;  %14312 = vmatprep.mubr.f32.mxu1 %v44530_v56  ;;  %v44601_v44 = vld [vmem:[#allocation55_spill] sm:$0xff]  ;;  %v44617_v17 = vld [vmem:[#allocation61_spill] sm:$0xff] }
 0x347   :  { %14980 = vmatpush1.msra.mxu0 %v37023_v53  ;;  %15043 = vmatprep.mubr.f32.mxu0 %v44530_v56  ;;  %v44616_v33 = vld [vmem:[#allocation23_spill] sm:$0xff]  ;;  %v44619_v53 = vld [vmem:[#allocation25_spill] sm:$0xff] }
 0x348   :  { %34824 = vmatmul.mubr.msk.f32.vlgmr.msra.gmra.mrb[0].mxu1 %vm177_vm1, %v39889_v26  ;;  %15121 = vmatprep.subr.mxu0 %v37024_v45  ;;  %v16018_v22 = vpop.permute.xlu0 %16017  ;;  %v44621_v45 = vld [vmem:[#allocation63_spill] sm:$0xff] }
 0x349   :  { %14391 = vmatpush1.msra.mxu1 %v14006_v51  ;;  %34834 = vmatmul.mubr.msk.f32.vlgmr.msra.gmra.mrb[6].mxu0 %vm177_vm1, %v39972_v16  ;;  %v44620_v51 = vld [vmem:[#allocation26_spill] sm:$0xff] }
 0x34a   :  { %14532 = vmatprep.subr.mxu1 %v14011_v41  ;;  %15122 = vmatpush1.msra.mxu0 %v37025_v13  ;;  %v44622_v41 = vld [vmem:[#allocation58_spill] sm:$0xff]  ;;  %v44623_v13 = vld [vmem:[#allocation27_spill] sm:$0xff] }
 0x34b   :  { %14454 = vmatprep.mubr.f32.mxu1 %v44530_v56  ;;  %15185 = vmatprep.mubr.f32.mxu0 %v44530_v56 }
 0x34c   :  { %15263 = vmatprep.subr.mxu0 %v39674_v10  ;;  %34826 = vmatmul.mubr.msk.f32.vlgmr.msra.gmra.mrb[2].mxu1 %vm177_vm1, %v39889_v26  ;;  %v37026_v10 = vld [vmem:[%s44285_s0 + $0x20] sm:$0xff] }
 0x34d   :  { %14533 = vmatpush1.msra.mxu1 %v14010_v46  ;;  %34836 = vmatmul.mubr.msk.f32.vlgmr.msra.gmra.mrb[8].mxu0 %vm177_vm1, %v39972_v16  ;;  %v44624_v46 = vld [vmem:[#allocation28_spill] sm:$0xff] }
 0x34e   :  { %15264 = vmatpush1.msra.mxu0 %v39660_v50  ;;  %14596 = vmatprep.mubr.f32.mxu1 %v44530_v56  ;;  %v37027_v50 = vld [vmem:[%s44285_s0 + $0x18] sm:$0xff]  ;;  %s37084_s0 = smov 1  }
 0x34f   :  { %15360 = vmatprep.subr.mxu0 %v44580_v61  ;;  %15327 = vmatprep.mubr.f32.mxu0 %v44530_v56  ;;  %v16682_v61 = vpop.permute.xlu1 %16681 }
 0x350   :  { %34828 = vmatmul.mubr.msk.f32.vlgmr.msra.gmra.mrb[4].mxu1 %vm177_vm1, %v39889_v26  ;;  %14766 = vmatprep.subr.mxu1 %v37026_v10  ;;  %v40047_v26 = vld [vmem:[%s44286_s1 + $0xa8] sm:$0xff]  ;;  %v44625_v10 = vld [vmem:[#allocation65_spill] sm:$0xff] }
 0x351   :  { %34838 = vmatmul.mubr.msk.f32.vlgmr.msra.gmra.mrb[10].mxu0 %vm177_vm1, %v39972_v16  ;;  %14767 = vmatpush1.msra.mxu1 %v37027_v50  ;;  %v44626_v50 = vld [vmem:[#allocation60_spill] sm:$0xff] }
 0x352   :  { %15361 = vmatpush1.msra.mxu0 %v44581_v2  ;;  %14830 = vmatprep.mubr.f32.mxu1 %v44530_v56  ;;  %v44627_v2 = vld [vmem:[#allocation29_spill] sm:$0xff] }
 0x353   :  { %15502 = vmatprep.subr.mxu0 %v44582_v48  ;;  %15424 = vmatprep.mubr.f32.mxu0 %v44530_v56  ;;  %v44629_v48 = vld [vmem:[#allocation31_spill] sm:$0xff] }
 0x354   :  { %34831 = vmatmul.mubr.msk.f32.vlgmr.msra.gmra.mrb[6].mxu1 %vm177_vm1, %v39972_v16  ;;  %14908 = vmatprep.subr.mxu1 %v37028_v39  ;;  %v16683_v39 = vsel %vm2235_vm3, %v44629_v48, %v16682_v61  ;;  %vm23266_vm3 = vcmask 474112  }
 0x355   :  { %34839 = vmatmul.mubr.msk.f32.vlgmr.msra.gmra.mrb[0].mxu0 %vm177_vm1, %v40047_v26  ;;  %14909 = vmatpush1.msra.mxu1 %v37029_v12  ;;  %v44630_v12 = vld [vmem:[#allocation62_spill] sm:$0xff] }
 0x356   :  { %15503 = vmatpush1.msra.mxu0 %v44583_v28  ;;  %14972 = vmatprep.mubr.f32.mxu1 %v44530_v56  ;;  %v44631_v28 = vld [vmem:[#allocation32_spill] sm:$0xff] }
 0x357   :  { %15644 = vmatprep.subr.mxu0 %v44584_v8  ;;  %15566 = vmatprep.mubr.f32.mxu0 %v44530_v56  ;;  %v44632_v8 = vld [vmem:[#allocation33_spill] sm:$0xff] }
 0x358   :  { %34833 = vmatmul.mubr.msk.f32.vlgmr.msra.gmra.mrb[0].mxu1 %vm177_vm1, %v39972_v16  ;;  %15050 = vmatprep.subr.mxu1 %v37030_v40  ;;  %v44633_v40 = vld [vmem:[#allocation67_spill] sm:$0xff] }
 0x359   :  { %34841 = vmatmul.mubr.msk.f32.vlgmr.msra.gmra.mrb[4].mxu0 %vm177_vm1, %v40047_v26  ;;  %15051 = vmatpush1.msra.mxu1 %v37031_v49  ;;  %v44634_v49 = vld [vmem:[#allocation64_spill] sm:$0xff] }
 0x35a   :  { %15645 = vmatpush1.msra.mxu0 %v44585_v31  ;;  %15114 = vmatprep.mubr.f32.mxu1 %v44530_v56  ;;  %v44635_v31 = vld [vmem:[#allocation34_spill] sm:$0xff] }
 0x35b   :  { %15786 = vmatprep.subr.mxu0 %v44586_v37  ;;  %15192 = vmatprep.subr.mxu1 %v39681_v25  ;;  %v15355_v25 = vsel %vm140_vm0, %v44589_v6, %v15354_v11  ;;  %v44636_v11 = vld [vmem:[#allocation36_spill] sm:$0xff]  ;;  %v82_v37 = vld [vmem:[%s44286_s1 + $0xc0] sm:$0xff]  ;;  %s37078_s1 = smov 58  }
 0x35c   :  { %15708 = vmatprep.mubr.f32.mxu0 %v44530_v56  ;;  %34835 = vmatmul.mubr.msk.f32.vlgmr.msra.gmra.mrb[2].mxu1 %vm177_vm1, %v39972_v16  ;;  %v44640_v6 = vld [vmem:[#allocation38_spill] sm:$0xff] }
 0x35d   :  { %15193 = vmatpush1.msra.mxu1 %v37032_v18  ;;  %34843 = vmatmul.mubr.msk.f32.vlgmr.msra.gmra.mrb[6].mxu0 %vm177_vm1, %v40047_v26  ;;  %v44637_v18 = vld [vmem:[#allocation70_spill] sm:$0xff] }
 0x35e   :  { %15787 = vmatpush1.msra.mxu0 %v44587_v59  ;;  %15431 = vmatprep.subr.mxu1 %v44588_v14  ;;  %v44638_v59 = vld [vmem:[#allocation66_spill] sm:$0xff]  ;;  %v44639_v14 = vld [vmem:[#allocation35_spill] sm:$0xff] }
 0x35f   :  { %15928 = vmatprep.subr.mxu0 %v15355_v25  ;;  %15256 = vmatprep.mubr.f32.mxu1 %v44530_v56  ;;  %v44641_v25 = vld [vmem:[#allocation72_spill] sm:$0xff] }
 0x360   :  { %15850 = vmatprep.mubr.f32.mxu0 %v44530_v56  ;;  %34837 = vmatmul.mubr.msk.f32.vlgmr.msra.gmra.mrb[4].mxu1 %vm177_vm1, %v39972_v16  ;;  %v44609_v16 = vld [vmem:[#allocation17_spill] sm:$0xff] }
 0x361   :  { %15432 = vmatpush1.msra.mxu1 %v44590_v63  ;;  %34845 = vmatmul.mubr.msk.f32.vlgmr.msra.gmra.mrb[8].mxu0 %vm177_vm1, %v40047_v26  ;;  %v16019_v5 = vsel %vm1500_vm2, %v44609_v16, %v16018_v22  ;;  %v44642_v63 = vld [vmem:[#allocation69_spill] sm:$0xff] }
 0x362   :  { %15929 = vmatpush1.msra.mxu0 %v44591_v57  ;;  %15573 = vmatprep.subr.mxu1 %v44592_v24  ;;  %v44643_v57 = vld [vmem:[#allocation37_spill] sm:$0xff]  ;;  %v44644_v24 = vld [vmem:[#allocation40_spill] sm:$0xff] }
 0x363   :  { %16024 = vmatprep.subr.mxu0 %v44593_v55  ;;  %15495 = vmatprep.mubr.f32.mxu1 %v44530_v56  ;;  %v17346_v55 = vpop.permute.xlu0 %17345 }
 0x364   :  { %15992 = vmatprep.mubr.f32.mxu0 %v44530_v56  ;;  %34840 = vmatmul.mubr.msk.f32.vlgmr.msra.gmra.mrb[6].mxu1 %vm177_vm1, %v40047_v26 }
 0x365   :  { %15574 = vmatpush1.msra.mxu1 %v44594_v58  ;;  %34847 = vmatmul.mubr.msk.f32.vlgmr.msra.gmra.mrb[10].mxu0 %vm177_vm1, %v40047_v26  ;;  %v44645_v58 = vld [vmem:[#allocation71_spill] sm:$0xff] }
 0x366   :  { %16025 = vmatpush1.msra.mxu0 %v44595_v52  ;;  %15715 = vmatprep.subr.mxu1 %v44596_v1  ;;  %v44646_v52 = vld [vmem:[#allocation39_spill] sm:$0xff] }
 0x367   :  { %16166 = vmatprep.subr.mxu0 %v44597_v15  ;;  %15637 = vmatprep.mubr.f32.mxu1 %v44530_v56  ;;  %v44647_v1 = vld [vmem:[#allocation43_spill] sm:$0xff] }
 0x368   :  { %16088 = vmatprep.mubr.f32.mxu0 %v44530_v56  ;;  %34842 = vmatmul.mubr.msk.f32.vlgmr.msra.gmra.mrb[0].mxu1 %vm177_vm1, %v40047_v26 }
 0x369   :  { %15716 = vmatpush1.msra.mxu1 %v44598_v3  ;;  %34848 = vmatmul.mubr.msk.f32.vlgmr.msra.gmra.mrb[0].mxu0 %vm177_vm1, %v80_v7 }
 0x36a   :  { %16167 = vmatpush1.msra.mxu0 %v44599_v38  ;;  %15857 = vmatprep.subr.mxu1 %v44600_v29 }
 0x36b   :  { %16308 = vmatprep.subr.mxu0 %v44601_v44  ;;  %15779 = vmatprep.mubr.f32.mxu1 %v44530_v56 }
 0x36c   :  { %16230 = vmatprep.mubr.f32.mxu0 %v44530_v56  ;;  %34844 = vmatmul.mubr.msk.f32.vlgmr.msra.gmra.mrb[2].mxu1 %vm177_vm1, %v40047_v26 }
 0x36d   :  { %15858 = vmatpush1.msra.mxu1 %v44602_v4  ;;  %34850 = vmatmul.mubr.msk.f32.vlgmr.msra.gmra.mrb[4].mxu0 %vm177_vm1, %v80_v7 }
 0x36e   :  { %16309 = vmatpush1.msra.mxu0 %v44603_v23  ;;  %16095 = vmatprep.subr.mxu1 %v44604_v27 }
 0x36f   :  { %16450 = vmatprep.subr.mxu0 %v44605_v62  ;;  %15921 = vmatprep.mubr.f32.mxu1 %v44530_v56 }
 0x370   :  { %16372 = vmatprep.mubr.f32.mxu0 %v44530_v56  ;;  %34846 = vmatmul.mubr.msk.f32.vlgmr.msra.gmra.mrb[4].mxu1 %vm177_vm1, %v40047_v26  ;;  %v44628_v26 = vld [vmem:[#allocation30_spill] sm:$0xff] }
 0x371   :  { %16096 = vmatpush1.msra.mxu1 %v44606_v47  ;;  %34852 = vmatmul.mubr.msk.f32.vlgmr.msra.gmra.mrb[6].mxu0 %vm177_vm1, %v80_v7 }
 0x372   :  { %16451 = vmatpush1.msra.mxu0 %v44607_v54  ;;  %16237 = vmatprep.subr.mxu1 %v44608_v20 }
 0x373   :  { %16592 = vmatprep.subr.mxu0 %v16019_v5  ;;  %16159 = vmatprep.mubr.f32.mxu1 %v44530_v56 }
 0x374   :  { %16514 = vmatprep.mubr.f32.mxu0 %v44530_v56  ;;  %34849 = vmatmul.mubr.msk.f32.vlgmr.msra.gmra.mrb[6].mxu1 %vm177_vm1, %v80_v7 }
 0x375   :  { %16238 = vmatpush1.msra.mxu1 %v44610_v9  ;;  %34854 = vmatmul.mubr.msk.f32.vlgmr.msra.gmra.mrb[8].mxu0 %vm177_vm1, %v80_v7 }
 0x376   :  { %16593 = vmatpush1.msra.mxu0 %v44611_v21  ;;  %16379 = vmatprep.subr.mxu1 %v44612_v30 }
 0x377   :  { %16688 = vmatprep.subr.mxu0 %v44613_v60  ;;  %16301 = vmatprep.mubr.f32.mxu1 %v44530_v56 }
 0x378   :  { %16656 = vmatprep.mubr.f32.mxu0 %v44530_v56  ;;  %34851 = vmatmul.mubr.msk.f32.vlgmr.msra.gmra.mrb[0].mxu1 %vm177_vm1, %v80_v7 }
 0x379   :  { %16380 = vmatpush1.msra.mxu1 %v44614_v0  ;;  %34856 = vmatmul.mubr.msk.f32.vlgmr.msra.gmra.mrb[10].mxu0 %vm177_vm1, %v80_v7 }
 0x37a   :  { %16689 = vmatpush1.msra.mxu0 %v44615_v35  ;;  %16521 = vmatprep.subr.mxu1 %v44616_v33 }
 0x37b   :  { %16830 = vmatprep.subr.mxu0 %v44617_v17  ;;  %16443 = vmatprep.mubr.f32.mxu1 %v44530_v56 }
 0x37c   :  { %16752 = vmatprep.mubr.f32.mxu0 %v44530_v56  ;;  %34853 = vmatmul.mubr.msk.f32.vlgmr.msra.gmra.mrb[2].mxu1 %vm177_vm1, %v80_v7 }
 0x37d   :  { %16522 = vmatpush1.msra.mxu1 %v44618_v43  ;;  %34857 = vmatmul.mubr.msk.f32.vlgmr.msra.gmra.mrb[0].mxu0 %vm177_vm1, %v81_v34 }
 0x37e   :  { %16831 = vmatpush1.msra.mxu0 %v44619_v53  ;;  %16759 = vmatprep.subr.mxu1 %v44620_v51 }
 0x37f   :  { %16972 = vmatprep.subr.mxu0 %v44621_v45  ;;  %16585 = vmatprep.mubr.f32.mxu1 %v44530_v56 }
 0x380   :  { %16894 = vmatprep.mubr.f32.mxu0 %v44530_v56  ;;  %34855 = vmatmul.mubr.msk.f32.vlgmr.msra.gmra.mrb[4].mxu1 %vm177_vm1, %v80_v7  ;;  %v44648_v7 = vld [vmem:[#allocation41_spill] sm:$0xff] }
 0x381   :  { %16760 = vmatpush1.msra.mxu1 %v44622_v41  ;;  %34859 = vmatmul.mubr.msk.f32.vlgmr.msra.gmra.mrb[4].mxu0 %vm177_vm1, %v81_v34  ;;  %v17347_v15 = vsel %vm2970_vm4, %v44648_v7, %v17346_v55 }
 0x382   :  { %16973 = vmatpush1.msra.mxu0 %v44623_v13  ;;  %16901 = vmatprep.subr.mxu1 %v44624_v46 }
 0x383   :  { %17114 = vmatprep.subr.mxu0 %v44625_v10  ;;  %16823 = vmatprep.mubr.f32.mxu1 %v44530_v56 }
 0x384   :  { %17036 = vmatprep.mubr.f32.mxu0 %v44530_v56  ;;  %34858 = vmatmul.mubr.msk.f32.vlgmr.msra.gmra.mrb[6].mxu1 %vm177_vm1, %v81_v34 }
 0x385   :  { %16902 = vmatpush1.msra.mxu1 %v44626_v50  ;;  %34861 = vmatmul.mubr.msk.f32.vlgmr.msra.gmra.mrb[6].mxu0 %vm177_vm1, %v81_v34 }
 0x386   :  { %17115 = vmatpush1.msra.mxu0 %v44627_v2  ;;  %17043 = vmatprep.subr.mxu1 %v44628_v26 }
 0x387   :  { %17256 = vmatprep.subr.mxu0 %v16683_v39  ;;  %16965 = vmatprep.mubr.f32.mxu1 %v44530_v56 }
 0x388   :  { %17178 = vmatprep.mubr.f32.mxu0 %v44530_v56  ;;  %34860 = vmatmul.mubr.msk.f32.vlgmr.msra.gmra.mrb[0].mxu1 %vm177_vm1, %v81_v34 }
 0x389   :  { %17044 = vmatpush1.msra.mxu1 %v44630_v12  ;;  %34863 = vmatmul.mubr.msk.f32.vlgmr.msra.gmra.mrb[8].mxu0 %vm177_vm1, %v81_v34 }
 0x38a   :  { %17257 = vmatpush1.msra.mxu0 %v44631_v28  ;;  %17185 = vmatprep.subr.mxu1 %v44632_v8 }
 0x38b   :  { %17352 = vmatprep.subr.mxu0 %v44633_v40  ;;  %17107 = vmatprep.mubr.f32.mxu1 %v44530_v56 }
 0x38c   :  { %17320 = vmatprep.mubr.f32.mxu0 %v44530_v56  ;;  %34862 = vmatmul.mubr.msk.f32.vlgmr.msra.gmra.mrb[2].mxu1 %vm177_vm1, %v81_v34 }
 0x38d   :  { %17186 = vmatpush1.msra.mxu1 %v44634_v49  ;;  %34865 = vmatmul.mubr.msk.f32.vlgmr.msra.gmra.mrb[10].mxu0 %vm177_vm1, %v81_v34 }
 0x38e   :  { %17353 = vmatpush1.msra.mxu0 %v44635_v31  ;;  %17423 = vmatprep.subr.mxu1 %v44636_v11 }
 0x38f   :  { %17494 = vmatprep.subr.mxu0 %v44637_v18  ;;  %17249 = vmatprep.mubr.f32.mxu1 %v44530_v56 }
 0x390   :  { %17416 = vmatprep.mubr.f32.mxu0 %v44530_v56  ;;  %34864 = vmatmul.mubr.msk.f32.vlgmr.msra.gmra.mrb[4].mxu1 %vm177_vm1, %v81_v34 }
 0x391   :  { %34866 = vmatmul.mubr.msk.f32.vlgmr.msra.gmra.mrb[0].mxu0 %vm177_vm1, %v82_v37  ;;  %17424 = vmatpush1.msra.mxu1 %v44638_v59 }
 0x392   :  { %17495 = vmatpush1.msra.mxu0 %v44639_v14  ;;  %17565 = vmatprep.subr.mxu1 %v44640_v6 }
 0x393   :  { %17636 = vmatprep.subr.mxu0 %v44641_v25  ;;  %17487 = vmatprep.mubr.f32.mxu1 %v44530_v56 }
 0x394   :  { %17558 = vmatprep.mubr.f32.mxu0 %v44530_v56  ;;  %34867 = vmatmul.mubr.msk.f32.vlgmr.msra.gmra.mrb[6].mxu1 %vm177_vm1, %v82_v37 }
 0x395   :  { %34868 = vmatmul.mubr.msk.f32.vlgmr.msra.gmra.mrb[4].mxu0 %vm177_vm1, %v82_v37  ;;  %17566 = vmatpush1.msra.mxu1 %v44642_v63 }
 0x396   :  { %17637 = vmatpush1.msra.mxu0 %v44643_v57  ;;  %17707 = vmatprep.subr.mxu1 %v44644_v24 }
 0x397   :  { %17778 = vmatprep.subr.mxu0 %v38507_v42  ;;  %17629 = vmatprep.mubr.f32.mxu1 %v44530_v56  ;;  %v44649_v42 = vld [vmem:[#allocation42_spill] sm:$0xff] }
 0x398   :  { %17700 = vmatprep.mubr.f32.mxu0 %v44530_v56  ;;  %34869 = vmatmul.mubr.msk.f32.vlgmr.msra.gmra.mrb[0].mxu1 %vm177_vm1, %v82_v37 }
 0x399   :  { %34870 = vmatmul.mubr.msk.f32.vlgmr.msra.gmra.mrb[6].mxu0 %vm177_vm1, %v82_v37  ;;  %17708 = vmatpush1.msra.mxu1 %v44645_v58 }
 0x39a   :  { %17779 = vmatpush1.msra.mxu0 %v44646_v52  ;;  %17849 = vmatprep.subr.mxu1 %v44647_v1 }
 0x39b   :  { %17920 = vmatprep.subr.mxu0 %v17347_v15  ;;  %17771 = vmatprep.mubr.f32.mxu1 %v44530_v56 }
 0x39c   :  { %17842 = vmatprep.mubr.f32.mxu0 %v44530_v56  ;;  %34871 = vmatmul.mubr.msk.f32.vlgmr.msra.gmra.mrb[2].mxu1 %vm177_vm1, %v82_v37 }
 0x39d   :  { %34872 = vmatmul.mubr.msk.f32.vlgmr.msra.gmra.mrb[8].mxu0 %vm177_vm1, %v82_v37  ;;  %17850 = vmatpush1.msra.mxu1 %v38503_v32 }
 0x39e   :  { %17921 = vmatpush1.msra.mxu0 %v44649_v42  ;;  %17913 = vmatprep.mubr.f32.mxu1 %v44530_v56  ;;  %v40246_v22 = vpop.permute.xlu1 %18012 }
 0x39f   :  { %17984 = vmatprep.mubr.f32.mxu0 %v44530_v56 }
 0x3a0   :  { %34873 = vmatmul.mubr.msk.f32.vlgmr.msra.gmra.mrb[4].mxu1 %vm177_vm1, %v82_v37 }
 0x3a1   :  { %34874 = vmatmul.mubr.msk.f32.vlgmr.msra.gmra.mrb[10].mxu0 %vm177_vm1, %v82_v37  ;;  %22891 = vmatprep.mubr.f32.mxu1 %v44530_v56 }
 0x3a2   :  { %18456 = vmatprep.mubr.f32.mxu0 %v44530_v56 }
 0x464   :  { %v40242_v3 = vpop.f32.mrb[0].mxu0 }
 0x465   :  { %v17420_v38 = vpop.f32.mrb[1].mxu0  ;;  %v40340_v63 = vadd.f32 %v40246_v22, %v40242_v3 }
 0x466   :  { %v40311_v40 = vadd.f32 %v40246_v22, %v17420_v38 }
 0x467   :  { %v17489_v29 = vpop.f32.mrb[6].mxu1  ;;  %v18033_v57 = vmax.f32 %v40340_v63, 0.0 }
 0x468   :  { %v35585_v32 = vadd.f32 %v17489_v29, %v39004_v36  ;;  %v17560_v44 = vpop.f32.mrb[4].mxu0  ;;  %v17491_v4 = vpop.f32.mrb[7].mxu1  ;;  %v18034_v37 = vmax.f32 %v40311_v40, 0.0 }
 0x469   :  { %v35586_v23 = vadd.f32 %v17491_v4, %v39008_v19  ;;  %v17562_v27 = vpop.f32.mrb[5].mxu0  ;;  %v40259_v19 = vadd.f32 %v40246_v22, %v17560_v44 }
 0x46a   :  { %v18020_v43 = vadd.f32 %v40246_v22, %v17562_v27  ;;  %v40327_v59 = vadd.f32 %v35585_v32, %v40246_v22 }
 0x46b   :  { %v17631_v62 = vpop.f32.mrb[0].mxu1  ;;  %v18037_v17 = vmax.f32 %v40259_v19, 0.0  ;;  %v40324_v18 = vadd.f32 %v35586_v23, %v40246_v22 }
 0x46c   :  { %v40249_v47 = vadd.f32 %v40246_v22, %v17631_v62  ;;  %v17702_v54 = vpop.f32.mrb[6].mxu0  ;;  %v17633_v20 = vpop.f32.mrb[1].mxu1  ;;  %v18038_v61 = vmax.f32 %v18020_v43, 0.0  ;;  %v18035_v25 = vmax.f32 %v40327_v59, 0.0 }
 0x46d   :  { %v40252_v16 = vadd.f32 %v40246_v22, %v17633_v20  ;;  %v17704_v5 = vpop.f32.mrb[7].mxu0  ;;  %v40256_v36 = vadd.f32 %v40246_v22, %v17702_v54  ;;  %v18036_v6 = vmax.f32 %v40324_v18, 0.0 }
 0x46e   :  { %v18039_v9 = vmax.f32 %v40249_v47, 0.0  ;;  %v40268_v34 = vadd.f32 %v40246_v22, %v17704_v5 }
 0x46f   :  { %v18040_v21 = vmax.f32 %v40252_v16, 0.0  ;;  %v17773_v30 = vpop.f32.mrb[2].mxu1  ;;  %v18041_v33 = vmax.f32 %v40256_v36, 0.0 }
 0x470   :  { %v17844_v60 = vpop.f32.mrb[8].mxu0  ;;  %v17775_v0 = vpop.f32.mrb[3].mxu1  ;;  %18081 = vrot.lane.b32.xlu1 %v18039_v9, %s37058_s21  ;;  %v18042_v13 = vmax.f32 %v40268_v34, 0.0  ;;  %v18025_v10 = vadd.f32 %v40246_v22, %v17773_v30 }
 0x471   :  { %v17846_v35 = vpop.f32.mrb[9].mxu0  ;;  %18083 = vrot.lane.b32.xlu0 %v18040_v21, %s37058_s21  ;;  %v40280_v46 = vadd.f32 %v40246_v22, %v17775_v0  ;;  %v40292_v48 = vadd.f32 %v40246_v22, %v17844_v60 }
 0x472   :  { %v40289_v2 = vadd.f32 %v40246_v22, %v17846_v35  ;;  %v18043_v26 = vmax.f32 %v18025_v10, 0.0 }
 0x473   :  { %v17915_v53 = vpop.f32.mrb[4].mxu1  ;;  %v18044_v50 = vmax.f32 %v40280_v46, 0.0  ;;  %v18045_v28 = vmax.f32 %v40292_v48, 0.0 }
 0x474   :  { %v17986_v51 = vpop.f32.mrb[10].mxu0  ;;  %v17917_v45 = vpop.f32.mrb[5].mxu1  ;;  %18085 = vrot.lane.b32.xlu1 %v18041_v33, %s37058_s21  ;;  %v18046_v39 = vmax.f32 %v40289_v2, 0.0  ;;  %v40304_v8 = vadd.f32 %v40246_v22, %v17915_v53 }
 0x475   :  { %v40275_v41 = vpop.f32.mrb[11].mxu0  ;;  %18077 = vrot.lane.b32.xlu0 %v18037_v17, %s37058_s21  ;;  %v40300_v12 = vadd.f32 %v40246_v22, %v17917_v45  ;;  %v40316_v11 = vadd.f32 %v40246_v22, %v17986_v51 }
 0x476   :  { %v18047_v31 = vmax.f32 %v40304_v8, 0.0 }
 0x477   :  { %v18048_v49 = vmax.f32 %v40300_v12, 0.0  ;;  %v18049_v14 = vmax.f32 %v40316_v11, 0.0 }
 0x478   :  { %18087 = vrot.lane.b32.xlu1 %v18042_v13, %s37058_s21 }
 0x479   :  { %18079 = vrot.lane.b32.xlu0 %v18038_v61, %s37058_s21 }
 0x47c   :  { %18091 = vrot.lane.b32.xlu1 %v18044_v50, %s37058_s21 }
 0x47d   :  { %18089 = vrot.lane.b32.xlu0 %v18043_v26, %s37058_s21 }
 0x480   :  { %18095 = vrot.lane.b32.xlu1 %v18046_v39, %s37058_s21 }
 0x481   :  { %18093 = vrot.lane.b32.xlu0 %v18045_v28, %s37058_s21 }
 0x484   :  { %18099 = vrot.lane.b32.xlu1 %v18048_v49, %s37058_s21 }
 0x485   :  { %18097 = vrot.lane.b32.xlu0 %v18047_v31, %s37058_s21 }
 0x488   :  { %18071 = vrot.lane.b32.xlu1 %v18034_v37, %s37058_s21 }
 0x489   :  { %18101 = vrot.lane.b32.xlu0 %v18049_v14, %s37058_s21 }
 0x48c   :  { %18075 = vrot.lane.b32.xlu1 %v18036_v6, %s37058_s21 }
 0x48d   :  { %18073 = vrot.lane.b32.xlu0 %v18035_v25, %s37058_s21 }
 0x491   :  { %18069 = vrot.lane.b32.xlu0 %v18033_v57, %s37058_s21 }
 0x4e2   :  { %v18082_v24 = vpop.permute.xlu1 %18081 }
 0x4e3   :  { %v18084_v55 = vpop.permute.xlu0 %18083 }
 0x4e4   :  { %v18111_v58 = vsel %vm140_vm0, %v18082_v24, %v18084_v55 }
 0x4e5   :  { %v40349_v52 = vmax.f32 %v18039_v9, %v18111_v58 }
 0x4e6   :  { %v18086_v1 = vpop.permute.xlu1 %18085 }
 0x4e7   :  { %v18078_v7 = vpop.permute.xlu0 %18077  ;;  %18188 = vrot.lane.b32.xlu0 %v40349_v52, %s37062_s18  ;;  %v18112_v44 = vsel %vm140_vm0, %v18084_v55, %v18086_v1 }
 0x4e8   :  { %v40364_v62 = vmax.f32 %v18040_v21, %v18112_v44 }
 0x4ea   :  { %v18088_v15 = vpop.permute.xlu1 %18087 }
 0x4eb   :  { %v18080_v42 = vpop.permute.xlu0 %18079  ;;  %v18113_v54 = vsel %vm140_vm0, %v18086_v1, %v18088_v15 }
 0x4ec   :  { %v18109_v3 = vsel %vm140_vm0, %v18078_v7, %v18080_v42  ;;  %v18110_v38 = vsel %vm140_vm0, %v18080_v42, %v18082_v24  ;;  %v18147_v19 = vmax.f32 %v18041_v33, %v18113_v54 }
 0x4ed   :  { %v40355_v29 = vmax.f32 %v18037_v17, %v18109_v3  ;;  %v18144_v32 = vmax.f32 %v18038_v61, %v18110_v38 }
 0x4ee   :  { %v18092_v4 = vpop.permute.xlu1 %18091 }
 0x4ef   :  { %v18090_v23 = vpop.permute.xlu0 %18089  ;;  %18186 = vrot.lane.b32.xlu1 %v18144_v32, %s37062_s18  ;;  %18184 = vrot.lane.b32.xlu0 %v40355_v29, %s37062_s18 }
 0x4f0   :  { %v18115_v27 = vsel %vm140_vm0, %v18090_v23, %v18092_v4  ;;  %v18114_v20 = vsel %vm140_vm0, %v18088_v15, %v18090_v23 }
 0x4f1   :  { %v40366_v47 = vmax.f32 %v18043_v26, %v18115_v27  ;;  %v18148_v16 = vmax.f32 %v18042_v13, %v18114_v20 }
 0x4f2   :  { %v18096_v5 = vpop.permute.xlu1 %18095 }
 0x4f3   :  { %v18094_v9 = vpop.permute.xlu0 %18093  ;;  %18190 = vrot.lane.b32.xlu1 %v40364_v62, %s37062_s18  ;;  %18196 = vrot.lane.b32.xlu0 %v40366_v47, %s37062_s18 }
 0x4f4   :  { %v18116_v21 = vsel %vm140_vm0, %v18092_v4, %v18094_v9  ;;  %v18117_v36 = vsel %vm140_vm0, %v18094_v9, %v18096_v5 }
 0x4f5   :  { %v18150_v35 = vmax.f32 %v18044_v50, %v18116_v21  ;;  %v18151_v53 = vmax.f32 %v18045_v28, %v18117_v36 }
 0x4f6   :  { %v18100_v30 = vpop.permute.xlu1 %18099 }
 0x4f7   :  { %v18098_v60 = vpop.permute.xlu0 %18097  ;;  %18194 = vrot.lane.b32.xlu1 %v18148_v16, %s37062_s18  ;;  %18192 = vrot.lane.b32.xlu0 %v18147_v19, %s37062_s18 }
 0x4f8   :  { %v18118_v0 = vsel %vm140_vm0, %v18096_v5, %v18098_v60  ;;  %v18119_v45 = vsel %vm140_vm0, %v18098_v60, %v18100_v30 }
 0x4f9   :  { %v40384_v17 = vmax.f32 %v18046_v39, %v18118_v0  ;;  %v18153_v10 = vmax.f32 %v18047_v31, %v18119_v45 }
 0x4fa   :  { %v18072_v33 = vpop.permute.xlu1 %18071 }
 0x4fb   :  { %v40387_v34 = vpop.permute.xlu0 %18101  ;;  %18198 = vrot.lane.b32.xlu1 %v18150_v35, %s37062_s18  ;;  %18202 = vrot.lane.b32.xlu0 %v40384_v17, %s37062_s18 }
 0x4fc   :  { %v18120_v43 = vsel %vm140_vm0, %v18100_v30, %v40387_v34 }
 0x4fd   :  { %v40396_v51 = vmax.f32 %v18048_v49, %v18120_v43 }
 0x4fe   :  { %v18076_v13 = vpop.permute.xlu1 %18075 }
 0x4ff   :  { %v18074_v46 = vpop.permute.xlu0 %18073  ;;  %18200 = vrot.lane.b32.xlu1 %v18151_v53, %s37062_s18  ;;  %18206 = vrot.lane.b32.xlu0 %v40396_v51, %s37062_s18  ;;  %v18108_v28 = vsel %vm140_vm0, %v18076_v13, %v18078_v7 }
 0x500   :  { %v18107_v61 = vsel %vm140_vm0, %v18074_v46, %v18076_v13  ;;  %v18106_v2 = vsel %vm140_vm0, %v18072_v33, %v18074_v46  ;;  %v18142_v8 = vmax.f32 %v18036_v6, %v18108_v28  ;;  %v40532_v13 = vadd.f32 %v40246_v22, %v40275_v41 }
 0x501   :  { %v40405_v50 = vmax.f32 %v18035_v25, %v18107_v61  ;;  %v18140_v39 = vmax.f32 %v18034_v37, %v18106_v2 }
 0x502   :  { %v44370_v46 = vmax.f32 %v40532_v13, 0.0 }
 0x503   :  { %18204 = vrot.lane.b32.xlu1 %v18153_v10, %s37062_s18  ;;  %18180 = vrot.lane.b32.xlu0 %v40405_v50, %s37062_s18  ;;  %v18070_v26 = vpop.permute.xlu0 %18069 }
 0x504   :  { %v18105_v48 = vsel %vm140_vm0, %v18070_v26, %v18072_v33  ;;  %v18277_v26 = vld [vmem:[%s44288_s3 + $0x70] sm:$0xff] }
 0x505   :  { %v18139_v12 = vmax.f32 %v18033_v57, %v18105_v48 }
 0x507   :  { %18178 = vrot.lane.b32.xlu1 %v18140_v39, %s37062_s18  ;;  %18176 = vrot.lane.b32.xlu0 %v18139_v12, %s37062_s18 }
 0x50b   :  { %18182 = vrot.lane.b32.xlu1 %v18142_v8, %s37062_s18 }
 0x559   :  { %v18189_v49 = vpop.permute.xlu0 %18188 }
 0x561   :  { %v18187_v31 = vpop.permute.xlu1 %18186  ;;  %v18185_v59 = vpop.permute.xlu0 %18184 }
 0x562   :  { %v18217_v25 = vsel %vm3705_vm5, %v18187_v31, %v18189_v49  ;;  %v18216_v40 = vsel %vm3705_vm5, %v18185_v59, %v18187_v31 }
 0x563   :  { %v40421_v63 = vmax.f32 %v18144_v32, %v18217_v25  ;;  %v40431_v6 = vmax.f32 %v40355_v29, %v18216_v40 }
 0x565   :  { %44650 = vst [vmem:[#allocation68_spill] sm:$0xff] %v40421_v63  ;;  %v40424_v37 = vpop.permute.xlu1 %18190  ;;  %22619 = vrot.lane.b32.xlu1 %v40421_v63, %s37071_s27  ;;  %v18197_v57 = vpop.permute.xlu0 %18196  ;;  %44651 = vst [vmem:[#allocation4_spill] sm:$0xff] %v40431_v6 }
 0x566   :  { %v18218_v18 = vsel %vm3705_vm5, %v18189_v49, %v40424_v37 }
 0x567   :  { %v40434_v24 = vmax.f32 %v40349_v52, %v18218_v18 }
 0x569   :  { %44652 = vst [vmem:[#allocation2_spill] sm:$0xff] %v40434_v24  ;;  %v18195_v55 = vpop.permute.xlu1 %18194  ;;  %22621 = vrot.lane.b32.xlu0 %v40434_v24, %s37071_s27  ;;  %22617 = vrot.lane.b32.xlu1 %v40431_v6, %s37071_s27  ;;  %v40440_v58 = vpop.permute.xlu0 %18192 }
 0x56a   :  { %v18221_v1 = vsel %vm3705_vm5, %v18195_v55, %v18197_v57  ;;  %v18220_v15 = vsel %vm3705_vm5, %v40440_v58, %v18195_v55  ;;  %v18219_v22 = vsel %vm3705_vm5, %v40424_v37, %v40440_v58 }
 0x56b   :  { %v40443_v7 = vmax.f32 %v18148_v16, %v18221_v1  ;;  %v40450_v38 = vmax.f32 %v18147_v19, %v18220_v15  ;;  %v40570_v41 = vmax.f32 %v40364_v62, %v18219_v22 }
 0x56d   :  { %44653 = vst [vmem:[#allocation45_spill] sm:$0xff] %v40443_v7  ;;  %v18199_v42 = vpop.permute.xlu1 %18198  ;;  %22627 = vrot.lane.b32.xlu0 %v40443_v7, %s37071_s27  ;;  %v18203_v52 = vpop.permute.xlu0 %18202  ;;  %44658 = vst [vmem:[#allocation9_spill] sm:$0xff] %v40570_v41 }
 0x56e   :  { %v18222_v3 = vsel %vm3705_vm5, %v18197_v57, %v18199_v42 }
 0x56f   :  { %v40453_v29 = vmax.f32 %v40366_v47, %v18222_v3 }
 0x571   :  { %v18201_v32 = vpop.permute.xlu1 %18200  ;;  %22629 = vrot.lane.b32.xlu1 %v40453_v29, %s37071_s27  ;;  %22625 = vrot.lane.b32.xlu0 %v40450_v38, %s37071_s27  ;;  %v40459_v44 = vpop.permute.xlu0 %18206 }
 0x572   :  { %v18223_v4 = vsel %vm3705_vm5, %v18199_v42, %v18201_v32  ;;  %v18224_v23 = vsel %vm3705_vm5, %v18201_v32, %v18203_v52 }
 0x573   :  { %v40463_v27 = vmax.f32 %v18150_v35, %v18223_v4  ;;  %v40465_v54 = vmax.f32 %v18151_v53, %v18224_v23 }
 0x575   :  { %44654 = vst [vmem:[#allocation5_spill] sm:$0xff] %v40463_v27  ;;  %v18205_v20 = vpop.permute.xlu1 %18204  ;;  %22631 = vrot.lane.b32.xlu1 %v40463_v27, %s37071_s27  ;;  %22633 = vrot.lane.b32.xlu0 %v40465_v54, %s37071_s27  ;;  %v18181_v47 = vpop.permute.xlu0 %18180 }
 0x576   :  { %v18225_v5 = vsel %vm3705_vm5, %v18203_v52, %v18205_v20  ;;  %v18226_v9 = vsel %vm3705_vm5, %v18205_v20, %v40459_v44 }
 0x577   :  { %v40475_v19 = vmax.f32 %v40384_v17, %v18225_v5  ;;  %v40477_v16 = vmax.f32 %v18153_v10, %v18226_v9 }
 0x579   :  { %44655 = vst [vmem:[#allocation47_spill] sm:$0xff] %v40477_v16  ;;  %v18179_v21 = vpop.permute.xlu1 %18178  ;;  %22635 = vrot.lane.b32.xlu1 %v40475_v19, %s37071_s27  ;;  %22637 = vrot.lane.b32.xlu0 %v40477_v16, %s37071_s27  ;;  %v18177_v30 = vpop.permute.xlu0 %18176 }
 0x57a   :  { %v18213_v60 = vsel %vm3705_vm5, %v18179_v21, %v18181_v47  ;;  %v18212_v35 = vsel %vm3705_vm5, %v18177_v30, %v18179_v21 }
 0x57b   :  { %v40484_v0 = vmax.f32 %v18140_v39, %v18213_v60  ;;  %v40490_v33 = vmax.f32 %v18139_v12, %v18212_v35  ;;  %v18278_v39 = vld [vmem:[%s44288_s3 + $0x78] sm:$0xff]  ;;  %v40698_v60 = vld [vmem:[%s44288_s3 + $0x88] sm:$0xff] }
 0x57d   :  { %v18183_v36 = vpop.permute.xlu1 %18182  ;;  %23238 = vrot.lane.b32.xlu1 %v40484_v0, %s37078_s1 }
 0x57e   :  { %v18214_v17 = vsel %vm3705_vm5, %v18181_v47, %v18183_v36  ;;  %v18215_v53 = vsel %vm3705_vm5, %v18183_v36, %v18185_v59  ;;  %v40680_v47 = vld [vmem:[%s44288_s3 + $0x80] sm:$0xff] }
 0x57f   :  { %v40493_v43 = vmax.f32 %v40405_v50, %v18214_v17  ;;  %v40500_v45 = vmax.f32 %v18142_v8, %v18215_v53 }
 0x581   :  { %44656 = vst [vmem:[#allocation7_spill] sm:$0xff] %v40493_v43  ;;  %23240 = vrot.lane.b32.xlu0 %v40493_v43, %s37078_s1  ;;  %23236 = vrot.lane.b32.xlu1 %v40490_v33, %s37078_s1  ;;  %44657 = vst [vmem:[#allocation49_spill] sm:$0xff] %v40500_v45 }
 0x585   :  { %23242 = vrot.lane.b32.xlu0 %v40500_v45, %s37078_s1  ;;  %23244 = vrot.lane.b32.xlu1 %v40431_v6, %s37078_s1 }
 0x589   :  { %23246 = vrot.lane.b32.xlu0 %v40421_v63, %s37078_s1  ;;  %23248 = vrot.lane.b32.xlu1 %v40434_v24, %s37078_s1 }
 0x58d   :  { %23254 = vrot.lane.b32.xlu0 %v40443_v7, %s37078_s1  ;;  %23256 = vrot.lane.b32.xlu1 %v40453_v29, %s37078_s1 }
 0x591   :  { %23252 = vrot.lane.b32.xlu0 %v40450_v38, %s37078_s1  ;;  %23258 = vrot.lane.b32.xlu1 %v40463_v27, %s37078_s1 }
 0x595   :  { %23260 = vrot.lane.b32.xlu0 %v40465_v54, %s37078_s1  ;;  %23262 = vrot.lane.b32.xlu1 %v40475_v19, %s37078_s1 }
 0x599   :  { %23264 = vrot.lane.b32.xlu0 %v40477_v16, %s37078_s1  ;;  %23866 = vrot.lane.b32.xlu1 %v40484_v0, %s37079_s26 }
 0x59d   :  { %23868 = vrot.lane.b32.xlu0 %v40493_v43, %s37079_s26  ;;  %23864 = vrot.lane.b32.xlu1 %v40490_v33, %s37079_s26 }
 0x5a1   :  { %23870 = vrot.lane.b32.xlu0 %v40500_v45, %s37079_s26  ;;  %23872 = vrot.lane.b32.xlu1 %v40431_v6, %s37079_s26 }
 0x5a5   :  { %18103 = vrot.lane.b32.xlu0 %v44370_v46, %s37058_s21  ;;  %23874 = vrot.lane.b32.xlu1 %v40421_v63, %s37079_s26 }
 0x5a9   :  { %23876 = vrot.lane.b32.xlu0 %v40434_v24, %s37079_s26  ;;  %23882 = vrot.lane.b32.xlu1 %v40443_v7, %s37079_s26 }
 0x5ad   :  { %23884 = vrot.lane.b32.xlu0 %v40453_v29, %s37079_s26  ;;  %23880 = vrot.lane.b32.xlu1 %v40450_v38, %s37079_s26 }
 0x5b1   :  { %23886 = vrot.lane.b32.xlu0 %v40463_v27, %s37079_s26  ;;  %23888 = vrot.lane.b32.xlu1 %v40465_v54, %s37079_s26 }
 0x5b5   :  { %23890 = vrot.lane.b32.xlu0 %v40475_v19, %s37079_s26  ;;  %23892 = vrot.lane.b32.xlu1 %v40477_v16, %s37079_s26 }
 0x5b9   :  { %18332 = vrot.lane.b32.xlu1 %v40493_v43, %s37059_s13 }
 0x5bd   :  { %18330 = vrot.lane.b32.xlu1 %v40484_v0, %s37059_s13 }
 0x5c1   :  { %18338 = vrot.lane.b32.xlu1 %v40421_v63, %s37059_s13 }
 0x5c5   :  { %18342 = vrot.lane.b32.xlu1 %v40570_v41, %s37059_s13 }
 0x5c9   :  { %18350 = vrot.lane.b32.xlu1 %v40463_v27, %s37059_s13 }
 0x5cd   :  { %18352 = vrot.lane.b32.xlu1 %v40465_v54, %s37059_s13 }
 0x5d1   :  { %18356 = vrot.lane.b32.xlu1 %v40477_v16, %s37059_s13 }
 0x5d5   :  { %19476 = vrot.lane.b32.xlu1 %v40493_v43, %s37061_s15 }
 0x5d7   :  { %v22620_v61 = vpop.permute.xlu1 %22619 }
 0x5d9   :  { %19474 = vrot.lane.b32.xlu1 %v40484_v0, %s37061_s15 }
 0x5db   :  { %v40584_v62 = vpop.permute.xlu1 %22617  ;;  %v40586_v10 = vpop.permute.xlu0 %22621 }
 0x5dc   :  { %44659 = vst [vmem:[#allocation6_spill] sm:$0xff] %v40584_v62  ;;  %44660 = vst [vmem:[#allocation11_spill] sm:$0xff] %v40586_v10  ;;  %v40590_v50 = vsel %vm10320_vm14, %v22620_v61, %v40586_v10  ;;  %v40594_v2 = vsel %vm10320_vm14, %v40584_v62, %v22620_v61 }
 0x5dd   :  { %44661 = vst [vmem:[#allocation3_spill] sm:$0xff] %v40590_v50  ;;  %44662 = vst [vmem:[#allocation12_spill] sm:$0xff] %v40594_v2  ;;  %19482 = vrot.lane.b32.xlu1 %v40421_v63, %s37061_s15  ;;  %22827 = vmatprep.subr.mxu1 %v40590_v50 }
 0x5de   :  { %22828 = vmatpush1.msra.mxu1 %v40594_v2 }
 0x5df   :  { %34977 = vmatmul.mubr.msk.f32.vlgmr.msra.gmra.mrb[8].mxu1 %vm177_vm1, %v18277_v26  ;;  %v22628_v48 = vpop.permute.xlu0 %22627 }
 0x5e0   :  { %22897 = vmatprep.mubr.f32.mxu1 %v44530_v56 }
 0x5e1   :  { %19486 = vrot.lane.b32.xlu1 %v40570_v41, %s37061_s15 }
 0x5e3   :  { %v22630_v12 = vpop.permute.xlu1 %22629  ;;  %34978 = vmatmul.mubr.msk.f32.gmra.mrb[10].mxu1 %vm177_vm1, %v18278_v39  ;;  %v40611_v28 = vpop.permute.xlu0 %22625 }
 0x5e4   :  { %44663 = vst [vmem:[#allocation8_spill] sm:$0xff] %v40611_v28  ;;  %v40614_v8 = vsel %vm10320_vm14, %v22628_v48, %v22630_v12  ;;  %v40618_v49 = vsel %vm10320_vm14, %v40611_v28, %v22628_v48  ;;  %23043 = vmatprep.mubr.f32.mxu1 %v44530_v56 }
 0x5e5   :  { %44664 = vst [vmem:[#allocation51_spill] sm:$0xff] %v40614_v8  ;;  %44665 = vst [vmem:[#allocation44_spill] sm:$0xff] %v40618_v49  ;;  %19494 = vrot.lane.b32.xlu1 %v40463_v27, %s37061_s15  ;;  %22979 = vmatprep.subr.mxu1 %v40614_v8 }
 0x5e6   :  { %22980 = vmatpush1.msra.mxu1 %v40618_v49 }
 0x5e7   :  { %v22632_v31 = vpop.permute.xlu1 %22631  ;;  %34981 = vmatmul.mubr.msk.f32.vlgmr.msra.gmra.mrb[12].mxu1 %vm177_vm1, %v18277_v26  ;;  %v22634_v59 = vpop.permute.xlu0 %22633 }
 0x5e8   :  { %v40627_v25 = vsel %vm10320_vm14, %v22632_v31, %v22634_v59  ;;  %23049 = vmatprep.mubr.f32.mxu1 %v44530_v56  ;;  %v40631_v40 = vsel %vm10320_vm14, %v22630_v12, %v22632_v31 }
 0x5e9   :  { %44666 = vst [vmem:[#allocation14_spill] sm:$0xff] %v40627_v25  ;;  %44667 = vst [vmem:[#allocation10_spill] sm:$0xff] %v40631_v40  ;;  %19496 = vrot.lane.b32.xlu1 %v40465_v54, %s37061_s15  ;;  %23056 = vmatprep.subr.mxu1 %v40627_v25 }
 0x5ea   :  { %23057 = vmatpush1.msra.mxu1 %v40631_v40 }
 0x5eb   :  { %v22636_v37 = vpop.permute.xlu1 %22635  ;;  %34982 = vmatmul.mubr.msk.f32.gmra.mrb[14].mxu1 %vm177_vm1, %v18278_v39  ;;  %v40638_v57 = vpop.permute.xlu0 %22637 }
 0x5ec   :  { %44668 = vst [vmem:[#allocation53_spill] sm:$0xff] %v40638_v57  ;;  %v40642_v18 = vsel %vm10320_vm14, %v22636_v37, %v40638_v57  ;;  %23120 = vmatprep.mubr.f32.mxu1 %v44530_v56  ;;  %v40650_v58 = vsel %vm10320_vm14, %v22634_v59, %v22636_v37 }
 0x5ed   :  { %44669 = vst [vmem:[#allocation46_spill] sm:$0xff] %v40642_v18  ;;  %19500 = vrot.lane.b32.xlu1 %v40477_v16, %s37061_s15  ;;  %23133 = vmatprep.subr.mxu1 %v40642_v18  ;;  %44670 = vst [vmem:[#allocation15_spill] sm:$0xff] %v40650_v58 }
 0x5ef   :  { %v23239_v55 = vpop.permute.xlu1 %23238  ;;  %34983 = vmatmul.mubr.msk.f32.vlgmr.msra.gmra.mrb[16].mxu1 %vm177_vm1, %v18277_v26 }
 0x5f0   :  { %23134 = vmatpush1.msra.mxu1 %v40650_v58  ;;  %23126 = vmatprep.mubr.f32.mxu1 %v44530_v56 }
 0x5f1   :  { %20103 = vrot.lane.b32.xlu1 %v40493_v43, %s37080_s17 }
 0x5f3   :  { %v23237_v1 = vpop.permute.xlu1 %23236  ;;  %34984 = vmatmul.mubr.msk.f32.gmra.mrb[18].mxu1 %vm177_vm1, %v18278_v39  ;;  %v23241_v15 = vpop.permute.xlu0 %23240 }
 0x5f4   :  { %v40658_v42 = vsel %vm23266_vm3, %v23239_v55, %v23241_v15  ;;  %23197 = vmatprep.mubr.f32.mxu1 %v44530_v56  ;;  %v23267_v52 = vsel %vm23266_vm3, %v23237_v1, %v23239_v55 }
 0x5f5   :  { %44671 = vst [vmem:[#allocation13_spill] sm:$0xff] %v40658_v42  ;;  %20101 = vrot.lane.b32.xlu1 %v40484_v0, %s37080_s17  ;;  %23301 = vmatprep.subr.mxu1 %v40658_v42 }
 0x5f7   :  { %v23245_v3 = vpop.permute.xlu1 %23244  ;;  %34985 = vmatmul.mubr.msk.f32.vlgmr.msra.gmra.mrb[20].mxu1 %vm177_vm1, %v18277_v26  ;;  %v23243_v32 = vpop.permute.xlu0 %23242 }
 0x5f8   :  { %23302 = vmatpush1.msra.mxu1 %v23267_v52  ;;  %v40667_v4 = vsel %vm23266_vm3, %v23243_v32, %v23245_v3  ;;  %23203 = vmatprep.mubr.f32.mxu1 %v44530_v56  ;;  %v40687_v9 = vsel %vm23266_vm3, %v23241_v15, %v23243_v32 }
 0x5f9   :  { %44672 = vst [vmem:[#allocation55_spill] sm:$0xff] %v40667_v4  ;;  %20109 = vrot.lane.b32.xlu1 %v40421_v63, %s37080_s17  ;;  %23378 = vmatprep.subr.mxu1 %v40667_v4  ;;  %44674 = vst [vmem:[#allocation18_spill] sm:$0xff] %v40687_v9 }
 0x5fb   :  { %v40673_v23 = vpop.permute.xlu1 %23248  ;;  %34986 = vmatmul.mubr.msk.f32.gmra.mrb[22].mxu1 %vm177_vm1, %v18278_v39  ;;  %v23247_v20 = vpop.permute.xlu0 %23246 }
 0x5fc   :  { %44673 = vst [vmem:[#allocation48_spill] sm:$0xff] %v40673_v23  ;;  %23365 = vmatprep.mubr.f32.mxu1 %v44530_v56  ;;  %v40692_v30 = vsel %vm23266_vm3, %v23247_v20, %v40673_v23  ;;  %v40713_v53 = vsel %vm23266_vm3, %v23245_v3, %v23247_v20  ;;  %v41228_v23 = vld [vmem:[%s44288_s3 + $0xc8] sm:$0xff] }
 0x5fd   :  { %20113 = vrot.lane.b32.xlu1 %v40570_v41, %s37080_s17  ;;  %44675 = vst [vmem:[#allocation16_spill] sm:$0xff] %v40692_v30  ;;  %44677 = vst [vmem:[#allocation50_spill] sm:$0xff] %v40713_v53 }
 0x5ff   :  { %v23257_v5 = vpop.permute.xlu1 %23256  ;;  %34987 = vmatmul.mubr.msk.f32.vlgmr.msra.gmra.mrb[24].mxu1 %vm177_vm1, %v40680_v47  ;;  %v23255_v21 = vpop.permute.xlu0 %23254 }
 0x600   :  { %23379 = vmatpush1.msra.mxu1 %v40687_v9  ;;  %23371 = vmatprep.mubr.f32.mxu1 %v44530_v56  ;;  %v40717_v61 = vsel %vm23266_vm3, %v23255_v21, %v23257_v5 }
 0x601   :  { %23455 = vmatprep.subr.mxu1 %v40692_v30  ;;  %20121 = vrot.lane.b32.xlu1 %v40463_v27, %s37080_s17  ;;  %44678 = vst [vmem:[#allocation20_spill] sm:$0xff] %v40717_v61 }
 0x603   :  { %v23259_v35 = vpop.permute.xlu1 %23258  ;;  %34988 = vmatmul.mubr.msk.f32.gmra.mrb[26].mxu1 %vm177_vm1, %v40698_v60  ;;  %v40705_v36 = vpop.permute.xlu0 %23252 }
 0x604   :  { %44676 = vst [vmem:[#allocation57_spill] sm:$0xff] %v40705_v36  ;;  %23442 = vmatprep.mubr.f32.mxu1 %v44530_v56  ;;  %v40734_v12 = vsel %vm23266_vm3, %v40705_v36, %v23255_v21  ;;  %v40756_v15 = vsel %vm23266_vm3, %v23257_v5, %v23259_v35 }
 0x605   :  { %20123 = vrot.lane.b32.xlu1 %v40465_v54, %s37080_s17  ;;  %44680 = vst [vmem:[#allocation17_spill] sm:$0xff] %v40734_v12  ;;  %44682 = vst [vmem:[#allocation22_spill] sm:$0xff] %v40756_v15 }
 0x607   :  { %v23263_v17 = vpop.permute.xlu1 %23262  ;;  %34989 = vmatmul.mubr.msk.f32.vlgmr.msra.gmra.mrb[28].mxu1 %vm177_vm1, %v40680_v47  ;;  %v23261_v22 = vpop.permute.xlu0 %23260 }
 0x608   :  { %23456 = vmatpush1.msra.mxu1 %v40713_v53  ;;  %23448 = vmatprep.mubr.f32.mxu1 %v44530_v56  ;;  %v40738_v59 = vsel %vm23266_vm3, %v23259_v35, %v23261_v22 }
 0x609   :  { %23607 = vmatprep.subr.mxu1 %v40717_v61  ;;  %20127 = vrot.lane.b32.xlu1 %v40477_v16, %s37080_s17  ;;  %44681 = vst [vmem:[#allocation52_spill] sm:$0xff] %v40738_v59 }
 0x60b   :  { %v23867_v26 = vpop.permute.xlu1 %23866  ;;  %34990 = vmatmul.mubr.msk.f32.gmra.mrb[30].mxu1 %vm177_vm1, %v40698_v60  ;;  %v40725_v48 = vpop.permute.xlu0 %23264 }
 0x60c   :  { %44679 = vst [vmem:[#allocation19_spill] sm:$0xff] %v40725_v48  ;;  %23519 = vmatprep.mubr.f32.mxu1 %v44530_v56  ;;  %v40766_v32 = vsel %vm23266_vm3, %v23263_v17, %v40725_v48 }
 0x60d   :  { %20731 = vrot.lane.b32.xlu1 %v40493_v43, %s37081_s24  ;;  %44683 = vst [vmem:[#allocation21_spill] sm:$0xff] %v40766_v32 }
 0x60f   :  { %v23865_v39 = vpop.permute.xlu1 %23864  ;;  %34991 = vmatmul.mubr.msk.f32.vlgmr.msra.gmra.mrb[8].mxu1 %vm177_vm1, %v40680_v47  ;;  %v23869_v31 = vpop.permute.xlu0 %23868 }
 0x610   :  { %23608 = vmatpush1.msra.mxu1 %v40734_v12  ;;  %23525 = vmatprep.mubr.f32.mxu1 %v44530_v56 }
 0x611   :  { %23684 = vmatprep.subr.mxu1 %v40738_v59  ;;  %20729 = vrot.lane.b32.xlu1 %v40484_v0, %s37081_s24 }
 0x613   :  { %v40744_v37 = vpop.permute.xlu1 %23872  ;;  %34992 = vmatmul.mubr.msk.f32.gmra.mrb[10].mxu1 %vm177_vm1, %v40698_v60  ;;  %v23871_v55 = vpop.permute.xlu0 %23870 }
 0x614   :  { %23671 = vmatprep.mubr.f32.mxu1 %v44530_v56 }
 0x615   :  { %20737 = vrot.lane.b32.xlu1 %v40421_v63, %s37081_s24 }
 0x617   :  { %v40751_v1 = vpop.permute.xlu1 %23874  ;;  %34995 = vmatmul.mubr.msk.f32.vlgmr.msra.gmra.mrb[12].mxu1 %vm177_vm1, %v40680_v47  ;;  %v40758_v52 = vpop.permute.xlu0 %18103 }
 0x618   :  { %23685 = vmatpush1.msra.mxu1 %v40756_v15  ;;  %v18121_v3 = vsel %vm140_vm0, %v40387_v34, %v40758_v52  ;;  %23677 = vmatprep.mubr.f32.mxu1 %v44530_v56  ;;  %vm23894_vm0 = vcmask 457728  }
 0x619   :  { %v40771_v20 = vmax.f32 %v18049_v14, %v18121_v3  ;;  %23761 = vmatprep.subr.mxu1 %v40766_v32  ;;  %20741 = vrot.lane.b32.xlu1 %v40570_v41, %s37081_s24  ;;  %v40790_v14 = vsel %vm23266_vm3, %v23261_v22, %v23263_v17  ;;  %v40796_v34 = vsel %vm23894_vm0, %v23867_v26, %v23869_v31 }
 0x61a   :  { %44685 = vst [vmem:[#allocation54_spill] sm:$0xff] %v40790_v14  ;;  %44686 = vst [vmem:[#allocation24_spill] sm:$0xff] %v40796_v34  ;;  %v23895_v35 = vsel %vm23894_vm0, %v23865_v39, %v23867_v26  ;;  %v40820_v22 = vsel %vm23894_vm0, %v23871_v55, %v40744_v37  ;;  %v40877_v12 = vsel %vm23894_vm0, %v40744_v37, %v40751_v1 }
 0x61b   :  { %v40776_v5 = vpop.permute.xlu1 %23882  ;;  %34996 = vmatmul.mubr.msk.f32.gmra.mrb[14].mxu1 %vm177_vm1, %v40698_v60  ;;  %18208 = vrot.lane.b32.xlu0 %v40771_v20, %s37062_s18  ;;  %44688 = vst [vmem:[#allocation61_spill] sm:$0xff] %v40820_v22  ;;  %v40836_v39 = vpop.permute.xlu0 %23876  ;;  %44692 = vst [vmem:[#allocation63_spill] sm:$0xff] %v40877_v12 }
 0x61c   :  { %23748 = vmatprep.mubr.f32.mxu1 %v44530_v56  ;;  %44689 = vst [vmem:[#allocation56_spill] sm:$0xff] %v40836_v39 }
 0x61d   :  { %20749 = vrot.lane.b32.xlu1 %v40463_v27, %s37081_s24 }
 0x61f   :  { %v40785_v11 = vpop.permute.xlu1 %23880  ;;  %34997 = vmatmul.mubr.msk.f32.vlgmr.msra.gmra.mrb[16].mxu1 %vm177_vm1, %v40680_v47  ;;  %18334 = vrot.lane.b32.xlu0 %v40500_v45, %s37059_s13 }
 0x620   :  { %44684 = vst [vmem:[#allocation59_spill] sm:$0xff] %v40785_v11  ;;  %23762 = vmatpush1.msra.mxu1 %v40790_v14  ;;  %23754 = vmatprep.mubr.f32.mxu1 %v44530_v56  ;;  %v40896_v37 = vsel %vm23894_vm0, %v40785_v11, %v40776_v5 }
 0x621   :  { %23929 = vmatprep.subr.mxu1 %v40796_v34  ;;  %20751 = vrot.lane.b32.xlu1 %v40465_v54, %s37081_s24  ;;  %44694 = vst [vmem:[#allocation27_spill] sm:$0xff] %v40896_v37 }
 0x623   :  { %v40802_v21 = vpop.permute.xlu1 %23888  ;;  %34998 = vmatmul.mubr.msk.f32.gmra.mrb[18].mxu1 %vm177_vm1, %v40698_v60  ;;  %18336 = vrot.lane.b32.xlu0 %v40431_v6, %s37059_s13 }
 0x624   :  { %23825 = vmatprep.mubr.f32.mxu1 %v44530_v56 }
 0x625   :  { %20755 = vrot.lane.b32.xlu1 %v40477_v16, %s37081_s24 }
 0x627   :  { %v40812_v17 = vpop.permute.xlu1 %23892  ;;  %34999 = vmatmul.mubr.msk.f32.vlgmr.msra.gmra.mrb[20].mxu1 %vm177_vm1, %v40680_v47  ;;  %18340 = vrot.lane.b32.xlu0 %v40434_v24, %s37059_s13  ;;  %v18281_v47 = vld [vmem:[%s44288_s3 + $0x90] sm:$0xff] }
 0x628   :  { %44687 = vst [vmem:[#allocation23_spill] sm:$0xff] %v40812_v17  ;;  %23930 = vmatpush1.msra.mxu1 %v23895_v35  ;;  %23831 = vmatprep.mubr.f32.mxu1 %v44530_v56  ;;  %v40852_v35 = vsel %vm23894_vm0, %v40751_v1, %v40836_v39 }
 0x629   :  { %24006 = vmatprep.subr.mxu1 %v40820_v22  ;;  %21359 = vrot.lane.b32.xlu1 %v40493_v43, %s37067_s12  ;;  %44691 = vst [vmem:[#allocation26_spill] sm:$0xff] %v40852_v35 }
 0x62b   :  { %v40826_v26 = vpop.permute.xlu1 %18332  ;;  %35000 = vmatmul.mubr.msk.f32.gmra.mrb[22].mxu1 %vm177_vm1, %v40698_v60  ;;  %18348 = vrot.lane.b32.xlu0 %v40453_v29, %s37059_s13  ;;  %v40844_v60 = vsel %vm23894_vm0, %v23869_v31, %v23871_v55  ;;  %v18282_v31 = vld [vmem:[%s44288_s3 + $0x98] sm:$0xff]  ;;  %v23885_v55 = vpop.permute.xlu0 %23884 }
 0x62c   :  { %23993 = vmatprep.mubr.f32.mxu1 %v44530_v56  ;;  %44690 = vst [vmem:[#allocation25_spill] sm:$0xff] %v40844_v60  ;;  %v40882_v49 = vsel %vm23894_vm0, %v40776_v5, %v23885_v55 }
 0x62d   :  { %21357 = vrot.lane.b32.xlu1 %v40484_v0, %s37067_s12  ;;  %44693 = vst [vmem:[#allocation58_spill] sm:$0xff] %v40882_v49 }
 0x62f   :  { %v40840_v3 = vpop.permute.xlu1 %18330  ;;  %35001 = vmatmul.mubr.msk.f32.vlgmr.msra.gmra.mrb[24].mxu1 %vm177_vm1, %v18281_v47  ;;  %18346 = vrot.lane.b32.xlu0 %v40443_v7, %s37059_s13  ;;  %v23887_v36 = vpop.permute.xlu0 %23886 }
 0x630   :  { %24007 = vmatpush1.msra.mxu1 %v40844_v60  ;;  %v40857_v46 = vsel %vm1500_vm2, %v40840_v3, %v40826_v26  ;;  %23999 = vmatprep.mubr.f32.mxu1 %v44530_v56  ;;  %v40901_v1 = vsel %vm23894_vm0, %v23887_v36, %v40802_v21  ;;  %v40913_v5 = vsel %vm23894_vm0, %v23885_v55, %v23887_v36 }
 0x631   :  { %24083 = vmatprep.subr.mxu1 %v40852_v35  ;;  %21363 = vrot.lane.b32.xlu1 %v40431_v6, %s37067_s12  ;;  %44695 = vst [vmem:[#allocation28_spill] sm:$0xff] %v40901_v1  ;;  %44696 = vst [vmem:[#allocation65_spill] sm:$0xff] %v40913_v5 }
 0x632   :  { %18392 = vmatprep.subr.mxu0 %v40857_v46 }
 0x633   :  { %35002 = vmatmul.mubr.msk.f32.gmra.mrb[26].mxu1 %vm177_vm1, %v18282_v31  ;;  %18354 = vrot.lane.b32.xlu0 %v40475_v19, %s37059_s13  ;;  %v23891_v28 = vpop.permute.xlu0 %23890 }
 0x634   :  { %24070 = vmatprep.mubr.f32.mxu1 %v44530_v56  ;;  %v40931_v36 = vsel %vm23894_vm0, %v40802_v21, %v23891_v28  ;;  %v18284_v21 = vld [vmem:[%s44288_s3 + $0xa8] sm:$0xff] }
 0x635   :  { %21367 = vrot.lane.b32.xlu1 %v40434_v24, %s37067_s12  ;;  %44698 = vst [vmem:[#allocation29_spill] sm:$0xff] %v40931_v36 }
 0x637   :  { %35003 = vmatmul.mubr.msk.f32.vlgmr.msra.gmra.mrb[28].mxu1 %vm177_vm1, %v18281_v47 }
 0x638   :  { %24084 = vmatpush1.msra.mxu1 %v40877_v12  ;;  %24076 = vmatprep.mubr.f32.mxu1 %v44530_v56 }
 0x639   :  { %24235 = vmatprep.subr.mxu1 %v40882_v49  ;;  %21375 = vrot.lane.b32.xlu1 %v40453_v29, %s37067_s12 }
 0x63b   :  { %35004 = vmatmul.mubr.msk.f32.gmra.mrb[30].mxu1 %vm177_vm1, %v18282_v31 }
 0x63c   :  { %24147 = vmatprep.mubr.f32.mxu1 %v44530_v56 }
 0x63d   :  { %21373 = vrot.lane.b32.xlu1 %v40443_v7, %s37067_s12 }
 0x63f   :  { %35005 = vmatmul.mubr.msk.f32.vlgmr.msra.gmra.mrb[8].mxu1 %vm177_vm1, %v18281_v47 }
 0x640   :  { %24236 = vmatpush1.msra.mxu1 %v40896_v37  ;;  %24153 = vmatprep.mubr.f32.mxu1 %v44530_v56  ;;  %v40918_v37 = vsel %vm23894_vm0, %v23891_v28, %v40812_v17  ;;  %v18283_v28 = vld [vmem:[%s44288_s3 + $0xa0] sm:$0xff] }
 0x641   :  { %24312 = vmatprep.subr.mxu1 %v40901_v1  ;;  %21379 = vrot.lane.b32.xlu1 %v40465_v54, %s37067_s12  ;;  %44697 = vst [vmem:[#allocation60_spill] sm:$0xff] %v40918_v37 }
 0x643   :  { %35006 = vmatmul.mubr.msk.f32.gmra.mrb[10].mxu1 %vm177_vm1, %v18282_v31 }
 0x644   :  { %24299 = vmatprep.mubr.f32.mxu1 %v44530_v56 }
 0x645   :  { %21383 = vrot.lane.b32.xlu1 %v40477_v16, %s37067_s12 }
 0x647   :  { %35009 = vmatmul.mubr.msk.f32.vlgmr.msra.gmra.mrb[12].mxu1 %vm177_vm1, %v18281_v47 }
 0x648   :  { %24313 = vmatpush1.msra.mxu1 %v40913_v5  ;;  %24305 = vmatprep.mubr.f32.mxu1 %v44530_v56 }
 0x649   :  { %24389 = vmatprep.subr.mxu1 %v40918_v37  ;;  %21986 = vrot.lane.b32.xlu1 %v40493_v43, %s37069_s28 }
 0x64b   :  { %35010 = vmatmul.mubr.msk.f32.gmra.mrb[14].mxu1 %vm177_vm1, %v18282_v31 }
 0x64c   :  { %24376 = vmatprep.mubr.f32.mxu1 %v44530_v56 }
 0x64d   :  { %21984 = vrot.lane.b32.xlu1 %v40484_v0, %s37069_s28 }
 0x64f   :  { %35011 = vmatmul.mubr.msk.f32.vlgmr.msra.gmra.mrb[16].mxu1 %vm177_vm1, %v18281_v47 }
 0x650   :  { %24390 = vmatpush1.msra.mxu1 %v40931_v36  ;;  %24382 = vmatprep.mubr.f32.mxu1 %v44530_v56 }
 0x651   :  { %24498 = vmatprep.subr.mxu1 %v40493_v43  ;;  %21992 = vrot.lane.b32.xlu1 %v40421_v63, %s37069_s28 }
 0x653   :  { %35012 = vmatmul.mubr.msk.f32.gmra.mrb[18].mxu1 %vm177_vm1, %v18282_v31 }
 0x654   :  { %24453 = vmatprep.mubr.f32.mxu1 %v44530_v56 }
 0x655   :  { %21996 = vrot.lane.b32.xlu1 %v40570_v41, %s37069_s28 }
 0x657   :  { %35013 = vmatmul.mubr.msk.f32.vlgmr.msra.gmra.mrb[20].mxu1 %vm177_vm1, %v18281_v47  ;;  %v18339_v47 = vpop.permute.xlu1 %18338 }
 0x658   :  { %24499 = vmatpush1.msra.mxu1 %v40484_v0  ;;  %24459 = vmatprep.mubr.f32.mxu1 %v44530_v56 }
 0x659   :  { %24575 = vmatprep.subr.mxu1 %v40431_v6  ;;  %22004 = vrot.lane.b32.xlu1 %v40463_v27, %s37069_s28 }
 0x65b   :  { %35014 = vmatmul.mubr.msk.f32.gmra.mrb[22].mxu1 %vm177_vm1, %v18282_v31 }
 0x65c   :  { %24562 = vmatprep.mubr.f32.mxu1 %v44530_v56 }
 0x65d   :  { %22006 = vrot.lane.b32.xlu1 %v40465_v54, %s37069_s28 }
 0x65f   :  { %35015 = vmatmul.mubr.msk.f32.vlgmr.msra.gmra.mrb[24].mxu1 %vm177_vm1, %v18283_v28 }
 0x660   :  { %24576 = vmatpush1.msra.mxu1 %v40500_v45  ;;  %24568 = vmatprep.mubr.f32.mxu1 %v44530_v56 }
 0x661   :  { %24652 = vmatprep.subr.mxu1 %v40434_v24  ;;  %22010 = vrot.lane.b32.xlu1 %v40477_v16, %s37069_s28 }
 0x663   :  { %35016 = vmatmul.mubr.msk.f32.gmra.mrb[26].mxu1 %vm177_vm1, %v18284_v21 }
 0x664   :  { %24639 = vmatprep.mubr.f32.mxu1 %v44530_v56 }
 0x665   :  { %22613 = vrot.lane.b32.xlu1 %v40493_v43, %s37071_s27 }
 0x667   :  { %35017 = vmatmul.mubr.msk.f32.vlgmr.msra.gmra.mrb[28].mxu1 %vm177_vm1, %v18283_v28 }
 0x668   :  { %24653 = vmatpush1.msra.mxu1 %v40421_v63  ;;  %24645 = vmatprep.mubr.f32.mxu1 %v44530_v56 }
 0x669   :  { %24804 = vmatprep.subr.mxu1 %v40453_v29  ;;  %22611 = vrot.lane.b32.xlu1 %v40484_v0, %s37071_s27 }
 0x66b   :  { %35018 = vmatmul.mubr.msk.f32.gmra.mrb[30].mxu1 %vm177_vm1, %v18284_v21 }
 0x66c   :  { %24716 = vmatprep.mubr.f32.mxu1 %v44530_v56 }
 0x66d   :  { %19472 = vrot.lane.b32.xlu1 %v40490_v33, %s37061_s15 }
 0x66f   :  { %35019 = vmatmul.mubr.msk.f32.vlgmr.msra.gmra.mrb[8].mxu1 %vm177_vm1, %v18283_v28 }
 0x670   :  { %24805 = vmatpush1.msra.mxu1 %v40443_v7  ;;  %24722 = vmatprep.mubr.f32.mxu1 %v44530_v56 }
 0x671   :  { %24881 = vmatprep.subr.mxu1 %v40465_v54  ;;  %19488 = vrot.lane.b32.xlu1 %v40450_v38, %s37061_s15 }
 0x673   :  { %35020 = vmatmul.mubr.msk.f32.gmra.mrb[10].mxu1 %vm177_vm1, %v18284_v21 }
 0x674   :  { %24868 = vmatprep.mubr.f32.mxu1 %v44530_v56 }
 0x675   :  { %20099 = vrot.lane.b32.xlu1 %v40490_v33, %s37080_s17 }
 0x677   :  { %35023 = vmatmul.mubr.msk.f32.vlgmr.msra.gmra.mrb[12].mxu1 %vm177_vm1, %v18283_v28 }
 0x678   :  { %24882 = vmatpush1.msra.mxu1 %v40463_v27  ;;  %24874 = vmatprep.mubr.f32.mxu1 %v44530_v56 }
 0x679   :  { %24958 = vmatprep.subr.mxu1 %v40477_v16  ;;  %20115 = vrot.lane.b32.xlu1 %v40450_v38, %s37080_s17 }
 0x67b   :  { %35024 = vmatmul.mubr.msk.f32.gmra.mrb[14].mxu1 %vm177_vm1, %v18284_v21 }
 0x67c   :  { %24945 = vmatprep.mubr.f32.mxu1 %v44530_v56 }
 0x67d   :  { %20727 = vrot.lane.b32.xlu1 %v40490_v33, %s37081_s24 }
 0x67f   :  { %35025 = vmatmul.mubr.msk.f32.vlgmr.msra.gmra.mrb[16].mxu1 %vm177_vm1, %v18283_v28 }
 0x680   :  { %24959 = vmatpush1.msra.mxu1 %v40475_v19  ;;  %24951 = vmatprep.mubr.f32.mxu1 %v44530_v56 }
 0x681   :  { %20743 = vrot.lane.b32.xlu1 %v40450_v38, %s37081_s24 }
 0x683   :  { %35026 = vmatmul.mubr.msk.f32.gmra.mrb[18].mxu1 %vm177_vm1, %v18284_v21 }
 0x684   :  { %25022 = vmatprep.mubr.f32.mxu1 %v44530_v56 }
 0x685   :  { %21355 = vrot.lane.b32.xlu1 %v40490_v33, %s37067_s12 }
 0x687   :  { %35027 = vmatmul.mubr.msk.f32.vlgmr.msra.gmra.mrb[20].mxu1 %vm177_vm1, %v18283_v28 }
 0x688   :  { %25028 = vmatprep.mubr.f32.mxu1 %v44530_v56 }
 0x68b   :  { %35028 = vmatmul.mubr.msk.f32.gmra.mrb[22].mxu1 %vm177_vm1, %v18284_v21  ;;  %v41028_v21 = vld [vmem:[%s44288_s3 + $0xb0] sm:$0xff] }
 0x68c   :  { %25136 = vmatprep.mubr.f32.mxu1 %v44530_v56 }
 0x68d   :  { %v41011_v31 = vpop.permute.xlu0 %18208 }
 0x68e   :  { %v18227_v55 = vsel %vm3705_vm5, %v40459_v44, %v41011_v31 }
 0x68f   :  { %v41017_v11 = vmax.f32 %v40396_v51, %v18227_v55  ;;  %v41046_v55 = vld [vmem:[%s44288_s3 + $0xb8] sm:$0xff] }
 0x691   :  { %44699 = vst [vmem:[#allocation30_spill] sm:$0xff] %v41017_v11  ;;  %25062 = vrot.lane.b32.xlu0 %v41017_v11, %s37059_s13  ;;  %v18335_v16 = vpop.permute.xlu0 %18334 }
 0x692   :  { %v41023_v28 = vsel %vm1500_vm2, %v40826_v26, %v18335_v16 }
 0x693   :  { %44700 = vst [vmem:[#allocation31_spill] sm:$0xff] %v41023_v28  ;;  %25072 = vmatprep.subr.mxu1 %v41023_v28 }
 0x694   :  { %25073 = vmatpush1.msra.mxu1 %v40857_v46  ;;  %v41048_v46 = vpop.permute.xlu1 %18342 }
 0x695   :  { %19478 = vrot.lane.b32.xlu0 %v40500_v45, %s37061_s15  ;;  %35029 = vmatmul.mubr.msk.f32.vlgmr.msra.gmra.mrb[24].mxu1 %vm177_vm1, %v41028_v21  ;;  %v18337_v51 = vpop.permute.xlu0 %18336 }
 0x696   :  { %v41037_v44 = vsel %vm1500_vm2, %v18337_v51, %v18339_v47  ;;  %25142 = vmatprep.mubr.f32.mxu1 %v44530_v56  ;;  %v41041_v26 = vsel %vm1500_vm2, %v18335_v16, %v18337_v51 }
 0x697   :  { %44701 = vst [vmem:[#allocation62_spill] sm:$0xff] %v41037_v44  ;;  %44702 = vst [vmem:[#allocation32_spill] sm:$0xff] %v41041_v26  ;;  %25149 = vmatprep.subr.mxu1 %v41037_v44 }
 0x698   :  { %25150 = vmatpush1.msra.mxu1 %v41041_v26  ;;  %v18351_v51 = vpop.permute.xlu1 %18350 }
 0x699   :  { %19480 = vrot.lane.b32.xlu0 %v40431_v6, %s37061_s15  ;;  %35030 = vmatmul.mubr.msk.f32.gmra.mrb[26].mxu1 %vm177_vm1, %v41046_v55  ;;  %v18341_v37 = vpop.permute.xlu0 %18340 }
 0x69a   :  { %v41058_v16 = vsel %vm1500_vm2, %v18341_v37, %v41048_v46  ;;  %25213 = vmatprep.mubr.f32.mxu1 %v44530_v56  ;;  %v41067_v17 = vsel %vm1500_vm2, %v18339_v47, %v18341_v37 }
 0x69b   :  { %44703 = vst [vmem:[#allocation33_spill] sm:$0xff] %v41058_v16  ;;  %25226 = vmatprep.subr.mxu1 %v41058_v16  ;;  %44704 = vst [vmem:[#allocation67_spill] sm:$0xff] %v41067_v17 }
 0x69c   :  { %v18353_v37 = vpop.permute.xlu1 %18352 }
 0x69d   :  { %19484 = vrot.lane.b32.xlu0 %v40434_v24, %s37061_s15  ;;  %35031 = vmatmul.mubr.msk.f32.vlgmr.msra.gmra.mrb[28].mxu1 %vm177_vm1, %v41028_v21  ;;  %v18349_v1 = vpop.permute.xlu0 %18348 }
 0x69e   :  { %25227 = vmatpush1.msra.mxu1 %v41067_v17  ;;  %v41071_v36 = vsel %vm1500_vm2, %v18349_v1, %v18351_v51  ;;  %25219 = vmatprep.mubr.f32.mxu1 %v44530_v56 }
 0x69f   :  { %44705 = vst [vmem:[#allocation64_spill] sm:$0xff] %v41071_v36  ;;  %25378 = vmatprep.subr.mxu1 %v41071_v36 }
 0x6a1   :  { %19492 = vrot.lane.b32.xlu0 %v40453_v29, %s37061_s15  ;;  %35032 = vmatmul.mubr.msk.f32.gmra.mrb[30].mxu1 %vm177_vm1, %v41046_v55  ;;  %v41079_v49 = vpop.permute.xlu0 %18346 }
 0x6a2   :  { %25290 = vmatprep.mubr.f32.mxu1 %v44530_v56  ;;  %v41088_v47 = vsel %vm1500_vm2, %v41079_v49, %v18349_v1  ;;  %v41106_v1 = vsel %vm1500_vm2, %v18351_v51, %v18353_v37  ;;  %v18357_v51 = vpop.permute.xlu1 %18356 }
 0x6a3   :  { %44706 = vst [vmem:[#allocation34_spill] sm:$0xff] %v41088_v47  ;;  %44708 = vst [vmem:[#allocation70_spill] sm:$0xff] %v41106_v1 }
 0x6a5   :  { %19490 = vrot.lane.b32.xlu0 %v40443_v7, %s37061_s15  ;;  %35033 = vmatmul.mubr.msk.f32.vlgmr.msra.gmra.mrb[8].mxu1 %vm177_vm1, %v41028_v21  ;;  %v18355_v5 = vpop.permute.xlu0 %18354 }
 0x6a6   :  { %25379 = vmatpush1.msra.mxu1 %v41088_v47  ;;  %v41092_v35 = vsel %vm1500_vm2, %v18353_v37, %v18355_v5  ;;  %25296 = vmatprep.mubr.f32.mxu1 %v44530_v56  ;;  %v19477_v37 = vpop.permute.xlu1 %19476  ;;  %v41179_v59 = vsel %vm1500_vm2, %v18355_v5, %v18357_v51 }
 0x6a7   :  { %44707 = vst [vmem:[#allocation36_spill] sm:$0xff] %v41092_v35  ;;  %25455 = vmatprep.subr.mxu1 %v41092_v35  ;;  %44711 = vst [vmem:[#allocation38_spill] sm:$0xff] %v41179_v59 }
 0x6a9   :  { %19498 = vrot.lane.b32.xlu0 %v40475_v19, %s37061_s15  ;;  %35034 = vmatmul.mubr.msk.f32.gmra.mrb[10].mxu1 %vm177_vm1, %v41046_v55 }
 0x6aa   :  { %25442 = vmatprep.mubr.f32.mxu1 %v44530_v56  ;;  %v41147_v39 = vpop.permute.xlu1 %19474 }
 0x6ab   :  { %v41195_v5 = vsel %vm2970_vm4, %v41147_v39, %v19477_v37 }
 0x6ad   :  { %25635 = vrot.lane.b32.xlu0 %v41017_v11, %s37061_s15  ;;  %35037 = vmatmul.mubr.msk.f32.vlgmr.msra.gmra.mrb[12].mxu1 %vm177_vm1, %v41028_v21 }
 0x6ae   :  { %25456 = vmatpush1.msra.mxu1 %v41106_v1  ;;  %25448 = vmatprep.mubr.f32.mxu1 %v44530_v56  ;;  %v19483_v22 = vpop.permute.xlu1 %19482 }
 0x6b1   :  { %20105 = vrot.lane.b32.xlu0 %v40500_v45, %s37080_s17  ;;  %35038 = vmatmul.mubr.msk.f32.gmra.mrb[14].mxu1 %vm177_vm1, %v41046_v55 }
 0x6b2   :  { %25519 = vmatprep.mubr.f32.mxu1 %v44530_v56  ;;  %v41155_v12 = vpop.permute.xlu1 %19486 }
 0x6b5   :  { %20107 = vrot.lane.b32.xlu0 %v40431_v6, %s37080_s17  ;;  %35039 = vmatmul.mubr.msk.f32.vlgmr.msra.gmra.mrb[16].mxu1 %vm177_vm1, %v41028_v21 }
 0x6b6   :  { %25525 = vmatprep.mubr.f32.mxu1 %v44530_v56  ;;  %v41161_v34 = vpop.permute.xlu1 %19494 }
 0x6b9   :  { %20111 = vrot.lane.b32.xlu0 %v40434_v24, %s37080_s17  ;;  %35040 = vmatmul.mubr.msk.f32.gmra.mrb[18].mxu1 %vm177_vm1, %v41046_v55 }
 0x6ba   :  { %25596 = vmatprep.mubr.f32.mxu1 %v44530_v56  ;;  %v41165_v60 = vpop.permute.xlu1 %19496 }
 0x6bb   :  { %v41294_v8 = vsel %vm2970_vm4, %v41161_v34, %v41165_v60 }
 0x6bc   :  { %44718 = vst [vmem:[#allocation43_spill] sm:$0xff] %v41294_v8 }
 0x6bd   :  { %20119 = vrot.lane.b32.xlu0 %v40453_v29, %s37080_s17 }
 0x6be   :  { %v41182_v14 = vpop.permute.xlu1 %19500 }
 0x6c1   :  { %20117 = vrot.lane.b32.xlu0 %v40443_v7, %s37080_s17 }
 0x6c5   :  { %20125 = vrot.lane.b32.xlu0 %v40475_v19, %s37080_s17 }
 0x6c9   :  { %26208 = vrot.lane.b32.xlu0 %v41017_v11, %s37080_s17 }
 0x6cd   :  { %20733 = vrot.lane.b32.xlu0 %v40500_v45, %s37081_s24 }
 0x6d1   :  { %20735 = vrot.lane.b32.xlu0 %v40431_v6, %s37081_s24 }
 0x6d5   :  { %20739 = vrot.lane.b32.xlu0 %v40434_v24, %s37081_s24 }
 0x6d9   :  { %20747 = vrot.lane.b32.xlu0 %v40453_v29, %s37081_s24 }
 0x6dd   :  { %20745 = vrot.lane.b32.xlu0 %v40443_v7, %s37081_s24 }
 0x6e1   :  { %20753 = vrot.lane.b32.xlu0 %v40475_v19, %s37081_s24 }
 0x6e5   :  { %26781 = vrot.lane.b32.xlu0 %v41017_v11, %s37081_s24 }
 0x6e9   :  { %21361 = vrot.lane.b32.xlu0 %v40500_v45, %s37067_s12 }
 0x6ed   :  { %18328 = vrot.lane.b32.xlu0 %v40490_v33, %s37059_s13 }
 0x6f1   :  { %21365 = vrot.lane.b32.xlu0 %v40421_v63, %s37067_s12 }
 0x6f5   :  { %21369 = vrot.lane.b32.xlu0 %v40570_v41, %s37067_s12 }
 0x6f9   :  { %21377 = vrot.lane.b32.xlu0 %v40463_v27, %s37067_s12 }
 0x6fd   :  { %18344 = vrot.lane.b32.xlu0 %v40450_v38, %s37059_s13 }
 0x701   :  { %21381 = vrot.lane.b32.xlu0 %v40475_v19, %s37067_s12 }
 0x703   :  { %v41169_v32 = vpop.permute.xlu0 %25062 }
 0x704   :  { %44709 = vst [vmem:[#allocation66_spill] sm:$0xff] %v41169_v32  ;;  %v41173_v48 = vsel %vm1500_vm2, %v18357_v51, %v41169_v32  ;;  %v41209_v32 = vpop.permute.xlu1 %20103 }
 0x705   :  { %44710 = vst [vmem:[#allocation35_spill] sm:$0xff] %v41173_v48  ;;  %27354 = vrot.lane.b32.xlu0 %v41017_v11, %s37067_s12  ;;  %25532 = vmatprep.subr.mxu1 %v41173_v48  ;;  %v41207_v48 = vld [vmem:[%s44288_s3 + $0xc0] sm:$0xff] }
 0x706   :  { %25533 = vmatpush1.msra.mxu1 %v41179_v59 }
 0x707   :  { %35041 = vmatmul.mubr.msk.f32.vlgmr.msra.gmra.mrb[20].mxu1 %vm177_vm1, %v41028_v21  ;;  %v19479_v61 = vpop.permute.xlu0 %19478 }
 0x708   :  { %v41187_v15 = vsel %vm2970_vm4, %v19477_v37, %v19479_v61  ;;  %25602 = vmatprep.mubr.f32.mxu1 %v44530_v56 }
 0x709   :  { %21988 = vrot.lane.b32.xlu0 %v40500_v45, %s37069_s28  ;;  %25645 = vmatprep.subr.mxu1 %v41187_v15 }
 0x70a   :  { %25646 = vmatpush1.msra.mxu1 %v41195_v5 }
 0x70b   :  { %35042 = vmatmul.mubr.msk.f32.gmra.mrb[22].mxu1 %vm177_vm1, %v41046_v55  ;;  %v19481_v21 = vpop.permute.xlu0 %19480 }
 0x70c   :  { %v41201_v51 = vsel %vm2970_vm4, %v19481_v21, %v19483_v22  ;;  %25709 = vmatprep.mubr.f32.mxu1 %v44530_v56  ;;  %v41217_v55 = vsel %vm2970_vm4, %v19479_v61, %v19481_v21  ;;  %v41233_v61 = vpop.permute.xlu1 %20101 }
 0x70d   :  { %21990 = vrot.lane.b32.xlu0 %v40431_v6, %s37069_s28  ;;  %25722 = vmatprep.subr.mxu1 %v41201_v51  ;;  %44712 = vst [vmem:[#allocation72_spill] sm:$0xff] %v41233_v61 }
 0x70f   :  { %35043 = vmatmul.mubr.msk.f32.vlgmr.msra.gmra.mrb[24].mxu1 %vm177_vm1, %v41207_v48  ;;  %v19485_v37 = vpop.permute.xlu0 %19484 }
 0x710   :  { %25723 = vmatpush1.msra.mxu1 %v41217_v55  ;;  %v41222_v30 = vsel %vm2970_vm4, %v19485_v37, %v41155_v12  ;;  %25715 = vmatprep.mubr.f32.mxu1 %v44530_v56  ;;  %v41243_v4 = vsel %vm2970_vm4, %v19483_v22, %v19485_v37  ;;  %v41253_v9 = vpop.permute.xlu1 %20109 }
 0x711   :  { %21994 = vrot.lane.b32.xlu0 %v40434_v24, %s37069_s28  ;;  %25799 = vmatprep.subr.mxu1 %v41222_v30 }
 0x713   :  { %35044 = vmatmul.mubr.msk.f32.gmra.mrb[26].mxu1 %vm177_vm1, %v41228_v23  ;;  %v19493_v21 = vpop.permute.xlu0 %19492 }
 0x714   :  { %25786 = vmatprep.mubr.f32.mxu1 %v44530_v56  ;;  %v41250_v42 = vsel %vm2970_vm4, %v19493_v21, %v41161_v34  ;;  %v41263_v37 = vpop.permute.xlu1 %20113 }
 0x715   :  { %22002 = vrot.lane.b32.xlu0 %v40453_v29, %s37069_s28  ;;  %44713 = vst [vmem:[#allocation69_spill] sm:$0xff] %v41250_v42  ;;  %44714 = vst [vmem:[#allocation37_spill] sm:$0xff] %v41263_v37 }
 0x717   :  { %35045 = vmatmul.mubr.msk.f32.vlgmr.msra.gmra.mrb[28].mxu1 %vm177_vm1, %v41207_v48  ;;  %v41245_v53 = vpop.permute.xlu0 %19490 }
 0x718   :  { %25800 = vmatpush1.msra.mxu1 %v41243_v4  ;;  %25792 = vmatprep.mubr.f32.mxu1 %v44530_v56  ;;  %v41269_v18 = vsel %vm2970_vm4, %v41245_v53, %v19493_v21  ;;  %v41285_v58 = vpop.permute.xlu1 %20121 }
 0x719   :  { %25951 = vmatprep.subr.mxu1 %v41250_v42  ;;  %22000 = vrot.lane.b32.xlu0 %v40443_v7, %s37069_s28  ;;  %44715 = vst [vmem:[#allocation40_spill] sm:$0xff] %v41269_v18 }
 0x71b   :  { %35046 = vmatmul.mubr.msk.f32.gmra.mrb[30].mxu1 %vm177_vm1, %v41228_v23  ;;  %v19499_v22 = vpop.permute.xlu0 %19498 }
 0x71c   :  { %25863 = vmatprep.mubr.f32.mxu1 %v44530_v56  ;;  %v41276_v25 = vsel %vm2970_vm4, %v41165_v60, %v19499_v22  ;;  %v41306_v10 = vpop.permute.xlu1 %20123  ;;  %v41317_v60 = vsel %vm2970_vm4, %v19499_v22, %v41182_v14 }
 0x71d   :  { %22008 = vrot.lane.b32.xlu0 %v40475_v19, %s37069_s28  ;;  %44717 = vst [vmem:[#allocation39_spill] sm:$0xff] %v41276_v25  ;;  %44720 = vst [vmem:[#allocation42_spill] sm:$0xff] %v41317_v60 }
 0x71f   :  { %35047 = vmatmul.mubr.msk.f32.vlgmr.msra.gmra.mrb[8].mxu1 %vm177_vm1, %v41207_v48  ;;  %v41271_v57 = vpop.permute.xlu0 %25635 }
 0x720   :  { %44716 = vst [vmem:[#allocation71_spill] sm:$0xff] %v41271_v57  ;;  %25952 = vmatpush1.msra.mxu1 %v41269_v18  ;;  %25869 = vmatprep.mubr.f32.mxu1 %v44530_v56  ;;  %v41300_v50 = vsel %vm2970_vm4, %v41182_v14, %v41271_v57  ;;  %v41325_v62 = vpop.permute.xlu1 %20127 }
 0x721   :  { %26028 = vmatprep.subr.mxu1 %v41276_v25  ;;  %27927 = vrot.lane.b32.xlu0 %v41017_v11, %s37069_s28  ;;  %44719 = vst [vmem:[#allocation41_spill] sm:$0xff] %v41300_v50 }
 0x723   :  { %35048 = vmatmul.mubr.msk.f32.gmra.mrb[10].mxu1 %vm177_vm1, %v41228_v23  ;;  %v20106_v21 = vpop.permute.xlu0 %20105 }
 0x724   :  { %26015 = vmatprep.mubr.f32.mxu1 %v44530_v56  ;;  %v41322_v57 = vsel %vm20129_vm11, %v41209_v32, %v20106_v21  ;;  %v41337_v22 = vpop.permute.xlu1 %20731 }
 0x725   :  { %22615 = vrot.lane.b32.xlu0 %v40500_v45, %s37071_s27  ;;  %44721 = vst [vmem:[#allocation73_spill] sm:$0xff] %v41322_v57 }
 0x727   :  { %35051 = vmatmul.mubr.msk.f32.vlgmr.msra.gmra.mrb[12].mxu1 %vm177_vm1, %v41207_v48  ;;  %v20108_v40 = vpop.permute.xlu0 %20107 }
 0x728   :  { %26029 = vmatpush1.msra.mxu1 %v41294_v8  ;;  %26021 = vmatprep.mubr.f32.mxu1 %v44530_v56  ;;  %v41351_v2 = vsel %vm20129_vm11, %v20108_v40, %v41253_v9 }
 0x729   :  { %26105 = vmatprep.subr.mxu1 %v41300_v50  ;;  %22623 = vrot.lane.b32.xlu0 %v40570_v41, %s37071_s27  ;;  %44724 = vst [vmem:[#allocation76_spill] sm:$0xff] %v41351_v2 }
 0x72b   :  { %35052 = vmatmul.mubr.msk.f32.gmra.mrb[14].mxu1 %vm177_vm1, %v41228_v23  ;;  %v20112_v34 = vpop.permute.xlu0 %20111 }
 0x72c   :  { %26092 = vmatprep.mubr.f32.mxu1 %v44530_v56  ;;  %v41384_v42 = vsel %vm20129_vm11, %v20112_v34, %v41263_v37 }
 0x72d   :  { %28500 = vrot.lane.b32.xlu0 %v41017_v11, %s37071_s27  ;;  %44728 = vst [vmem:[#allocation79_spill] sm:$0xff] %v41384_v42 }
 0x72f   :  { %35053 = vmatmul.mubr.msk.f32.vlgmr.msra.gmra.mrb[16].mxu1 %vm177_vm1, %v41207_v48  ;;  %v20120_v50 = vpop.permute.xlu0 %20119 }
 0x730   :  { %26106 = vmatpush1.msra.mxu1 %v41317_v60  ;;  %26098 = vmatprep.mubr.f32.mxu1 %v44530_v56 }
 0x731   :  { %26218 = vmatprep.subr.mxu1 %v41322_v57  ;;  %23250 = vrot.lane.b32.xlu0 %v40570_v41, %s37078_s1  ;;  %v41344_v57 = vsel %vm20129_vm11, %v41233_v61, %v41209_v32  ;;  %v41365_v32 = vld [vmem:[%s44288_s3 + $0xd0] sm:$0xff]  ;;  %v41367_v61 = vpop.permute.xlu1 %20729 }
 0x732   :  { %44723 = vst [vmem:[#allocation75_spill] sm:$0xff] %v41344_v57 }
 0x733   :  { %35054 = vmatmul.mubr.msk.f32.gmra.mrb[18].mxu1 %vm177_vm1, %v41228_v23  ;;  %v41332_v14 = vpop.permute.xlu0 %20117 }
 0x734   :  { %44722 = vst [vmem:[#allocation74_spill] sm:$0xff] %v41332_v14  ;;  %26169 = vmatprep.mubr.f32.mxu1 %v44530_v56 }
 0x735   :  { %29073 = vrot.lane.b32.xlu0 %v41017_v11, %s37078_s1 }
 0x737   :  { %35055 = vmatmul.mubr.msk.f32.vlgmr.msra.gmra.mrb[20].mxu1 %vm177_vm1, %v41207_v48  ;;  %v41346_v25 = vpop.permute.xlu0 %20125 }
 0x738   :  { %26219 = vmatpush1.msra.mxu1 %v41344_v57  ;;  %26175 = vmatprep.mubr.f32.mxu1 %v44530_v56  ;;  %v41441_v37 = vsel %vm20129_vm11, %v41306_v10, %v41346_v25 }
 0x739   :  { %26295 = vmatprep.subr.mxu1 %v41351_v2  ;;  %23878 = vrot.lane.b32.xlu0 %v40570_v41, %s37079_s26  ;;  %v44726_v2 = vmax.f32 %v40532_v13, 0.0  ;;  %v41390_v13 = vld [vmem:[%s44288_s3 + $0xd8] sm:$0xff]  ;;  %44732 = vst [vmem:[#allocation83_spill] sm:$0xff] %v41441_v37 }
 0x73b   :  { %35056 = vmatmul.mubr.msk.f32.gmra.mrb[22].mxu1 %vm177_vm1, %v41228_v23  ;;  %v41359_v48 = vpop.permute.xlu0 %26208  ;;  %v18157_v57 = vmax.f32 %v44726_v2, %v40758_v52  ;;  %v41377_v23 = vsel %vm20129_vm11, %v20106_v21, %v20108_v40  ;;  %v41394_v2 = vpop.permute.xlu1 %20737  ;;  %v41407_v52 = vsel %vm20129_vm11, %v41253_v9, %v20112_v34  ;;  %v41414_v21 = vsel %vm20129_vm11, %v20120_v50, %v41285_v58 }
 0x73c   :  { %44725 = vst [vmem:[#allocation77_spill] sm:$0xff] %v41359_v48  ;;  %26282 = vmatprep.mubr.f32.mxu1 %v44530_v56  ;;  %44727 = vst [vmem:[#allocation78_spill] sm:$0xff] %v41377_v23 }
 0x73d   :  { %29646 = vrot.lane.b32.xlu0 %v41017_v11, %s37079_s26  ;;  %44729 = vst [vmem:[#allocation80_spill] sm:$0xff] %v41407_v52  ;;  %44730 = vst [vmem:[#allocation81_spill] sm:$0xff] %v41414_v21 }
 0x73f   :  { %35057 = vmatmul.mubr.msk.f32.vlgmr.msra.gmra.mrb[24].mxu1 %vm177_vm1, %v41365_v32  ;;  %v41379_v60 = vpop.permute.xlu0 %20733  ;;  %v41417_v11 = vpop.permute.xlu1 %20741 }
 0x740   :  { %26296 = vmatpush1.msra.mxu1 %v41377_v23  ;;  %26288 = vmatprep.mubr.f32.mxu1 %v44530_v56  ;;  %v41494_v8 = vsel %vm20757_vm13, %v41337_v22, %v41379_v60 }
 0x741   :  { %26372 = vmatprep.subr.mxu1 %v41384_v42  ;;  %18210 = vrot.lane.b32.xlu0 %v18157_v57, %s37062_s18  ;;  %v41433_v42 = vsel %vm20129_vm11, %v41332_v14, %v20120_v50  ;;  %v41457_v14 = vsel %vm20129_vm11, %v41285_v58, %v41306_v10  ;;  %v41481_v58 = vsel %vm20129_vm11, %v41346_v25, %v41325_v62 }
 0x742   :  { %44731 = vst [vmem:[#allocation82_spill] sm:$0xff] %v41433_v42  ;;  %44733 = vst [vmem:[#allocation84_spill] sm:$0xff] %v41457_v14 }
 0x743   :  { %35058 = vmatmul.mubr.msk.f32.gmra.mrb[26].mxu1 %vm177_vm1, %v41390_v13  ;;  %v41398_v40 = vpop.permute.xlu0 %20735  ;;  %v41427_v34 = vpop.permute.xlu1 %20749  ;;  %44736 = vst [vmem:[#allocation87_spill] sm:$0xff] %v41481_v58  ;;  %44737 = vst [vmem:[#allocation88_spill] sm:$0xff] %v41494_v8 }
 0x744   :  { %26359 = vmatprep.mubr.f32.mxu1 %v44530_v56 }
 0x745   :  { %21371 = vrot.lane.b32.xlu0 %v40450_v38, %s37067_s12 }
 0x747   :  { %35059 = vmatmul.mubr.msk.f32.vlgmr.msra.gmra.mrb[28].mxu1 %vm177_vm1, %v41365_v32  ;;  %v41409_v57 = vpop.permute.xlu0 %20739  ;;  %v41450_v50 = vpop.permute.xlu1 %20751 }
 0x748   :  { %26373 = vmatpush1.msra.mxu1 %v41407_v52  ;;  %26365 = vmatprep.mubr.f32.mxu1 %v44530_v56 }
 0x749   :  { %26524 = vmatprep.subr.mxu1 %v41414_v21  ;;  %21982 = vrot.lane.b32.xlu0 %v40490_v33, %s37069_s28 }
 0x74b   :  { %35060 = vmatmul.mubr.msk.f32.gmra.mrb[30].mxu1 %vm177_vm1, %v41390_v13  ;;  %v41424_v9 = vpop.permute.xlu0 %20747  ;;  %v41469_v23 = vpop.permute.xlu1 %20755 }
 0x74c   :  { %26436 = vmatprep.mubr.f32.mxu1 %v44530_v56 }
 0x74f   :  { %35061 = vmatmul.mubr.msk.f32.vlgmr.msra.gmra.mrb[8].mxu1 %vm177_vm1, %v41365_v32  ;;  %v41435_v21 = vpop.permute.xlu0 %20745 }
 0x750   :  { %26525 = vmatpush1.msra.mxu1 %v41433_v42  ;;  %26442 = vmatprep.mubr.f32.mxu1 %v44530_v56 }
 0x751   :  { %26601 = vmatprep.subr.mxu1 %v41441_v37  ;;  %v41465_v37 = vsel %vm20129_vm11, %v41325_v62, %v41359_v48  ;;  %v41497_v62 = vpop.permute.xlu1 %21359 }
 0x752   :  { %44735 = vst [vmem:[#allocation86_spill] sm:$0xff] %v41465_v37 }
 0x753   :  { %35062 = vmatmul.mubr.msk.f32.gmra.mrb[10].mxu1 %vm177_vm1, %v41390_v13  ;;  %v41447_v52 = vpop.permute.xlu0 %20753 }
 0x754   :  { %26588 = vmatprep.mubr.f32.mxu1 %v44530_v56 }
 0x757   :  { %35065 = vmatmul.mubr.msk.f32.vlgmr.msra.gmra.mrb[12].mxu1 %vm177_vm1, %v41365_v32  ;;  %v41459_v42 = vpop.permute.xlu0 %26781 }
 0x758   :  { %44734 = vst [vmem:[#allocation85_spill] sm:$0xff] %v41459_v42  ;;  %26602 = vmatpush1.msra.mxu1 %v41457_v14  ;;  %26594 = vmatprep.mubr.f32.mxu1 %v44530_v56 }
 0x759   :  { %26678 = vmatprep.subr.mxu1 %v41465_v37  ;;  %v41486_v37 = vld [vmem:[%s44288_s3 + $0x10] sm:$0xff] }
 0x75b   :  { %35066 = vmatmul.mubr.msk.f32.gmra.mrb[14].mxu1 %vm177_vm1, %v41390_v13  ;;  %v41473_v10 = vpop.permute.xlu0 %21361 }
 0x75c   :  { %26665 = vmatprep.mubr.f32.mxu1 %v44530_v56 }
 0x75f   :  { %35067 = vmatmul.mubr.msk.f32.vlgmr.msra.gmra.mrb[16].mxu1 %vm177_vm1, %v41365_v32  ;;  %v18329_v48 = vpop.permute.xlu0 %18328 }
 0x760   :  { %26679 = vmatpush1.msra.mxu1 %v41481_v58  ;;  %v18358_v14 = vsel %vm1500_vm2, %v18329_v48, %v40840_v3  ;;  %26671 = vmatprep.mubr.f32.mxu1 %v44530_v56  ;;  %v41511_v3 = vld [vmem:[%s44288_s3 + $0x18] sm:$0xff]  ;;  %v41525_v48 = vsel %vm20757_vm13, %v41367_v61, %v41337_v22 }
 0x761   :  { %26791 = vmatprep.subr.mxu1 %v41494_v8  ;;  %18393 = vmatpush1.msra.mxu0 %v18358_v14  ;;  %v41518_v14 = vpop.permute.xlu1 %21357 }
 0x762   :  { %34875 = vmatmul.mubr.msk.f32.vlgmr.msra.gmra.mrb[12].mxu0 %vm177_vm1, %v41486_v37  ;;  %18469 = vmatprep.subr.mxu0 %v41041_v26  ;;  %44738 = vst [vmem:[#allocation89_spill] sm:$0xff] %v41518_v14 }
 0x763   :  { %18470 = vmatpush1.msra.mxu0 %v41023_v28  ;;  %35068 = vmatmul.mubr.msk.f32.gmra.mrb[18].mxu1 %vm177_vm1, %v41390_v13  ;;  %v41506_v25 = vpop.permute.xlu0 %21365 }
 0x764   :  { %18546 = vmatprep.subr.mxu0 %v41067_v17  ;;  %18462 = vmatprep.mubr.f32.mxu0 %v44530_v56  ;;  %v41534_v17 = vsel %vm20757_vm13, %v41398_v40, %v41394_v2 }
 0x765   :  { %26742 = vmatprep.mubr.f32.mxu1 %v44530_v56  ;;  %44740 = vst [vmem:[#allocation91_spill] sm:$0xff] %v41534_v17  ;;  %v41552_v26 = vpop.permute.xlu1 %21363 }
 0x766   :  { %34876 = vmatmul.mubr.msk.f32.gmra.mrb[14].mxu0 %vm177_vm1, %v41511_v3 }
 0x767   :  { %35069 = vmatmul.mubr.msk.f32.vlgmr.msra.gmra.mrb[20].mxu1 %vm177_vm1, %v41365_v32  ;;  %v41527_v28 = vpop.permute.xlu0 %21369  ;;  %18533 = vmatprep.mubr.f32.mxu0 %v44530_v56  ;;  %v41550_v32 = vld [vmem:[%s44288_s3 + $0xe0] sm:$0xff] }
 0x768   :  { %44739 = vst [vmem:[#allocation90_spill] sm:$0xff] %v41527_v28  ;;  %26792 = vmatpush1.msra.mxu1 %v41525_v48  ;;  %26748 = vmatprep.mubr.f32.mxu1 %v44530_v56 }
 0x769   :  { %26868 = vmatprep.subr.mxu1 %v41534_v17  ;;  %v41568_v17 = vsel %vm20757_vm13, %v41409_v57, %v41417_v11 }
 0x76a   :  { %34877 = vmatmul.mubr.msk.f32.vlgmr.msra.gmra.mrb[16].mxu0 %vm177_vm1, %v41486_v37  ;;  %44742 = vst [vmem:[#allocation93_spill] sm:$0xff] %v41568_v17 }
 0x76b   :  { %18547 = vmatpush1.msra.mxu0 %v41037_v44  ;;  %35070 = vmatmul.mubr.msk.f32.gmra.mrb[22].mxu1 %vm177_vm1, %v41390_v13  ;;  %v41543_v22 = vpop.permute.xlu0 %21377  ;;  %v41561_v13 = vsel %vm20757_vm13, %v41379_v60, %v41398_v40  ;;  %v41578_v60 = vld [vmem:[%s44288_s3 + $0xe8] sm:$0xff]  ;;  %v41584_v40 = vpop.permute.xlu1 %21367 }
 0x76c   :  { %18539 = vmatprep.mubr.f32.mxu0 %v44530_v56  ;;  %26855 = vmatprep.mubr.f32.mxu1 %v44530_v56  ;;  %44741 = vst [vmem:[#allocation92_spill] sm:$0xff] %v41561_v13 }
 0x76e   :  { %34878 = vmatmul.mubr.msk.f32.gmra.mrb[18].mxu0 %vm177_vm1, %v41511_v3 }
 0x76f   :  { %35071 = vmatmul.mubr.msk.f32.vlgmr.msra.gmra.mrb[24].mxu1 %vm177_vm1, %v41550_v32  ;;  %v18345_v44 = vpop.permute.xlu0 %18344  ;;  %18610 = vmatprep.mubr.f32.mxu0 %v44530_v56 }
 0x770   :  { %26869 = vmatpush1.msra.mxu1 %v41561_v13  ;;  %v41572_v8 = vsel %vm1500_vm2, %v41048_v46, %v18345_v44  ;;  %26861 = vmatprep.mubr.f32.mxu1 %v44530_v56 }
 0x771   :  { %44743 = vst [vmem:[#allocation94_spill] sm:$0xff] %v41572_v8  ;;  %26945 = vmatprep.subr.mxu1 %v41568_v17  ;;  %18623 = vmatprep.subr.mxu0 %v41572_v8  ;;  %v41613_v17 = vpop.permute.xlu1 %21375 }
 0x772   :  { %34879 = vmatmul.mubr.msk.f32.vlgmr.msra.gmra.mrb[20].mxu0 %vm177_vm1, %v41486_v37 }
 0x773   :  { %18624 = vmatpush1.msra.mxu0 %v41058_v16  ;;  %35072 = vmatmul.mubr.msk.f32.gmra.mrb[26].mxu1 %vm177_vm1, %v41578_v60  ;;  %v41589_v46 = vpop.permute.xlu0 %21381  ;;  %v41601_v16 = vsel %vm20757_vm13, %v41394_v2, %v41409_v57  ;;  %v41620_v2 = vsel %vm1500_vm2, %v18345_v44, %v41079_v49  ;;  %v41639_v49 = vsel %vm20757_vm13, %v41435_v21, %v41424_v9 }
 0x774   :  { %18698 = vmatprep.subr.mxu0 %v41088_v47  ;;  %18616 = vmatprep.mubr.f32.mxu0 %v44530_v56  ;;  %44744 = vst [vmem:[#allocation95_spill] sm:$0xff] %v41601_v16  ;;  %v41610_v47 = vsel %vm20757_vm13, %v41424_v9, %v41427_v34  ;;  %44746 = vst [vmem:[#allocation97_spill] sm:$0xff] %v41620_v2 }
 0x775   :  { %26932 = vmatprep.mubr.f32.mxu1 %v44530_v56  ;;  %44745 = vst [vmem:[#allocation96_spill] sm:$0xff] %v41610_v47  ;;  %44748 = vst [vmem:[#allocation99_spill] sm:$0xff] %v41639_v49 }
 0x776   :  { %34880 = vmatmul.mubr.msk.f32.gmra.mrb[22].mxu0 %vm177_vm1, %v41511_v3 }
 0x777   :  { %35073 = vmatmul.mubr.msk.f32.vlgmr.msra.gmra.mrb[28].mxu1 %vm177_vm1, %v41550_v32  ;;  %v41603_v8 = vpop.permute.xlu0 %27354  ;;  %18687 = vmatprep.mubr.f32.mxu0 %v44530_v56 }
 0x778   :  { %26946 = vmatpush1.msra.mxu1 %v41601_v16  ;;  %26938 = vmatprep.mubr.f32.mxu1 %v44530_v56 }
 0x779   :  { %27097 = vmatprep.subr.mxu1 %v41610_v47  ;;  %v41632_v47 = vpop.permute.xlu1 %21373 }
 0x77a   :  { %34881 = vmatmul.mubr.msk.f32.vlgmr.msra.gmra.mrb[24].mxu0 %vm177_vm1, %v41486_v37  ;;  %44747 = vst [vmem:[#allocation98_spill] sm:$0xff] %v41632_v47 }
 0x77b   :  { %18699 = vmatpush1.msra.mxu0 %v41620_v2  ;;  %35074 = vmatmul.mubr.msk.f32.gmra.mrb[30].mxu1 %vm177_vm1, %v41578_v60  ;;  %v41625_v57 = vpop.permute.xlu0 %21988  ;;  %v41648_v2 = vsel %vm20757_vm13, %v41450_v50, %v41447_v52 }
 0x77c   :  { %18775 = vmatprep.subr.mxu0 %v41106_v1  ;;  %18692 = vmatprep.mubr.f32.mxu0 %v44530_v56  ;;  %44749 = vst [vmem:[#allocation100_spill] sm:$0xff] %v41648_v2 }
 0x77d   :  { %27009 = vmatprep.mubr.f32.mxu1 %v44530_v56  ;;  %v41661_v1 = vpop.permute.xlu1 %21379 }
 0x77e   :  { %34882 = vmatmul.mubr.msk.f32.gmra.mrb[26].mxu0 %vm177_vm1, %v41511_v3 }
 0x77f   :  { %35075 = vmatmul.mubr.msk.f32.vlgmr.msra.gmra.mrb[8].mxu1 %vm177_vm1, %v41550_v32  ;;  %v41641_v44 = vpop.permute.xlu0 %21990  ;;  %18762 = vmatprep.mubr.f32.mxu0 %v44530_v56 }
 0x780   :  { %27098 = vmatpush1.msra.mxu1 %v41639_v49  ;;  %27015 = vmatprep.mubr.f32.mxu1 %v44530_v56 }
 0x781   :  { %27174 = vmatprep.subr.mxu1 %v41648_v2 }
 0x782   :  { %34883 = vmatmul.mubr.msk.f32.vlgmr.msra.gmra.mrb[28].mxu0 %vm177_vm1, %v41486_v37 }
 0x783   :  { %18776 = vmatpush1.msra.mxu0 %v41071_v36  ;;  %35076 = vmatmul.mubr.msk.f32.gmra.mrb[10].mxu1 %vm177_vm1, %v41578_v60  ;;  %v41657_v9 = vpop.permute.xlu0 %21994  ;;  %v41671_v36 = vsel %vm20757_vm13, %v41427_v34, %v41450_v50  ;;  %v41686_v34 = vpop.permute.xlu1 %21383 }
 0x784   :  { %18852 = vmatprep.subr.mxu0 %v41179_v59  ;;  %18768 = vmatprep.mubr.f32.mxu0 %v44530_v56  ;;  %v41680_v59 = vsel %vm20757_vm13, %v41469_v23, %v41459_v42 }
 0x785   :  { %27161 = vmatprep.mubr.f32.mxu1 %v44530_v56  ;;  %44750 = vst [vmem:[#allocation101_spill] sm:$0xff] %v41680_v59 }
 0x786   :  { %34884 = vmatmul.mubr.msk.f32.gmra.mrb[30].mxu0 %vm177_vm1, %v41511_v3 }
 0x787   :  { %35079 = vmatmul.mubr.msk.f32.vlgmr.msra.gmra.mrb[12].mxu1 %vm177_vm1, %v41550_v32  ;;  %v41673_v2 = vpop.permute.xlu0 %22002  ;;  %18839 = vmatprep.mubr.f32.mxu0 %v44530_v56 }
 0x788   :  { %27175 = vmatpush1.msra.mxu1 %v41671_v36  ;;  %27167 = vmatprep.mubr.f32.mxu1 %v44530_v56 }
 0x789   :  { %27251 = vmatprep.subr.mxu1 %v41680_v59  ;;  %v41703_v59 = vsel %vm20757_vm13, %v41447_v52, %v41469_v23 }
 0x78a   :  { %34885 = vmatmul.mubr.msk.f32.vlgmr.msra.gmra.mrb[32].mxu0 %vm177_vm1, %v41486_v37  ;;  %44751 = vst [vmem:[#allocation102_spill] sm:$0xff] %v41703_v59 }
 0x78b   :  { %18853 = vmatpush1.msra.mxu0 %v41092_v35  ;;  %35080 = vmatmul.mubr.msk.f32.gmra.mrb[14].mxu1 %vm177_vm1, %v41578_v60  ;;  %v41691_v50 = vpop.permute.xlu0 %22000  ;;  %v41715_v35 = vpop.permute.xlu1 %21986 }
 0x78c   :  { %18935 = vmatprep.subr.mxu0 %v40484_v0  ;;  %18845 = vmatprep.mubr.f32.mxu0 %v44530_v56  ;;  %v41712_v0 = vsel %vm7380_vm10, %v41497_v62, %v41473_v10 }
 0x78d   :  { %27238 = vmatprep.mubr.f32.mxu1 %v44530_v56  ;;  %44752 = vst [vmem:[#allocation103_spill] sm:$0xff] %v41712_v0 }
 0x78e   :  { %34886 = vmatmul.mubr.msk.f32.gmra.mrb[34].mxu0 %vm177_vm1, %v41511_v3 }
 0x78f   :  { %35081 = vmatmul.mubr.msk.f32.vlgmr.msra.gmra.mrb[16].mxu1 %vm177_vm1, %v41550_v32  ;;  %v41705_v42 = vpop.permute.xlu0 %22008  ;;  %18916 = vmatprep.mubr.f32.mxu0 %v44530_v56  ;;  %v41730_v52 = vpop.permute.xlu1 %21984 }
 0x790   :  { %27252 = vmatpush1.msra.mxu1 %v41703_v59  ;;  %27244 = vmatprep.mubr.f32.mxu1 %v44530_v56 }
 0x791   :  { %27364 = vmatprep.subr.mxu1 %v41712_v0 }
 0x792   :  { %34887 = vmatmul.mubr.msk.f32.vlgmr.msra.gmra.mrb[36].mxu0 %vm177_vm1, %v41486_v37  ;;  %v41737_v37 = vsel %vm7380_vm10, %v41518_v14, %v41497_v62  ;;  %v41793_v14 = vsel %vm7380_vm10, %v41584_v40, %v41527_v28 }
 0x793   :  { %18936 = vmatpush1.msra.mxu0 %v40490_v33  ;;  %35082 = vmatmul.mubr.msk.f32.gmra.mrb[18].mxu1 %vm177_vm1, %v41578_v60  ;;  %v41723_v23 = vpop.permute.xlu0 %27927  ;;  %44753 = vst [vmem:[#allocation104_spill] sm:$0xff] %v41737_v37  ;;  %44755 = vst [vmem:[#allocation106_spill] sm:$0xff] %v41793_v14 }
 0x794   :  { %19012 = vmatprep.subr.mxu0 %v40500_v45  ;;  %18922 = vmatprep.mubr.f32.mxu0 %v44530_v56  ;;  %v41745_v45 = vld [vmem:[%s44288_s3] sm:$0xff] }
 0x795   :  { %27315 = vmatprep.mubr.f32.mxu1 %v44530_v56 }
 0x796   :  { %34888 = vmatmul.mubr.msk.f32.gmra.mrb[38].mxu0 %vm177_vm1, %v41511_v3  ;;  %v41751_v3 = vsel %vm7380_vm10, %v41552_v26, %v41506_v25 }
 0x797   :  { %35083 = vmatmul.mubr.msk.f32.vlgmr.msra.gmra.mrb[20].mxu1 %vm177_vm1, %v41550_v32  ;;  %v41739_v0 = vpop.permute.xlu0 %22615  ;;  %18999 = vmatprep.mubr.f32.mxu0 %v44530_v56  ;;  %44754 = vst [vmem:[#allocation105_spill] sm:$0xff] %v41751_v3  ;;  %v41765_v32 = vld [vmem:[%s44288_s3 + $0x8] sm:$0xff] }
 0x798   :  { %27365 = vmatpush1.msra.mxu1 %v41737_v37  ;;  %27321 = vmatprep.mubr.f32.mxu1 %v44530_v56  ;;  %v41799_v37 = vld [vmem:[%s44288_s3 + $0xf8] sm:$0xff] }
 0x799   :  { %27441 = vmatprep.subr.mxu1 %v41751_v3  ;;  %v41772_v3 = vld [vmem:[%s44288_s3 + $0xf0] sm:$0xff] }
 0x79a   :  { %34889 = vmatmul.mubr.msk.f32.vlgmr.msra.gmra.mrb[12].mxu0 %vm177_vm1, %v41745_v45 }
 0x79b   :  { %19013 = vmatpush1.msra.mxu0 %v40493_v43  ;;  %35084 = vmatmul.mubr.msk.f32.gmra.mrb[22].mxu1 %vm177_vm1, %v41578_v60  ;;  %v41760_v62 = vpop.permute.xlu0 %22623  ;;  %v41774_v43 = vpop.permute.xlu1 %21992  ;;  %v41784_v60 = vsel %vm7380_vm10, %v41473_v10, %v41552_v26 }
 0x79c   :  { %19089 = vmatprep.subr.mxu0 %v40421_v63  ;;  %19005 = vmatprep.mubr.f32.mxu0 %v44530_v56 }
 0x79d   :  { %27428 = vmatprep.mubr.f32.mxu1 %v44530_v56 }
 0x79e   :  { %34890 = vmatmul.mubr.msk.f32.gmra.mrb[14].mxu0 %vm177_vm1, %v41765_v32 }
 0x79f   :  { %35085 = vmatmul.mubr.msk.f32.vlgmr.msra.gmra.mrb[24].mxu1 %vm177_vm1, %v41772_v3  ;;  %v41786_v63 = vpop.permute.xlu0 %28500  ;;  %19076 = vmatprep.mubr.f32.mxu0 %v44530_v56  ;;  %v41804_v26 = vpop.permute.xlu1 %21996 }
 0x7a0   :  { %27442 = vmatpush1.msra.mxu1 %v41784_v60  ;;  %27434 = vmatprep.mubr.f32.mxu1 %v44530_v56 }
 0x7a1   :  { %27518 = vmatprep.subr.mxu1 %v41793_v14 }
 0x7a2   :  { %34891 = vmatmul.mubr.msk.f32.vlgmr.msra.gmra.mrb[16].mxu0 %vm177_vm1, %v41745_v45 }
 0x7a3   :  { %19090 = vmatpush1.msra.mxu0 %v40431_v6  ;;  %35086 = vmatmul.mubr.msk.f32.gmra.mrb[26].mxu1 %vm177_vm1, %v41799_v37  ;;  %v41809_v10 = vpop.permute.xlu0 %23250  ;;  %v41821_v6 = vsel %vm7380_vm10, %v41506_v25, %v41584_v40  ;;  %v41833_v28 = vpop.permute.xlu1 %22004 }
 0x7a4   :  { %19166 = vmatprep.subr.mxu0 %v40570_v41  ;;  %19082 = vmatprep.mubr.f32.mxu0 %v44530_v56  ;;  %v41830_v41 = vsel %vm7380_vm10, %v41613_v17, %v41543_v22 }
 0x7a5   :  { %27505 = vmatprep.mubr.f32.mxu1 %v44530_v56  ;;  %44756 = vst [vmem:[#allocation107_spill] sm:$0xff] %v41830_v41 }
 0x7a6   :  { %34892 = vmatmul.mubr.msk.f32.gmra.mrb[18].mxu0 %vm177_vm1, %v41765_v32 }
 0x7a7   :  { %35087 = vmatmul.mubr.msk.f32.vlgmr.msra.gmra.mrb[28].mxu1 %vm177_vm1, %v41772_v3  ;;  %v41823_v14 = vpop.permute.xlu0 %29073  ;;  %19153 = vmatprep.mubr.f32.mxu0 %v44530_v56  ;;  %v41848_v40 = vpop.permute.xlu1 %22006 }
 0x7a8   :  { %27519 = vmatpush1.msra.mxu1 %v41821_v6  ;;  %27511 = vmatprep.mubr.f32.mxu1 %v44530_v56 }
 0x7a9   :  { %27670 = vmatprep.subr.mxu1 %v41830_v41  ;;  %v41855_v41 = vsel %vm7380_vm10, %v41632_v47, %v41613_v17 }
 0x7aa   :  { %34893 = vmatmul.mubr.msk.f32.vlgmr.msra.gmra.mrb[20].mxu0 %vm177_vm1, %v41745_v45  ;;  %44757 = vst [vmem:[#allocation108_spill] sm:$0xff] %v41855_v41 }
 0x7ab   :  { %19167 = vmatpush1.msra.mxu0 %v40434_v24  ;;  %35088 = vmatmul.mubr.msk.f32.gmra.mrb[30].mxu1 %vm177_vm1, %v41799_v37  ;;  %v41841_v25 = vpop.permute.xlu0 %23878 }
 0x7ac   :  { %19241 = vmatprep.subr.mxu0 %v40443_v7  ;;  %19159 = vmatprep.mubr.f32.mxu0 %v44530_v56  ;;  %v41864_v7 = vsel %vm7380_vm10, %v41661_v1, %v41589_v46 }
 0x7ad   :  { %27582 = vmatprep.mubr.f32.mxu1 %v44530_v56  ;;  %44758 = vst [vmem:[#allocation109_spill] sm:$0xff] %v41864_v7 }
 0x7ae   :  { %34894 = vmatmul.mubr.msk.f32.gmra.mrb[22].mxu0 %vm177_vm1, %v41765_v32 }
 0x7af   :  { %35089 = vmatmul.mubr.msk.f32.vlgmr.msra.gmra.mrb[8].mxu1 %vm177_vm1, %v41772_v3  ;;  %v41857_v24 = vpop.permute.xlu0 %29646  ;;  %19230 = vmatprep.mubr.f32.mxu0 %v44530_v56 }
 0x7b0   :  { %27671 = vmatpush1.msra.mxu1 %v41855_v41  ;;  %27588 = vmatprep.mubr.f32.mxu1 %v44530_v56  ;;  %v41877_v41 = vpop.permute.xlu1 %22010 }
 0x7b1   :  { %27747 = vmatprep.subr.mxu1 %v41864_v7 }
 0x7b2   :  { %34895 = vmatmul.mubr.msk.f32.vlgmr.msra.gmra.mrb[40].mxu0 %vm177_vm1, %v41745_v45 }
 0x7b3   :  { %19242 = vmatpush1.msra.mxu0 %v40450_v38  ;;  %35090 = vmatmul.mubr.msk.f32.gmra.mrb[10].mxu1 %vm177_vm1, %v41799_v37  ;;  %v18211_v17 = vpop.permute.xlu0 %18210 }
 0x7b4   :  { %19318 = vmatprep.subr.mxu0 %v40463_v27  ;;  %v18228_v47 = vsel %vm3705_vm5, %v41011_v31, %v18211_v17  ;;  %19235 = vmatprep.mubr.f32.mxu0 %v44530_v56  ;;  %v41888_v27 = vsel %vm7380_vm10, %v41543_v22, %v41661_v1  ;;  %v41900_v31 = vpop.permute.xlu1 %22613  ;;  %v27929_v17 = vsel %vm8850_vm12, %v41877_v41, %v41723_v23 }
 0x7b5   :  { %v18262_v7 = vmax.f32 %v40771_v20, %v18228_v47  ;;  %27734 = vmatprep.mubr.f32.mxu1 %v44530_v56  ;;  %v27356_v20 = vsel %vm7380_vm10, %v41686_v34, %v41603_v8  ;;  %v41918_v8 = vsel %vm7380_vm10, %v41589_v46, %v41686_v34  ;;  %v41925_v47 = vsel %vm8850_vm12, %v41715_v35, %v41625_v57 }
 0x7b6   :  { %34896 = vmatmul.mubr.msk.f32.gmra.mrb[42].mxu0 %vm177_vm1, %v41765_v32  ;;  %v41996_v34 = vsel %vm8850_vm12, %v41657_v9, %v41804_v26  ;;  %v42115_v23 = vsel %vm10320_vm14, %v41900_v31, %v41739_v0 }
 0x7b7   :  { %35093 = vmatmul.mubr.msk.f32.vlgmr.msra.gmra.mrb[12].mxu1 %vm177_vm1, %v41772_v3  ;;  %31362 = vrot.lane.b32.xlu0 %v18262_v7, %s37061_s15 }
 0x7b8   :  { %27748 = vmatpush1.msra.mxu1 %v41888_v27  ;;  %30789 = vrot.lane.b32.xlu1 %v18262_v7, %s37059_s13  ;;  %v41928_v1 = vpop.permute.xlu1 %22611 }
 0x7b9   :  { %27824 = vmatprep.subr.mxu1 %v27356_v20  ;;  %19305 = vmatprep.mubr.f32.mxu0 %v44530_v56 }
 0x7ba   :  { %34897 = vmatmul.mubr.msk.f32.vlgmr.msra.gmra.mrb[28].mxu0 %vm177_vm1, %v41745_v45  ;;  %27740 = vmatprep.mubr.f32.mxu1 %v44530_v56 }
 0x7bb   :  { %19319 = vmatpush1.msra.mxu0 %v40453_v29  ;;  %35094 = vmatmul.mubr.msk.f32.gmra.mrb[14].mxu1 %vm177_vm1, %v41799_v37 }
 0x7bc   :  { %19395 = vmatprep.subr.mxu0 %v40475_v19  ;;  %31935 = vrot.lane.b32.xlu0 %v18262_v7, %s37080_s17  ;;  %v19473_v22 = vpop.permute.xlu1 %19472 }
 0x7bd   :  { %21998 = vrot.lane.b32.xlu1 %v40450_v38, %s37069_s28  ;;  %19311 = vmatprep.mubr.f32.mxu0 %v44530_v56  ;;  %v19502_v46 = vsel %vm2970_vm4, %v19473_v22, %v41147_v39  ;;  %v41990_v39 = vld [vmem:[%s44288_s3 + $0x20] sm:$0xff]  ;;  %v44764_v22 = vld [vmem:[#allocation39_spill] sm:$0xff] }
 0x7be   :  { %34898 = vmatmul.mubr.msk.f32.gmra.mrb[30].mxu0 %vm177_vm1, %v41765_v32  ;;  %27811 = vmatprep.mubr.f32.mxu1 %v44530_v56 }
 0x7bf   :  { %35095 = vmatmul.mubr.msk.f32.vlgmr.msra.gmra.mrb[16].mxu1 %vm177_vm1, %v41772_v3  ;;  %19382 = vmatprep.mubr.f32.mxu0 %v44530_v56 }
 0x7c0   :  { %27825 = vmatpush1.msra.mxu1 %v41918_v8  ;;  %27817 = vmatprep.mubr.f32.mxu1 %v44530_v56 }
 0x7c1   :  { %22609 = vrot.lane.b32.xlu1 %v40490_v33, %s37071_s27  ;;  %27937 = vmatprep.subr.mxu1 %v41925_v47  ;;  %v33082_v33 = vld [vmem:[%s44289_s4 + $0x8] sm:$0xff] }
 0x7c2   :  { %34899 = vmatmul.mubr.msk.f32.vlgmr.msra.gmra.mrb[32].mxu0 %vm177_vm1, %v41745_v45 }
 0x7c3   :  { %19396 = vmatpush1.msra.mxu0 %v40465_v54  ;;  %35096 = vmatmul.mubr.msk.f32.gmra.mrb[18].mxu1 %vm177_vm1, %v41799_v37 }
 0x7c4   :  { %19536 = vmatprep.subr.mxu0 %v41195_v5  ;;  %19388 = vmatprep.mubr.f32.mxu0 %v44530_v56  ;;  %v41952_v5 = vsel %vm8850_vm12, %v41730_v52, %v41715_v35  ;;  %v41974_v35 = vld [vmem:[%s44288_s3 + $0x100] sm:$0xff] }
 0x7c5   :  { %32508 = vrot.lane.b32.xlu1 %v18262_v7, %s37081_s24  ;;  %27888 = vmatprep.mubr.f32.mxu1 %v44530_v56  ;;  %v41959_v7 = vsel %vm8850_vm12, %v41641_v44, %v41774_v43 }
 0x7c6   :  { %34900 = vmatmul.mubr.msk.f32.gmra.mrb[34].mxu0 %vm177_vm1, %v41765_v32 }
 0x7c7   :  { %35097 = vmatmul.mubr.msk.f32.vlgmr.msra.gmra.mrb[20].mxu1 %vm177_vm1, %v41772_v3  ;;  %19459 = vmatprep.mubr.f32.mxu0 %v44530_v56  ;;  %v19489_v3 = vpop.permute.xlu1 %19488 }
 0x7c8   :  { %27938 = vmatpush1.msra.mxu1 %v41952_v5  ;;  %27894 = vmatprep.mubr.f32.mxu1 %v44530_v56  ;;  %v42093_v20 = vsel %vm2970_vm4, %v19489_v3, %v41245_v53  ;;  %v42108_v53 = vsel %vm8850_vm12, %v41705_v42, %v41877_v41  ;;  %v44762_v41 = vld [vmem:[#allocation42_spill] sm:$0xff] }
 0x7c9   :  { %33090 = vperm.xlu1 %36625, %v33082_v33   ;;  %28014 = vmatprep.subr.mxu1 %v41959_v7  ;;  %44759 = vst [vmem:[#allocation110_spill] sm:$0xff] %v42093_v20  ;;  %v44763_v33 = vld [vmem:[#allocation12_spill] sm:$0xff] }
 0x7ca   :  { %34901 = vmatmul.mubr.msk.f32.vlgmr.msra.gmra.mrb[36].mxu0 %vm177_vm1, %v41745_v45  ;;  %v41984_v45 = vsel %vm8850_vm12, %v41625_v57, %v41641_v44  ;;  %v42002_v57 = vld [vmem:[%s44288_s3 + $0x108] sm:$0xff] }
 0x7cb   :  { %19537 = vmatpush1.msra.mxu0 %v19502_v46  ;;  %35098 = vmatmul.mubr.msk.f32.gmra.mrb[22].mxu1 %vm177_vm1, %v41799_v37  ;;  %v42013_v44 = vld [vmem:[%s44288_s3 + $0x28] sm:$0xff]  ;;  %v42025_v37 = vsel %vm8850_vm12, %v41774_v43, %v41657_v9  ;;  %v42041_v43 = vsel %vm2970_vm4, %v41155_v12, %v19489_v3  ;;  %v42055_v12 = vsel %vm8850_vm12, %v41691_v50, %v41673_v2  ;;  %v44766_v3 = vld [vmem:[#allocation6_spill] sm:$0xff] }
 0x7cc   :  { %19613 = vmatprep.subr.mxu0 %v41217_v55  ;;  %19465 = vmatprep.mubr.f32.mxu0 %v44530_v56  ;;  %v42062_v9 = vsel %vm8850_vm12, %v41848_v40, %v41705_v42  ;;  %v42134_v42 = vsel %vm10320_vm14, %v41928_v1, %v41900_v31  ;;  %v44765_v46 = vld [vmem:[#allocation75_spill] sm:$0xff]  ;;  %v42150_v31 = vld [vmem:[%s44288_s3 + $0x110] sm:$0xff] }
 0x7cd   :  { %28001 = vmatprep.mubr.f32.mxu1 %v44530_v56 }
 0x7ce   :  { %34902 = vmatmul.mubr.msk.f32.gmra.mrb[38].mxu0 %vm177_vm1, %v41765_v32  ;;  %v42032_v32 = vsel %vm8850_vm12, %v41673_v2, %v41833_v28  ;;  %v42081_v2 = vsel %vm8850_vm12, %v41833_v28, %v41848_v40  ;;  %v44760_v28 = vld [vmem:[#allocation43_spill] sm:$0xff]  ;;  %v44761_v40 = vld [vmem:[#allocation69_spill] sm:$0xff] }
 0x7cf   :  { %35099 = vmatmul.mubr.msk.f32.vlgmr.msra.gmra.mrb[24].mxu1 %vm177_vm1, %v41974_v35  ;;  %19600 = vmatprep.mubr.f32.mxu0 %v44530_v56 }
 0x7d0   :  { %28015 = vmatpush1.msra.mxu1 %v41984_v45  ;;  %28007 = vmatprep.mubr.f32.mxu1 %v44530_v56 }
 0x7d1   :  { %28091 = vmatprep.subr.mxu1 %v41996_v34 }
 0x7d2   :  { %34903 = vmatmul.mubr.msk.f32.vlgmr.msra.gmra.mrb[12].mxu0 %vm177_vm1, %v41990_v39 }
 0x7d3   :  { %19614 = vmatpush1.msra.mxu0 %v41187_v15  ;;  %35100 = vmatmul.mubr.msk.f32.gmra.mrb[26].mxu1 %vm177_vm1, %v42002_v57 }
 0x7d4   :  { %19690 = vmatprep.subr.mxu0 %v41243_v4  ;;  %19606 = vmatprep.mubr.f32.mxu0 %v44530_v56 }
 0x7d5   :  { %28078 = vmatprep.mubr.f32.mxu1 %v44530_v56 }
 0x7d6   :  { %34904 = vmatmul.mubr.msk.f32.gmra.mrb[14].mxu0 %vm177_vm1, %v42013_v44 }
 0x7d7   :  { %35101 = vmatmul.mubr.msk.f32.vlgmr.msra.gmra.mrb[28].mxu1 %vm177_vm1, %v41974_v35  ;;  %19677 = vmatprep.mubr.f32.mxu0 %v44530_v56 }
 0x7d8   :  { %28092 = vmatpush1.msra.mxu1 %v42025_v37  ;;  %28084 = vmatprep.mubr.f32.mxu1 %v44530_v56 }
 0x7d9   :  { %28243 = vmatprep.subr.mxu1 %v42032_v32 }
 0x7da   :  { %34905 = vmatmul.mubr.msk.f32.vlgmr.msra.gmra.mrb[16].mxu0 %vm177_vm1, %v41990_v39 }
 0x7db   :  { %19691 = vmatpush1.msra.mxu0 %v41201_v51  ;;  %35102 = vmatmul.mubr.msk.f32.gmra.mrb[30].mxu1 %vm177_vm1, %v42002_v57 }
 0x7dc   :  { %19767 = vmatprep.subr.mxu0 %v42041_v43  ;;  %19683 = vmatprep.mubr.f32.mxu0 %v44530_v56 }
 0x7dd   :  { %28155 = vmatprep.mubr.f32.mxu1 %v44530_v56 }
 0x7de   :  { %34906 = vmatmul.mubr.msk.f32.gmra.mrb[18].mxu0 %vm177_vm1, %v42013_v44 }
 0x7df   :  { %35103 = vmatmul.mubr.msk.f32.vlgmr.msra.gmra.mrb[8].mxu1 %vm177_vm1, %v41974_v35  ;;  %19754 = vmatprep.mubr.f32.mxu0 %v44530_v56 }
 0x7e0   :  { %28244 = vmatpush1.msra.mxu1 %v42055_v12  ;;  %28161 = vmatprep.mubr.f32.mxu1 %v44530_v56 }
 0x7e1   :  { %28320 = vmatprep.subr.mxu1 %v42062_v9 }
 0x7e2   :  { %34907 = vmatmul.mubr.msk.f32.vlgmr.msra.gmra.mrb[20].mxu0 %vm177_vm1, %v41990_v39 }
 0x7e3   :  { %19768 = vmatpush1.msra.mxu0 %v41222_v30  ;;  %35104 = vmatmul.mubr.msk.f32.gmra.mrb[10].mxu1 %vm177_vm1, %v42002_v57 }
 0x7e4   :  { %19842 = vmatprep.subr.mxu0 %v41269_v18  ;;  %19760 = vmatprep.mubr.f32.mxu0 %v44530_v56  ;;  %v44773_v18 = vld [vmem:[#allocation80_spill] sm:$0xff] }
 0x7e5   :  { %28307 = vmatprep.mubr.f32.mxu1 %v44530_v56 }
 0x7e6   :  { %34908 = vmatmul.mubr.msk.f32.gmra.mrb[22].mxu0 %vm177_vm1, %v42013_v44 }
 0x7e7   :  { %35107 = vmatmul.mubr.msk.f32.vlgmr.msra.gmra.mrb[12].mxu1 %vm177_vm1, %v41974_v35  ;;  %19831 = vmatprep.mubr.f32.mxu0 %v44530_v56 }
 0x7e8   :  { %28321 = vmatpush1.msra.mxu1 %v42081_v2  ;;  %28313 = vmatprep.mubr.f32.mxu1 %v44530_v56 }
 0x7e9   :  { %28397 = vmatprep.subr.mxu1 %v27929_v17  ;;  %v44767_v17 = vld [vmem:[#allocation11_spill] sm:$0xff] }
 0x7ea   :  { %34909 = vmatmul.mubr.msk.f32.vlgmr.msra.gmra.mrb[44].mxu0 %vm177_vm1, %v41990_v39 }
 0x7eb   :  { %19843 = vmatpush1.msra.mxu0 %v42093_v20  ;;  %35108 = vmatmul.mubr.msk.f32.gmra.mrb[14].mxu1 %vm177_vm1, %v42002_v57  ;;  %v44777_v20 = vld [vmem:[#allocation37_spill] sm:$0xff] }
 0x7ec   :  { %19919 = vmatprep.subr.mxu0 %v44760_v28  ;;  %19836 = vmatprep.mubr.f32.mxu0 %v44530_v56 }
 0x7ed   :  { %28384 = vmatprep.mubr.f32.mxu1 %v44530_v56 }
 0x7ee   :  { %34910 = vmatmul.mubr.msk.f32.gmra.mrb[46].mxu0 %vm177_vm1, %v42013_v44 }
 0x7ef   :  { %35109 = vmatmul.mubr.msk.f32.vlgmr.msra.gmra.mrb[16].mxu1 %vm177_vm1, %v41974_v35  ;;  %19906 = vmatprep.mubr.f32.mxu0 %v44530_v56 }
 0x7f0   :  { %28398 = vmatpush1.msra.mxu1 %v42108_v53  ;;  %28390 = vmatprep.mubr.f32.mxu1 %v44530_v56 }
 0x7f1   :  { %28510 = vmatprep.subr.mxu1 %v42115_v23 }
 0x7f2   :  { %34911 = vmatmul.mubr.msk.f32.vlgmr.msra.gmra.mrb[28].mxu0 %vm177_vm1, %v41990_v39 }
 0x7f3   :  { %19920 = vmatpush1.msra.mxu0 %v44761_v40  ;;  %35110 = vmatmul.mubr.msk.f32.gmra.mrb[18].mxu1 %vm177_vm1, %v42002_v57 }
 0x7f4   :  { %19996 = vmatprep.subr.mxu0 %v44762_v41  ;;  %19912 = vmatprep.mubr.f32.mxu0 %v44530_v56 }
 0x7f5   :  { %28461 = vmatprep.mubr.f32.mxu1 %v44530_v56 }
 0x7f6   :  { %34912 = vmatmul.mubr.msk.f32.gmra.mrb[30].mxu0 %vm177_vm1, %v42013_v44 }
 0x7f7   :  { %35111 = vmatmul.mubr.msk.f32.vlgmr.msra.gmra.mrb[20].mxu1 %vm177_vm1, %v41974_v35  ;;  %19983 = vmatprep.mubr.f32.mxu0 %v44530_v56  ;;  %v20100_v35 = vpop.permute.xlu1 %20099 }
 0x7f8   :  { %28511 = vmatpush1.msra.mxu1 %v42134_v42  ;;  %28467 = vmatprep.mubr.f32.mxu1 %v44530_v56 }
 0x7f9   :  { %28587 = vmatprep.subr.mxu1 %v44763_v33  ;;  %v42167_v33 = vsel %vm10320_vm14, %v44767_v17, %v41760_v62  ;;  %v44769_v17 = vld [vmem:[#allocation78_spill] sm:$0xff] }
 0x7fa   :  { %34913 = vmatmul.mubr.msk.f32.vlgmr.msra.gmra.mrb[32].mxu0 %vm177_vm1, %v41990_v39 }
 0x7fb   :  { %19997 = vmatpush1.msra.mxu0 %v44764_v22  ;;  %35112 = vmatmul.mubr.msk.f32.gmra.mrb[22].mxu1 %vm177_vm1, %v42002_v57  ;;  %v42160_v57 = vsel %vm10320_vm14, %v41739_v0, %v44766_v3  ;;  %v44768_v0 = vld [vmem:[#allocation72_spill] sm:$0xff] }
 0x7fc   :  { %20164 = vmatprep.subr.mxu0 %v44765_v46  ;;  %19989 = vmatprep.mubr.f32.mxu0 %v44530_v56  ;;  %v42173_v46 = vld [vmem:[%s44288_s3 + $0x118] sm:$0xff]  ;;  %v20130_v3 = vsel %vm20129_vm11, %v20100_v35, %v44768_v0  ;;  %v44770_v35 = vld [vmem:[#allocation3_spill] sm:$0xff]  ;;  %v44771_v0 = vld [vmem:[#allocation10_spill] sm:$0xff] }
 0x7fd   :  { %28574 = vmatprep.mubr.f32.mxu1 %v44530_v56 }
 0x7fe   :  { %34914 = vmatmul.mubr.msk.f32.gmra.mrb[34].mxu0 %vm177_vm1, %v42013_v44 }
 0x7ff   :  { %35113 = vmatmul.mubr.msk.f32.vlgmr.msra.gmra.mrb[24].mxu1 %vm177_vm1, %v42150_v31  ;;  %20060 = vmatprep.mubr.f32.mxu0 %v44530_v56 }
 0x800   :  { %28588 = vmatpush1.msra.mxu1 %v42160_v57  ;;  %28580 = vmatprep.mubr.f32.mxu1 %v44530_v56 }
 0x801   :  { %28664 = vmatprep.subr.mxu1 %v42167_v33 }
 0x802   :  { %34915 = vmatmul.mubr.msk.f32.vlgmr.msra.gmra.mrb[36].mxu0 %vm177_vm1, %v41990_v39  ;;  %v42193_v39 = vld [vmem:[%s44288_s3 + $0x30] sm:$0xff] }
 0x803   :  { %20165 = vmatpush1.msra.mxu0 %v20130_v3  ;;  %35114 = vmatmul.mubr.msk.f32.gmra.mrb[26].mxu1 %vm177_vm1, %v42173_v46  ;;  %v42206_v3 = vld [vmem:[%s44288_s3 + $0x38] sm:$0xff] }
 0x804   :  { %20241 = vmatprep.subr.mxu0 %v44769_v17  ;;  %20066 = vmatprep.mubr.f32.mxu0 %v44530_v56 }
 0x805   :  { %28651 = vmatprep.mubr.f32.mxu1 %v44530_v56 }
 0x806   :  { %34916 = vmatmul.mubr.msk.f32.gmra.mrb[38].mxu0 %vm177_vm1, %v42013_v44  ;;  %v44772_v44 = vld [vmem:[#allocation73_spill] sm:$0xff] }
 0x807   :  { %35115 = vmatmul.mubr.msk.f32.vlgmr.msra.gmra.mrb[28].mxu1 %vm177_vm1, %v42150_v31  ;;  %20228 = vmatprep.mubr.f32.mxu0 %v44530_v56 }
 0x808   :  { %28665 = vmatpush1.msra.mxu1 %v44770_v35  ;;  %28657 = vmatprep.mubr.f32.mxu1 %v44530_v56  ;;  %v20116_v35 = vpop.permute.xlu1 %20115 }
 0x809   :  { %28816 = vmatprep.subr.mxu1 %v44771_v0  ;;  %v44774_v0 = vld [vmem:[#allocation51_spill] sm:$0xff]  ;;  %v42224_v17 = vsel %vm20129_vm11, %v44777_v20, %v20116_v35  ;;  %v44780_v20 = vld [vmem:[#allocation53_spill] sm:$0xff] }
 0x80a   :  { %34917 = vmatmul.mubr.msk.f32.vlgmr.msra.gmra.mrb[12].mxu0 %vm177_vm1, %v42193_v39  ;;  %44778 = vst [vmem:[#allocation43_spill] sm:$0xff] %v42224_v17 }
 0x80b   :  { %20242 = vmatpush1.msra.mxu0 %v44772_v44  ;;  %35116 = vmatmul.mubr.msk.f32.gmra.mrb[30].mxu1 %vm177_vm1, %v42173_v46  ;;  %v44775_v44 = vld [vmem:[#allocation15_spill] sm:$0xff] }
 0x80c   :  { %20318 = vmatprep.subr.mxu0 %v44773_v18  ;;  %20234 = vmatprep.mubr.f32.mxu0 %v44530_v56  ;;  %v44776_v18 = vld [vmem:[#allocation76_spill] sm:$0xff] }
 0x80d   :  { %28728 = vmatprep.mubr.f32.mxu1 %v44530_v56 }
 0x80e   :  { %34918 = vmatmul.mubr.msk.f32.gmra.mrb[14].mxu0 %vm177_vm1, %v42206_v3 }
 0x80f   :  { %35117 = vmatmul.mubr.msk.f32.vlgmr.msra.gmra.mrb[8].mxu1 %vm177_vm1, %v42150_v31  ;;  %20305 = vmatprep.mubr.f32.mxu0 %v44530_v56 }
 0x810   :  { %28817 = vmatpush1.msra.mxu1 %v44774_v0  ;;  %28734 = vmatprep.mubr.f32.mxu1 %v44530_v56  ;;  %v28502_v0 = vsel %vm10320_vm14, %v44780_v20, %v41786_v63  ;;  %v44783_v63 = vld [vmem:[#allocation46_spill] sm:$0xff] }
 0x811   :  { %28893 = vmatprep.subr.mxu1 %v44775_v44  ;;  %v44779_v44 = vld [vmem:[#allocation14_spill] sm:$0xff] }
 0x812   :  { %34919 = vmatmul.mubr.msk.f32.vlgmr.msra.gmra.mrb[16].mxu0 %vm177_vm1, %v42193_v39  ;;  %v44785_v20 = vld [vmem:[#allocation74_spill] sm:$0xff] }
 0x813   :  { %20319 = vmatpush1.msra.mxu0 %v44776_v18  ;;  %35118 = vmatmul.mubr.msk.f32.gmra.mrb[10].mxu1 %vm177_vm1, %v42173_v46  ;;  %v44782_v18 = vld [vmem:[#allocation82_spill] sm:$0xff] }
 0x814   :  { %20395 = vmatprep.subr.mxu0 %v42224_v17  ;;  %20311 = vmatprep.mubr.f32.mxu0 %v44530_v56  ;;  %v44781_v17 = vld [vmem:[#allocation79_spill] sm:$0xff] }
 0x815   :  { %28880 = vmatprep.mubr.f32.mxu1 %v44530_v56 }
 0x816   :  { %34920 = vmatmul.mubr.msk.f32.gmra.mrb[18].mxu0 %vm177_vm1, %v42206_v3 }
 0x817   :  { %35121 = vmatmul.mubr.msk.f32.vlgmr.msra.gmra.mrb[12].mxu1 %vm177_vm1, %v42150_v31  ;;  %20382 = vmatprep.mubr.f32.mxu0 %v44530_v56 }
 0x818   :  { %28894 = vmatpush1.msra.mxu1 %v44779_v44  ;;  %28886 = vmatprep.mubr.f32.mxu1 %v44530_v56  ;;  %v44784_v44 = vld [vmem:[#allocation18_spill] sm:$0xff] }
 0x819   :  { %28970 = vmatprep.subr.mxu1 %v28502_v0  ;;  %v42261_v0 = vsel %vm20129_vm11, %v20116_v35, %v44785_v20  ;;  %v44787_v35 = vld [vmem:[#allocation13_spill] sm:$0xff]  ;;  %v44791_v20 = vld [vmem:[#allocation48_spill] sm:$0xff] }
 0x81a   :  { %34921 = vmatmul.mubr.msk.f32.vlgmr.msra.gmra.mrb[20].mxu0 %vm177_vm1, %v42193_v39 }
 0x81b   :  { %20396 = vmatpush1.msra.mxu0 %v44781_v17  ;;  %35122 = vmatmul.mubr.msk.f32.gmra.mrb[14].mxu1 %vm177_vm1, %v42173_v46 }
 0x81c   :  { %20470 = vmatprep.subr.mxu0 %v44782_v18  ;;  %20388 = vmatprep.mubr.f32.mxu0 %v44530_v56  ;;  %v44786_v18 = vld [vmem:[#allocation84_spill] sm:$0xff] }
 0x81d   :  { %28957 = vmatprep.mubr.f32.mxu1 %v44530_v56 }
 0x81e   :  { %34922 = vmatmul.mubr.msk.f32.gmra.mrb[22].mxu0 %vm177_vm1, %v42206_v3 }
 0x81f   :  { %35123 = vmatmul.mubr.msk.f32.vlgmr.msra.gmra.mrb[16].mxu1 %vm177_vm1, %v42150_v31  ;;  %20459 = vmatprep.mubr.f32.mxu0 %v44530_v56 }
 0x820   :  { %28971 = vmatpush1.msra.mxu1 %v44783_v63  ;;  %28963 = vmatprep.mubr.f32.mxu1 %v44530_v56  ;;  %v44788_v63 = vld [vmem:[#allocation50_spill] sm:$0xff] }
 0x821   :  { %29083 = vmatprep.subr.mxu1 %v44784_v44  ;;  %v44789_v44 = vld [vmem:[#allocation81_spill] sm:$0xff] }
 0x822   :  { %34923 = vmatmul.mubr.msk.f32.vlgmr.msra.gmra.mrb[48].mxu0 %vm177_vm1, %v42193_v39 }
 0x823   :  { %20471 = vmatpush1.msra.mxu0 %v42261_v0  ;;  %35124 = vmatmul.mubr.msk.f32.gmra.mrb[18].mxu1 %vm177_vm1, %v42173_v46 }
 0x824   :  { %20547 = vmatprep.subr.mxu0 %v44786_v18  ;;  %20464 = vmatprep.mubr.f32.mxu0 %v44530_v56 }
 0x825   :  { %29034 = vmatprep.mubr.f32.mxu1 %v44530_v56 }
 0x826   :  { %34924 = vmatmul.mubr.msk.f32.gmra.mrb[50].mxu0 %vm177_vm1, %v42206_v3 }
 0x827   :  { %35125 = vmatmul.mubr.msk.f32.vlgmr.msra.gmra.mrb[20].mxu1 %vm177_vm1, %v42150_v31  ;;  %20534 = vmatprep.mubr.f32.mxu0 %v44530_v56  ;;  %v42287_v31 = vld [vmem:[%s44288_s3 + $0x120] sm:$0xff] }
 0x828   :  { %29084 = vmatpush1.msra.mxu1 %v44787_v35  ;;  %29040 = vmatprep.mubr.f32.mxu1 %v44530_v56  ;;  %v42299_v35 = vsel %vm23266_vm3, %v44791_v20, %v41809_v10  ;;  %v44793_v20 = vld [vmem:[#allocation16_spill] sm:$0xff] }
 0x829   :  { %29160 = vmatprep.subr.mxu1 %v44788_v63  ;;  %v42305_v63 = vld [vmem:[%s44288_s3 + $0x128] sm:$0xff] }
 0x82a   :  { %34925 = vmatmul.mubr.msk.f32.vlgmr.msra.gmra.mrb[28].mxu0 %vm177_vm1, %v42193_v39 }
 0x82b   :  { %20548 = vmatpush1.msra.mxu0 %v44789_v44  ;;  %35126 = vmatmul.mubr.msk.f32.gmra.mrb[22].mxu1 %vm177_vm1, %v42173_v46  ;;  %v44790_v46 = vld [vmem:[#allocation55_spill] sm:$0xff] }
 0x82c   :  { %20624 = vmatprep.subr.mxu0 %v41481_v58  ;;  %20540 = vmatprep.mubr.f32.mxu0 %v44530_v56  ;;  %v44792_v58 = vld [vmem:[#allocation83_spill] sm:$0xff] }
 0x82d   :  { %29147 = vmatprep.mubr.f32.mxu1 %v44530_v56 }
 0x82e   :  { %34926 = vmatmul.mubr.msk.f32.gmra.mrb[30].mxu0 %vm177_vm1, %v42206_v3 }
 0x82f   :  { %35127 = vmatmul.mubr.msk.f32.vlgmr.msra.gmra.mrb[24].mxu1 %vm177_vm1, %v42287_v31  ;;  %20611 = vmatprep.mubr.f32.mxu0 %v44530_v56 }
 0x830   :  { %29161 = vmatpush1.msra.mxu1 %v44790_v46  ;;  %29153 = vmatprep.mubr.f32.mxu1 %v44530_v56  ;;  %v20728_v46 = vpop.permute.xlu1 %20727 }
 0x831   :  { %29237 = vmatprep.subr.mxu1 %v42299_v35 }
 0x832   :  { %34927 = vmatmul.mubr.msk.f32.vlgmr.msra.gmra.mrb[32].mxu0 %vm177_vm1, %v42193_v39 }
 0x833   :  { %20625 = vmatpush1.msra.mxu0 %v44792_v58  ;;  %35128 = vmatmul.mubr.msk.f32.gmra.mrb[26].mxu1 %vm177_vm1, %v42305_v63  ;;  %v44794_v58 = vld [vmem:[#allocation22_spill] sm:$0xff] }
 0x834   :  { %20792 = vmatprep.subr.mxu0 %v41525_v48  ;;  %20617 = vmatprep.mubr.f32.mxu0 %v44530_v56  ;;  %v20758_v48 = vsel %vm20757_vm13, %v20728_v46, %v41367_v61  ;;  %v42341_v61 = vld [vmem:[%s44288_s3 + $0x40] sm:$0xff]  ;;  %v42354_v46 = vld [vmem:[%s44288_s3 + $0x48] sm:$0xff] }
 0x835   :  { %29224 = vmatprep.mubr.f32.mxu1 %v44530_v56 }
 0x836   :  { %34928 = vmatmul.mubr.msk.f32.gmra.mrb[34].mxu0 %vm177_vm1, %v42206_v3 }
 0x837   :  { %35129 = vmatmul.mubr.msk.f32.vlgmr.msra.gmra.mrb[28].mxu1 %vm177_vm1, %v42287_v31  ;;  %20688 = vmatprep.mubr.f32.mxu0 %v44530_v56 }
 0x838   :  { %29238 = vmatpush1.msra.mxu1 %v44793_v20  ;;  %29230 = vmatprep.mubr.f32.mxu1 %v44530_v56  ;;  %v20744_v20 = vpop.permute.xlu1 %20743 }
 0x839   :  { %29389 = vmatprep.subr.mxu1 %v44794_v58  ;;  %v44795_v58 = vld [vmem:[#allocation20_spill] sm:$0xff] }
 0x83a   :  { %34929 = vmatmul.mubr.msk.f32.vlgmr.msra.gmra.mrb[36].mxu0 %vm177_vm1, %v42193_v39  ;;  %v44796_v39 = vld [vmem:[#allocation54_spill] sm:$0xff] }
 0x83b   :  { %20793 = vmatpush1.msra.mxu0 %v20758_v48  ;;  %35130 = vmatmul.mubr.msk.f32.gmra.mrb[30].mxu1 %vm177_vm1, %v42305_v63  ;;  %v44798_v48 = vld [vmem:[#allocation52_spill] sm:$0xff] }
 0x83c   :  { %20869 = vmatprep.subr.mxu0 %v41561_v13  ;;  %20694 = vmatprep.mubr.f32.mxu0 %v44530_v56  ;;  %v44803_v13 = vld [vmem:[#allocation93_spill] sm:$0xff] }
 0x83d   :  { %29301 = vmatprep.mubr.f32.mxu1 %v44530_v56 }
 0x83e   :  { %34930 = vmatmul.mubr.msk.f32.gmra.mrb[38].mxu0 %vm177_vm1, %v42206_v3  ;;  %v44797_v3 = vld [vmem:[#allocation88_spill] sm:$0xff] }
 0x83f   :  { %35131 = vmatmul.mubr.msk.f32.vlgmr.msra.gmra.mrb[8].mxu1 %vm177_vm1, %v42287_v31  ;;  %20856 = vmatprep.mubr.f32.mxu0 %v44530_v56 }
 0x840   :  { %29390 = vmatpush1.msra.mxu1 %v44795_v58  ;;  %29307 = vmatprep.mubr.f32.mxu1 %v44530_v56  ;;  %v44799_v58 = vld [vmem:[#allocation19_spill] sm:$0xff] }
 0x841   :  { %29466 = vmatprep.subr.mxu1 %v44796_v39  ;;  %v29075_v39 = vsel %vm23266_vm3, %v44799_v58, %v41823_v14  ;;  %v44802_v58 = vld [vmem:[#allocation25_spill] sm:$0xff] }
 0x842   :  { %34931 = vmatmul.mubr.msk.f32.vlgmr.msra.gmra.mrb[12].mxu0 %vm177_vm1, %v42341_v61 }
 0x843   :  { %20870 = vmatpush1.msra.mxu0 %v44797_v3  ;;  %35132 = vmatmul.mubr.msk.f32.gmra.mrb[10].mxu1 %vm177_vm1, %v42305_v63  ;;  %v42374_v3 = vsel %vm20757_vm13, %v41417_v11, %v20744_v20  ;;  %v44801_v11 = vld [vmem:[#allocation21_spill] sm:$0xff] }
 0x844   :  { %20946 = vmatprep.subr.mxu0 %v41601_v16  ;;  %20862 = vmatprep.mubr.f32.mxu0 %v44530_v56  ;;  %v44800_v16 = vld [vmem:[#allocation91_spill] sm:$0xff] }
 0x845   :  { %29453 = vmatprep.mubr.f32.mxu1 %v44530_v56 }
 0x846   :  { %34932 = vmatmul.mubr.msk.f32.gmra.mrb[14].mxu0 %vm177_vm1, %v42354_v46 }
 0x847   :  { %35135 = vmatmul.mubr.msk.f32.vlgmr.msra.gmra.mrb[12].mxu1 %vm177_vm1, %v42287_v31  ;;  %20933 = vmatprep.mubr.f32.mxu0 %v44530_v56 }
 0x848   :  { %29467 = vmatpush1.msra.mxu1 %v44798_v48  ;;  %29459 = vmatprep.mubr.f32.mxu1 %v44530_v56 }
 0x849   :  { %29543 = vmatprep.subr.mxu1 %v29075_v39 }
 0x84a   :  { %34933 = vmatmul.mubr.msk.f32.vlgmr.msra.gmra.mrb[16].mxu0 %vm177_vm1, %v42341_v61 }
 0x84b   :  { %20947 = vmatpush1.msra.mxu0 %v44800_v16  ;;  %35136 = vmatmul.mubr.msk.f32.gmra.mrb[14].mxu1 %vm177_vm1, %v42305_v63 }
 0x84c   :  { %21023 = vmatprep.subr.mxu0 %v42374_v3  ;;  %20939 = vmatprep.mubr.f32.mxu0 %v44530_v56 }
 0x84d   :  { %29530 = vmatprep.mubr.f32.mxu1 %v44530_v56  ;;  %v42381_v14 = vpop.f32.mrb[24].mxu0 }
 0x84e   :  { %34934 = vmatmul.mubr.msk.f32.gmra.mrb[18].mxu0 %vm177_vm1, %v42354_v46  ;;  %v18691_v48 = vpop.f32.mrb[25].mxu0 }
 0x84f   :  { %35137 = vmatmul.mubr.msk.f32.vlgmr.msra.gmra.mrb[16].mxu1 %vm177_vm1, %v42287_v31  ;;  %21010 = vmatprep.mubr.f32.mxu0 %v44530_v56  ;;  %v44805_v48 = vld [vmem:[#allocation63_spill] sm:$0xff] }
 0x850   :  { %29544 = vmatpush1.msra.mxu1 %v44801_v11  ;;  %29536 = vmatprep.mubr.f32.mxu1 %v44530_v56  ;;  %v42413_v11 = vsel %vm20757_vm13, %v20744_v20, %v41435_v21  ;;  %v44806_v21 = vld [vmem:[#allocation61_spill] sm:$0xff] }
 0x851   :  { %29656 = vmatprep.subr.mxu1 %v44802_v58  ;;  %v42391_v39 = vpop.f32.mrb[26].mxu0  ;;  %v42441_v58 = vld [vmem:[%s44288_s3 + $0x138] sm:$0xff] }
 0x852   :  { %34935 = vmatmul.mubr.msk.f32.vlgmr.msra.gmra.mrb[20].mxu0 %vm177_vm1, %v42341_v61  ;;  %v18696_v16 = vpop.f32.mrb[27].mxu0 }
 0x853   :  { %21024 = vmatpush1.msra.mxu0 %v44803_v13  ;;  %35138 = vmatmul.mubr.msk.f32.gmra.mrb[18].mxu1 %vm177_vm1, %v42305_v63  ;;  %v44804_v16 = vld [vmem:[#allocation24_spill] sm:$0xff] }
 0x854   :  { %21098 = vmatprep.subr.mxu0 %v41639_v49  ;;  %21016 = vmatprep.mubr.f32.mxu0 %v44530_v56  ;;  %v44812_v49 = vld [vmem:[#allocation104_spill] sm:$0xff] }
 0x855   :  { %29607 = vmatprep.mubr.f32.mxu1 %v44530_v56 }
 0x856   :  { %34936 = vmatmul.mubr.msk.f32.gmra.mrb[22].mxu0 %vm177_vm1, %v42354_v46 }
 0x857   :  { %35139 = vmatmul.mubr.msk.f32.vlgmr.msra.gmra.mrb[20].mxu1 %vm177_vm1, %v42287_v31  ;;  %21087 = vmatprep.mubr.f32.mxu0 %v44530_v56  ;;  %v42423_v31 = vld [vmem:[%s44288_s3 + $0x130] sm:$0xff] }
 0x858   :  { %29657 = vmatpush1.msra.mxu1 %v44804_v16  ;;  %29613 = vmatprep.mubr.f32.mxu1 %v44530_v56  ;;  %v44808_v16 = vld [vmem:[#allocation96_spill] sm:$0xff] }
 0x859   :  { %29733 = vmatprep.subr.mxu1 %v44805_v48  ;;  %v44809_v48 = vld [vmem:[#allocation26_spill] sm:$0xff] }
 0x85a   :  { %34937 = vmatmul.mubr.msk.f32.vlgmr.msra.gmra.mrb[52].mxu0 %vm177_vm1, %v42341_v61 }
 0x85b   :  { %21099 = vmatpush1.msra.mxu0 %v42413_v11  ;;  %35140 = vmatmul.mubr.msk.f32.gmra.mrb[22].mxu1 %vm177_vm1, %v42305_v63  ;;  %v44807_v63 = vld [vmem:[#allocation56_spill] sm:$0xff] }
 0x85c   :  { %21175 = vmatprep.subr.mxu0 %v41671_v36  ;;  %21092 = vmatprep.mubr.f32.mxu0 %v44530_v56  ;;  %v42435_v20 = vsel %vm23894_vm0, %v44807_v63, %v41841_v25  ;;  %v44811_v63 = vld [vmem:[#allocation100_spill] sm:$0xff] }
 0x85d   :  { %29720 = vmatprep.mubr.f32.mxu1 %v44530_v56 }
 0x85e   :  { %34938 = vmatmul.mubr.msk.f32.gmra.mrb[54].mxu0 %vm177_vm1, %v42354_v46 }
 0x85f   :  { %35141 = vmatmul.mubr.msk.f32.vlgmr.msra.gmra.mrb[24].mxu1 %vm177_vm1, %v42423_v31  ;;  %21162 = vmatprep.mubr.f32.mxu0 %v44530_v56 }
 0x860   :  { %29734 = vmatpush1.msra.mxu1 %v44806_v21  ;;  %29726 = vmatprep.mubr.f32.mxu1 %v44530_v56  ;;  %v44810_v21 = vld [vmem:[#allocation65_spill] sm:$0xff] }
 0x861   :  { %29810 = vmatprep.subr.mxu1 %v42435_v20 }
 0x862   :  { %34939 = vmatmul.mubr.msk.f32.vlgmr.msra.gmra.mrb[28].mxu0 %vm177_vm1, %v42341_v61 }
 0x863   :  { %21176 = vmatpush1.msra.mxu0 %v44808_v16  ;;  %35142 = vmatmul.mubr.msk.f32.gmra.mrb[26].mxu1 %vm177_vm1, %v42441_v58 }
 0x864   :  { %21252 = vmatprep.subr.mxu0 %v41703_v59  ;;  %21168 = vmatprep.mubr.f32.mxu0 %v44530_v56 }
 0x865   :  { %29797 = vmatprep.mubr.f32.mxu1 %v44530_v56 }
 0x866   :  { %34940 = vmatmul.mubr.msk.f32.gmra.mrb[30].mxu0 %vm177_vm1, %v42354_v46 }
 0x867   :  { %35143 = vmatmul.mubr.msk.f32.vlgmr.msra.gmra.mrb[28].mxu1 %vm177_vm1, %v42423_v31  ;;  %21239 = vmatprep.mubr.f32.mxu0 %v44530_v56 }
 0x868   :  { %29811 = vmatpush1.msra.mxu1 %v44809_v48  ;;  %29803 = vmatprep.mubr.f32.mxu1 %v44530_v56  ;;  %v21356_v48 = vpop.permute.xlu1 %21355 }
 0x869   :  { %29962 = vmatprep.subr.mxu1 %v44810_v21  ;;  %v44813_v21 = vld [vmem:[#allocation58_spill] sm:$0xff] }
 0x86a   :  { %34941 = vmatmul.mubr.msk.f32.vlgmr.msra.gmra.mrb[32].mxu0 %vm177_vm1, %v42341_v61 }
 0x86b   :  { %21253 = vmatpush1.msra.mxu0 %v44811_v63  ;;  %35144 = vmatmul.mubr.msk.f32.gmra.mrb[30].mxu1 %vm177_vm1, %v42441_v58  ;;  %v44814_v63 = vld [vmem:[#allocation29_spill] sm:$0xff] }
 0x86c   :  { %21419 = vmatprep.subr.mxu0 %v44812_v49  ;;  %21245 = vmatprep.mubr.f32.mxu0 %v44530_v56  ;;  %v44815_v49 = vld [vmem:[#allocation89_spill] sm:$0xff] }
 0x86d   :  { %29874 = vmatprep.mubr.f32.mxu1 %v44530_v56  ;;  %v21385_v59 = vsel %vm7380_vm10, %v21356_v48, %v44815_v49  ;;  %v42508_v48 = vld [vmem:[%s44288_s3 + $0x58] sm:$0xff] }
 0x86e   :  { %34942 = vmatmul.mubr.msk.f32.gmra.mrb[34].mxu0 %vm177_vm1, %v42354_v46  ;;  %v44820_v49 = vld [vmem:[#allocation49_spill] sm:$0xff] }
 0x86f   :  { %35145 = vmatmul.mubr.msk.f32.vlgmr.msra.gmra.mrb[8].mxu1 %vm177_vm1, %v42423_v31  ;;  %21316 = vmatprep.mubr.f32.mxu0 %v44530_v56 }
 0x870   :  { %29963 = vmatpush1.msra.mxu1 %v44813_v21  ;;  %29880 = vmatprep.mubr.f32.mxu1 %v44530_v56  ;;  %v44819_v21 = vld [vmem:[#allocation60_spill] sm:$0xff] }
 0x871   :  { %30039 = vmatprep.subr.mxu1 %v44814_v63 }
 0x872   :  { %34943 = vmatmul.mubr.msk.f32.vlgmr.msra.gmra.mrb[36].mxu0 %vm177_vm1, %v42341_v61  ;;  %v44816_v61 = vld [vmem:[#allocation28_spill] sm:$0xff] }
 0x873   :  { %21420 = vmatpush1.msra.mxu0 %v21385_v59  ;;  %35146 = vmatmul.mubr.msk.f32.gmra.mrb[10].mxu1 %vm177_vm1, %v42441_v58  ;;  %v42493_v59 = vld [vmem:[%s44288_s3 + $0x50] sm:$0xff] }
 0x874   :  { %21496 = vmatprep.subr.mxu0 %v41784_v60  ;;  %21322 = vmatprep.mubr.f32.mxu0 %v44530_v56  ;;  %v44817_v60 = vld [vmem:[#allocation23_spill] sm:$0xff] }
 0x875   :  { %30026 = vmatprep.mubr.f32.mxu1 %v44530_v56  ;;  %v29648_v63 = vsel %vm23894_vm0, %v44817_v60, %v41857_v24  ;;  %v21372_v24 = vpop.permute.xlu0 %21371 }
 0x876   :  { %34944 = vmatmul.mubr.msk.f32.gmra.mrb[38].mxu0 %vm177_vm1, %v42354_v46  ;;  %v44818_v46 = vld [vmem:[#allocation103_spill] sm:$0xff] }
 0x877   :  { %35149 = vmatmul.mubr.msk.f32.vlgmr.msra.gmra.mrb[12].mxu1 %vm177_vm1, %v42423_v31  ;;  %21483 = vmatprep.mubr.f32.mxu0 %v44530_v56 }
 0x878   :  { %30040 = vmatpush1.msra.mxu1 %v44816_v61  ;;  %30032 = vmatprep.mubr.f32.mxu1 %v44530_v56  ;;  %v44822_v61 = vld [vmem:[#allocation90_spill] sm:$0xff] }
 0x879   :  { %30116 = vmatprep.subr.mxu1 %v29648_v63  ;;  %v42526_v60 = vsel %vm7380_vm10, %v44822_v61, %v21372_v24 }
 0x87a   :  { %34945 = vmatmul.mubr.msk.f32.vlgmr.msra.gmra.mrb[12].mxu0 %vm177_vm1, %v42493_v59 }
 0x87b   :  { %21497 = vmatpush1.msra.mxu0 %v44818_v46  ;;  %35150 = vmatmul.mubr.msk.f32.gmra.mrb[14].mxu1 %vm177_vm1, %v42441_v58 }
 0x87c   :  { %21573 = vmatprep.subr.mxu0 %v41821_v6  ;;  %21489 = vmatprep.mubr.f32.mxu0 %v44530_v56  ;;  %v44821_v6 = vld [vmem:[#allocation105_spill] sm:$0xff] }
 0x87d   :  { %30103 = vmatprep.mubr.f32.mxu1 %v44530_v56 }
 0x87e   :  { %34946 = vmatmul.mubr.msk.f32.gmra.mrb[14].mxu0 %vm177_vm1, %v42508_v48 }
 0x87f   :  { %35151 = vmatmul.mubr.msk.f32.vlgmr.msra.gmra.mrb[16].mxu1 %vm177_vm1, %v42423_v31  ;;  %21560 = vmatprep.mubr.f32.mxu0 %v44530_v56 }
 0x880   :  { %30117 = vmatpush1.msra.mxu1 %v44819_v21  ;;  %30109 = vmatprep.mubr.f32.mxu1 %v44530_v56 }
 0x881   :  { %30225 = vmatprep.subr.mxu1 %v44820_v49  ;;  %v44823_v49 = vld [vmem:[#allocation7_spill] sm:$0xff] }
 0x882   :  { %34947 = vmatmul.mubr.msk.f32.vlgmr.msra.gmra.mrb[16].mxu0 %vm177_vm1, %v42493_v59 }
 0x883   :  { %21574 = vmatpush1.msra.mxu0 %v44821_v6  ;;  %35152 = vmatmul.mubr.msk.f32.gmra.mrb[18].mxu1 %vm177_vm1, %v42441_v58  ;;  %v44824_v6 = vld [vmem:[#allocation68_spill] sm:$0xff] }
 0x884   :  { %21650 = vmatprep.subr.mxu0 %v42526_v60  ;;  %21566 = vmatprep.mubr.f32.mxu0 %v44530_v56 }
 0x885   :  { %30180 = vmatprep.mubr.f32.mxu1 %v44530_v56  ;;  %v19232_v63 = vpop.f32.mrb[40].mxu0 }
 0x886   :  { %34948 = vmatmul.mubr.msk.f32.gmra.mrb[18].mxu0 %vm177_vm1, %v42508_v48  ;;  %v42536_v46 = vadd.f32 %v19232_v63, %v42381_v14  ;;  %v19234_v21 = vpop.f32.mrb[41].mxu0  ;;  %v44825_v63 = vld [vmem:[#allocation106_spill] sm:$0xff] }
 0x887   :  { %35153 = vmatmul.mubr.msk.f32.vlgmr.msra.gmra.mrb[20].mxu1 %vm177_vm1, %v42423_v31  ;;  %21637 = vmatprep.mubr.f32.mxu0 %v44530_v56  ;;  %v44826_v21 = vld [vmem:[#allocation108_spill] sm:$0xff] }
 0x888   :  { %30226 = vmatpush1.msra.mxu1 %v44823_v49  ;;  %30186 = vmatprep.mubr.f32.mxu1 %v44530_v56  ;;  %v42557_v49 = vld [vmem:[%s44288_s3 + $0x140] sm:$0xff] }
 0x889   :  { %30302 = vmatprep.subr.mxu1 %v44824_v6  ;;  %v19237_v61 = vpop.f32.mrb[42].mxu0  ;;  %v42570_v6 = vld [vmem:[%s44288_s3 + $0x148] sm:$0xff] }
 0x88a   :  { %34949 = vmatmul.mubr.msk.f32.vlgmr.msra.gmra.mrb[20].mxu0 %vm177_vm1, %v42493_v59  ;;  %v42547_v16 = vadd.f32 %v19237_v61, %v42391_v39  ;;  %v19239_v14 = vpop.f32.mrb[43].mxu0  ;;  %v44827_v39 = vld [vmem:[#allocation4_spill] sm:$0xff]  ;;  %v44828_v61 = vld [vmem:[#allocation9_spill] sm:$0xff] }
 0x88b   :  { %21651 = vmatpush1.msra.mxu0 %v44825_v63  ;;  %35154 = vmatmul.mubr.msk.f32.gmra.mrb[22].mxu1 %vm177_vm1, %v42441_v58  ;;  %v44829_v14 = vld [vmem:[#allocation98_spill] sm:$0xff] }
 0x88c   :  { %21725 = vmatprep.subr.mxu0 %v44826_v21  ;;  %21643 = vmatprep.mubr.f32.mxu0 %v44530_v56  ;;  %v42577_v63 = vsel %vm7380_vm10, %v21372_v24, %v44829_v14  ;;  %v44830_v24 = vld [vmem:[#allocation2_spill] sm:$0xff]  ;;  %v44831_v21 = vld [vmem:[#allocation5_spill] sm:$0xff]  ;;  %v44838_v14 = vld [vmem:[#allocation67_spill] sm:$0xff] }
 0x88d   :  { %30289 = vmatprep.mubr.f32.mxu1 %v44530_v56 }
 0x88e   :  { %34950 = vmatmul.mubr.msk.f32.gmra.mrb[22].mxu0 %vm177_vm1, %v42508_v48 }
 0x88f   :  { %35155 = vmatmul.mubr.msk.f32.vlgmr.msra.gmra.mrb[24].mxu1 %vm177_vm1, %v42557_v49  ;;  %21714 = vmatprep.mubr.f32.mxu0 %v44530_v56 }
 0x890   :  { %30303 = vmatpush1.msra.mxu1 %v44827_v39  ;;  %30295 = vmatprep.mubr.f32.mxu1 %v44530_v56  ;;  %v44837_v39 = vld [vmem:[#allocation31_spill] sm:$0xff] }
 0x891   :  { %30379 = vmatprep.subr.mxu1 %v44828_v61 }
 0x892   :  { %34951 = vmatmul.mubr.msk.f32.vlgmr.msra.gmra.mrb[56].mxu0 %vm177_vm1, %v42493_v59 }
 0x893   :  { %21726 = vmatpush1.msra.mxu0 %v42577_v63  ;;  %35156 = vmatmul.mubr.msk.f32.gmra.mrb[26].mxu1 %vm177_vm1, %v42570_v6 }
 0x894   :  { %21802 = vmatprep.subr.mxu0 %v41888_v27  ;;  %21719 = vmatprep.mubr.f32.mxu0 %v44530_v56  ;;  %v44832_v27 = vld [vmem:[#allocation107_spill] sm:$0xff] }
 0x895   :  { %30366 = vmatprep.mubr.f32.mxu1 %v44530_v56 }
 0x896   :  { %34952 = vmatmul.mubr.msk.f32.gmra.mrb[58].mxu0 %vm177_vm1, %v42508_v48 }
 0x897   :  { %35157 = vmatmul.mubr.msk.f32.vlgmr.msra.gmra.mrb[28].mxu1 %vm177_vm1, %v42557_v49  ;;  %21789 = vmatprep.mubr.f32.mxu0 %v44530_v56 }
 0x898   :  { %30380 = vmatpush1.msra.mxu1 %v44830_v24  ;;  %30372 = vmatprep.mubr.f32.mxu1 %v44530_v56  ;;  %v42684_v24 = vld [vmem:[%s44288_s3 + $0x150] sm:$0xff] }
 0x899   :  { %30531 = vmatprep.subr.mxu1 %v44831_v21 }
 0x89a   :  { %34953 = vmatmul.mubr.msk.f32.vlgmr.msra.gmra.mrb[28].mxu0 %vm177_vm1, %v42493_v59 }
 0x89b   :  { %21803 = vmatpush1.msra.mxu0 %v44832_v27  ;;  %35158 = vmatmul.mubr.msk.f32.gmra.mrb[30].mxu1 %vm177_vm1, %v42570_v6  ;;  %v44839_v27 = vld [vmem:[#allocation62_spill] sm:$0xff] }
 0x89c   :  { %21879 = vmatprep.subr.mxu0 %v41918_v8  ;;  %21795 = vmatprep.mubr.f32.mxu0 %v44530_v56  ;;  %v44833_v8 = vld [vmem:[#allocation109_spill] sm:$0xff] }
 0x89d   :  { %30443 = vmatprep.mubr.f32.mxu1 %v44530_v56 }
 0x89e   :  { %34954 = vmatmul.mubr.msk.f32.gmra.mrb[30].mxu0 %vm177_vm1, %v42508_v48 }
 0x89f   :  { %35159 = vmatmul.mubr.msk.f32.vlgmr.msra.gmra.mrb[8].mxu1 %vm177_vm1, %v42557_v49  ;;  %21866 = vmatprep.mubr.f32.mxu0 %v44530_v56 }
 0x8a0   :  { %30532 = vmatpush1.msra.mxu1 %v40453_v29  ;;  %30449 = vmatprep.mubr.f32.mxu1 %v44530_v56  ;;  %v21983_v29 = vpop.permute.xlu0 %21982 }
 0x8a1   :  { %30608 = vmatprep.subr.mxu1 %v40475_v19  ;;  %v44834_v19 = vld [vmem:[#allocation30_spill] sm:$0xff] }
 0x8a2   :  { %34955 = vmatmul.mubr.msk.f32.vlgmr.msra.gmra.mrb[32].mxu0 %vm177_vm1, %v42493_v59 }
 0x8a3   :  { %21880 = vmatpush1.msra.mxu0 %v44833_v8  ;;  %35160 = vmatmul.mubr.msk.f32.gmra.mrb[10].mxu1 %vm177_vm1, %v42570_v6  ;;  %v42700_v8 = vld [vmem:[%s44288_s3 + $0x158] sm:$0xff] }
 0x8a4   :  { %22046 = vmatprep.subr.mxu0 %v41952_v5  ;;  %21872 = vmatprep.mubr.f32.mxu0 %v44530_v56  ;;  %v22012_v5 = vsel %vm8850_vm12, %v21983_v29, %v41730_v52  ;;  %v44835_v52 = vld [vmem:[#allocation47_spill] sm:$0xff]  ;;  %v44840_v29 = vld [vmem:[#allocation94_spill] sm:$0xff] }
 0x8a5   :  { %30595 = vmatprep.mubr.f32.mxu1 %v44530_v56 }
 0x8a6   :  { %34956 = vmatmul.mubr.msk.f32.gmra.mrb[34].mxu0 %vm177_vm1, %v42508_v48 }
 0x8a7   :  { %35163 = vmatmul.mubr.msk.f32.vlgmr.msra.gmra.mrb[12].mxu1 %vm177_vm1, %v42557_v49  ;;  %21943 = vmatprep.mubr.f32.mxu0 %v44530_v56 }
 0x8a8   :  { %30609 = vmatpush1.msra.mxu1 %v40465_v54  ;;  %30601 = vmatprep.mubr.f32.mxu1 %v44530_v56  ;;  %v42642_v54 = vld [vmem:[%s44288_s3 + $0x60] sm:$0xff] }
 0x8a9   :  { %30685 = vmatprep.subr.mxu1 %v44834_v19 }
 0x8aa   :  { %34957 = vmatmul.mubr.msk.f32.vlgmr.msra.gmra.mrb[36].mxu0 %vm177_vm1, %v42493_v59  ;;  %v42647_v59 = vpop.permute.xlu1 %30789 }
 0x8ab   :  { %22047 = vmatpush1.msra.mxu0 %v22012_v5  ;;  %35164 = vmatmul.mubr.msk.f32.gmra.mrb[14].mxu1 %vm177_vm1, %v42570_v6 }
 0x8ac   :  { %22123 = vmatprep.subr.mxu0 %v41984_v45  ;;  %21949 = vmatprep.mubr.f32.mxu0 %v44530_v56  ;;  %v44836_v45 = vld [vmem:[#allocation32_spill] sm:$0xff] }
 0x8ad   :  { %30672 = vmatprep.mubr.f32.mxu1 %v44530_v56 }
 0x8ae   :  { %34958 = vmatmul.mubr.msk.f32.gmra.mrb[38].mxu0 %vm177_vm1, %v42508_v48  ;;  %v42657_v48 = vld [vmem:[%s44288_s3 + $0x68] sm:$0xff] }
 0x8af   :  { %35165 = vmatmul.mubr.msk.f32.vlgmr.msra.gmra.mrb[16].mxu1 %vm177_vm1, %v42557_v49  ;;  %22110 = vmatprep.mubr.f32.mxu0 %v44530_v56 }
 0x8b0   :  { %30686 = vmatpush1.msra.mxu1 %v44835_v52  ;;  %30678 = vmatprep.mubr.f32.mxu1 %v44530_v56  ;;  %v44844_v52 = vld [vmem:[#allocation38_spill] sm:$0xff] }
 0x8b1   :  { %30799 = vmatprep.subr.mxu1 %v44836_v45 }
 0x8b2   :  { %34959 = vmatmul.mubr.msk.f32.vlgmr.msra.gmra.mrb[12].mxu0 %vm177_vm1, %v42642_v54 }
 0x8b3   :  { %22124 = vmatpush1.msra.mxu0 %v41925_v47  ;;  %35166 = vmatmul.mubr.msk.f32.gmra.mrb[18].mxu1 %vm177_vm1, %v42570_v6  ;;  %v21999_v47 = vpop.permute.xlu1 %21998 }
 0x8b4   :  { %22200 = vmatprep.subr.mxu0 %v42025_v37  ;;  %22116 = vmatprep.mubr.f32.mxu0 %v44530_v56  ;;  %v42675_v37 = vsel %vm8850_vm12, %v41804_v26, %v21999_v47 }
 0x8b5   :  { %30749 = vmatprep.mubr.f32.mxu1 %v44530_v56 }
 0x8b6   :  { %34960 = vmatmul.mubr.msk.f32.gmra.mrb[14].mxu0 %vm177_vm1, %v42657_v48 }
 0x8b7   :  { %35167 = vmatmul.mubr.msk.f32.vlgmr.msra.gmra.mrb[20].mxu1 %vm177_vm1, %v42557_v49  ;;  %22187 = vmatprep.mubr.f32.mxu0 %v44530_v56 }
 0x8b8   :  { %30800 = vmatpush1.msra.mxu1 %v44837_v39  ;;  %30755 = vmatprep.mubr.f32.mxu1 %v44530_v56  ;;  %v44850_v39 = vld [vmem:[#allocation59_spill] sm:$0xff] }
 0x8b9   :  { %30876 = vmatprep.subr.mxu1 %v44838_v14  ;;  %v42858_v14 = vsel %vm23894_vm0, %v41841_v25, %v44850_v39  ;;  %v31363_v25 = vpop.permute.xlu0 %31362  ;;  %v44866_v39 = vld [vmem:[#allocation17_spill] sm:$0xff] }
 0x8ba   :  { %34961 = vmatmul.mubr.msk.f32.vlgmr.msra.gmra.mrb[16].mxu0 %vm177_vm1, %v42642_v54 }
 0x8bb   :  { %22201 = vmatpush1.msra.mxu0 %v41959_v7  ;;  %35168 = vmatmul.mubr.msk.f32.gmra.mrb[22].mxu1 %vm177_vm1, %v42570_v6 }
 0x8bc   :  { %22277 = vmatprep.subr.mxu0 %v42675_v37  ;;  %22193 = vmatprep.mubr.f32.mxu0 %v44530_v56 }
 0x8bd   :  { %30863 = vmatprep.mubr.f32.mxu1 %v44530_v56  ;;  %v19833_v21 = vpop.f32.mrb[44].mxu0 }
 0x8be   :  { %34962 = vmatmul.mubr.msk.f32.gmra.mrb[18].mxu0 %vm177_vm1, %v42657_v48  ;;  %v42690_v26 = vadd.f32 %v19833_v21, %v42536_v46  ;;  %v19835_v7 = vpop.f32.mrb[45].mxu0  ;;  %v44854_v21 = vld [vmem:[#allocation78_spill] sm:$0xff] }
 0x8bf   :  { %35169 = vmatmul.mubr.msk.f32.vlgmr.msra.gmra.mrb[24].mxu1 %vm177_vm1, %v42684_v24  ;;  %22264 = vmatprep.mubr.f32.mxu0 %v44530_v56  ;;  %v44855_v7 = vld [vmem:[#allocation110_spill] sm:$0xff] }
 0x8c0   :  { %30877 = vmatpush1.msra.mxu1 %v44839_v27  ;;  %30869 = vmatprep.mubr.f32.mxu1 %v44530_v56  ;;  %v37040_v27 = vld [vmem:[%s44288_s3 + $0xa8] sm:$0xff] }
 0x8c1   :  { %30953 = vmatprep.subr.mxu1 %v44840_v29  ;;  %v19838_v19 = vpop.f32.mrb[46].mxu0 }
 0x8c2   :  { %34963 = vmatmul.mubr.msk.f32.vlgmr.msra.gmra.mrb[20].mxu0 %vm177_vm1, %v42642_v54  ;;  %v42706_v46 = vadd.f32 %v19838_v19, %v42547_v16  ;;  %v19840_v5 = vpop.f32.mrb[47].mxu0  ;;  %v44841_v16 = vld [vmem:[#allocation33_spill] sm:$0xff]  ;;  %v44857_v19 = vld [vmem:[#allocation80_spill] sm:$0xff] }
 0x8c3   :  { %22278 = vmatpush1.msra.mxu0 %v41996_v34  ;;  %35170 = vmatmul.mubr.msk.f32.gmra.mrb[26].mxu1 %vm177_vm1, %v42700_v8  ;;  %v44842_v34 = vld [vmem:[#allocation70_spill] sm:$0xff]  ;;  %v42945_v5 = vld [vmem:[%s44288_s3 + $0x170] sm:$0xff] }
 0x8c4   :  { %22352 = vmatprep.subr.mxu0 %v42055_v12  ;;  %22270 = vmatprep.mubr.f32.mxu0 %v44530_v56  ;;  %v42726_v12 = vsel %vm8850_vm12, %v21999_v47, %v41691_v50  ;;  %v44843_v50 = vld [vmem:[#allocation64_spill] sm:$0xff] }
 0x8c5   :  { %30940 = vmatprep.mubr.f32.mxu1 %v44530_v56 }
 0x8c6   :  { %34964 = vmatmul.mubr.msk.f32.gmra.mrb[22].mxu0 %vm177_vm1, %v42657_v48 }
 0x8c7   :  { %35171 = vmatmul.mubr.msk.f32.vlgmr.msra.gmra.mrb[28].mxu1 %vm177_vm1, %v42684_v24  ;;  %22341 = vmatprep.mubr.f32.mxu0 %v44530_v56 }
 0x8c8   :  { %30954 = vmatpush1.msra.mxu1 %v44841_v16  ;;  %30946 = vmatprep.mubr.f32.mxu1 %v44530_v56  ;;  %v37042_v16 = vld [vmem:[%s44288_s3 + $0xb8] sm:$0xff] }
 0x8c9   :  { %31105 = vmatprep.subr.mxu1 %v44842_v34  ;;  %v42960_v34 = vld [vmem:[%s44288_s3 + $0x178] sm:$0xff] }
 0x8ca   :  { %34965 = vmatmul.mubr.msk.f32.vlgmr.msra.gmra.mrb[60].mxu0 %vm177_vm1, %v42642_v54 }
 0x8cb   :  { %22353 = vmatpush1.msra.mxu0 %v42726_v12  ;;  %35172 = vmatmul.mubr.msk.f32.gmra.mrb[30].mxu1 %vm177_vm1, %v42700_v8 }
 0x8cc   :  { %22429 = vmatprep.subr.mxu0 %v42081_v2  ;;  %22346 = vmatprep.mubr.f32.mxu0 %v44530_v56  ;;  %v44845_v2 = vld [vmem:[#allocation36_spill] sm:$0xff] }
 0x8cd   :  { %31017 = vmatprep.mubr.f32.mxu1 %v44530_v56 }
 0x8ce   :  { %34966 = vmatmul.mubr.msk.f32.gmra.mrb[62].mxu0 %vm177_vm1, %v42657_v48 }
 0x8cf   :  { %35173 = vmatmul.mubr.msk.f32.vlgmr.msra.gmra.mrb[8].mxu1 %vm177_vm1, %v42684_v24  ;;  %22416 = vmatprep.mubr.f32.mxu0 %v44530_v56 }
 0x8d0   :  { %31106 = vmatpush1.msra.mxu1 %v44843_v50  ;;  %31023 = vmatprep.mubr.f32.mxu1 %v44530_v56  ;;  %v44859_v50 = vld [vmem:[#allocation43_spill] sm:$0xff] }
 0x8d1   :  { %31182 = vmatprep.subr.mxu1 %v44844_v52  ;;  %v37043_v52 = vld [vmem:[%s44288_s3 + $0xc0] sm:$0xff] }
 0x8d2   :  { %34967 = vmatmul.mubr.msk.f32.vlgmr.msra.gmra.mrb[28].mxu0 %vm177_vm1, %v42642_v54 }
 0x8d3   :  { %22430 = vmatpush1.msra.mxu0 %v42032_v32  ;;  %35174 = vmatmul.mubr.msk.f32.gmra.mrb[10].mxu1 %vm177_vm1, %v42700_v8  ;;  %v44846_v32 = vld [vmem:[#allocation66_spill] sm:$0xff] }
 0x8d4   :  { %22506 = vmatprep.subr.mxu0 %v42108_v53  ;;  %22422 = vmatprep.mubr.f32.mxu0 %v44530_v56  ;;  %v30791_v45 = vsel %vm1500_vm2, %v44846_v32, %v42647_v59  ;;  %v22610_v53 = vpop.permute.xlu1 %22609  ;;  %v44847_v59 = vld [vmem:[#allocation35_spill] sm:$0xff] }
 0x8d5   :  { %31169 = vmatprep.mubr.f32.mxu1 %v44530_v56  ;;  %v37044_v32 = vld [vmem:[%s44288_s3 + $0xc8] sm:$0xff] }
 0x8d6   :  { %34968 = vmatmul.mubr.msk.f32.gmra.mrb[30].mxu0 %vm177_vm1, %v42657_v48 }
 0x8d7   :  { %35177 = vmatmul.mubr.msk.f32.vlgmr.msra.gmra.mrb[12].mxu1 %vm177_vm1, %v42684_v24  ;;  %22493 = vmatprep.mubr.f32.mxu0 %v44530_v56 }
 0x8d8   :  { %31183 = vmatpush1.msra.mxu1 %v44845_v2  ;;  %31175 = vmatprep.mubr.f32.mxu1 %v44530_v56  ;;  %v33081_v2 = vld [vmem:[%s44289_s4] sm:$0xff] }
 0x8d9   :  { %31259 = vmatprep.subr.mxu1 %v30791_v45  ;;  %33085 = vperm.xlu0 %36626, %v33081_v2   ;;  %v37045_v45 = vld [vmem:[%s44288_s3 + $0xd0] sm:$0xff] }
 0x8da   :  { %34969 = vmatmul.mubr.msk.f32.vlgmr.msra.gmra.mrb[32].mxu0 %vm177_vm1, %v42642_v54 }
 0x8db   :  { %22507 = vmatpush1.msra.mxu0 %v42062_v9  ;;  %35178 = vmatmul.mubr.msk.f32.gmra.mrb[14].mxu1 %vm177_vm1, %v42700_v8  ;;  %v22639_v9 = vsel %vm10320_vm14, %v22610_v53, %v41928_v1  ;;  %v44848_v1 = vld [vmem:[#allocation8_spill] sm:$0xff]  ;;  %v37046_v53 = vld [vmem:[%s44288_s3 + $0xd8] sm:$0xff] }
 0x8dc   :  { %22673 = vmatprep.subr.mxu0 %v42134_v42  ;;  %22499 = vmatprep.mubr.f32.mxu0 %v44530_v56  ;;  %v42801_v42 = vsel %vm10320_vm14, %v41760_v62, %v44848_v1  ;;  %v42825_v62 = vld [vmem:[%s44288_s3 + $0x168] sm:$0xff]  ;;  %v37047_v1 = vld [vmem:[%s44288_s3 + $0xe0] sm:$0xff] }
 0x8dd   :  { %31246 = vmatprep.mubr.f32.mxu1 %v44530_v56 }
 0x8de   :  { %34970 = vmatmul.mubr.msk.f32.gmra.mrb[34].mxu0 %vm177_vm1, %v42657_v48 }
 0x8df   :  { %35179 = vmatmul.mubr.msk.f32.vlgmr.msra.gmra.mrb[16].mxu1 %vm177_vm1, %v42684_v24  ;;  %22570 = vmatprep.mubr.f32.mxu0 %v44530_v56 }
 0x8e0   :  { %31260 = vmatpush1.msra.mxu1 %v44847_v59  ;;  %31252 = vmatprep.mubr.f32.mxu1 %v44530_v56 }
 0x8e1   :  { %31372 = vmatprep.subr.mxu1 %v41217_v55  ;;  %v37033_v55 = vld [vmem:[%s44288_s3 + $0x70] sm:$0xff] }
 0x8e2   :  { %34971 = vmatmul.mubr.msk.f32.vlgmr.msra.gmra.mrb[36].mxu0 %vm177_vm1, %v42642_v54 }
 0x8e3   :  { %22674 = vmatpush1.msra.mxu0 %v22639_v9  ;;  %35180 = vmatmul.mubr.msk.f32.gmra.mrb[18].mxu1 %vm177_vm1, %v42700_v8 }
 0x8e4   :  { %22750 = vmatprep.subr.mxu0 %v42160_v57  ;;  %22576 = vmatprep.mubr.f32.mxu0 %v44530_v56 }
 0x8e5   :  { %31323 = vmatprep.mubr.f32.mxu1 %v44530_v56 }
 0x8e6   :  { %34972 = vmatmul.mubr.msk.f32.gmra.mrb[38].mxu0 %vm177_vm1, %v42657_v48 }
 0x8e7   :  { %35181 = vmatmul.mubr.msk.f32.vlgmr.msra.gmra.mrb[20].mxu1 %vm177_vm1, %v42684_v24  ;;  %22737 = vmatprep.mubr.f32.mxu0 %v44530_v56 }
 0x8e8   :  { %31373 = vmatpush1.msra.mxu1 %v41187_v15  ;;  %31329 = vmatprep.mubr.f32.mxu1 %v44530_v56  ;;  %v37034_v15 = vld [vmem:[%s44288_s3 + $0x78] sm:$0xff] }
 0x8e9   :  { %31449 = vmatprep.subr.mxu1 %v41243_v4  ;;  %v42810_v4 = vld [vmem:[%s44288_s3 + $0x160] sm:$0xff] }
 0x8ea   :  { %34973 = vmatmul.mubr.msk.f32.vlgmr.msra.gmra.mrb[12].mxu0 %vm177_vm1, %v37033_v55 }
 0x8eb   :  { %22751 = vmatpush1.msra.mxu0 %v42115_v23  ;;  %35182 = vmatmul.mubr.msk.f32.gmra.mrb[22].mxu1 %vm177_vm1, %v42700_v8  ;;  %v44849_v23 = vld [vmem:[#allocation57_spill] sm:$0xff] }
 0x8ec   :  { %22904 = vmatprep.subr.mxu0 %v42801_v42  ;;  %22743 = vmatprep.mubr.f32.mxu0 %v44530_v56  ;;  %v42833_v57 = vsel %vm23266_vm3, %v41809_v10, %v44849_v23  ;;  %v37048_v23 = vld [vmem:[%s44288_s3 + $0xe8] sm:$0xff] }
 0x8ed   :  { %31436 = vmatprep.mubr.f32.mxu1 %v44530_v56 }
 0x8ee   :  { %34974 = vmatmul.mubr.msk.f32.gmra.mrb[14].mxu0 %vm177_vm1, %v37034_v15 }
 0x8ef   :  { %35183 = vmatmul.mubr.msk.f32.vlgmr.msra.gmra.mrb[24].mxu1 %vm177_vm1, %v42810_v4  ;;  %22814 = vmatprep.mubr.f32.mxu0 %v44530_v56 }
 0x8f0   :  { %31450 = vmatpush1.msra.mxu1 %v41201_v51  ;;  %31442 = vmatprep.mubr.f32.mxu1 %v44530_v56 }
 0x8f1   :  { %31526 = vmatprep.subr.mxu1 %v42041_v43 }
 0x8f2   :  { %34975 = vmatmul.mubr.msk.f32.vlgmr.msra.gmra.mrb[16].mxu0 %vm177_vm1, %v37033_v55 }
 0x8f3   :  { %22905 = vmatpush1.msra.mxu0 %v42167_v33  ;;  %35184 = vmatmul.mubr.msk.f32.gmra.mrb[26].mxu1 %vm177_vm1, %v42825_v62 }
 0x8f4   :  { %23532 = vmatprep.subr.mxu0 %v42833_v57  ;;  %22820 = vmatprep.mubr.f32.mxu0 %v44530_v56 }
 0x8f5   :  { %v20461_v51 = vpop.f32.mrb[48].mxu0  ;;  %31513 = vmatprep.mubr.f32.mxu1 %v44530_v56 }
 0x8f6   :  { %v42841_v54 = vadd.f32 %v20461_v51, %v42690_v26  ;;  %34976 = vmatmul.mubr.msk.f32.gmra.mrb[18].mxu0 %vm177_vm1, %v37034_v15  ;;  %v20463_v33 = vpop.f32.mrb[49].mxu0  ;;  %v37039_v26 = vld [vmem:[%s44288_s3 + $0xa0] sm:$0xff]  ;;  %v44862_v51 = vld [vmem:[#allocation77_spill] sm:$0xff] }
 0x8f7   :  { %35185 = vmatmul.mubr.msk.f32.vlgmr.msra.gmra.mrb[28].mxu1 %vm177_vm1, %v42810_v4  ;;  %22968 = vmatprep.mubr.f32.mxu0 %v44530_v56  ;;  %v44863_v33 = vld [vmem:[#allocation44_spill] sm:$0xff] }
 0x8f8   :  { %31527 = vmatpush1.msra.mxu1 %v41222_v30  ;;  %31519 = vmatprep.mubr.f32.mxu1 %v44530_v56  ;;  %v37035_v30 = vld [vmem:[%s44288_s3 + $0x80] sm:$0xff] }
 0x8f9   :  { %31678 = vmatprep.subr.mxu1 %v44760_v28  ;;  %v20466_v10 = vpop.f32.mrb[50].mxu0  ;;  %v37036_v28 = vld [vmem:[%s44288_s3 + $0x88] sm:$0xff] }
 0x8fa   :  { %v42851_v48 = vadd.f32 %v20466_v10, %v42706_v46  ;;  %34979 = vmatmul.mubr.msk.f32.vlgmr.msra.gmra.mrb[64].mxu0 %vm177_vm1, %v37033_v55  ;;  %v20468_v47 = vpop.f32.mrb[51].mxu0  ;;  %v37041_v46 = vld [vmem:[%s44288_s3 + $0xb0] sm:$0xff]  ;;  %v37050_v10 = vld [vmem:[%s44288_s3 + $0xf8] sm:$0xff] }
 0x8fb   :  { %23533 = vmatpush1.msra.mxu0 %v42299_v35  ;;  %35186 = vmatmul.mubr.msk.f32.gmra.mrb[30].mxu1 %vm177_vm1, %v42825_v62  ;;  %v37037_v35 = vld [vmem:[%s44288_s3 + $0x90] sm:$0xff]  ;;  %v37051_v47 = vld [vmem:[%s44288_s3 + $0x100] sm:$0xff] }
 0x8fc   :  { %24160 = vmatprep.subr.mxu0 %v42858_v14  ;;  %22973 = vmatprep.mubr.f32.mxu0 %v44530_v56 }
 0x8fd   :  { %31590 = vmatprep.mubr.f32.mxu1 %v44530_v56 }
 0x8fe   :  { %34980 = vmatmul.mubr.msk.f32.gmra.mrb[66].mxu0 %vm177_vm1, %v37034_v15 }
 0x8ff   :  { %35187 = vmatmul.mubr.msk.f32.vlgmr.msra.gmra.mrb[8].mxu1 %vm177_vm1, %v42810_v4  ;;  %23596 = vmatprep.mubr.f32.mxu0 %v44530_v56 }
 0x900   :  { %31679 = vmatpush1.msra.mxu1 %v44761_v40  ;;  %31596 = vmatprep.mubr.f32.mxu1 %v44530_v56  ;;  %v44851_v40 = vld [vmem:[#allocation71_spill] sm:$0xff] }
 0x901   :  { %31755 = vmatprep.subr.mxu1 %v44762_v41  ;;  %v31364_v41 = vsel %vm2970_vm4, %v44851_v40, %v31363_v25  ;;  %v44868_v25 = vld [vmem:[#allocation95_spill] sm:$0xff]  ;;  %vm34643_vm4 = vcmask 15360  }
 0x902   :  { %34993 = vmatmul.mubr.msk.f32.vlgmr.msra.gmra.mrb[68].mxu0 %vm177_vm1, %v37035_v30  ;;  %v37052_v30 = vld [vmem:[%s44288_s3 + $0x108] sm:$0xff] }
 0x903   :  { %24161 = vmatpush1.msra.mxu0 %v42435_v20  ;;  %35188 = vmatmul.mubr.msk.f32.gmra.mrb[10].mxu1 %vm177_vm1, %v42825_v62  ;;  %v44852_v20 = vld [vmem:[#allocation97_spill] sm:$0xff]  ;;  %v44869_v40 = vld [vmem:[#allocation27_spill] sm:$0xff] }
 0x904   :  { %24729 = vmatprep.subr.mxu0 %v40450_v38  ;;  %23601 = vmatprep.mubr.f32.mxu0 %v44530_v56 }
 0x905   :  { %31742 = vmatprep.mubr.f32.mxu1 %v44530_v56 }
 0x906   :  { %34994 = vmatmul.mubr.msk.f32.gmra.mrb[70].mxu0 %vm177_vm1, %v37036_v28  ;;  %v37053_v28 = vld [vmem:[%s44288_s3 + $0x110] sm:$0xff] }
 0x907   :  { %35191 = vmatmul.mubr.msk.f32.vlgmr.msra.gmra.mrb[12].mxu1 %vm177_vm1, %v42810_v4  ;;  %24224 = vmatprep.mubr.f32.mxu0 %v44530_v56 }
 0x908   :  { %31756 = vmatpush1.msra.mxu1 %v44764_v22  ;;  %31748 = vmatprep.mubr.f32.mxu1 %v44530_v56  ;;  %v37038_v22 = vld [vmem:[%s44288_s3 + $0x98] sm:$0xff] }
 0x909   :  { %31832 = vmatprep.subr.mxu1 %v31364_v41  ;;  %v43085_v41 = vld [vmem:[%s44288_s3 + $0x180] sm:$0xff] }
 0x90a   :  { %35007 = vmatmul.mubr.msk.f32.vlgmr.msra.gmra.mrb[72].mxu0 %vm177_vm1, %v37037_v35  ;;  %v37054_v35 = vld [vmem:[%s44288_s3 + $0x118] sm:$0xff] }
 0x90b   :  { %24730 = vmatpush1.msra.mxu0 %v44828_v61  ;;  %35192 = vmatmul.mubr.msk.f32.gmra.mrb[14].mxu1 %vm177_vm1, %v42825_v62  ;;  %v44853_v61 = vld [vmem:[#allocation41_spill] sm:$0xff] }
 0x90c   :  { %25303 = vmatprep.subr.mxu0 %v44852_v20  ;;  %24229 = vmatprep.mubr.f32.mxu0 %v44530_v56 }
 0x90d   :  { %31819 = vmatprep.mubr.f32.mxu1 %v44530_v56 }
 0x90e   :  { %35008 = vmatmul.mubr.msk.f32.gmra.mrb[74].mxu0 %vm177_vm1, %v37038_v22  ;;  %v43100_v22 = vld [vmem:[%s44288_s3 + $0x188] sm:$0xff] }
 0x90f   :  { %35193 = vmatmul.mubr.msk.f32.vlgmr.msra.gmra.mrb[16].mxu1 %vm177_vm1, %v42810_v4  ;;  %24793 = vmatprep.mubr.f32.mxu0 %v44530_v56 }
 0x910   :  { %31833 = vmatpush1.msra.mxu1 %v44853_v61  ;;  %31825 = vmatprep.mubr.f32.mxu1 %v44530_v56  ;;  %v37055_v61 = vld [vmem:[%s44288_s3 + $0x120] sm:$0xff] }
 0x911   :  { %31945 = vmatprep.subr.mxu1 %v44854_v21  ;;  %v44871_v21 = vld [vmem:[#allocation45_spill] sm:$0xff] }
 0x912   :  { %35021 = vmatmul.mubr.msk.f32.vlgmr.msra.gmra.mrb[76].mxu0 %vm177_vm1, %v37039_v26 }
 0x913   :  { %25304 = vmatpush1.msra.mxu0 %v44840_v29  ;;  %35194 = vmatmul.mubr.msk.f32.gmra.mrb[18].mxu1 %vm177_vm1, %v42825_v62  ;;  %v44856_v29 = vld [vmem:[#allocation73_spill] sm:$0xff] }
 0x914   :  { %25876 = vmatprep.subr.mxu0 %v44855_v7  ;;  %24798 = vmatprep.mubr.f32.mxu0 %v44530_v56 }
 0x915   :  { %31896 = vmatprep.mubr.f32.mxu1 %v44530_v56 }
 0x916   :  { %35022 = vmatmul.mubr.msk.f32.gmra.mrb[78].mxu0 %vm177_vm1, %v37040_v27 }
 0x917   :  { %35195 = vmatmul.mubr.msk.f32.vlgmr.msra.gmra.mrb[20].mxu1 %vm177_vm1, %v42810_v4  ;;  %25367 = vmatprep.mubr.f32.mxu0 %v44530_v56 }
 0x918   :  { %31946 = vmatpush1.msra.mxu1 %v44856_v29  ;;  %31902 = vmatprep.mubr.f32.mxu1 %v44530_v56 }
 0x919   :  { %32022 = vmatprep.subr.mxu1 %v44857_v19 }
 0x91a   :  { %35035 = vmatmul.mubr.msk.f32.vlgmr.msra.gmra.mrb[80].mxu0 %vm177_vm1, %v37041_v46 }
 0x91b   :  { %25877 = vmatpush1.msra.mxu0 %v42041_v43  ;;  %35196 = vmatmul.mubr.msk.f32.gmra.mrb[22].mxu1 %vm177_vm1, %v42825_v62  ;;  %v44858_v43 = vld [vmem:[#allocation76_spill] sm:$0xff] }
 0x91c   :  { %26449 = vmatprep.subr.mxu0 %v42261_v0  ;;  %25372 = vmatprep.mubr.f32.mxu0 %v44530_v56 }
 0x91d   :  { %32009 = vmatprep.mubr.f32.mxu1 %v44530_v56 }
 0x91e   :  { %35036 = vmatmul.mubr.msk.f32.gmra.mrb[82].mxu0 %vm177_vm1, %v37042_v16  ;;  %v44878_v16 = vld [vmem:[#allocation82_spill] sm:$0xff] }
 0x91f   :  { %35197 = vmatmul.mubr.msk.f32.vlgmr.msra.gmra.mrb[24].mxu1 %vm177_vm1, %v42945_v5  ;;  %25940 = vmatprep.mubr.f32.mxu0 %v44530_v56 }
 0x920   :  { %32023 = vmatpush1.msra.mxu1 %v44858_v43  ;;  %32015 = vmatprep.mubr.f32.mxu1 %v44530_v56 }
 0x921   :  { %32099 = vmatprep.subr.mxu1 %v44859_v50 }
 0x922   :  { %35049 = vmatmul.mubr.msk.f32.vlgmr.msra.gmra.mrb[84].mxu0 %vm177_vm1, %v37043_v52 }
 0x923   :  { %26450 = vmatpush1.msra.mxu0 %v44859_v50  ;;  %35198 = vmatmul.mubr.msk.f32.gmra.mrb[26].mxu1 %vm177_vm1, %v42960_v34 }
 0x924   :  { %27022 = vmatprep.subr.mxu0 %v42413_v11  ;;  %25945 = vmatprep.mubr.f32.mxu0 %v44530_v56 }
 0x925   :  { %32086 = vmatprep.mubr.f32.mxu1 %v44530_v56 }
 0x926   :  { %35050 = vmatmul.mubr.msk.f32.gmra.mrb[86].mxu0 %vm177_vm1, %v37044_v32 }
 0x927   :  { %35199 = vmatmul.mubr.msk.f32.vlgmr.msra.gmra.mrb[28].mxu1 %vm177_vm1, %v42945_v5  ;;  %26513 = vmatprep.mubr.f32.mxu0 %v44530_v56 }
 0x928   :  { %32100 = vmatpush1.msra.mxu1 %v44781_v17  ;;  %32092 = vmatprep.mubr.f32.mxu1 %v44530_v56 }
 0x929   :  { %32251 = vmatprep.subr.mxu1 %v44786_v18 }
 0x92a   :  { %35063 = vmatmul.mubr.msk.f32.vlgmr.msra.gmra.mrb[88].mxu0 %vm177_vm1, %v37045_v45 }
 0x92b   :  { %27023 = vmatpush1.msra.mxu0 %v42374_v3  ;;  %35200 = vmatmul.mubr.msk.f32.gmra.mrb[30].mxu1 %vm177_vm1, %v42960_v34 }
 0x92c   :  { %27595 = vmatprep.subr.mxu0 %v42577_v63  ;;  %26518 = vmatprep.mubr.f32.mxu0 %v44530_v56  ;;  %v44860_v63 = vld [vmem:[#allocation87_spill] sm:$0xff] }
 0x92d   :  { %v21089_v17 = vpop.f32.mrb[52].mxu0  ;;  %32163 = vmatprep.mubr.f32.mxu1 %v44530_v56 }
 0x92e   :  { %v42997_v18 = vadd.f32 %v21089_v17, %v42841_v54  ;;  %35064 = vmatmul.mubr.msk.f32.gmra.mrb[90].mxu0 %vm177_vm1, %v37046_v53  ;;  %v21091_v59 = vpop.f32.mrb[53].mxu0  ;;  %v37049_v54 = vld [vmem:[%s44288_s3 + $0xf0] sm:$0xff] }
 0x92f   :  { %35201 = vmatmul.mubr.msk.f32.vlgmr.msra.gmra.mrb[8].mxu1 %vm177_vm1, %v42945_v5  ;;  %27086 = vmatprep.mubr.f32.mxu0 %v44530_v56 }
 0x930   :  { %32252 = vmatpush1.msra.mxu1 %v44789_v44  ;;  %32169 = vmatprep.mubr.f32.mxu1 %v44530_v56  ;;  %v31936_v44 = vpop.permute.xlu0 %31935 }
 0x931   :  { %32328 = vmatprep.subr.mxu1 %v44860_v63  ;;  %v21094_v9 = vpop.f32.mrb[54].mxu0 }
 0x932   :  { %v43010_v55 = vadd.f32 %v21094_v9, %v42851_v48  ;;  %35077 = vmatmul.mubr.msk.f32.vlgmr.msra.gmra.mrb[92].mxu0 %vm177_vm1, %v37047_v1  ;;  %v21096_v15 = vpop.f32.mrb[55].mxu0  ;;  %v44865_v48 = vld [vmem:[#allocation92_spill] sm:$0xff] }
 0x933   :  { %27596 = vmatpush1.msra.mxu0 %v42526_v60  ;;  %35202 = vmatmul.mubr.msk.f32.gmra.mrb[10].mxu1 %vm177_vm1, %v42960_v34  ;;  %v44861_v60 = vld [vmem:[#allocation83_spill] sm:$0xff] }
 0x934   :  { %28168 = vmatprep.subr.mxu0 %v42726_v12  ;;  %27091 = vmatprep.mubr.f32.mxu0 %v44530_v56  ;;  %v31937_v12 = vsel %vm20129_vm11, %v44862_v51, %v31936_v44 }
 0x935   :  { %32315 = vmatprep.mubr.f32.mxu1 %v44530_v56 }
 0x936   :  { %35078 = vmatmul.mubr.msk.f32.gmra.mrb[94].mxu0 %vm177_vm1, %v37048_v23 }
 0x937   :  { %35205 = vmatmul.mubr.msk.f32.vlgmr.msra.gmra.mrb[12].mxu1 %vm177_vm1, %v42945_v5  ;;  %27659 = vmatprep.mubr.f32.mxu0 %v44530_v56 }
 0x938   :  { %32329 = vmatpush1.msra.mxu1 %v44861_v60  ;;  %32321 = vmatprep.mubr.f32.mxu1 %v44530_v56 }
 0x939   :  { %32405 = vmatprep.subr.mxu1 %v31937_v12 }
 0x93a   :  { %35091 = vmatmul.mubr.msk.f32.vlgmr.msra.gmra.mrb[96].mxu0 %vm177_vm1, %v37049_v54 }
 0x93b   :  { %28169 = vmatpush1.msra.mxu0 %v42675_v37  ;;  %35206 = vmatmul.mubr.msk.f32.gmra.mrb[14].mxu1 %vm177_vm1, %v42960_v34  ;;  %v44864_v37 = vld [vmem:[#allocation86_spill] sm:$0xff] }
 0x93c   :  { %28741 = vmatprep.subr.mxu0 %v44863_v33  ;;  %27664 = vmatprep.mubr.f32.mxu0 %v44530_v56 }
 0x93d   :  { %32392 = vmatprep.mubr.f32.mxu1 %v44530_v56 }
 0x93e   :  { %35092 = vmatmul.mubr.msk.f32.gmra.mrb[98].mxu0 %vm177_vm1, %v37050_v10 }
 0x93f   :  { %35207 = vmatmul.mubr.msk.f32.vlgmr.msra.gmra.mrb[16].mxu1 %vm177_vm1, %v42945_v5  ;;  %28232 = vmatprep.mubr.f32.mxu0 %v44530_v56 }
 0x940   :  { %32406 = vmatpush1.msra.mxu1 %v44864_v37  ;;  %32398 = vmatprep.mubr.f32.mxu1 %v44530_v56 }
 0x941   :  { %32518 = vmatprep.subr.mxu1 %v44865_v48 }
 0x942   :  { %35105 = vmatmul.mubr.msk.f32.vlgmr.msra.gmra.mrb[100].mxu0 %vm177_vm1, %v37051_v47 }
 0x943   :  { %28742 = vmatpush1.msra.mxu0 %v42801_v42  ;;  %35208 = vmatmul.mubr.msk.f32.gmra.mrb[18].mxu1 %vm177_vm1, %v42960_v34  ;;  %v44867_v42 = vld [vmem:[#allocation88_spill] sm:$0xff] }
 0x944   :  { %29314 = vmatprep.subr.mxu0 %v44866_v39  ;;  %28237 = vmatprep.mubr.f32.mxu0 %v44530_v56 }
 0x945   :  { %32469 = vmatprep.mubr.f32.mxu1 %v44530_v56 }
 0x946   :  { %35106 = vmatmul.mubr.msk.f32.gmra.mrb[102].mxu0 %vm177_vm1, %v37052_v30 }
 0x947   :  { %35209 = vmatmul.mubr.msk.f32.vlgmr.msra.gmra.mrb[20].mxu1 %vm177_vm1, %v42945_v5  ;;  %28805 = vmatprep.mubr.f32.mxu0 %v44530_v56 }
 0x948   :  { %32519 = vmatpush1.msra.mxu1 %v44867_v42  ;;  %32475 = vmatprep.mubr.f32.mxu1 %v44530_v56 }
 0x949   :  { %32595 = vmatprep.subr.mxu1 %v44868_v25 }
 0x94a   :  { %35119 = vmatmul.mubr.msk.f32.vlgmr.msra.gmra.mrb[104].mxu0 %vm177_vm1, %v37053_v28 }
 0x94b   :  { %29315 = vmatpush1.msra.mxu0 %v42833_v57  ;;  %35210 = vmatmul.mubr.msk.f32.gmra.mrb[22].mxu1 %vm177_vm1, %v42960_v34  ;;  %v44870_v57 = vld [vmem:[#allocation91_spill] sm:$0xff] }
 0x94c   :  { %29887 = vmatprep.subr.mxu0 %v44869_v40  ;;  %28810 = vmatprep.mubr.f32.mxu0 %v44530_v56 }
 0x94d   :  { %32582 = vmatprep.mubr.f32.mxu1 %v44530_v56 }
 0x94e   :  { %35120 = vmatmul.mubr.msk.f32.gmra.mrb[106].mxu0 %vm177_vm1, %v37054_v35 }
 0x94f   :  { %35211 = vmatmul.mubr.msk.f32.vlgmr.msra.gmra.mrb[24].mxu1 %vm177_vm1, %v43085_v41  ;;  %29378 = vmatprep.mubr.f32.mxu0 %v44530_v56 }
 0x950   :  { %32596 = vmatpush1.msra.mxu1 %v44870_v57  ;;  %32588 = vmatprep.mubr.f32.mxu1 %v44530_v56 }
 0x951   :  { %32672 = vmatprep.subr.mxu1 %v42374_v3  ;;  %v37056_v3 = vld [vmem:[%s44288_s3 + $0x128] sm:$0xff]  ;;  %s37082_s3 = smov 116  }
 0x952   :  { %35133 = vmatmul.mubr.msk.f32.vlgmr.msra.gmra.mrb[108].mxu0 %vm177_vm1, %v37055_v61 }
 0x953   :  { %29888 = vmatpush1.msra.mxu0 %v42858_v14  ;;  %35212 = vmatmul.mubr.msk.f32.gmra.mrb[26].mxu1 %vm177_vm1, %v43100_v22  ;;  %v44872_v14 = vld [vmem:[#allocation34_spill] sm:$0xff] }
 0x954   :  { %30456 = vmatprep.subr.mxu0 %v44871_v21  ;;  %29383 = vmatprep.mubr.f32.mxu0 %v44530_v56 }
 0x955   :  { %32659 = vmatprep.mubr.f32.mxu1 %v44530_v56 }
 0x956   :  { %35134 = vmatmul.mubr.msk.f32.gmra.mrb[110].mxu0 %vm177_vm1, %v37056_v3 }
 0x957   :  { %35213 = vmatmul.mubr.msk.f32.vlgmr.msra.gmra.mrb[28].mxu1 %vm177_vm1, %v43085_v41  ;;  %29951 = vmatprep.mubr.f32.mxu0 %v44530_v56 }
 0x958   :  { %32673 = vmatpush1.msra.mxu1 %v44803_v13  ;;  %32665 = vmatprep.mubr.f32.mxu1 %v44530_v56  ;;  %v44875_v13 = vld [vmem:[#allocation40_spill] sm:$0xff] }
 0x959   :  { %32824 = vmatprep.subr.mxu1 %v41671_v36  ;;  %v44873_v36 = vld [vmem:[#allocation96_spill] sm:$0xff] }
 0x95a   :  { %35147 = vmatmul.mubr.msk.f32.vlgmr.msra.gmra.mrb[112].mxu0 %vm177_vm1, %v42423_v31  ;;  %v32509_v31 = vpop.permute.xlu1 %32508 }
 0x95b   :  { %30457 = vmatpush1.msra.mxu0 %v40450_v38  ;;  %35214 = vmatmul.mubr.msk.f32.gmra.mrb[30].mxu1 %vm177_vm1, %v43100_v22  ;;  %v44874_v38 = vld [vmem:[#allocation102_spill] sm:$0xff] }
 0x95c   :  { %31030 = vmatprep.subr.mxu0 %v44872_v14  ;;  %29956 = vmatprep.mubr.f32.mxu0 %v44530_v56 }
 0x95d   :  { %32736 = vmatprep.mubr.f32.mxu1 %v44530_v56 }
 0x95e   :  { %35148 = vmatmul.mubr.msk.f32.gmra.mrb[114].mxu0 %vm177_vm1, %v42441_v58 }
 0x95f   :  { %35215 = vmatmul.mubr.msk.f32.vlgmr.msra.gmra.mrb[8].mxu1 %vm177_vm1, %v43085_v41  ;;  %30520 = vmatprep.mubr.f32.mxu0 %v44530_v56 }
 0x960   :  { %32825 = vmatpush1.msra.mxu1 %v44873_v36  ;;  %32742 = vmatprep.mubr.f32.mxu1 %v44530_v56 }
 0x961   :  { %32901 = vmatprep.subr.mxu1 %v44874_v38 }
 0x962   :  { %35161 = vmatmul.mubr.msk.f32.vlgmr.msra.gmra.mrb[116].mxu0 %vm177_vm1, %v42557_v49  ;;  %v44876_v49 = vld [vmem:[#allocation100_spill] sm:$0xff] }
 0x963   :  { %31031 = vmatpush1.msra.mxu0 %v44852_v20  ;;  %35216 = vmatmul.mubr.msk.f32.gmra.mrb[10].mxu1 %vm177_vm1, %v43100_v22  ;;  %v44877_v20 = vld [vmem:[#allocation85_spill] sm:$0xff] }
 0x964   :  { %31603 = vmatprep.subr.mxu0 %v44875_v13  ;;  %30525 = vmatprep.mubr.f32.mxu0 %v44530_v56  ;;  %v32510_v29 = vsel %vm20757_vm13, %v44877_v20, %v32509_v31 }
 0x965   :  { %v21716_v58 = vpop.f32.mrb[56].mxu0  ;;  %32888 = vmatprep.mubr.f32.mxu1 %v44530_v56 }
 0x966   :  { %v21962_v26 = vadd.f32 %v21716_v58, %v42997_v18  ;;  %35162 = vmatmul.mubr.msk.f32.gmra.mrb[118].mxu0 %vm177_vm1, %v42570_v6  ;;  %v21718_v27 = vpop.f32.mrb[57].mxu0 }
 0x967   :  { %35219 = vmatmul.mubr.msk.f32.vlgmr.msra.gmra.mrb[12].mxu1 %vm177_vm1, %v43085_v41  ;;  %31094 = vmatprep.mubr.f32.mxu0 %v44530_v56 }
 0x968   :  { %32902 = vmatpush1.msra.mxu1 %v44876_v49  ;;  %32894 = vmatprep.mubr.f32.mxu1 %v44530_v56 }
 0x969   :  { %32978 = vmatprep.subr.mxu1 %v32510_v29  ;;  %v21721_v19 = vpop.f32.mrb[58].mxu0 }
 0x96a   :  { %v21975_v46 = vadd.f32 %v21721_v19, %v43010_v55  ;;  %35175 = vmatmul.mubr.msk.f32.vlgmr.msra.gmra.mrb[120].mxu0 %vm177_vm1, %v42684_v24  ;;  %v21723_v6 = vpop.f32.mrb[59].mxu0  ;;  %v44879_v24 = vld [vmem:[#allocation101_spill] sm:$0xff] }
 0x96b   :  { %31604 = vmatpush1.msra.mxu0 %v44855_v7  ;;  %35220 = vmatmul.mubr.msk.f32.gmra.mrb[14].mxu1 %vm177_vm1, %v43100_v22  ;;  %v44880_v7 = vld [vmem:[#allocation99_spill] sm:$0xff] }
 0x96c   :  { %32176 = vmatprep.subr.mxu0 %v44878_v16  ;;  %31099 = vmatprep.mubr.f32.mxu0 %v44530_v56 }
 0x96d   :  { %32965 = vmatprep.mubr.f32.mxu1 %v44530_v56 }
 0x96e   :  { %35176 = vmatmul.mubr.msk.f32.gmra.mrb[122].mxu0 %vm177_vm1, %v42700_v8 }
 0x96f   :  { %35221 = vmatmul.mubr.msk.f32.vlgmr.msra.gmra.mrb[16].mxu1 %vm177_vm1, %v43085_v41  ;;  %31667 = vmatprep.mubr.f32.mxu0 %v44530_v56 }
 0x970   :  { %32979 = vmatpush1.msra.mxu1 %v44879_v24  ;;  %32971 = vmatprep.mubr.f32.mxu1 %v44530_v56 }
 0x972   :  { %35189 = vmatmul.mubr.msk.f32.vlgmr.msra.gmra.mrb[124].mxu0 %vm177_vm1, %v42810_v4 }
 0x973   :  { %32177 = vmatpush1.msra.mxu0 %v42261_v0  ;;  %35222 = vmatmul.mubr.msk.f32.gmra.mrb[18].mxu1 %vm177_vm1, %v43100_v22 }
 0x974   :  { %32749 = vmatprep.subr.mxu0 %v44880_v7  ;;  %31672 = vmatprep.mubr.f32.mxu0 %v44530_v56 }
 0x975   :  { %33042 = vmatprep.mubr.f32.mxu1 %v44530_v56 }
 0x976   :  { %35190 = vmatmul.mubr.msk.f32.gmra.mrb[126].mxu0 %vm177_vm1, %v42825_v62 }
 0x977   :  { %35223 = vmatmul.mubr.msk.f32.vlgmr.msra.gmra.mrb[20].mxu1 %vm177_vm1, %v43085_v41  ;;  %32240 = vmatprep.mubr.f32.mxu0 %v44530_v56 }
 0x978   :  { %33048 = vmatprep.mubr.f32.mxu1 %v44530_v56 }
 0x97a   :  { %35203 = vmatmul.mubr.msk.f32.vlgmr.msra.gmra.mrb[128].mxu0 %vm177_vm1, %v42945_v5 }
 0x97b   :  { %32750 = vmatpush1.msra.mxu0 %v42413_v11  ;;  %35224 = vmatmul.mubr.msk.f32.gmra.mrb[22].mxu1 %vm177_vm1, %v43100_v22 }
 0x97c   :  { %32245 = vmatprep.mubr.f32.mxu0 %v44530_v56 }
 0x97e   :  { %35204 = vmatmul.mubr.msk.f32.gmra.mrb[130].mxu0 %vm177_vm1, %v42960_v34 }
 0x97f   :  { %32813 = vmatprep.mubr.f32.mxu0 %v44530_v56 }
 0x982   :  { %35217 = vmatmul.mubr.msk.f32.vlgmr.msra.gmra.mrb[132].mxu0 %vm177_vm1, %v43085_v41 }
 0x983   :  { %32818 = vmatprep.mubr.f32.mxu0 %v44530_v56 }
 0x986   :  { %35218 = vmatmul.mubr.msk.f32.gmra.mrb[134].mxu0 %vm177_vm1, %v43100_v22  ;;  %vm33433_vm1 = vcmask 7168  }
 0x995   :  { %v43201_v0 = vpop.f32.mrb[20].mxu0 }
 0x996   :  { %v43203_v11 = vpop.f32.mrb[21].mxu0 }
 0x999   :  { %v43205_v8 = vpop.f32.mrb[22].mxu0 }
 0x99a   :  { %v43207_v4 = vpop.f32.mrb[23].mxu0 }
 0x99d   :  { %v22343_v62 = vpop.f32.mrb[60].mxu0 }
 0x99e   :  { %v22589_v5 = vadd.f32 %v22343_v62, %v21962_v26  ;;  %v22345_v43 = vpop.f32.mrb[61].mxu0 }
 0x9a1   :  { %v22348_v34 = vpop.f32.mrb[62].mxu0 }
 0x9a2   :  { %v22602_v50 = vadd.f32 %v22348_v34, %v21975_v46  ;;  %v22350_v52 = vpop.f32.mrb[63].mxu0 }
 0x9a5   :  { %v43209_v2 = vpop.f32.mrb[28].mxu0 }
 0x9a6   :  { %v43211_v56 = vpop.f32.mrb[29].mxu0 }
 0x9a9   :  { %v43213_v32 = vpop.f32.mrb[30].mxu0 }
 0x9aa   :  { %v43215_v45 = vpop.f32.mrb[31].mxu0 }
 0x9ad   :  { %v43217_v17 = vpop.f32.mrb[32].mxu0 }
 0x9ae   :  { %v43219_v18 = vpop.f32.mrb[33].mxu0 }
 0x9b1   :  { %v43221_v53 = vpop.f32.mrb[34].mxu0 }
 0x9b2   :  { %v43223_v59 = vpop.f32.mrb[35].mxu0 }
 0x9b5   :  { %v43225_v63 = vpop.f32.mrb[36].mxu0 }
 0x9b6   :  { %v43227_v9 = vpop.f32.mrb[37].mxu0 }
 0x9b9   :  { %v43229_v55 = vpop.f32.mrb[38].mxu0 }
 0x9ba   :  { %v43231_v1 = vpop.f32.mrb[39].mxu0 }
 0x9bd   :  { %v43233_v15 = vpop.f32.mrb[12].mxu0 }
 0x9be   :  { %v43235_v44 = vpop.f32.mrb[13].mxu0 }
 0x9c1   :  { %v43237_v23 = vpop.f32.mrb[14].mxu0 }
 0x9c2   :  { %v43239_v60 = vpop.f32.mrb[15].mxu0 }
 0x9c5   :  { %v43241_v51 = vpop.f32.mrb[16].mxu0 }
 0x9c6   :  { %v43243_v12 = vpop.f32.mrb[17].mxu0 }
 0x9c9   :  { %v43245_v54 = vpop.f32.mrb[18].mxu0 }
 0x9ca   :  { %v43247_v33 = vpop.f32.mrb[19].mxu0 }
 0x9cd   :  { %v22970_v10 = vpop.f32.mrb[64].mxu0 }
 0x9ce   :  { %v23216_v37 = vadd.f32 %v22970_v10, %v22589_v5  ;;  %v22972_v48 = vpop.f32.mrb[65].mxu0 }
 0x9d1   :  { %v22975_v47 = vpop.f32.mrb[66].mxu0 }
 0x9d2   :  { %v23229_v39 = vadd.f32 %v22975_v47, %v22602_v50  ;;  %v22977_v30 = vpop.f32.mrb[67].mxu0 }
 0x9d5   :  { %v23598_v42 = vpop.f32.mrb[68].mxu0 }
 0x9d6   :  { %v23844_v25 = vadd.f32 %v23598_v42, %v23216_v37  ;;  %v23600_v28 = vpop.f32.mrb[69].mxu0 }
 0x9d9   :  { %v23603_v40 = vpop.f32.mrb[70].mxu0 }
 0x9da   :  { %v23857_v41 = vadd.f32 %v23603_v40, %v23229_v39  ;;  %v23605_v35 = vpop.f32.mrb[71].mxu0 }
 0x9dd   :  { %v24226_v57 = vpop.f32.mrb[72].mxu0 }
 0x9de   :  { %v24472_v22 = vadd.f32 %v24226_v57, %v23844_v25  ;;  %v24228_v61 = vpop.f32.mrb[73].mxu0 }
 0x9e1   :  { %v24231_v21 = vpop.f32.mrb[74].mxu0 }
 0x9e2   :  { %v24485_v3 = vadd.f32 %v24231_v21, %v23857_v41  ;;  %v24233_v14 = vpop.f32.mrb[75].mxu0 }
 0x9e5   :  { %v24795_v36 = vpop.f32.mrb[76].mxu0 }
 0x9e6   :  { %v25041_v38 = vadd.f32 %v24795_v36, %v24472_v22  ;;  %v24797_v13 = vpop.f32.mrb[77].mxu0 }
 0x9e9   :  { %v24800_v31 = vpop.f32.mrb[78].mxu0 }
 0x9ea   :  { %v25054_v58 = vadd.f32 %v24800_v31, %v24485_v3  ;;  %v24802_v26 = vpop.f32.mrb[79].mxu0 }
 0x9ed   :  { %v25369_v27 = vpop.f32.mrb[80].mxu0 }
 0x9ee   :  { %v25615_v49 = vadd.f32 %v25369_v27, %v25041_v38  ;;  %v25371_v20 = vpop.f32.mrb[81].mxu0 }
 0x9f1   :  { %v25374_v29 = vpop.f32.mrb[82].mxu0 }
 0x9f2   :  { %v25628_v19 = vadd.f32 %v25374_v29, %v25054_v58  ;;  %v25376_v46 = vpop.f32.mrb[83].mxu0 }
 0x9f5   :  { %v25942_v6 = vpop.f32.mrb[84].mxu0 }
 0x9f6   :  { %v26188_v16 = vadd.f32 %v25942_v6, %v25615_v49  ;;  %v25944_v24 = vpop.f32.mrb[85].mxu0 }
 0x9f9   :  { %v25947_v7 = vpop.f32.mrb[86].mxu0 }
 0x9fa   :  { %v26201_v62 = vadd.f32 %v25947_v7, %v25628_v19  ;;  %v25949_v5 = vpop.f32.mrb[87].mxu0 }
 0x9fd   :  { %v26515_v43 = vpop.f32.mrb[88].mxu0 }
 0x9fe   :  { %v26761_v34 = vadd.f32 %v26515_v43, %v26188_v16  ;;  %v26517_v50 = vpop.f32.mrb[89].mxu0  ;;  %v43256_v43 = vpop.permute.xlu0 %33085 }
 0xa01   :  { %v26520_v52 = vpop.f32.mrb[90].mxu0 }
 0xa02   :  { %v26774_v10 = vadd.f32 %v26520_v52, %v26201_v62  ;;  %v26522_v37 = vpop.f32.mrb[91].mxu0 }
 0xa05   :  { %v27088_v48 = vpop.f32.mrb[92].mxu0 }
 0xa06   :  { %v27334_v47 = vadd.f32 %v27088_v48, %v26761_v34  ;;  %v27090_v39 = vpop.f32.mrb[93].mxu0 }
 0xa07   :  { %v43264_v39 = vpop.permute.xlu1 %33090 }
 0xa09   :  { %v27093_v30 = vpop.f32.mrb[94].mxu0 }
 0xa0a   :  { %v27347_v42 = vadd.f32 %v27093_v30, %v26774_v10  ;;  %v27095_v25 = vpop.f32.mrb[95].mxu0 }
 0xa0d   :  { %v27661_v28 = vpop.f32.mrb[96].mxu0 }
 0xa0e   :  { %v27907_v40 = vadd.f32 %v27661_v28, %v27334_v47  ;;  %v27663_v41 = vpop.f32.mrb[97].mxu0 }
 0xa11   :  { %v27666_v35 = vpop.f32.mrb[98].mxu0 }
 0xa12   :  { %v27920_v57 = vadd.f32 %v27666_v35, %v27347_v42  ;;  %v27668_v22 = vpop.f32.mrb[99].mxu0 }
 0xa15   :  { %v28234_v61 = vpop.f32.mrb[100].mxu0 }
 0xa16   :  { %v28480_v21 = vadd.f32 %v28234_v61, %v27907_v40  ;;  %v28236_v3 = vpop.f32.mrb[101].mxu0 }
 0xa19   :  { %v28239_v14 = vpop.f32.mrb[102].mxu0 }
 0xa1a   :  { %v28493_v36 = vadd.f32 %v28239_v14, %v27920_v57  ;;  %v28241_v38 = vpop.f32.mrb[103].mxu0 }
 0xa1d   :  { %v28807_v13 = vpop.f32.mrb[104].mxu0 }
 0xa1e   :  { %v29053_v31 = vadd.f32 %v28807_v13, %v28480_v21  ;;  %v28809_v58 = vpop.f32.mrb[105].mxu0 }
 0xa21   :  { %v28812_v26 = vpop.f32.mrb[106].mxu0 }
 0xa22   :  { %v29066_v27 = vadd.f32 %v28812_v26, %v28493_v36  ;;  %v32584_v49 = vpop.f32.mrb[24].mxu1  ;;  %v28814_v20 = vpop.f32.mrb[107].mxu0 }
 0xa23   :  { %v43250_v29 = vadd.f32 %v32584_v49, %v43233_v15  ;;  %v32586_v19 = vpop.f32.mrb[25].mxu1 }
 0xa24   :  { %v35588_v46 = vadd.f32 %v32586_v19, %v43235_v44 }
 0xa25   :  { %v29380_v6 = vpop.f32.mrb[108].mxu0 }
 0xa26   :  { %v29626_v16 = vadd.f32 %v29380_v6, %v29053_v31  ;;  %v32590_v24 = vpop.f32.mrb[26].mxu1  ;;  %v29382_v7 = vpop.f32.mrb[109].mxu0  ;;  %v43261_v44 = vadd.f32 %v35588_v46, %v43256_v43 }
 0xa27   :  { %v43254_v62 = vadd.f32 %v32590_v24, %v43237_v23  ;;  %v32592_v5 = vpop.f32.mrb[27].mxu1 }
 0xa28   :  { %v35590_v34 = vadd.f32 %v32592_v5, %v43239_v60 }
 0xa29   :  { %v29385_v50 = vpop.f32.mrb[110].mxu0 }
 0xa2a   :  { %v29639_v52 = vadd.f32 %v29385_v50, %v29066_v27  ;;  %v32661_v10 = vpop.f32.mrb[28].mxu1  ;;  %v29387_v15 = vpop.f32.mrb[111].mxu0  ;;  %v43270_v28 = vadd.f32 %v35590_v34, %v43264_v39 }
 0xa2b   :  { %v35591_v37 = vadd.f32 %v32661_v10, %v43241_v51  ;;  %v32663_v48 = vpop.f32.mrb[29].mxu1  ;;  %v33120_v51 = vmax.f32 %v43261_v44, 0.0 }
 0xa2c   :  { %v35592_v47 = vadd.f32 %v32663_v48, %v43243_v12  ;;  %v33133_v36 = vmax.f32 %v43270_v28, 0.0 }
 0xa2d   :  { %v43267_v23 = vadd.f32 %v35591_v37, %v43256_v43  ;;  %v29953_v30 = vpop.f32.mrb[112].mxu0 }
 0xa2e   :  { %v30199_v42 = vadd.f32 %v29953_v30, %v29626_v16  ;;  %v32667_v60 = vpop.f32.mrb[30].mxu1  ;;  %v29955_v25 = vpop.f32.mrb[113].mxu0  ;;  %v43305_v5 = vadd.f32 %v35592_v47, %v43256_v43 }
 0xa2f   :  { %v33121_v40 = vmax.f32 %v43267_v23, 0.0  ;;  %v35593_v41 = vadd.f32 %v32667_v60, %v43245_v54  ;;  %v32669_v35 = vpop.f32.mrb[31].mxu1 }
 0xa30   :  { %v35594_v12 = vadd.f32 %v32669_v35, %v43247_v33  ;;  %v33122_v48 = vmax.f32 %v43305_v5, 0.0 }
 0xa31   :  { %v36627_v57 = vpack.i.bf16 %v33121_v40, %v33120_v51  ;;  %v43281_v22 = vadd.f32 %v35593_v41, %v43264_v39  ;;  %v29958_v61 = vpop.f32.mrb[114].mxu0 }
 0xa32   :  { %v30212_v21 = vadd.f32 %v29958_v61, %v29639_v52  ;;  %v32738_v3 = vpop.f32.mrb[8].mxu1  ;;  %v29960_v14 = vpop.f32.mrb[115].mxu0 }
 0xa33   :  { %v33134_v38 = vmax.f32 %v43281_v22, 0.0  ;;  %v43286_v54 = vadd.f32 %v32738_v3, %v43201_v0  ;;  %v32740_v33 = vpop.f32.mrb[9].mxu1  ;;  %36628 = vrot.lane.b32.xlu1 %v36627_v57, %s37059_s13 }
 0xa34   :  { %v43290_v13 = vadd.f32 %v32740_v33, %v43203_v11 }
 0xa35   :  { %v36632_v31 = vpack.i.bf16 %v33134_v38, %v33133_v36  ;;  %v30522_v58 = vpop.f32.mrb[116].mxu0 }
 0xa36   :  { %v30768_v26 = vadd.f32 %v30522_v58, %v30199_v42  ;;  %v32744_v27 = vpop.f32.mrb[10].mxu1  ;;  %v30524_v49 = vpop.f32.mrb[117].mxu0 }
 0xa37   :  { %v43297_v20 = vadd.f32 %v32744_v27, %v43205_v8  ;;  %36633 = vrot.lane.b32.xlu0 %v36632_v31, %s37059_s13  ;;  %v32746_v0 = vpop.f32.mrb[11].mxu1 }
 0xa38   :  { %v43301_v19 = vadd.f32 %v32746_v0, %v43207_v4 }
 0xa39   :  { %v30527_v11 = vpop.f32.mrb[118].mxu0 }
 0xa3a   :  { %v30781_v46 = vadd.f32 %v30527_v11, %v30212_v21  ;;  %v32890_v6 = vpop.f32.mrb[12].mxu1  ;;  %v30529_v16 = vpop.f32.mrb[119].mxu0 }
 0xa3b   :  { %v35599_v24 = vadd.f32 %v32890_v6, %v43209_v2  ;;  %v32892_v7 = vpop.f32.mrb[13].mxu1  ;;  %v43314_v2 = vadd.f32 %v35594_v12, %v43264_v39  ;;  %v43353_v6 = vadd.f32 %v43254_v62, %v43264_v39  ;;  %v43368_v62 = vadd.f32 %v43250_v29, %v43256_v43 }
 0xa3c   :  { %v35600_v34 = vadd.f32 %v32892_v7, %v43211_v56  ;;  %v43379_v29 = vadd.f32 %v43297_v20, %v43264_v39 }
 0xa3d   :  { %v31096_v8 = vpop.f32.mrb[120].mxu0  ;;  %v33135_v57 = vmax.f32 %v43314_v2, 0.0  ;;  %v43346_v0 = vadd.f32 %v35599_v24, %v43256_v43 }
 0xa3e   :  { %v43309_v50 = vadd.f32 %v35600_v34, %v43256_v43  ;;  %v31342_v52 = vadd.f32 %v31096_v8, %v30768_v26  ;;  %v32896_v10 = vpop.f32.mrb[14].mxu1  ;;  %v31098_v4 = vpop.f32.mrb[121].mxu0 }
 0xa3f   :  { %v35601_v15 = vadd.f32 %v32896_v10, %v43213_v32  ;;  %v32898_v37 = vpop.f32.mrb[15].mxu1 }
 0xa40   :  { %v33127_v47 = vmax.f32 %v43309_v50, 0.0  ;;  %v35602_v30 = vadd.f32 %v32898_v37, %v43215_v45  ;;  %v33126_v37 = vmax.f32 %v43346_v0, 0.0 }
 0xa41   :  { %v31101_v56 = vpop.f32.mrb[122].mxu0  ;;  %v43334_v14 = vadd.f32 %v35601_v15, %v43264_v39 }
 0xa42   :  { %v36637_v42 = vpack.i.bf16 %v33127_v47, %v33122_v48  ;;  %v43323_v60 = vadd.f32 %v35602_v30, %v43264_v39  ;;  %v31355_v32 = vadd.f32 %v31101_v56, %v30781_v46  ;;  %v32967_v25 = vpop.f32.mrb[16].mxu1  ;;  %v31103_v41 = vpop.f32.mrb[123].mxu0 }
 0xa43   :  { %v35603_v35 = vadd.f32 %v32967_v25, %v43217_v17  ;;  %v32969_v12 = vpop.f32.mrb[17].mxu1 }
 0xa44   :  { %v33140_v61 = vmax.f32 %v43323_v60, 0.0  ;;  %v35604_v45 = vadd.f32 %v32969_v12, %v43219_v18  ;;  %36638 = vrot.lane.b32.xlu0 %v36637_v42, %s37059_s13  ;;  %v33132_v42 = vmax.f32 %v43353_v6, 0.0  ;;  %v33119_v12 = vmax.f32 %v43368_v62, 0.0 }
 0xa45   :  { %v43331_v21 = vadd.f32 %v35603_v35, %v43256_v43  ;;  %v31669_v3 = vpop.f32.mrb[124].mxu0 }
 0xa46   :  { %v36642_v17 = vpack.i.bf16 %v33140_v61, %v33135_v57  ;;  %v43341_v33 = vadd.f32 %v35604_v45, %v43256_v43  ;;  %v31915_v31 = vadd.f32 %v31669_v3, %v31342_v52  ;;  %v32973_v58 = vpop.f32.mrb[18].mxu1  ;;  %v31671_v18 = vpop.f32.mrb[125].mxu0 }
 0xa47   :  { %v33128_v26 = vmax.f32 %v43331_v21, 0.0  ;;  %v35605_v27 = vadd.f32 %v32973_v58, %v43221_v53  ;;  %v32975_v49 = vpop.f32.mrb[19].mxu1  ;;  %v33139_v53 = vmax.f32 %v43334_v14, 0.0 }
 0xa48   :  { %v33129_v11 = vmax.f32 %v43341_v33, 0.0  ;;  %v35606_v46 = vadd.f32 %v32975_v49, %v43223_v59  ;;  %36643 = vrot.lane.b32.xlu1 %v36642_v17, %s37059_s13  ;;  %v43396_v17 = vadd.f32 %v43286_v54, %v43256_v43  ;;  %v43411_v54 = vadd.f32 %v43301_v19, %v43264_v39 }
 0xa49   :  { %v43356_v16 = vadd.f32 %v35605_v27, %v43264_v39  ;;  %v31674_v7 = vpop.f32.mrb[126].mxu0  ;;  %v44506_v27 = vmax.f32 %v43379_v29, 0.0 }
 0xa4a   :  { %v36647_v24 = vpack.i.bf16 %v33129_v11, %v33128_v26  ;;  %v43364_v34 = vadd.f32 %v35606_v46, %v43264_v39  ;;  %v31928_v59 = vadd.f32 %v31674_v7, %v31355_v32  ;;  %v33044_v8 = vpop.f32.mrb[20].mxu1  ;;  %v31676_v52 = vpop.f32.mrb[127].mxu0 }
 0xa4b   :  { %v33141_v10 = vmax.f32 %v43356_v16, 0.0  ;;  %v35607_v4 = vadd.f32 %v33044_v8, %v43225_v63  ;;  %v33046_v15 = vpop.f32.mrb[21].mxu1  ;;  %v36657_v63 = vpack.i.bf16 %v33139_v53, %v33126_v37  ;;  %v33123_v52 = vmax.f32 %v43396_v17, 0.0 }
 0xa4c   :  { %v33142_v30 = vmax.f32 %v43364_v34, 0.0  ;;  %v35608_v56 = vadd.f32 %v33046_v15, %v43227_v9  ;;  %36648 = vrot.lane.b32.xlu1 %v36647_v24, %s37059_s13 }
 0xa4d   :  { %v32242_v32 = vpop.f32.mrb[128].mxu0  ;;  %v43391_v45 = vadd.f32 %v35607_v4, %v43256_v43  ;;  %v43424_v4 = vadd.f32 %v43290_v13, %v43256_v43 }
 0xa4e   :  { %v36652_v25 = vpack.i.bf16 %v33142_v30, %v33141_v10  ;;  %v32488_v9 = vadd.f32 %v32242_v32, %v31915_v31  ;;  %v33050_v41 = vpop.f32.mrb[22].mxu1  ;;  %v32244_v35 = vpop.f32.mrb[129].mxu0  ;;  %v36662_v31 = vpack.i.bf16 %v33132_v42, %v33119_v12  ;;  %v43418_v24 = vadd.f32 %v35608_v56, %v43256_v43 }
 0xa4f   :  { %v35609_v20 = vadd.f32 %v33050_v41, %v43229_v55  ;;  %v33052_v3 = vpop.f32.mrb[23].mxu1  ;;  %v33130_v7 = vmax.f32 %v43391_v45, 0.0  ;;  %v36672_v56 = vpack.i.bf16 %v44506_v27, %v33123_v52  ;;  %v33137_v32 = vmax.f32 %v43411_v54, 0.0 }
 0xa50   :  { %v35610_v58 = vadd.f32 %v33052_v3, %v43231_v1  ;;  %36653 = vrot.lane.b32.xlu0 %v36652_v25, %s37059_s13  ;;  %36658 = vrot.lane.b32.xlu1 %v36657_v63, %s37059_s13  ;;  %v44504_v25 = vmax.f32 %v43418_v24, 0.0  ;;  %v33124_v41 = vmax.f32 %v43424_v4, 0.0 }
 0xa51   :  { %v43406_v18 = vadd.f32 %v35609_v20, %v43264_v39  ;;  %v32247_v55 = vpop.f32.mrb[130].mxu0 }
 0xa52   :  { %v43414_v1 = vadd.f32 %v35610_v58, %v43264_v39  ;;  %v32501_v49 = vadd.f32 %v32247_v55, %v31928_v59  ;;  %v32249_v46 = vpop.f32.mrb[131].mxu0 }
 0xa53   :  { %v33143_v8 = vmax.f32 %v43406_v18, 0.0  ;;  %v44881_v18 = vmax.f32 %v43379_v29, 0.0 }
 0xa54   :  { %36663 = vrot.lane.b32.xlu0 %v36662_v31, %s37059_s13  ;;  %v44505_v59 = vmax.f32 %v43414_v1, 0.0 }
 0xa55   :  { %v36667_v19 = vpack.i.bf16 %v33143_v8, %v33130_v7  ;;  %v32815_v15 = vpop.f32.mrb[132].mxu0 }
 0xa56   :  { %v33061_v63 = vadd.f32 %v32815_v15, %v32488_v9  ;;  %v32817_v13 = vpop.f32.mrb[133].mxu0  ;;  %v36677_v35 = vpack.i.bf16 %v44505_v59, %v44504_v25  ;;  %v36682_v9 = vpack.i.bf16 %v33137_v32, %v33124_v41 }
 0xa57   :  { %36668 = vrot.lane.b32.xlu1 %v36667_v19, %s37059_s13 }
 0xa58   :  { %36673 = vrot.lane.b32.xlu0 %v36672_v56, %s37059_s13  ;;  %v33099_v3 = vadd.f32 %v43256_v43, %v33061_v63 }
 0xa59   :  { %v32820_v20 = vpop.f32.mrb[134].mxu0 }
 0xa5a   :  { %v33074_v58 = vadd.f32 %v32820_v20, %v32501_v49  ;;  %v32822_v31 = vpop.f32.mrb[135].mxu0  ;;  %v33125_v46 = vmax.f32 %v33099_v3, 0.0 }
 0xa5b   :  { %36678 = vrot.lane.b32.xlu1 %v36677_v35, %s37059_s13 }
 0xa5c   :  { %v33112_v55 = vadd.f32 %v43264_v39, %v33074_v58  ;;  %36683 = vrot.lane.b32.xlu0 %v36682_v9, %s37059_s13 }
 0xa5e   :  { %v33138_v19 = vmax.f32 %v33112_v55, 0.0 }
 0xa60   :  { %v43453_v15 = vpack.i.bf16 %v33138_v19, %v33125_v46 }
 0xaa5   :  { %v36629_v56 = vpop.permute.xlu1 %36628 }
 0xaa6   :  { %v36631_v25 = vunpack.i.h.bf16 %v36629_v56  ;;  %v36630_v59 = vunpack.i.l.bf16 %v36629_v56 }
 0xaa8   :  { %v33218_v43 = vsel %vm1500_vm2, %v36630_v59, %v36631_v25 }
 0xaa9   :  { %v36634_v13 = vpop.permute.xlu0 %36633  ;;  %v43464_v20 = vmax.f32 %v33120_v51, %v33218_v43 }
 0xaaa   :  { %v36636_v49 = vunpack.i.h.bf16 %v36634_v13  ;;  %v36635_v63 = vunpack.i.l.bf16 %v36634_v13 }
 0xaac   :  { %v33228_v58 = vsel %vm1500_vm2, %v36635_v63, %v36636_v49 }
 0xab6   :  { %v43455_v27 = vpop.permute.xlu0 %36638 }
 0xab7   :  { %v36640_v35 = vunpack.i.l.bf16 %v43455_v27  ;;  %v36641_v51 = vunpack.i.h.bf16 %v43455_v27 }
 0xab9   :  { %v33219_v39 = vsel %vm1500_vm2, %v36631_v25, %v36640_v35  ;;  %v43476_v25 = vmax.f32 %v33133_v36, %v33228_v58 }
 0xaba   :  { %v43468_v9 = vmax.f32 %v33121_v40, %v33219_v39  ;;  %v36644_v3 = vpop.permute.xlu1 %36643 }
 0xabb   :  { %v36645_v31 = vunpack.i.l.bf16 %v36644_v3  ;;  %v36646_v36 = vunpack.i.h.bf16 %v36644_v3 }
 0xabc   :  { %v36687_v55 = vpack.i.bf16 %v43468_v9, %v43464_v20 }
 0xabd   :  { %v33229_v46 = vsel %vm1500_vm2, %v36636_v49, %v36645_v31 }
 0xabe   :  { %v43480_v44 = vmax.f32 %v33134_v38, %v33229_v46  ;;  %v36649_v23 = vpop.permute.xlu1 %36648  ;;  %36688 = vrot.lane.b32.xlu1 %v36687_v55, %s37067_s12 }
 0xabf   :  { %v36651_v40 = vunpack.i.h.bf16 %v36649_v23  ;;  %v36650_v19 = vunpack.i.l.bf16 %v36649_v23 }
 0xac0   :  { %v36692_v56 = vpack.i.bf16 %v43480_v44, %v43476_v25 }
 0xac1   :  { %v33223_v13 = vsel %vm1500_vm2, %v36641_v51, %v36650_v19  ;;  %v33224_v28 = vsel %vm1500_vm2, %v36650_v19, %v36651_v40 }
 0xac2   :  { %v43490_v22 = vmax.f32 %v33127_v47, %v33223_v13  ;;  %v43494_v38 = vmax.f32 %v33128_v26, %v33224_v28  ;;  %v36659_v43 = vpop.permute.xlu1 %36658  ;;  %v36654_v49 = vpop.permute.xlu0 %36653  ;;  %36693 = vrot.lane.b32.xlu1 %v36692_v56, %s37067_s12 }
 0xac3   :  { %v36661_v39 = vunpack.i.h.bf16 %v36659_v43  ;;  %v36660_v58 = vunpack.i.l.bf16 %v36659_v43  ;;  %v36656_v55 = vunpack.i.h.bf16 %v36654_v49  ;;  %v36655_v46 = vunpack.i.l.bf16 %v36654_v49 }
 0xac4   :  { %v36697_v23 = vpack.i.bf16 %v43494_v38, %v43490_v22 }
 0xac5   :  { %v33222_v3 = vsel %vm1500_vm2, %v36660_v58, %v36641_v51  ;;  %v33232_v50 = vsel %vm1500_vm2, %v36661_v39, %v36646_v36  ;;  %v33233_v47 = vsel %vm1500_vm2, %v36646_v36, %v36655_v46  ;;  %v33234_v21 = vsel %vm1500_vm2, %v36655_v46, %v36656_v55 }
 0xac6   :  { %v43505_v26 = vmax.f32 %v33126_v37, %v33222_v3  ;;  %v43509_v19 = vmax.f32 %v33139_v53, %v33232_v50  ;;  %v43513_v56 = vmax.f32 %v33140_v61, %v33233_v47  ;;  %v43517_v51 = vmax.f32 %v33141_v10, %v33234_v21  ;;  %v36664_v13 = vpop.permute.xlu0 %36663  ;;  %36698 = vrot.lane.b32.xlu0 %v36697_v23, %s37067_s12 }
 0xac7   :  { %v36666_v28 = vunpack.i.h.bf16 %v36664_v13  ;;  %v36665_v36 = vunpack.i.l.bf16 %v36664_v13  ;;  %v44882_v47 = vmax.f32 %v43414_v1, 0.0  ;;  %v44883_v13 = vmax.f32 %v43418_v24, 0.0 }
 0xac8   :  { %v36702_v0 = vpack.i.bf16 %v43517_v51, %v43513_v56  ;;  %v36707_v14 = vpack.i.bf16 %v43509_v19, %v43505_v26 }
 0xac9   :  { %v33217_v53 = vsel %vm1500_vm2, %v36665_v36, %v36630_v59  ;;  %v33227_v60 = vsel %vm1500_vm2, %v36666_v28, %v36635_v63  ;;  %v36669_v61 = vpop.permute.xlu1 %36668 }
 0xaca   :  { %v33257_v16 = vmax.f32 %v33119_v12, %v33217_v53  ;;  %v33267_v10 = vmax.f32 %v33132_v42, %v33227_v60  ;;  %v36671_v37 = vunpack.i.h.bf16 %v36669_v61  ;;  %v36670_v43 = vunpack.i.l.bf16 %v36669_v61  ;;  %v36674_v49 = vpop.permute.xlu0 %36673  ;;  %36703 = vrot.lane.b32.xlu0 %v36702_v0, %s37067_s12  ;;  %36708 = vrot.lane.b32.xlu1 %v36707_v14, %s37067_s12 }
 0xacb   :  { %v36676_v39 = vunpack.i.h.bf16 %v36674_v49  ;;  %v36675_v58 = vunpack.i.l.bf16 %v36674_v49 }
 0xacc   :  { %v33225_v59 = vsel %vm1500_vm2, %v36651_v40, %v36670_v43  ;;  %v33235_v63 = vsel %vm1500_vm2, %v36656_v55, %v36671_v37  ;;  %v36712_v46 = vpack.i.bf16 %v33267_v10, %v33257_v16 }
 0xacd   :  { %v43536_v62 = vmax.f32 %v33129_v11, %v33225_v59  ;;  %v43540_v6 = vmax.f32 %v33142_v30, %v33235_v63  ;;  %v33230_v42 = vsel %vm1500_vm2, %v36645_v31, %v36676_v39  ;;  %v33220_v12 = vsel %vm1500_vm2, %v36640_v35, %v36675_v58  ;;  %v36679_v23 = vpop.permute.xlu1 %36678 }
 0xace   :  { %v43548_v40 = vmax.f32 %v33135_v57, %v33230_v42  ;;  %v43552_v33 = vmax.f32 %v33122_v48, %v33220_v12  ;;  %v36681_v11 = vunpack.i.h.bf16 %v36679_v23  ;;  %v36680_v55 = vunpack.i.l.bf16 %v36679_v23  ;;  %v43554_v34 = vpop.permute.xlu0 %36683  ;;  %36713 = vrot.lane.b32.xlu0 %v36712_v46, %s37067_s12 }
 0xacf   :  { %v36686_v30 = vunpack.i.h.bf16 %v43554_v34  ;;  %v36685_v27 = vunpack.i.l.bf16 %v43554_v34  ;;  %v36717_v35 = vpack.i.bf16 %v43540_v6, %v43536_v62 }
 0xad0   :  { %v33226_v2 = vsel %vm1500_vm2, %v36670_v43, %v36680_v55  ;;  %v33236_v57 = vsel %vm1500_vm2, %v36671_v37, %v36681_v11  ;;  %v36722_v50 = vpack.i.bf16 %v43548_v40, %v43552_v33  ;;  %v33292_v21 = vmax.f32 %v44882_v47, %v36681_v11 }
 0xad1   :  { %v43565_v5 = vmax.f32 %v33130_v7, %v33226_v2  ;;  %v43569_v48 = vmax.f32 %v33143_v8, %v33236_v57  ;;  %v33221_v31 = vsel %vm1500_vm2, %v36675_v58, %v36685_v27  ;;  %v33231_v3 = vsel %vm1500_vm2, %v36676_v39, %v36686_v30  ;;  %36718 = vrot.lane.b32.xlu1 %v36717_v35, %s37067_s12 }
 0xad2   :  { %v43582_v45 = vmax.f32 %v33123_v52, %v33221_v31  ;;  %v43586_v7 = vmax.f32 %v44881_v18, %v33231_v3  ;;  %36723 = vrot.lane.b32.xlu0 %v36722_v50, %s37067_s12  ;;  %v33290_v17 = vmax.f32 %v44883_v13, %v36680_v55 }
 0xad3   :  { %v36732_v8 = vpack.i.bf16 %v43569_v48, %v43565_v5 }
 0xad4   :  { %v36737_v52 = vpack.i.bf16 %v43586_v7, %v43582_v45  ;;  %v36742_v29 = vpack.i.bf16 %v33292_v21, %v33290_v17 }
 0xad5   :  { %36728 = vrot.lane.b32.xlu1 %v43453_v15, %s37059_s13  ;;  %s37083_s13 = smov 112  }
 0xad6   :  { %36733 = vrot.lane.b32.xlu0 %v36732_v8, %s37067_s12 }
 0xad9   :  { %36738 = vrot.lane.b32.xlu1 %v36737_v52, %s37067_s12 }
 0xada   :  { %36743 = vrot.lane.b32.xlu0 %v36742_v29, %s37067_s12 }
 0xb30   :  { %v36689_v28 = vpop.permute.xlu1 %36688 }
 0xb31   :  { %v36690_v14 = vunpack.i.l.bf16 %v36689_v28  ;;  %v36691_v58 = vunpack.i.h.bf16 %v36689_v28 }
 0xb34   :  { %v36694_v1 = vpop.permute.xlu1 %36693 }
 0xb35   :  { %v36695_v24 = vunpack.i.l.bf16 %v36694_v1  ;;  %v36696_v61 = vunpack.i.h.bf16 %v36694_v1 }
 0xb37   :  { %v33376_v46 = vsel %vm7380_vm10, %v36695_v24, %v36696_v61 }
 0xb38   :  { %v43602_v36 = vpop.permute.xlu0 %36698 }
 0xb39   :  { %v36701_v52 = vunpack.i.h.bf16 %v43602_v36 }
 0xb3c   :  { %v43604_v15 = vpop.permute.xlu0 %36703  ;;  %v36709_v23 = vpop.permute.xlu1 %36708 }
 0xb3d   :  { %v36705_v11 = vunpack.i.l.bf16 %v43604_v15  ;;  %v36711_v55 = vunpack.i.h.bf16 %v36709_v23  ;;  %v36710_v35 = vunpack.i.l.bf16 %v36709_v23  ;;  %v36706_v13 = vunpack.i.h.bf16 %v43604_v15 }
 0xb3f   :  { %v33381_v28 = vsel %vm7380_vm10, %v36705_v11, %v36706_v13 }
 0xb40   :  { %v36714_v0 = vpop.permute.xlu0 %36713 }
 0xb41   :  { %v36716_v53 = vunpack.i.h.bf16 %v36714_v0  ;;  %v36715_v60 = vunpack.i.l.bf16 %v36714_v0 }
 0xb43   :  { %v33375_v37 = vsel %vm7380_vm10, %v36716_v53, %v36695_v24  ;;  %v33365_v43 = vsel %vm7380_vm10, %v36715_v60, %v36690_v14  ;;  %v36719_v3 = vpop.permute.xlu1 %36718 }
 0xb44   :  { %v43608_v49 = vmax.f32 %v33267_v10, %v33375_v37  ;;  %v43610_v39 = vmax.f32 %v33257_v16, %v33365_v43  ;;  %v43612_v59 = vpop.permute.xlu0 %36723  ;;  %v33366_v16 = vsel %vm7380_vm10, %v36690_v14, %v36691_v58  ;;  %v43623_v10 = vmax.f32 %v43476_v25, %v33376_v46 }
 0xb45   :  { %v36726_v42 = vunpack.i.h.bf16 %v43612_v59  ;;  %v36725_v12 = vunpack.i.l.bf16 %v43612_v59  ;;  %v43633_v31 = vmax.f32 %v43464_v20, %v33366_v16  ;;  %v36700_v25 = vunpack.i.l.bf16 %v43602_v36 }
 0xb46   :  { %v36752_v63 = vpack.i.bf16 %v43608_v49, %v43610_v39  ;;  %v33380_v20 = vsel %vm7380_vm10, %v36711_v55, %v36705_v11  ;;  %v36721_v15 = vunpack.i.h.bf16 %v36719_v3  ;;  %v36720_v14 = vunpack.i.l.bf16 %v36719_v3 }
 0xb47   :  { %v33377_v2 = vsel %vm7380_vm10, %v36696_v61, %v36726_v42  ;;  %v33367_v57 = vsel %vm7380_vm10, %v36691_v58, %v36725_v12  ;;  %v43646_v8 = vpack.i.bf16 %v43623_v10, %v43633_v31  ;;  %v33370_v47 = vsel %vm7380_vm10, %v36710_v35, %v36700_v25  ;;  %v36729_v17 = vpop.permute.xlu1 %36728 }
 0xb48   :  { %36753 = vrot.lane.b32.xlu0 %v36752_v63, %s37081_s24  ;;  %36748 = vrot.lane.b32.xlu1 %v36752_v63, %s37061_s15  ;;  %v43639_v50 = vmax.f32 %v43480_v44, %v33377_v2  ;;  %v43642_v18 = vmax.f32 %v43468_v9, %v33367_v57  ;;  %v33420_v44 = vmax.f32 %v43509_v19, %v33380_v20  ;;  %v36731_v1 = vunpack.i.h.bf16 %v36729_v17  ;;  %v36734_v4 = vpop.permute.xlu0 %36733  ;;  %v33837_v20 = vld [vmem:[%s44291_s6 + $0x38] sm:$0xff] }
 0xb49   :  { %v33410_v21 = vmax.f32 %v43505_v26, %v33370_v47  ;;  %v36730_v0 = vunpack.i.l.bf16 %v36729_v17  ;;  %v33371_v26 = vsel %vm7380_vm10, %v36700_v25, %v36701_v52  ;;  %v33421_v19 = vmax.f32 %v43513_v56, %v33381_v28  ;;  %v33839_v47 = vld [vmem:[%s44291_s6 + $0x48] sm:$0xff]  ;;  %v33845_v17 = vld [vmem:[%s44291_s6 + $0x78] sm:$0xff] }
 0xb4a   :  { %v36777_v9 = vpack.i.bf16 %v43639_v50, %v43642_v18  ;;  %v33284_v36 = vsel %vm1500_vm2, %v36686_v30, %v36731_v1  ;;  %v33411_v53 = vmax.f32 %v43490_v22, %v33371_v26  ;;  %v33382_v30 = vsel %vm7380_vm10, %v36706_v13, %v36721_v15  ;;  %v34298_v28 = vld [vmem:[%s44292_s8 + $0x8] sm:$0xff]  ;;  %v34300_v26 = vld [vmem:[%s44292_s8 + $0x18] sm:$0xff] }
 0xb4b   :  { %v36787_v29 = vpack.i.bf16 %v33420_v44, %v33410_v21  ;;  %v33283_v24 = vsel %vm1500_vm2, %v36685_v27, %v36730_v0  ;;  %v33291_v56 = vmax.f32 %v33137_v32, %v33284_v36  ;;  %v33372_v34 = vsel %vm7380_vm10, %v36701_v52, %v36720_v14  ;;  %v33841_v44 = vld [vmem:[%s44291_s6 + $0x58] sm:$0xff]  ;;  %v33843_v21 = vld [vmem:[%s44291_s6 + $0x68] sm:$0xff] }
 0xb4c   :  { %36758 = vrot.lane.b32.xlu0 %v36752_v63, %s37082_s3  ;;  %36763 = vrot.lane.b32.xlu1 %v36752_v63, %s37083_s13  ;;  %v33289_v60 = vmax.f32 %v33124_v41, %v33283_v24  ;;  %v36812_v61 = vpack.i.bf16 %v33421_v19, %v33411_v53  ;;  %v33422_v22 = vmax.f32 %v43517_v51, %v33382_v30  ;;  %v36736_v32 = vunpack.i.h.bf16 %v36734_v4  ;;  %v43692_v51 = vpop.permute.xlu1 %36738  ;;  %v34304_v53 = vld [vmem:[%s44292_s8 + $0x38] sm:$0xff] }
 0xb4d   :  { %v33412_v27 = vmax.f32 %v43494_v38, %v33372_v34  ;;  %v36735_v41 = vunpack.i.l.bf16 %v36734_v4  ;;  %v36741_v58 = vunpack.i.h.bf16 %v43692_v51  ;;  %v36740_v63 = vunpack.i.l.bf16 %v43692_v51 }
 0xb4e   :  { %v36822_v37 = vpack.i.bf16 %v33291_v56, %v33289_v60  ;;  %v33383_v38 = vsel %vm7380_vm10, %v36721_v15, %v36736_v32  ;;  %vm33926_vm2 = vcmask 130048  }
 0xb4f   :  { %v36832_v54 = vpack.i.bf16 %v33422_v22, %v33412_v27  ;;  %v33373_v43 = vsel %vm7380_vm10, %v36720_v14, %v36735_v41  ;;  %v33423_v46 = vmax.f32 %v43540_v6, %v33383_v38  ;;  %v33368_v16 = vsel %vm7380_vm10, %v36725_v12, %v36740_v63  ;;  %v33767_v12 = vld [vmem:[%s44290_s5 + $0x8] sm:$0xff] }
 0xb50   :  { %36768 = vrot.lane.b32.xlu0 %v43646_v8, %s37082_s3  ;;  %36773 = vrot.lane.b32.xlu1 %v43646_v8, %s37083_s13  ;;  %v33413_v23 = vmax.f32 %v43536_v62, %v33373_v43  ;;  %v33378_v11 = vsel %vm7380_vm10, %v36726_v42, %v36741_v58  ;;  %v43718_v6 = vmax.f32 %v43552_v33, %v33368_v16  ;;  %v36744_v42 = vpop.permute.xlu0 %36743  ;;  %v34302_v14 = vld [vmem:[%s44292_s8 + $0x28] sm:$0xff] }
 0xb51   :  { %v43721_v62 = vmax.f32 %v43548_v40, %v33378_v11  ;;  %34039 = vmatprep.mubr.f32.mxu0 %v33767_v12  ;;  %v36746_v40 = vunpack.i.h.bf16 %v36744_v42  ;;  %v36745_v33 = vunpack.i.l.bf16 %v36744_v42  ;;  %v34306_v27 = vld [vmem:[%s44292_s8 + $0x48] sm:$0xff]  ;;  %v34308_v42 = vld [vmem:[%s44292_s8 + $0x58] sm:$0xff] }
 0xb52   :  { %v36882_v55 = vpack.i.bf16 %v33423_v46, %v33413_v23 }
 0xb53   :  { %v36892_v59 = vpack.i.bf16 %v43721_v62, %v43718_v6  ;;  %v33374_v35 = vsel %vm7380_vm10, %v36735_v41, %v36745_v33  ;;  %v33384_v2 = vsel %vm7380_vm10, %v36736_v32, %v36746_v40 }
 0xb54   :  { %36778 = vrot.lane.b32.xlu0 %v36777_v9, %s37061_s15  ;;  %36783 = vrot.lane.b32.xlu1 %v36777_v9, %s37081_s24  ;;  %v33414_v57 = vmax.f32 %v43565_v5, %v33374_v35  ;;  %v33424_v25 = vmax.f32 %v43569_v48, %v33384_v2  ;;  %v33831_v5 = vld [vmem:[%s44291_s6 + $0x8] sm:$0xff]  ;;  %v33833_v48 = vld [vmem:[%s44291_s6 + $0x18] sm:$0xff] }
 0xb56   :  { %v36952_v3 = vpack.i.bf16 %v33424_v25, %v33414_v57 }
 0xb58   :  { %36788 = vrot.lane.b32.xlu0 %v36787_v29, %s37084_s0  ;;  %36798 = vrot.lane.b32.xlu1 %v36787_v29, %s37085_s25 }
 0xb5c   :  { %36793 = vrot.lane.b32.xlu0 %v36787_v29, %s37060_s14  ;;  %36803 = vrot.lane.b32.xlu1 %v36787_v29, %s37086_s2 }
 0xb60   :  { %36813 = vrot.lane.b32.xlu0 %v36812_v61, %s37087_s29  ;;  %36808 = vrot.lane.b32.xlu1 %v36812_v61, %s37086_s2 }
 0xb64   :  { %36818 = vrot.lane.b32.xlu0 %v36787_v29, %s37087_s29  ;;  %36823 = vrot.lane.b32.xlu1 %v36822_v37, %s37067_s12 }
 0xb68   :  { %36828 = vrot.lane.b32.xlu0 %v36777_v9, %s37082_s3  ;;  %36833 = vrot.lane.b32.xlu1 %v36832_v54, %s37084_s0 }
 0xb6c   :  { %36843 = vrot.lane.b32.xlu0 %v36832_v54, %s37085_s25  ;;  %36838 = vrot.lane.b32.xlu1 %v36832_v54, %s37060_s14 }
 0xb70   :  { %36848 = vrot.lane.b32.xlu0 %v36812_v61, %s37084_s0  ;;  %36853 = vrot.lane.b32.xlu1 %v36777_v9, %s37083_s13 }
 0xb74   :  { %36868 = vrot.lane.b32.xlu0 %v36832_v54, %s37087_s29  ;;  %36858 = vrot.lane.b32.xlu1 %v36832_v54, %s37086_s2 }
 0xb78   :  { %36873 = vrot.lane.b32.xlu0 %v36812_v61, %s37060_s14  ;;  %36863 = vrot.lane.b32.xlu1 %v43646_v8, %s37061_s15 }
 0xb7c   :  { %36878 = vrot.lane.b32.xlu0 %v43646_v8, %s37081_s24  ;;  %36883 = vrot.lane.b32.xlu1 %v36882_v55, %s37084_s0  ;;  %v33835_v8 = vld [vmem:[%s44291_s6 + $0x28] sm:$0xff] }
 0xb80   :  { %36893 = vrot.lane.b32.xlu0 %v36892_v59, %s37061_s15  ;;  %36888 = vrot.lane.b32.xlu1 %v36812_v61, %s37085_s25 }
 0xb84   :  { %36898 = vrot.lane.b32.xlu0 %v36892_v59, %s37081_s24  ;;  %36913 = vrot.lane.b32.xlu1 %v36882_v55, %s37060_s14 }
 0xb88   :  { %36903 = vrot.lane.b32.xlu0 %v36892_v59, %s37082_s3  ;;  %36918 = vrot.lane.b32.xlu1 %v36882_v55, %s37085_s25 }
 0xb8c   :  { %36908 = vrot.lane.b32.xlu0 %v36892_v59, %s37083_s13  ;;  %36923 = vrot.lane.b32.xlu1 %v36882_v55, %s37086_s2 }
 0xb90   :  { %36953 = vrot.lane.b32.xlu0 %v36952_v3, %s37084_s0  ;;  %36928 = vrot.lane.b32.xlu1 %v36882_v55, %s37087_s29 }
 0xb94   :  { %36958 = vrot.lane.b32.xlu0 %v36952_v3, %s37060_s14 }
 0xb98   :  { %36963 = vrot.lane.b32.xlu0 %v36952_v3, %s37085_s25 }
 0xb9c   :  { %36968 = vrot.lane.b32.xlu0 %v36952_v3, %s37086_s2 }
 0xba0   :  { %36973 = vrot.lane.b32.xlu0 %v36952_v3, %s37087_s29 }
 0xba4   :  { %33853 = vperm.xlu0 %36626, %v33831_v5  }
 0xba8   :  { %33863 = vperm.xlu0 %36626, %v33833_v48  }
 0xbac   :  { %33873 = vperm.xlu0 %36626, %v33835_v8  }
 0xbb0   :  { %33883 = vperm.xlu0 %36626, %v33837_v20  }
 0xbb4   :  { %33893 = vperm.xlu0 %36626, %v33839_v47  }
 0xbb8   :  { %33903 = vperm.xlu0 %36626, %v33841_v44  }
 0xbba   :  { %v43770_v9 = vpop.permute.xlu0 %36753  ;;  %v43772_v13 = vpop.permute.xlu1 %36748 }
 0xbbb   :  { %v36756_v34 = vunpack.i.h.bf16 %v43770_v9  ;;  %v36755_v22 = vunpack.i.l.bf16 %v43770_v9  ;;  %v36750_v57 = vunpack.i.l.bf16 %v43772_v13 }
 0xbbc   :  { %33913 = vperm.xlu0 %36626, %v33843_v21  }
 0xbbe   :  { %v43777_v52 = vpop.permute.xlu0 %36758  ;;  %v43779_v29 = vpop.permute.xlu1 %36763 }
 0xbbf   :  { %v36761_v44 = vunpack.i.h.bf16 %v43777_v52 }
 0xbc0   :  { %33923 = vperm.xlu0 %36626, %v33845_v17   ;;  %v36760_v17 = vunpack.i.l.bf16 %v43777_v52 }
 0xbc2   :  { %v36769_v1 = vpop.permute.xlu0 %36768  ;;  %v36774_v0 = vpop.permute.xlu1 %36773 }
 0xbc3   :  { %v36771_v37 = vunpack.i.h.bf16 %v36769_v1  ;;  %v36770_v54 = vunpack.i.l.bf16 %v36769_v1  ;;  %v36776_v4 = vunpack.i.h.bf16 %v36774_v0  ;;  %v36775_v32 = vunpack.i.l.bf16 %v36774_v0 }
 0xbc4   :  { %34320 = vperm.xlu0 %36626, %v34298_v28   ;;  %v36766_v28 = vunpack.i.h.bf16 %v43779_v29 }
 0xbc6   :  { %v43787_v19 = vpop.permute.xlu0 %36778  ;;  %v43789_v15 = vpop.permute.xlu1 %36783 }
 0xbc8   :  { %34330 = vperm.xlu0 %36626, %v34300_v26   ;;  %v34310_v26 = vld [vmem:[%s44292_s8 + $0x68] sm:$0xff] }
 0xbca   :  { %v36789_v36 = vpop.permute.xlu0 %36788  ;;  %v43794_v24 = vpop.permute.xlu1 %36798 }
 0xbcb   :  { %v36791_v61 = vunpack.i.h.bf16 %v36789_v36  ;;  %v36790_v30 = vunpack.i.l.bf16 %v36789_v36  ;;  %v36800_v8 = vunpack.i.l.bf16 %v43794_v24 }
 0xbcc   :  { %34340 = vperm.xlu0 %36626, %v34302_v14   ;;  %v36781_v14 = vunpack.i.h.bf16 %v43787_v19 }
 0xbcd   :  { %v33435_v11 = vsel %vm33433_vm1, %v43608_v49, %v36791_v61  ;;  %v33434_v55 = vsel %vm33433_vm1, %v43610_v39, %v36790_v30  ;;  %v36751_v49 = vunpack.i.h.bf16 %v43772_v13  ;;  %v36801_v39 = vunpack.i.h.bf16 %v43794_v24 }
 0xbce   :  { %v36794_v56 = vpop.permute.xlu0 %36793  ;;  %v43799_v60 = vpop.permute.xlu1 %36803  ;;  %v35464_v48 = vpack.c.bf16 %v33435_v11, %v33434_v55  ;;  %v36780_v30 = vunpack.i.l.bf16 %v43787_v19  ;;  %v34557_v55 = vld [vmem:[%s44293_s10 + $0x8] sm:$0xff] }
 0xbcf   :  { %v36796_v12 = vunpack.i.h.bf16 %v36794_v56  ;;  %v36795_v59 = vunpack.i.l.bf16 %v36794_v56  ;;  %v33465_v36 = vsel %vm33433_vm1, %v36756_v34, %v36801_v39  ;;  %v36805_v34 = vunpack.i.l.bf16 %v43799_v60 }
 0xbd0   :  { %34350 = vperm.xlu0 %36626, %v34304_v53  }
 0xbd1   :  { %v33450_v21 = vsel %vm33433_vm1, %v36750_v57, %v36795_v59  ;;  %v33451_v9 = vsel %vm33433_vm1, %v36751_v49, %v36796_v12 }
 0xbd2   :  { %v36814_v41 = vpop.permute.xlu0 %36813  ;;  %v36809_v38 = vpop.permute.xlu1 %36808  ;;  %v35468_v53 = vpack.c.bf16 %v33451_v9, %v33450_v21 }
 0xbd3   :  { %v36816_v43 = vunpack.i.h.bf16 %v36814_v41  ;;  %v36815_v46 = vunpack.i.l.bf16 %v36814_v41  ;;  %v36811_v23 = vunpack.i.h.bf16 %v36809_v38  ;;  %v36810_v16 = vunpack.i.l.bf16 %v36809_v38 }
 0xbd4   :  { %34360 = vperm.xlu0 %36626, %v34306_v27   ;;  %v36806_v27 = vunpack.i.h.bf16 %v43799_v60 }
 0xbd5   :  { %v33546_v40 = vsel %vm33433_vm1, %v36770_v54, %v36810_v16  ;;  %v33547_v33 = vsel %vm33433_vm1, %v36771_v37, %v36811_v23  ;;  %v33560_v35 = vsel %vm33433_vm1, %v36775_v32, %v36815_v46  ;;  %v33561_v2 = vsel %vm33433_vm1, %v36776_v4, %v36816_v43 }
 0xbd6   :  { %v43820_v25 = vpop.permute.xlu0 %36818  ;;  %v36824_v3 = vpop.permute.xlu1 %36823  ;;  %v35462_v5 = vpack.c.bf16 %v33547_v33, %v33546_v40  ;;  %v35466_v13 = vpack.c.bf16 %v33561_v2, %v33560_v35  ;;  %v36785_v37 = vunpack.i.l.bf16 %v43789_v15  ;;  %v33479_v11 = vsel %vm33433_vm1, %v36761_v44, %v36806_v27  ;;  %v33830_v27 = vld [vmem:[%s44291_s6] sm:$0xff] }
 0xbd7   :  { %v36826_v20 = vunpack.i.h.bf16 %v36824_v3  ;;  %v36825_v47 = vunpack.i.l.bf16 %v36824_v3  ;;  %v36821_v4 = vunpack.i.h.bf16 %v43820_v25  ;;  %v36820_v32 = vunpack.i.l.bf16 %v43820_v25 }
 0xbd8   :  { %34370 = vperm.xlu0 %36626, %v34308_v42   ;;  %35463 = vmatprep.subr.bf16.mxu0 %v35462_v5 }
 0xbd9   :  { %v33379_v1 = vsel %vm7380_vm10, %v36741_v58, %v36826_v20  ;;  %v33369_v0 = vsel %vm7380_vm10, %v36740_v63, %v36825_v47  ;;  %35465 = vmatpush3.bf16.msra.mxu0 %v35464_v48  ;;  %v33464_v63 = vsel %vm33433_vm1, %v36755_v22, %v36800_v8  ;;  %v34312_v22 = vld [vmem:[%s44292_s8 + $0x78] sm:$0xff]  ;;  %v33493_v33 = vsel %vm33433_vm1, %v36766_v28, %v36821_v4  ;;  %v33832_v4 = vld [vmem:[%s44291_s6 + $0x10] sm:$0xff] }
 0xbda   :  { %v43840_v52 = vmax.f32 %v43586_v7, %v33379_v1  ;;  %v43843_v24 = vmax.f32 %v43582_v45, %v33369_v0  ;;  %v43845_v58 = vpop.permute.xlu0 %36828  ;;  %v36834_v51 = vpop.permute.xlu1 %36833  ;;  %35467 = vmatprep.subr.bf16.mxu0 %v35466_v13  ;;  %v36786_v7 = vunpack.i.h.bf16 %v43789_v15  ;;  %v35472_v54 = vpack.c.bf16 %v33465_v36, %v33464_v63 }
 0xbdb   :  { %v36836_v56 = vunpack.i.h.bf16 %v36834_v51  ;;  %v36835_v61 = vunpack.i.l.bf16 %v36834_v51  ;;  %v36831_v48 = vunpack.i.h.bf16 %v43845_v58  ;;  %v36830_v8 = vunpack.i.l.bf16 %v43845_v58 }
 0xbdc   :  { %34380 = vperm.xlu0 %36626, %v34310_v26   ;;  %v43853_v45 = vpack.i.bf16 %v43840_v52, %v43843_v24 }
 0xbdd   :  { %35469 = vmatpush3.bf16.msra.mxu0 %v35468_v53  ;;  %v33570_v19 = vsel %vm33433_vm1, %v43642_v18, %v36835_v61  ;;  %v33571_v60 = vsel %vm33433_vm1, %v43639_v50, %v36836_v56  ;;  %v36765_v18 = vunpack.i.l.bf16 %v43779_v29  ;;  %v33478_v50 = vsel %vm33433_vm1, %v36760_v17, %v36805_v34 }
 0xbde   :  { %v36844_v41 = vpop.permute.xlu0 %36843  ;;  %v36839_v38 = vpop.permute.xlu1 %36838  ;;  %36933 = vrot.lane.b32.xlu1 %v43853_v45, %s37061_s15  ;;  %v35470_v15 = vpack.c.bf16 %v33571_v60, %v33570_v19  ;;  %v35476_v57 = vpack.c.bf16 %v33479_v11, %v33478_v50  ;;  %v33834_v11 = vld [vmem:[%s44291_s6 + $0x20] sm:$0xff] }
 0xbdf   :  { %v36846_v43 = vunpack.i.h.bf16 %v36844_v41  ;;  %v36845_v46 = vunpack.i.l.bf16 %v36844_v41  ;;  %v36841_v23 = vunpack.i.h.bf16 %v36839_v38  ;;  %v36840_v16 = vunpack.i.l.bf16 %v36839_v38 }
 0xbe0   :  { %34390 = vperm.xlu0 %36626, %v34312_v22   ;;  %35471 = vmatprep.subr.bf16.mxu0 %v35470_v15  ;;  %v33492_v29 = vsel %vm33433_vm1, %v36765_v18, %v36820_v32 }
 0xbe1   :  { %35473 = vmatpush3.bf16.msra.mxu0 %v35472_v54  ;;  %v33586_v12 = vsel %vm33433_vm1, %v36780_v30, %v36840_v16  ;;  %v33587_v59 = vsel %vm33433_vm1, %v36781_v14, %v36841_v23  ;;  %v33600_v42 = vsel %vm33433_vm1, %v36785_v37, %v36845_v46  ;;  %v33601_v40 = vsel %vm33433_vm1, %v36786_v7, %v36846_v43 }
 0xbe2   :  { %v36849_v35 = vpop.permute.xlu0 %36848  ;;  %v36854_v2 = vpop.permute.xlu1 %36853  ;;  %36938 = vrot.lane.b32.xlu1 %v43853_v45, %s37081_s24  ;;  %v35474_v49 = vpack.c.bf16 %v33587_v59, %v33586_v12  ;;  %v35478_v3 = vpack.c.bf16 %v33601_v40, %v33600_v42  ;;  %v35480_v5 = vpack.c.bf16 %v33493_v33, %v33492_v29  ;;  %v33836_v33 = vld [vmem:[%s44291_s6 + $0x30] sm:$0xff] }
 0xbe3   :  { %v36851_v39 = vunpack.i.h.bf16 %v36849_v35  ;;  %v36850_v25 = vunpack.i.l.bf16 %v36849_v35  ;;  %v36856_v44 = vunpack.i.h.bf16 %v36854_v2  ;;  %v36855_v21 = vunpack.i.l.bf16 %v36854_v2  ;;  %v33766_v35 = vld [vmem:[%s44290_s5] sm:$0xff] }
 0xbe4   :  { %34565 = vperm.xlu0 %36626, %v34557_v55   ;;  %35475 = vmatprep.subr.bf16.mxu0 %v35474_v49 }
 0xbe5   :  { %35477 = vmatpush3.bf16.msra.mxu0 %v35476_v57  ;;  %v33503_v20 = vsel %vm33433_vm1, %v43623_v10, %v36851_v39  ;;  %v33502_v47 = vsel %vm33433_vm1, %v43633_v31, %v36850_v25  ;;  %v37088_v57 = vmov 0.0|0.0   ;;  %v33771_v39 = vld [vmem:[%s44290_s5 + $0x28] sm:$0xff] }
 0xbe6   :  { %v36869_v9 = vpop.permute.xlu0 %36868  ;;  %v36859_v13 = vpop.permute.xlu1 %36858  ;;  %36943 = vrot.lane.b32.xlu1 %v43853_v45, %s37082_s3  ;;  %35479 = vmatprep.subr.bf16.mxu0 %v35478_v3  ;;  %v35484_v36 = vpack.c.bf16 %v33503_v20, %v33502_v47 }
 0xbe7   :  { %v36871_v17 = vunpack.i.h.bf16 %v36869_v9  ;;  %v36870_v28 = vunpack.i.l.bf16 %v36869_v9  ;;  %v36861_v1 = vunpack.i.h.bf16 %v36859_v13  ;;  %v36860_v0 = vunpack.i.l.bf16 %v36859_v13 }
 0xbe9   :  { %35481 = vmatpush3.bf16.msra.mxu0 %v35480_v5  ;;  %v33614_v26 = vsel %vm33433_vm1, %v36830_v8, %v36860_v0  ;;  %v33615_v10 = vsel %vm33433_vm1, %v36831_v48, %v36861_v1  ;;  %v33628_v14 = vsel %vm33433_vm1, %v36855_v21, %v36870_v28  ;;  %v33629_v31 = vsel %vm33433_vm1, %v36856_v44, %v36871_v17  ;;  %v33838_v44 = vld [vmem:[%s44291_s6 + $0x40] sm:$0xff]  ;;  %v33775_v17 = vld [vmem:[%s44290_s5 + $0x48] sm:$0xff] }
 0xbea   :  { %v36874_v58 = vpop.permute.xlu0 %36873  ;;  %v36864_v51 = vpop.permute.xlu1 %36863  ;;  %36948 = vrot.lane.b32.xlu1 %v43853_v45, %s37083_s13  ;;  %v35482_v63 = vpack.c.bf16 %v33615_v10, %v33614_v26  ;;  %v35486_v34 = vpack.c.bf16 %v33629_v31, %v33628_v14  ;;  %v33770_v21 = vld [vmem:[%s44290_s5 + $0x20] sm:$0xff] }
 0xbeb   :  { %v36876_v53 = vunpack.i.h.bf16 %v36874_v58  ;;  %v36875_v56 = vunpack.i.l.bf16 %v36874_v58  ;;  %v36866_v61 = vunpack.i.h.bf16 %v36864_v51  ;;  %v36865_v30 = vunpack.i.l.bf16 %v36864_v51  ;;  %v33774_v58 = vld [vmem:[%s44290_s5 + $0x40] sm:$0xff] }
 0xbec   :  { %35483 = vmatprep.subr.bf16.mxu0 %v35482_v63 }
 0xbed   :  { %v33519_v7 = vsel %vm33433_vm1, %v36866_v61, %v36876_v53  ;;  %v33518_v37 = vsel %vm33433_vm1, %v36865_v30, %v36875_v56  ;;  %35485 = vmatpush3.bf16.msra.mxu0 %v35484_v36  ;;  %v33840_v36 = vld [vmem:[%s44291_s6 + $0x50] sm:$0xff]  ;;  %v33779_v53 = vld [vmem:[%s44290_s5 + $0x68] sm:$0xff] }
 0xbee   :  { %v35488_v22 = vpack.c.bf16 %v33519_v7, %v33518_v37  ;;  %v36879_v19 = vpop.permute.xlu0 %36878  ;;  %v36884_v60 = vpop.permute.xlu1 %36883  ;;  %33848 = vperm.xlu1 %36625, %v33830_v27   ;;  %35487 = vmatprep.subr.bf16.mxu0 %v35486_v34 }
 0xbef   :  { %v36886_v45 = vunpack.i.h.bf16 %v36884_v60  ;;  %v36885_v54 = vunpack.i.l.bf16 %v36884_v60  ;;  %v36881_v46 = vunpack.i.h.bf16 %v36879_v19  ;;  %v36880_v23 = vunpack.i.l.bf16 %v36879_v19  ;;  %v33842_v60 = vld [vmem:[%s44291_s6 + $0x60] sm:$0xff] }
 0xbf1   :  { %35489 = vmatpush3.bf16.msra.mxu0 %v35488_v22  ;;  %v33638_v32 = vsel %vm33433_vm1, %v43718_v6, %v36885_v54  ;;  %v33639_v41 = vsel %vm33433_vm1, %v43721_v62, %v36886_v45  ;;  %v33778_v45 = vld [vmem:[%s44290_s5 + $0x60] sm:$0xff] }
 0xbf2   :  { %v36894_v38 = vpop.permute.xlu0 %36893  ;;  %v36889_v15 = vpop.permute.xlu1 %36888  ;;  %33858 = vperm.xlu1 %36625, %v33832_v4   ;;  %v35490_v43 = vpack.c.bf16 %v33639_v41, %v33638_v32  ;;  %v33783_v32 = vld [vmem:[%s44290_s5 + $0x88] sm:$0xff] }
 0xbf3   :  { %v36891_v16 = vunpack.i.h.bf16 %v36889_v15  ;;  %v36890_v18 = vunpack.i.l.bf16 %v36889_v15  ;;  %v36896_v59 = vunpack.i.h.bf16 %v36894_v38  ;;  %v36895_v42 = vunpack.i.l.bf16 %v36894_v38 }
 0xbf4   :  { %35491 = vmatprep.subr.bf16.mxu0 %v35490_v43  ;;  %v33844_v43 = vld [vmem:[%s44291_s6 + $0x70] sm:$0xff] }
 0xbf5   :  { %v33533_v50 = vsel %vm33433_vm1, %v36881_v46, %v36891_v16  ;;  %v33532_v6 = vsel %vm33433_vm1, %v36880_v23, %v36890_v18  ;;  %v33782_v46 = vld [vmem:[%s44290_s5 + $0x80] sm:$0xff]  ;;  %v33791_v18 = vld [vmem:[%s44290_s5 + $0xc8] sm:$0xff] }
 0xbf6   :  { %v35492_v55 = vpack.c.bf16 %v33533_v50, %v33532_v6  ;;  %v36899_v12 = vpop.permute.xlu0 %36898  ;;  %v36914_v62 = vpop.permute.xlu1 %36913  ;;  %33868 = vperm.xlu1 %36625, %v33834_v11   ;;  %v33786_v16 = vld [vmem:[%s44290_s5 + $0xa0] sm:$0xff]  ;;  %v34299_v11 = vld [vmem:[%s44292_s8 + $0x10] sm:$0xff]  ;;  %v33795_v6 = vld [vmem:[%s44290_s5 + $0xe8] sm:$0xff] }
 0xbf7   :  { %v36916_v40 = vunpack.i.h.bf16 %v36914_v62  ;;  %v36915_v29 = vunpack.i.l.bf16 %v36914_v62  ;;  %v36901_v48 = vunpack.i.h.bf16 %v36899_v12  ;;  %v36900_v8 = vunpack.i.l.bf16 %v36899_v12  ;;  %v33790_v50 = vld [vmem:[%s44290_s5 + $0xc0] sm:$0xff]  ;;  %v33799_v62 = vld [vmem:[%s44290_s5 + $0x108] sm:$0xff] }
 0xbf8   :  { %35493 = vmatpush3.bf16.msra.mxu0 %v35492_v55  ;;  %v34301_v55 = vld [vmem:[%s44292_s8 + $0x20] sm:$0xff] }
 0xbf9   :  { %v33655_v2 = vsel %vm33433_vm1, %v36896_v59, %v36916_v40  ;;  %v33654_v49 = vsel %vm33433_vm1, %v36895_v42, %v36915_v29  ;;  %35494 = vmatprep.subr.bf16.mxu0 %v37088_v57  ;;  %v33794_v12 = vld [vmem:[%s44290_s5 + $0xe0] sm:$0xff]  ;;  %v34303_v59 = vld [vmem:[%s44292_s8 + $0x30] sm:$0xff]  ;;  %v33803_v40 = vld [vmem:[%s44290_s5 + $0x128] sm:$0xff] }
 0xbfa   :  { %v35495_v25 = vpack.c.bf16 %v33655_v2, %v33654_v49  ;;  %v36904_v3 = vpop.permute.xlu0 %36903  ;;  %v36919_v5 = vpop.permute.xlu1 %36918  ;;  %33878 = vperm.xlu1 %36625, %v33836_v33   ;;  %v33798_v42 = vld [vmem:[%s44290_s5 + $0x100] sm:$0xff]  ;;  %v34307_v2 = vld [vmem:[%s44292_s8 + $0x50] sm:$0xff] }
 0xbfb   :  { %v36921_v20 = vunpack.i.h.bf16 %v36919_v5  ;;  %v36920_v47 = vunpack.i.l.bf16 %v36919_v5  ;;  %34040 = vmatmul.mubr.f32.vlgmr.msra.gmra.mrb[136].mxu0 %v33766_v35  ;;  %v36906_v26 = vunpack.i.h.bf16 %v36904_v3  ;;  %v36905_v10 = vunpack.i.l.bf16 %v36904_v3  ;;  %v34305_v29 = vld [vmem:[%s44292_s8 + $0x40] sm:$0xff]  ;;  %v33807_v35 = vld [vmem:[%s44290_s5 + $0x148] sm:$0xff] }
 0xbfc   :  { %35496 = vmatpush1.bf16.msra.mxu0 %v35495_v25  ;;  %34044 = vmatprep.mubr.f32.mxu0 %v33771_v39  ;;  %v33802_v33 = vld [vmem:[%s44290_s5 + $0x120] sm:$0xff]  ;;  %v33811_v39 = vld [vmem:[%s44290_s5 + $0x168] sm:$0xff] }
 0xbfd   :  { %v33669_v9 = vsel %vm33433_vm1, %v36901_v48, %v36921_v20  ;;  %v33668_v13 = vsel %vm33433_vm1, %v36900_v8, %v36920_v47  ;;  %35497 = vmatprep.subr.bf16.mxu0 %v37088_v57  ;;  %v33806_v49 = vld [vmem:[%s44290_s5 + $0x140] sm:$0xff]  ;;  %v33815_v5 = vld [vmem:[%s44290_s5 + $0x188] sm:$0xff]  ;;  %v34311_v48 = vld [vmem:[%s44292_s8 + $0x70] sm:$0xff] }
 0xbfe   :  { %v35498_v28 = vpack.c.bf16 %v33669_v9, %v33668_v13  ;;  %v36909_v1 = vpop.permute.xlu0 %36908  ;;  %v36924_v0 = vpop.permute.xlu1 %36923  ;;  %33888 = vperm.xlu1 %36625, %v33838_v44   ;;  %v34309_v25 = vld [vmem:[%s44292_s8 + $0x60] sm:$0xff]  ;;  %v33819_v20 = vld [vmem:[%s44290_s5 + $0x1a8] sm:$0xff] }
 0xbff   :  { %v36926_v14 = vunpack.i.h.bf16 %v36924_v0  ;;  %v36925_v31 = vunpack.i.l.bf16 %v36924_v0  ;;  %34045 = vmatmul.mubr.f32.gmra.mrb[138].mxu0 %v33770_v21  ;;  %v36911_v56 = vunpack.i.h.bf16 %v36909_v1  ;;  %v36910_v61 = vunpack.i.l.bf16 %v36909_v1  ;;  %v33810_v3 = vld [vmem:[%s44290_s5 + $0x160] sm:$0xff]  ;;  %v33823_v21 = vld [vmem:[%s44290_s5 + $0x1c8] sm:$0xff] }
 0xc00   :  { %35499 = vmatpush1.bf16.msra.mxu0 %v35498_v28  ;;  %34049 = vmatprep.mubr.f32.mxu0 %v33775_v17  ;;  %v33814_v8 = vld [vmem:[%s44290_s5 + $0x180] sm:$0xff]  ;;  %v33827_v13 = vld [vmem:[%s44290_s5 + $0x1e8] sm:$0xff]  ;;  %v33769_v28 = vld [vmem:[%s44290_s5 + $0x18] sm:$0xff] }
 0xc01   :  { %v33683_v51 = vsel %vm33433_vm1, %v36906_v26, %v36926_v14  ;;  %v33682_v63 = vsel %vm33433_vm1, %v36905_v10, %v36925_v31  ;;  %35500 = vmatprep.subr.bf16.mxu0 %v37088_v57  ;;  %v34556_v47 = vld [vmem:[%s44293_s10] sm:$0xff] }
 0xc02   :  { %v35501_v30 = vpack.c.bf16 %v33683_v51, %v33682_v63  ;;  %v36954_v27 = vpop.permute.xlu0 %36953  ;;  %v36929_v34 = vpop.permute.xlu1 %36928  ;;  %33898 = vperm.xlu1 %36625, %v33840_v36   ;;  %v33818_v44 = vld [vmem:[%s44290_s5 + $0x1a0] sm:$0xff] }
 0xc03   :  { %v36956_v7 = vunpack.i.h.bf16 %v36954_v27  ;;  %v36955_v37 = vunpack.i.l.bf16 %v36954_v27  ;;  %v36931_v22 = vunpack.i.h.bf16 %v36929_v34  ;;  %v36930_v19 = vunpack.i.l.bf16 %v36929_v34  ;;  %34050 = vmatmul.mubr.f32.gmra.mrb[140].mxu0 %v33774_v58  ;;  %v33822_v9 = vld [vmem:[%s44290_s5 + $0x1c0] sm:$0xff] }
 0xc04   :  { %35502 = vmatpush1.bf16.msra.mxu0 %v35501_v30  ;;  %34054 = vmatprep.mubr.f32.mxu0 %v33779_v53  ;;  %v33826_v17 = vld [vmem:[%s44290_s5 + $0x1e0] sm:$0xff] }
 0xc05   :  { %v33697_v54 = vsel %vm33433_vm1, %v36911_v56, %v36931_v22  ;;  %v33696_v4 = vsel %vm33433_vm1, %v36910_v61, %v36930_v19  ;;  %35503 = vmatprep.subr.bf16.mxu0 %v37088_v57  ;;  %v33706_v38 = vsel %vm33433_vm1, %v43843_v24, %v36955_v37  ;;  %v33707_v15 = vsel %vm33433_vm1, %v43840_v52, %v36956_v7  ;;  %v33787_v24 = vld [vmem:[%s44290_s5 + $0xa8] sm:$0xff]  ;;  %v34297_v52 = vld [vmem:[%s44292_s8] sm:$0xff] }
 0xc06   :  { %v35504_v41 = vpack.c.bf16 %v33697_v54, %v33696_v4  ;;  %33908 = vperm.xlu1 %36625, %v33842_v60   ;;  %v35507_v23 = vpack.c.bf16 %v33707_v15, %v33706_v38  ;;  %v36959_v1 = vpop.permute.xlu0 %36958 }
 0xc07   :  { %34055 = vmatmul.mubr.f32.gmra.mrb[142].mxu0 %v33778_v45  ;;  %v36961_v10 = vunpack.i.h.bf16 %v36959_v1  ;;  %v36960_v14 = vunpack.i.l.bf16 %v36959_v1  ;;  %v33824_v1 = vld [vmem:[%s44290_s5 + $0x1d0] sm:$0xff] }
 0xc08   :  { %35505 = vmatpush1.bf16.msra.mxu0 %v35504_v41  ;;  %34059 = vmatprep.mubr.f32.mxu0 %v33783_v32 }
 0xc09   :  { %35506 = vmatprep.subr.bf16.mxu0 %v37088_v57 }
 0xc0a   :  { %33918 = vperm.xlu1 %36625, %v33844_v43   ;;  %v36964_v0 = vpop.permute.xlu0 %36963 }
 0xc0b   :  { %34060 = vmatmul.mubr.f32.gmra.mrb[144].mxu0 %v33782_v46  ;;  %v36966_v61 = vunpack.i.h.bf16 %v36964_v0  ;;  %v36965_v30 = vunpack.i.l.bf16 %v36964_v0  ;;  %v33829_v0 = vld [vmem:[%s44290_s5 + $0x1f8] sm:$0xff] }
 0xc0c   :  { %35508 = vmatpush1.bf16.msra.mxu0 %v35507_v23  ;;  %34064 = vmatprep.mubr.f32.mxu0 %v33787_v24 }
 0xc0d   :  { %35509 = vmatprep.subr.bf16.mxu0 %v37088_v57 }
 0xc0e   :  { %34315 = vperm.xlu1 %36625, %v34297_v52   ;;  %v36969_v63 = vpop.permute.xlu0 %36968 }
 0xc0f   :  { %34065 = vmatmul.mubr.f32.gmra.mrb[146].mxu0 %v33786_v16  ;;  %v36971_v60 = vunpack.i.h.bf16 %v36969_v63  ;;  %v36970_v45 = vunpack.i.l.bf16 %v36969_v63 }
 0xc10   :  { %34069 = vmatprep.mubr.f32.mxu0 %v33791_v18 }
 0xc12   :  { %34325 = vperm.xlu1 %36625, %v34299_v11   ;;  %v36974_v32 = vpop.permute.xlu0 %36973 }
 0xc13   :  { %34070 = vmatmul.mubr.f32.gmra.mrb[148].mxu0 %v33790_v50  ;;  %v36976_v46 = vunpack.i.h.bf16 %v36974_v32  ;;  %v36975_v24 = vunpack.i.l.bf16 %v36974_v32  ;;  %v33768_v50 = vld [vmem:[%s44290_s5 + $0x10] sm:$0xff] }
 0xc14   :  { %34074 = vmatprep.mubr.f32.mxu0 %v33795_v6  ;;  %v33773_v6 = vld [vmem:[%s44290_s5 + $0x38] sm:$0xff] }
 0xc16   :  { %34335 = vperm.xlu1 %36625, %v34301_v55   ;;  %v33772_v55 = vld [vmem:[%s44290_s5 + $0x30] sm:$0xff] }
 0xc17   :  { %34075 = vmatmul.mubr.f32.gmra.mrb[150].mxu0 %v33794_v12  ;;  %v33776_v12 = vld [vmem:[%s44290_s5 + $0x50] sm:$0xff] }
 0xc18   :  { %34079 = vmatprep.mubr.f32.mxu0 %v33799_v62  ;;  %v33781_v62 = vld [vmem:[%s44290_s5 + $0x78] sm:$0xff] }
 0xc1a   :  { %34345 = vperm.xlu1 %36625, %v34303_v59   ;;  %v33780_v59 = vld [vmem:[%s44290_s5 + $0x70] sm:$0xff] }
 0xc1b   :  { %34080 = vmatmul.mubr.f32.gmra.mrb[152].mxu0 %v33798_v42  ;;  %v33785_v42 = vld [vmem:[%s44290_s5 + $0x98] sm:$0xff] }
 0xc1c   :  { %34084 = vmatprep.mubr.f32.mxu0 %v33803_v40  ;;  %v33784_v40 = vld [vmem:[%s44290_s5 + $0x90] sm:$0xff] }
 0xc1e   :  { %34355 = vperm.xlu1 %36625, %v34305_v29   ;;  %v33789_v29 = vld [vmem:[%s44290_s5 + $0xb8] sm:$0xff] }
 0xc1f   :  { %34085 = vmatmul.mubr.f32.gmra.mrb[154].mxu0 %v33802_v33  ;;  %v33788_v33 = vld [vmem:[%s44290_s5 + $0xb0] sm:$0xff] }
 0xc20   :  { %34089 = vmatprep.mubr.f32.mxu0 %v33807_v35  ;;  %v33793_v35 = vld [vmem:[%s44290_s5 + $0xd8] sm:$0xff] }
 0xc22   :  { %34365 = vperm.xlu1 %36625, %v34307_v2   ;;  %v33792_v2 = vld [vmem:[%s44290_s5 + $0xd0] sm:$0xff] }
 0xc23   :  { %34090 = vmatmul.mubr.f32.gmra.mrb[156].mxu0 %v33806_v49  ;;  %v33797_v49 = vld [vmem:[%s44290_s5 + $0xf8] sm:$0xff] }
 0xc24   :  { %34094 = vmatprep.mubr.f32.mxu0 %v33811_v39  ;;  %v33796_v39 = vld [vmem:[%s44290_s5 + $0xf0] sm:$0xff] }
 0xc26   :  { %34375 = vperm.xlu1 %36625, %v34309_v25   ;;  %v33801_v25 = vld [vmem:[%s44290_s5 + $0x118] sm:$0xff] }
 0xc27   :  { %34095 = vmatmul.mubr.f32.gmra.mrb[158].mxu0 %v33810_v3  ;;  %v33800_v3 = vld [vmem:[%s44290_s5 + $0x110] sm:$0xff] }
 0xc28   :  { %34099 = vmatprep.mubr.f32.mxu0 %v33815_v5  ;;  %v33805_v5 = vld [vmem:[%s44290_s5 + $0x138] sm:$0xff] }
 0xc2a   :  { %34385 = vperm.xlu1 %36625, %v34311_v48   ;;  %v33804_v48 = vld [vmem:[%s44290_s5 + $0x130] sm:$0xff] }
 0xc2b   :  { %34100 = vmatmul.mubr.f32.gmra.mrb[160].mxu0 %v33814_v8  ;;  %v33809_v8 = vld [vmem:[%s44290_s5 + $0x158] sm:$0xff] }
 0xc2c   :  { %34104 = vmatprep.mubr.f32.mxu0 %v33819_v20  ;;  %v33808_v20 = vld [vmem:[%s44290_s5 + $0x150] sm:$0xff] }
 0xc2e   :  { %34560 = vperm.xlu1 %36625, %v34556_v47   ;;  %v33813_v47 = vld [vmem:[%s44290_s5 + $0x178] sm:$0xff] }
 0xc2f   :  { %34105 = vmatmul.mubr.f32.gmra.mrb[162].mxu0 %v33818_v44  ;;  %v33812_v44 = vld [vmem:[%s44290_s5 + $0x170] sm:$0xff] }
 0xc30   :  { %34109 = vmatprep.mubr.f32.mxu0 %v33823_v21  ;;  %v33817_v21 = vld [vmem:[%s44290_s5 + $0x198] sm:$0xff] }
 0xc33   :  { %34110 = vmatmul.mubr.f32.gmra.mrb[164].mxu0 %v33822_v9  ;;  %v33816_v9 = vld [vmem:[%s44290_s5 + $0x190] sm:$0xff] }
 0xc34   :  { %34114 = vmatprep.mubr.f32.mxu0 %v33827_v13  ;;  %v33821_v13 = vld [vmem:[%s44290_s5 + $0x1b8] sm:$0xff] }
 0xc37   :  { %34115 = vmatmul.mubr.f32.gmra.mrb[166].mxu0 %v33826_v17  ;;  %v33820_v17 = vld [vmem:[%s44290_s5 + $0x1b0] sm:$0xff] }
 0xc38   :  { %35225 = vmatprep.mubr.msk.f32.mxu0 %vm33926_vm2, %v33769_v28  ;;  %v33825_v28 = vld [vmem:[%s44290_s5 + $0x1d8] sm:$0xff] }
 0xc50   :  { %v36934_v26 = vpop.permute.xlu1 %36933 }
 0xc51   :  { %v36936_v31 = vunpack.i.h.bf16 %v36934_v26  ;;  %v36935_v36 = vunpack.i.l.bf16 %v36934_v26  ;;  %v33828_v26 = vld [vmem:[%s44290_s5 + $0x1f0] sm:$0xff] }
 0xc53   :  { %v33723_v58 = vsel %vm33433_vm1, %v36936_v31, %v36961_v10  ;;  %v33722_v51 = vsel %vm33433_vm1, %v36935_v36, %v36960_v14 }
 0xc54   :  { %v35510_v53 = vpack.c.bf16 %v33723_v58, %v33722_v51  ;;  %v36939_v56 = vpop.permute.xlu1 %36938 }
 0xc55   :  { %v36941_v27 = vunpack.i.h.bf16 %v36939_v56  ;;  %v36940_v34 = vunpack.i.l.bf16 %v36939_v56 }
 0xc56   :  { %35511 = vmatpush1.bf16.msra.mxu0 %v35510_v53 }
 0xc57   :  { %v33737_v7 = vsel %vm33433_vm1, %v36941_v27, %v36966_v61  ;;  %v33736_v37 = vsel %vm33433_vm1, %v36940_v34, %v36965_v30  ;;  %35512 = vmatprep.subr.bf16.mxu0 %v37088_v57 }
 0xc58   :  { %v35513_v22 = vpack.c.bf16 %v33737_v7, %v33736_v37  ;;  %v36944_v19 = vpop.permute.xlu1 %36943 }
 0xc59   :  { %v36946_v54 = vunpack.i.h.bf16 %v36944_v19  ;;  %v36945_v4 = vunpack.i.l.bf16 %v36944_v19 }
 0xc5a   :  { %35514 = vmatpush1.bf16.msra.mxu0 %v35513_v22 }
 0xc5b   :  { %v33751_v41 = vsel %vm33433_vm1, %v36946_v54, %v36971_v60  ;;  %v33750_v38 = vsel %vm33433_vm1, %v36945_v4, %v36970_v45  ;;  %35515 = vmatprep.subr.bf16.mxu0 %v37088_v57 }
 0xc5c   :  { %v35516_v15 = vpack.c.bf16 %v33751_v41, %v33750_v38  ;;  %v36949_v43 = vpop.permute.xlu1 %36948 }
 0xc5d   :  { %v36951_v23 = vunpack.i.h.bf16 %v36949_v43  ;;  %v36950_v52 = vunpack.i.l.bf16 %v36949_v43 }
 0xc5e   :  { %35517 = vmatpush1.bf16.msra.mxu0 %v35516_v15 }
 0xc5f   :  { %v33765_v16 = vsel %vm33433_vm1, %v36951_v23, %v36976_v46  ;;  %v33764_v18 = vsel %vm33433_vm1, %v36950_v52, %v36975_v24  ;;  %35518 = vmatprep.subr.bf16.mxu0 %v37088_v57  ;;  %v33777_v57 = vld [vmem:[%s44290_s5 + $0x58] sm:$0xff] }
 0xc60   :  { %v35519_v11 = vpack.c.bf16 %v33765_v16, %v33764_v18 }
 0xc62   :  { %35520 = vmatpush1.bf16.msra.mxu0 %v35519_v11 }
 0xc65   :  { %34185 = vmatmul.mubr.f32.vlgmr.msra.gmra.mrb[168].mxu0 %v33768_v50 }
 0xc66   :  { %35226 = vmatprep.mubr.msk.f32.mxu0 %vm33926_vm2, %v33773_v6 }
 0xc69   :  { %34190 = vmatmul.mubr.f32.gmra.mrb[170].mxu0 %v33772_v55 }
 0xc6a   :  { %35227 = vmatprep.mubr.msk.f32.mxu0 %vm33926_vm2, %v33777_v57  ;;  %v34281_v57 = vld [vmem:[%s44294_s7] sm:$0xff] }
 0xc6d   :  { %34195 = vmatmul.mubr.f32.gmra.mrb[172].mxu0 %v33776_v12 }
 0xc6e   :  { %35228 = vmatprep.mubr.msk.f32.mxu0 %vm33926_vm2, %v33781_v62 }
 0xc71   :  { %34200 = vmatmul.mubr.f32.gmra.mrb[174].mxu0 %v33780_v59 }
 0xc72   :  { %35229 = vmatprep.mubr.msk.f32.mxu0 %vm33926_vm2, %v33785_v42 }
 0xc75   :  { %34205 = vmatmul.mubr.f32.gmra.mrb[176].mxu0 %v33784_v40 }
 0xc76   :  { %35230 = vmatprep.mubr.msk.f32.mxu0 %vm33926_vm2, %v33789_v29 }
 0xc79   :  { %34210 = vmatmul.mubr.f32.gmra.mrb[178].mxu0 %v33788_v33 }
 0xc7a   :  { %35231 = vmatprep.mubr.msk.f32.mxu0 %vm33926_vm2, %v33793_v35 }
 0xc7d   :  { %34215 = vmatmul.mubr.f32.gmra.mrb[180].mxu0 %v33792_v2 }
 0xc7e   :  { %35232 = vmatprep.mubr.msk.f32.mxu0 %vm33926_vm2, %v33797_v49 }
 0xc81   :  { %34220 = vmatmul.mubr.f32.gmra.mrb[182].mxu0 %v33796_v39 }
 0xc82   :  { %35233 = vmatprep.mubr.msk.f32.mxu0 %vm33926_vm2, %v33801_v25 }
 0xc85   :  { %34225 = vmatmul.mubr.f32.gmra.mrb[184].mxu0 %v33800_v3  ;;  %v33849_v3 = vpop.permute.xlu1 %33848 }
 0xc86   :  { %35234 = vmatprep.mubr.msk.f32.mxu0 %vm33926_vm2, %v33805_v5 }
 0xc89   :  { %34230 = vmatmul.mubr.f32.gmra.mrb[186].mxu0 %v33804_v48 }
 0xc8a   :  { %35235 = vmatprep.mubr.msk.f32.mxu0 %vm33926_vm2, %v33809_v8 }
 0xc8d   :  { %34235 = vmatmul.mubr.f32.gmra.mrb[188].mxu0 %v33808_v20 }
 0xc8e   :  { %35236 = vmatprep.mubr.msk.f32.mxu0 %vm33926_vm2, %v33813_v47  ;;  %v33854_v47 = vpop.permute.xlu0 %33853 }
 0xc91   :  { %34240 = vmatmul.mubr.f32.gmra.mrb[190].mxu0 %v33812_v44 }
 0xc92   :  { %35237 = vmatprep.mubr.msk.f32.mxu0 %vm33926_vm2, %v33817_v21 }
 0xc95   :  { %34245 = vmatmul.mubr.f32.gmra.mrb[192].mxu0 %v33816_v9 }
 0xc96   :  { %35238 = vmatprep.mubr.msk.f32.mxu0 %vm33926_vm2, %v33821_v13 }
 0xc99   :  { %34250 = vmatmul.mubr.f32.gmra.mrb[194].mxu0 %v33820_v17  ;;  %v33859_v17 = vpop.permute.xlu1 %33858 }
 0xc9a   :  { %35239 = vmatprep.mubr.msk.f32.mxu0 %vm33926_vm2, %v33825_v28 }
 0xc9d   :  { %34255 = vmatmul.mubr.f32.gmra.mrb[196].mxu0 %v33824_v1 }
 0xc9e   :  { %35240 = vmatprep.mubr.msk.f32.mxu0 %vm33926_vm2, %v33829_v0 }
 0xca1   :  { %34260 = vmatmul.mubr.f32.gmra.mrb[198].mxu0 %v33828_v26 }
 0xca2   :  { %35403 = vmatprep.mubr.f32.mxu0 %v34281_v57 }
 0xcce   :  { %v35273_v10 = vpop.f32.mrb[136].mxu0 }
 0xccf   :  { %v35274_v14 = vpop.f32.mrb[137].mxu0 }
 0xcd0   :  { %v35275_v31 = vadd.f32 %v35274_v14, %v35273_v10 }
 0xcd2   :  { %v35276_v36 = vpop.f32.mrb[138].mxu0  ;;  %v34042_v5 = vadd.f32 %v35275_v31, %v33849_v3 }
 0xcd3   :  { %v35277_v58 = vpop.f32.mrb[139].mxu0 }
 0xcd4   :  { %v35278_v51 = vadd.f32 %v35277_v58, %v35276_v36  ;;  %v33864_v58 = vpop.permute.xlu0 %33863 }
 0xcd6   :  { %v35279_v63 = vpop.f32.mrb[140].mxu0  ;;  %v34047_v44 = vadd.f32 %v35278_v51, %v33854_v47 }
 0xcd7   :  { %v35280_v53 = vpop.f32.mrb[141].mxu0 }
 0xcd8   :  { %v35281_v56 = vadd.f32 %v35280_v53, %v35279_v63 }
 0xcda   :  { %v35282_v61 = vpop.f32.mrb[142].mxu0  ;;  %v34052_v0 = vadd.f32 %v35281_v56, %v33859_v17 }
 0xcdb   :  { %v35283_v30 = vpop.f32.mrb[143].mxu0 }
 0xcdc   :  { %v35284_v27 = vadd.f32 %v35283_v30, %v35282_v61  ;;  %v33869_v30 = vpop.permute.xlu1 %33868 }
 0xcde   :  { %v35285_v34 = vpop.f32.mrb[144].mxu0  ;;  %v34057_v63 = vadd.f32 %v35284_v27, %v33864_v58 }
 0xcdf   :  { %v35286_v7 = vpop.f32.mrb[145].mxu0 }
 0xce0   :  { %v44189_v37 = vadd.f32 %v35286_v7, %v35285_v34 }
 0xce2   :  { %v35288_v22 = vpop.f32.mrb[146].mxu0  ;;  %v34062_v7 = vadd.f32 %v44189_v37, %v33869_v30 }
 0xce3   :  { %v35289_v19 = vpop.f32.mrb[147].mxu0 }
 0xce4   :  { %v44191_v60 = vadd.f32 %v35289_v19, %v35288_v22 }
 0xce6   :  { %v35291_v45 = vpop.f32.mrb[148].mxu0 }
 0xce7   :  { %v35292_v54 = vpop.f32.mrb[149].mxu0 }
 0xce8   :  { %v44193_v4 = vadd.f32 %v35292_v54, %v35291_v45  ;;  %v33874_v54 = vpop.permute.xlu0 %33873 }
 0xcea   :  { %v35294_v32 = vpop.f32.mrb[150].mxu0 }
 0xceb   :  { %v35295_v41 = vpop.f32.mrb[151].mxu0 }
 0xcec   :  { %v44195_v38 = vadd.f32 %v35295_v41, %v35294_v32  ;;  %v34067_v32 = vadd.f32 %v44191_v60, %v33874_v54  ;;  %v33884_v57 = vpop.permute.xlu0 %33883 }
 0xcee   :  { %v35297_v15 = vpop.f32.mrb[152].mxu0 }
 0xcef   :  { %v35298_v43 = vpop.f32.mrb[153].mxu0 }
 0xcf0   :  { %v44197_v46 = vadd.f32 %v35298_v43, %v35297_v15  ;;  %v33879_v43 = vpop.permute.xlu1 %33878 }
 0xcf2   :  { %v35300_v24 = vpop.f32.mrb[154].mxu0 }
 0xcf3   :  { %v35301_v23 = vpop.f32.mrb[155].mxu0 }
 0xcf4   :  { %v44199_v52 = vadd.f32 %v35301_v23, %v35300_v24 }
 0xcf6   :  { %v35303_v16 = vpop.f32.mrb[156].mxu0 }
 0xcf7   :  { %v35304_v18 = vpop.f32.mrb[157].mxu0 }
 0xcf8   :  { %v44201_v11 = vadd.f32 %v35304_v18, %v35303_v16  ;;  %v34072_v16 = vadd.f32 %v44193_v4, %v33879_v43 }
 0xcfa   :  { %v35306_v50 = vpop.f32.mrb[158].mxu0 }
 0xcfb   :  { %v35307_v6 = vpop.f32.mrb[159].mxu0 }
 0xcfc   :  { %v44203_v55 = vadd.f32 %v35307_v6, %v35306_v50 }
 0xcfe   :  { %v35309_v12 = vpop.f32.mrb[160].mxu0 }
 0xcff   :  { %v35310_v62 = vpop.f32.mrb[161].mxu0 }
 0xd00   :  { %v44208_v59 = vadd.f32 %v35310_v62, %v35309_v12  ;;  %v34077_v12 = vadd.f32 %v44195_v38, %v33884_v57  ;;  %v34286_v57 = vld [vmem:[%s44294_s7 + $0x28] sm:$0xff] }
 0xd02   :  { %v35312_v42 = vpop.f32.mrb[162].mxu0 }
 0xd03   :  { %v35313_v40 = vpop.f32.mrb[163].mxu0 }
 0xd04   :  { %v44210_v29 = vadd.f32 %v35313_v40, %v35312_v42  ;;  %v33889_v40 = vpop.permute.xlu1 %33888 }
 0xd06   :  { %v35315_v33 = vpop.f32.mrb[164].mxu0 }
 0xd07   :  { %v35316_v35 = vpop.f32.mrb[165].mxu0 }
 0xd08   :  { %v44212_v2 = vadd.f32 %v35316_v35, %v35315_v33 }
 0xd0a   :  { %v35318_v49 = vpop.f32.mrb[166].mxu0 }
 0xd0b   :  { %v35319_v39 = vpop.f32.mrb[167].mxu0 }
 0xd0c   :  { %v44214_v25 = vadd.f32 %v35319_v39, %v35318_v49  ;;  %v34082_v49 = vadd.f32 %v44197_v46, %v33889_v40  ;;  %v34291_v40 = vld [vmem:[%s44294_s7 + $0x50] sm:$0xff] }
 0xd38   :  { %v34186_v48 = vpop.f32.mrb[168].mxu0 }
 0xd39   :  { %v34187_v8 = vadd.f32 %v34186_v48, %v34042_v5  ;;  %v34188_v20 = vpop.f32.mrb[169].mxu0  ;;  %v33894_v48 = vpop.permute.xlu0 %33893 }
 0xd3b   :  { %v34265_v28 = vmax.f32 %v34187_v8, 0.0  ;;  %v34087_v8 = vadd.f32 %v44199_v52, %v33894_v48 }
 0xd3c   :  { %v34191_v21 = vpop.f32.mrb[170].mxu0 }
 0xd3d   :  { %v34192_v9 = vadd.f32 %v34191_v21, %v34047_v44  ;;  %v34193_v13 = vpop.f32.mrb[171].mxu0  ;;  %v33899_v44 = vpop.permute.xlu1 %33898 }
 0xd3e   :  { %v34092_v13 = vadd.f32 %v44201_v11, %v33899_v44 }
 0xd3f   :  { %v34266_v1 = vmax.f32 %v34192_v9, 0.0 }
 0xd40   :  { %v34196_v26 = vpop.f32.mrb[172].mxu0 }
 0xd41   :  { %v35521_v10 = vpack.c.bf16 %v34266_v1, %v34265_v28  ;;  %v34197_v14 = vadd.f32 %v34196_v26, %v34052_v0  ;;  %v34198_v36 = vpop.f32.mrb[173].mxu0  ;;  %v33904_v0 = vpop.permute.xlu0 %33903 }
 0xd42   :  { %v34097_v26 = vadd.f32 %v44203_v55, %v33904_v0  ;;  %v33909_v36 = vpop.permute.xlu1 %33908 }
 0xd43   :  { %35522 = vmatprep.subr.bf16.mxu0 %v35521_v10  ;;  %v34267_v51 = vmax.f32 %v34197_v14, 0.0 }
 0xd44   :  { %v34201_v31 = vpop.f32.mrb[174].mxu0  ;;  %35524 = vmatpush3.bf16.msra.mxu0 %v35521_v10 }
 0xd45   :  { %v34202_v53 = vadd.f32 %v34201_v31, %v34057_v63  ;;  %v34203_v61 = vpop.f32.mrb[175].mxu0  ;;  %v34102_v31 = vadd.f32 %v44208_v59, %v33909_v36 }
 0xd47   :  { %v34268_v34 = vmax.f32 %v34202_v53, 0.0 }
 0xd48   :  { %v34206_v22 = vpop.f32.mrb[176].mxu0 }
 0xd49   :  { %v35525_v19 = vpack.c.bf16 %v34268_v34, %v34267_v51  ;;  %v34207_v45 = vadd.f32 %v34206_v22, %v34062_v7  ;;  %v34208_v56 = vpop.f32.mrb[177].mxu0  ;;  %v33914_v51 = vpop.permute.xlu0 %33913 }
 0xd4a   :  { %v34107_v34 = vadd.f32 %v44210_v29, %v33914_v51 }
 0xd4b   :  { %35526 = vmatprep.subr.bf16.mxu0 %v35525_v19  ;;  %v34269_v24 = vmax.f32 %v34207_v45, 0.0 }
 0xd4c   :  { %v34211_v41 = vpop.f32.mrb[178].mxu0  ;;  %35528 = vmatpush3.bf16.msra.mxu0 %v35525_v19  ;;  %v33919_v19 = vpop.permute.xlu1 %33918 }
 0xd4d   :  { %v34212_v27 = vadd.f32 %v34211_v41, %v34067_v32  ;;  %v34213_v15 = vpop.f32.mrb[179].mxu0  ;;  %v34112_v54 = vadd.f32 %v44212_v2, %v33919_v19  ;;  %v34282_v2 = vld [vmem:[%s44294_s7 + $0x8] sm:$0xff] }
 0xd4e   :  { %v33924_v15 = vpop.permute.xlu0 %33923 }
 0xd4f   :  { %v34270_v23 = vmax.f32 %v34212_v27, 0.0  ;;  %v34117_v43 = vadd.f32 %v44214_v25, %v33924_v15  ;;  %v34284_v25 = vld [vmem:[%s44294_s7 + $0x18] sm:$0xff] }
 0xd50   :  { %v34216_v18 = vpop.f32.mrb[180].mxu0  ;;  %v34316_v48 = vpop.permute.xlu1 %34315 }
 0xd51   :  { %v35529_v50 = vpack.c.bf16 %v34270_v23, %v34269_v24  ;;  %v34217_v37 = vadd.f32 %v34216_v18, %v34072_v16  ;;  %v34218_v6 = vpop.f32.mrb[181].mxu0 }
 0xd52   :  { %v34285_v6 = vld [vmem:[%s44294_s7 + $0x20] sm:$0xff] }
 0xd53   :  { %35530 = vmatprep.subr.bf16.mxu0 %v35529_v50  ;;  %v34271_v33 = vmax.f32 %v34217_v37, 0.0  ;;  %v34283_v37 = vld [vmem:[%s44294_s7 + $0x10] sm:$0xff] }
 0xd54   :  { %v34221_v62 = vpop.f32.mrb[182].mxu0  ;;  %35532 = vmatpush3.bf16.msra.mxu0 %v35529_v50 }
 0xd55   :  { %v34222_v60 = vadd.f32 %v34221_v62, %v34077_v12  ;;  %v34223_v42 = vpop.f32.mrb[183].mxu0  ;;  %v34287_v12 = vld [vmem:[%s44294_s7 + $0x30] sm:$0xff]  ;;  %v34288_v62 = vld [vmem:[%s44294_s7 + $0x38] sm:$0xff] }
 0xd56   :  { %v34290_v42 = vld [vmem:[%s44294_s7 + $0x48] sm:$0xff] }
 0xd57   :  { %v34272_v35 = vmax.f32 %v34222_v60, 0.0  ;;  %v34289_v60 = vld [vmem:[%s44294_s7 + $0x40] sm:$0xff] }
 0xd58   :  { %v34226_v39 = vpop.f32.mrb[184].mxu0 }
 0xd59   :  { %v35533_v3 = vpack.c.bf16 %v34272_v35, %v34271_v33  ;;  %v34227_v4 = vadd.f32 %v34226_v39, %v34082_v49  ;;  %v34228_v5 = vpop.f32.mrb[185].mxu0  ;;  %v34292_v33 = vld [vmem:[%s44294_s7 + $0x58] sm:$0xff]  ;;  %v34293_v35 = vld [vmem:[%s44294_s7 + $0x60] sm:$0xff]  ;;  %v34294_v49 = vld [vmem:[%s44294_s7 + $0x68] sm:$0xff] }
 0xd5a   :  { %v34295_v39 = vld [vmem:[%s44294_s7 + $0x70] sm:$0xff]  ;;  %v34321_v5 = vpop.permute.xlu0 %34320 }
 0xd5b   :  { %35534 = vmatprep.subr.bf16.mxu0 %v35533_v3  ;;  %v34273_v21 = vmax.f32 %v34227_v4, 0.0  ;;  %v34554_v4 = vld [vmem:[%s44295_s9] sm:$0xff] }
 0xd5c   :  { %v34231_v20 = vpop.f32.mrb[186].mxu0  ;;  %35536 = vmatpush3.bf16.msra.mxu0 %v35533_v3  ;;  %v34296_v3 = vld [vmem:[%s44294_s7 + $0x78] sm:$0xff] }
 0xd5d   :  { %v34232_v38 = vadd.f32 %v34231_v20, %v34087_v8  ;;  %v34233_v47 = vpop.f32.mrb[187].mxu0  ;;  %v34326_v20 = vpop.permute.xlu1 %34325 }
 0xd5e   :  { %v34331_v8 = vpop.permute.xlu0 %34330 }
 0xd5f   :  { %v34274_v9 = vmax.f32 %v34232_v38, 0.0 }
 0xd60   :  { %v34236_v17 = vpop.f32.mrb[188].mxu0 }
 0xd61   :  { %v35537_v28 = vpack.c.bf16 %v34274_v9, %v34273_v21  ;;  %v34237_v46 = vadd.f32 %v34236_v17, %v34092_v13  ;;  %v34238_v1 = vpop.f32.mrb[189].mxu0  ;;  %v34336_v47 = vpop.permute.xlu1 %34335 }
 0xd62   :  { %v34341_v38 = vpop.permute.xlu0 %34340 }
 0xd63   :  { %35538 = vmatprep.subr.bf16.mxu0 %v35537_v28  ;;  %v34275_v58 = vmax.f32 %v34237_v46, 0.0 }
 0xd64   :  { %v34241_v10 = vpop.f32.mrb[190].mxu0  ;;  %35540 = vmatpush3.bf16.msra.mxu0 %v35537_v28 }
 0xd65   :  { %v34242_v52 = vadd.f32 %v34241_v10, %v34097_v26  ;;  %v34243_v14 = vpop.f32.mrb[191].mxu0  ;;  %v34346_v0 = vpop.permute.xlu1 %34345 }
 0xd66   :  { %v34351_v28 = vpop.permute.xlu0 %34350 }
 0xd67   :  { %v34276_v63 = vmax.f32 %v34242_v52, 0.0 }
 0xd68   :  { %v34246_v53 = vpop.f32.mrb[192].mxu0 }
 0xd69   :  { %v35541_v61 = vpack.c.bf16 %v34276_v63, %v34275_v58  ;;  %v34247_v11 = vadd.f32 %v34246_v53, %v34102_v31  ;;  %v34248_v30 = vpop.f32.mrb[193].mxu0  ;;  %v34356_v51 = vpop.permute.xlu1 %34355 }
 0xd6b   :  { %35542 = vmatprep.subr.bf16.mxu0 %v35541_v61  ;;  %v34277_v45 = vmax.f32 %v34247_v11, 0.0 }
 0xd6c   :  { %v34251_v7 = vpop.f32.mrb[194].mxu0  ;;  %35544 = vmatpush3.bf16.msra.mxu0 %v35541_v61  ;;  %v34361_v61 = vpop.permute.xlu0 %34360 }
 0xd6d   :  { %v34252_v55 = vadd.f32 %v34251_v7, %v34107_v34  ;;  %v34253_v22 = vpop.f32.mrb[195].mxu0 }
 0xd6f   :  { %v34278_v56 = vmax.f32 %v34252_v55, 0.0 }
 0xd70   :  { %v34256_v32 = vpop.f32.mrb[196].mxu0 }
 0xd71   :  { %v35545_v41 = vpack.c.bf16 %v34278_v56, %v34277_v45  ;;  %v34257_v59 = vadd.f32 %v34256_v32, %v34112_v54  ;;  %v34258_v27 = vpop.f32.mrb[197].mxu0  ;;  %v34371_v32 = vpop.permute.xlu0 %34370 }
 0xd72   :  { %v34366_v27 = vpop.permute.xlu1 %34365 }
 0xd73   :  { %35546 = vmatprep.subr.bf16.mxu0 %v35545_v41  ;;  %v34279_v16 = vmax.f32 %v34257_v59, 0.0 }
 0xd74   :  { %v34261_v24 = vpop.f32.mrb[198].mxu0  ;;  %35548 = vmatpush3.bf16.msra.mxu0 %v35545_v41 }
 0xd75   :  { %v34262_v29 = vadd.f32 %v34261_v24, %v34117_v43  ;;  %v34263_v23 = vpop.f32.mrb[199].mxu0 }
 0xd77   :  { %v34280_v18 = vmax.f32 %v34262_v29, 0.0 }
 0xd79   :  { %v35549_v50 = vpack.c.bf16 %v34280_v18, %v34279_v16 }
 0xd7b   :  { %35550 = vmatprep.subr.bf16.mxu0 %v35549_v50 }
 0xd7c   :  { %35552 = vmatpush3.bf16.msra.mxu0 %v35549_v50 }
 0xd7f   :  { %35404 = vmatmul.mubr.f32.vlgmr.msra.gmra.mrb[200].mxu0 %v34282_v2 }
 0xd80   :  { %35406 = vmatprep.mubr.f32.mxu0 %v34283_v37  ;;  %v34381_v37 = vpop.permute.xlu0 %34380 }
 0xd83   :  { %35407 = vmatmul.mubr.f32.gmra.mrb[202].mxu0 %v34284_v25 }
 0xd84   :  { %35409 = vmatprep.mubr.f32.mxu0 %v34285_v6 }
 0xd87   :  { %35410 = vmatmul.mubr.f32.gmra.mrb[204].mxu0 %v34286_v57  ;;  %v34376_v57 = vpop.permute.xlu1 %34375 }
 0xd88   :  { %35412 = vmatprep.mubr.f32.mxu0 %v34287_v12 }
 0xd8b   :  { %35413 = vmatmul.mubr.f32.gmra.mrb[206].mxu0 %v34288_v62 }
 0xd8c   :  { %35415 = vmatprep.mubr.f32.mxu0 %v34289_v60 }
 0xd8f   :  { %35416 = vmatmul.mubr.f32.gmra.mrb[208].mxu0 %v34290_v42 }
 0xd90   :  { %35418 = vmatprep.mubr.f32.mxu0 %v34291_v40 }
 0xd93   :  { %35419 = vmatmul.mubr.f32.gmra.mrb[210].mxu0 %v34292_v33 }
 0xd94   :  { %35421 = vmatprep.mubr.f32.mxu0 %v34293_v35 }
 0xd97   :  { %35422 = vmatmul.mubr.f32.gmra.mrb[212].mxu0 %v34294_v49 }
 0xd98   :  { %35424 = vmatprep.mubr.f32.mxu0 %v34295_v39  ;;  %v34391_v39 = vpop.permute.xlu0 %34390 }
 0xd9b   :  { %35425 = vmatmul.mubr.f32.gmra.mrb[214].mxu0 %v34296_v3 }
 0xd9c   :  { %35459 = vmatprep.mubr.f32.mxu0 %v34554_v4 }
 0xe52   :  { %v35405_v44 = vpop.f32.mrb[200].mxu0 }
 0xe53   :  { %v34465_v21 = vadd.f32 %v35405_v44, %v34321_v5  ;;  %v34459_v9 = vpop.f32.mrb[201].mxu0  ;;  %v34386_v5 = vpop.permute.xlu1 %34385 }
 0xe54   :  { %v34460_v13 = vadd.f32 %v34459_v9, %v34316_v48  ;;  %v34555_v9 = vld [vmem:[%s44295_s9 + $0x8] sm:$0xff] }
 0xe55   :  { %v34539_v17 = vmax.f32 %v34465_v21, 0.0 }
 0xe56   :  { %v34538_v46 = vmax.f32 %v34460_v13, 0.0  ;;  %v35408_v1 = vpop.f32.mrb[202].mxu0  ;;  %v34566_v13 = vpop.permute.xlu0 %34565 }
 0xe57   :  { %v34475_v26 = vadd.f32 %v35408_v1, %v34331_v8  ;;  %v34469_v10 = vpop.f32.mrb[203].mxu0 }
 0xe58   :  { %v35553_v52 = vpack.c.bf16 %v34539_v17, %v34538_v46  ;;  %v34470_v14 = vadd.f32 %v34469_v10, %v34326_v20 }
 0xe59   :  { %v34541_v36 = vmax.f32 %v34475_v26, 0.0 }
 0xe5a   :  { %v34540_v58 = vmax.f32 %v34470_v14, 0.0  ;;  %v35411_v63 = vpop.f32.mrb[204].mxu0  ;;  %35554 = vmatprep.subr.bf16.mxu0 %v35553_v52 }
 0xe5b   :  { %v34485_v31 = vadd.f32 %v35411_v63, %v34341_v38  ;;  %v34479_v53 = vpop.f32.mrb[205].mxu0  ;;  %35556 = vmatpush3.bf16.msra.mxu0 %v35553_v52 }
 0xe5c   :  { %v35557_v11 = vpack.c.bf16 %v34541_v36, %v34540_v58  ;;  %v34480_v30 = vadd.f32 %v34479_v53, %v34336_v47 }
 0xe5d   :  { %v34543_v34 = vmax.f32 %v34485_v31, 0.0 }
 0xe5e   :  { %v34542_v7 = vmax.f32 %v34480_v30, 0.0  ;;  %v35414_v55 = vpop.f32.mrb[206].mxu0  ;;  %35558 = vmatprep.subr.bf16.mxu0 %v35557_v11 }
 0xe5f   :  { %v34495_v22 = vadd.f32 %v35414_v55, %v34351_v28  ;;  %v34489_v19 = vpop.f32.mrb[207].mxu0  ;;  %35560 = vmatpush3.bf16.msra.mxu0 %v35557_v11  ;;  %v34561_v28 = vpop.permute.xlu1 %34560 }
 0xe60   :  { %v35561_v45 = vpack.c.bf16 %v34543_v34, %v34542_v7  ;;  %v34490_v56 = vadd.f32 %v34489_v19, %v34346_v0 }
 0xe61   :  { %v34545_v54 = vmax.f32 %v34495_v22, 0.0 }
 0xe62   :  { %v34544_v41 = vmax.f32 %v34490_v56, 0.0  ;;  %v35417_v59 = vpop.f32.mrb[208].mxu0  ;;  %35562 = vmatprep.subr.bf16.mxu0 %v35561_v45 }
 0xe63   :  { %v34505_v15 = vadd.f32 %v35417_v59, %v34361_v61  ;;  %v34499_v43 = vpop.f32.mrb[209].mxu0  ;;  %35564 = vmatpush3.bf16.msra.mxu0 %v35561_v45 }
 0xe64   :  { %v35565_v24 = vpack.c.bf16 %v34545_v54, %v34544_v41  ;;  %v34500_v29 = vadd.f32 %v34499_v43, %v34356_v51 }
 0xe65   :  { %v34547_v23 = vmax.f32 %v34505_v15, 0.0 }
 0xe66   :  { %v34546_v16 = vmax.f32 %v34500_v29, 0.0  ;;  %v35420_v18 = vpop.f32.mrb[210].mxu0  ;;  %35566 = vmatprep.subr.bf16.mxu0 %v35565_v24 }
 0xe67   :  { %v34515_v50 = vadd.f32 %v35420_v18, %v34371_v32  ;;  %v34509_v2 = vpop.f32.mrb[211].mxu0  ;;  %35568 = vmatpush3.bf16.msra.mxu0 %v35565_v24 }
 0xe68   :  { %v35569_v25 = vpack.c.bf16 %v34547_v23, %v34546_v16  ;;  %v34510_v6 = vadd.f32 %v34509_v2, %v34366_v27 }
 0xe69   :  { %v34549_v12 = vmax.f32 %v34515_v50, 0.0 }
 0xe6a   :  { %v34548_v62 = vmax.f32 %v34510_v6, 0.0  ;;  %v35423_v60 = vpop.f32.mrb[212].mxu0  ;;  %35570 = vmatprep.subr.bf16.mxu0 %v35569_v25 }
 0xe6b   :  { %v34525_v42 = vadd.f32 %v35423_v60, %v34381_v37  ;;  %v34519_v40 = vpop.f32.mrb[213].mxu0  ;;  %35572 = vmatpush3.bf16.msra.mxu0 %v35569_v25 }
 0xe6c   :  { %v35573_v33 = vpack.c.bf16 %v34549_v12, %v34548_v62  ;;  %v34520_v35 = vadd.f32 %v34519_v40, %v34376_v57 }
 0xe6d   :  { %v34551_v49 = vmax.f32 %v34525_v42, 0.0 }
 0xe6e   :  { %v34550_v3 = vmax.f32 %v34520_v35, 0.0  ;;  %v35426_v4 = vpop.f32.mrb[214].mxu0  ;;  %35574 = vmatprep.subr.bf16.mxu0 %v35573_v33 }
 0xe6f   :  { %v34535_v48 = vadd.f32 %v35426_v4, %v34391_v39  ;;  %v34529_v8 = vpop.f32.mrb[215].mxu0  ;;  %35576 = vmatpush3.bf16.msra.mxu0 %v35573_v33 }
 0xe70   :  { %v35577_v20 = vpack.c.bf16 %v34551_v49, %v34550_v3  ;;  %v34530_v38 = vadd.f32 %v34529_v8, %v34386_v5 }
 0xe71   :  { %v34553_v47 = vmax.f32 %v34535_v48, 0.0 }
 0xe72   :  { %v34552_v44 = vmax.f32 %v34530_v38, 0.0  ;;  %35578 = vmatprep.subr.bf16.mxu0 %v35577_v20 }
 0xe73   :  { %35580 = vmatpush3.bf16.msra.mxu0 %v35577_v20 }
 0xe74   :  { %v35581_v21 = vpack.c.bf16 %v34553_v47, %v34552_v44 }
 0xe76   :  { %35582 = vmatprep.subr.bf16.mxu0 %v35581_v21 }
 0xe77   :  { %35584 = vmatpush3.bf16.msra.mxu0 %v35581_v21 }
 0xe7a   :  { %35460 = vmatmul.mubr.f32.vlgmr.msra.gmra.mrb[216].mxu0 %v34555_v9 }
 0xf4d   :  { %v35461_v17 = vpop.f32.mrb[216].mxu0 }
 0xf4e   :  { %v34640_v46 = vadd.f32 %v35461_v17, %v34566_v13  ;;  %v34634_v1 = vpop.f32.mrb[217].mxu0 }
 0xf4f   :  { %v34635_v0 = vadd.f32 %v34634_v1, %v34561_v28 }
 0xf50   :  { %34645 = vst.msk [vmem:[%s44296_s11 + $0x8] sm:$0xff] %vm34643_vm4, %v34640_v46 }
 0xf51   :  { %34644 = vst.msk [vmem:[%s44296_s11] sm:$0xff] %vm34643_vm4, %v34635_v0 }

</bundles_post_ra>
